<compile_context>
chip_gen: v5e
topology: v5e:2x2
jax: 0.10.0
libtpu: 0.0.40
codegen_flags: <defaults>
</compile_context>

<pallas_src>
import jax
import jax.numpy as jnp
from jax.experimental import pallas as pl
from jax.experimental.pallas import tpu as pltpu

# ----- model dims (small synthetic sizes) -----
C_IN = 3       # RGB image channels
C_MID = 32     # backbone hidden channels
C_FEAT = 64    # stand-in for the 2048-d InceptionV3 feature map
C_ATTN = 16    # stand-in for the 512-d attention bottleneck
OUT_SIZE = 32  # args.output_size
MAX_BT = 16    # per-step batch fold cap (VMEM-safe on v7x's 64 MiB VMEM)


def _use_bf16_exp() -> bool:
    """bf16 EUP exp is ~2x on v6e/v7x; v5e and older lack bf16 VPU/EUP."""
    try:
        kind = jax.devices()[0].device_kind.lower()
        return ("v6" in kind) or ("v7" in kind)
    except Exception:
        return False


_USE_BF16_EXP = _use_bf16_exp()


# ------------------------------------------------------------------ kernel

def make_kernel(bt, n, bf16_exp):
    """One grid step = Bt images of one branch, activations in (C, Bt*N)."""

    def kernel(bid_ref,                               # scalar prefetch (index_maps only)
               x_ref,
               bw1_ref, bb1_ref, bw2_ref, bb2_ref,
               aw1_ref, ab1_ref, aw2_ref, ab2_ref,
               lw_ref, lb_ref,
               o_ref):
        del bid_ref
        x = x_ref[0]                                   # (C_IN, Bt*N) f32
        w1 = bw1_ref[0]                                # (C_MID, C_IN) f32

        # ---- backbone conv1: K=3 contraction -> VPU broadcast MACs ----
        h = w1[:, 0:1] * x[0:1, :]
        for c in range(1, C_IN):
            h = h + w1[:, c:c + 1] * x[c:c + 1, :]
        h = jnp.maximum(h + bb1_ref[0], 0.0)           # (C_MID, L)

        # ---- backbone conv2 (MXU, bf16 in / f32 acc) ----
        f = jnp.dot(bw2_ref[0], h.astype(jnp.bfloat16),
                    preferred_element_type=jnp.float32)
        f = jnp.maximum(f + bb2_ref[0], 0.0)           # (C_FEAT, L)

        # ---- SelfAttention: conv -> ReLU -> conv ----
        a1 = jnp.dot(aw1_ref[0], f.astype(jnp.bfloat16),
                     preferred_element_type=jnp.float32)
        a1 = jnp.maximum(a1 + ab1_ref[0], 0.0)         # (C_ATTN, L)
        a = jnp.dot(aw2_ref[0], a1.astype(jnp.bfloat16),
                    preferred_element_type=jnp.float32) + ab2_ref[0]   # (C_FEAT, L)

        # ---- per-image softmax over ALL channel*spatial (attn.view(B, -1)) ----
        a3 = a.reshape(C_FEAT, bt, n)
        f3 = f.reshape(C_FEAT, bt, n)
        m = jnp.max(jnp.max(a3, axis=2, keepdims=True), axis=0, keepdims=True)  # (1,bt,1)
        d = a3 - m
        if bf16_exp:
            e = jnp.exp(d.astype(jnp.bfloat16)).astype(jnp.float32)
        else:
            e = jnp.exp(d)
        s = jnp.sum(jnp.sum(e, axis=2, keepdims=True), axis=0, keepdims=True)   # (1,bt,1)
        p = e * pl.reciprocal(s, approx=True)          # EUP reciprocal
        y = f3 * (1.0 + p)                             # residual: f + f*attn

        # AdaptiveMaxPool2d(1): max over spatial positions
        pooled = jnp.max(y, axis=2)                    # (C_FEAT, bt)

        # ---- Linear_global + F.normalize (MXU over the folded batch) ----
        z = jax.lax.dot_general(
            pooled.astype(jnp.bfloat16), lw_ref[0],
            (((0,), (0,)), ((), ())),
            preferred_element_type=jnp.float32) + lb_ref[0]            # (bt, OUT)
        n2 = jnp.sum(z * z, axis=1, keepdims=True)
        # F.normalize: x / max(||x||, 1e-12)  ->  rsqrt(max(n2, 1e-24))
        o_ref[0] = z * jax.lax.rsqrt(jnp.maximum(n2, 1e-24))

    return kernel


# ------------------------------------------------------------------ wrapper

def _flatten_params(p):
    return (p["backbone"]["w1"], p["backbone"]["b1"],
            p["backbone"]["w2"], p["backbone"]["b2"],
            p["attn"]["w1"], p["attn"]["b1"],
            p["attn"]["w2"], p["attn"]["b2"],
            p["linear"]["w"], p["linear"]["b"])


def _pick_bt(batch, max_bt=MAX_BT):
    """Largest divisor of `batch` that is <= max_bt (keeps blocks branch-pure)."""
    bt = 1
    for d in range(1, min(batch, max_bt) + 1):
        if batch % d == 0:
            bt = d
    return bt


@jax.jit
def fg_sbir_forward(sketch_img, positive_img, negative_img,
                    sample_params, sketch_params):
    B, _, H, W = positive_img.shape
    N = H * W
    Bt = _pick_bt(B)
    total = 3 * B
    num_blocks = total // Bt          # >= 3, so v7x's 2 TCs both get work
    L = Bt * N

    # [positive | negative | sketch] -> (num_blocks, C_IN, Bt*N) lane-dense blocks
    imgs = jnp.concatenate([positive_img, negative_img, sketch_img], axis=0)
    x = imgs.reshape(total, C_IN, N)
    x = jnp.transpose(x.reshape(num_blocks, Bt, C_IN, N), (0, 2, 1, 3))
    x = x.reshape(num_blocks, C_IN, L)

    # per-block branch id: 0 = sample (positive/negative), 1 = sketch
    n_sample_blocks = (2 * B) // Bt
    branch_ids = (jnp.arange(num_blocks) >= n_sample_blocks).astype(jnp.int32)

    # stack both parameter sets on a leading axis of size 2 -> one pallas_call
    stacked = jax.tree_util.tree_map(lambda a, b: jnp.stack([a, b], axis=0),
                                     sample_params, sketch_params)
    flat = _flatten_params(stacked)

    def sel(shape):   # branch-selected (stacked) parameter spec
        return pl.BlockSpec((1,) + shape, lambda g, bid: (bid[g], 0, 0))

    grid_spec = pltpu.PrefetchScalarGridSpec(
        num_scalar_prefetch=1,
        grid=(num_blocks,),
        in_specs=[
            pl.BlockSpec((1, C_IN, L), lambda g, bid: (g, 0, 0)),
            sel((C_MID, C_IN)), sel((C_MID, 1)),
            sel((C_FEAT, C_MID)), sel((C_FEAT, 1)),
            sel((C_ATTN, C_FEAT)), sel((C_ATTN, 1)),
            sel((C_FEAT, C_ATTN)), sel((C_FEAT, 1)),
            sel((C_FEAT, OUT_SIZE)), sel((1, OUT_SIZE)),
        ],
        out_specs=pl.BlockSpec((1, Bt, OUT_SIZE), lambda g, bid: (g, 0, 0)),
    )

    out = pl.pallas_call(
        make_kernel(Bt, N, _USE_BF16_EXP),
        out_shape=jax.ShapeDtypeStruct((num_blocks, Bt, OUT_SIZE), jnp.float32),
        grid_spec=grid_spec,
        compiler_params=pltpu.CompilerParams(
            dimension_semantics=("parallel",)),
    )(branch_ids, x, *flat)

    out = out.reshape(total, OUT_SIZE)
    positive_feature = out[:B]
    negative_feature = out[B:2 * B]
    sketch_feature = out[2 * B:]
    return sketch_feature, positive_feature, negative_feature


# ------------------------------------------------------------------ params

def _kaiming(key, shape, fan_in):
    return jax.random.normal(key, shape, jnp.float32) * jnp.sqrt(2.0 / fan_in)


def init_branch_params(key):
    ks = jax.random.split(key, 10)
    return {
        "backbone": {
            "w1": _kaiming(ks[0], (C_MID, C_IN), C_IN),                          # f32 (VPU)
            "b1": 0.01 * jax.random.normal(ks[1], (C_MID, 1), jnp.float32),
            "w2": _kaiming(ks[2], (C_FEAT, C_MID), C_MID).astype(jnp.bfloat16),
            "b2": 0.01 * jax.random.normal(ks[3], (C_FEAT, 1), jnp.float32),
        },
        "attn": {
            "w1": _kaiming(ks[4], (C_ATTN, C_FEAT), C_FEAT).astype(jnp.bfloat16),
            "b1": 0.01 * jax.random.normal(ks[5], (C_ATTN, 1), jnp.float32),
            "w2": _kaiming(ks[6], (C_FEAT, C_ATTN), C_ATTN).astype(jnp.bfloat16),
            "b2": 0.01 * jax.random.normal(ks[7], (C_FEAT, 1), jnp.float32),
        },
        "linear": {
            "w": _kaiming(ks[8], (C_FEAT, OUT_SIZE), C_FEAT).astype(jnp.bfloat16),
            "b": 0.01 * jax.random.normal(ks[9], (1, OUT_SIZE), jnp.float32),
        },
    }


# ------------------------------------------------------------------ reference

def embed_branch_ref(x_bcn, p):
    """Pure-JAX f32 reference of the fused branch (loose sanity check)."""
    f32 = jnp.float32
    w1, b1 = p["backbone"]["w1"].astype(f32), p["backbone"]["b1"]
    w2, b2 = p["backbone"]["w2"].astype(f32), p["backbone"]["b2"]
    aw1, ab1 = p["attn"]["w1"].astype(f32), p["attn"]["b1"]
    aw2, ab2 = p["attn"]["w2"].astype(f32), p["attn"]["b2"]
    lw, lb = p["linear"]["w"].astype(f32), p["linear"]["b"]

    x = x_bcn.astype(f32)                                            # (B, C_IN, N)
    h = jnp.maximum(jnp.einsum("oc,bcn->bon", w1, x) + b1[None], 0.0)
    f = jnp.maximum(jnp.einsum("oc,bcn->bon", w2, h) + b2[None], 0.0)
    a1 = jnp.maximum(jnp.einsum("oc,bcn->bon", aw1, f) + ab1[None], 0.0)
    a = jnp.einsum("oc,bcn->bon", aw2, a1) + ab2[None]               # (B, C_FEAT, N)
    Bb = a.shape[0]
    prob = jax.nn.softmax(a.reshape(Bb, -1), axis=-1).reshape(a.shape)
    y = f * (1.0 + prob)
    pooled = jnp.max(y, axis=2)                                      # (B, C_FEAT)
    z = pooled @ lw + lb
    nrm = jnp.linalg.norm(z, axis=1, keepdims=True)
    return z / jnp.maximum(nrm, 1e-12)


# ------------------------------------------------------------------ main

if __name__ == "__main__":
    key = jax.random.PRNGKey(0)
    k_samp, k_sk, k_s, k_p, k_n = jax.random.split(key, 5)

    sample_params = init_branch_params(k_samp)   # shared by positive/negative
    sketch_params = init_branch_params(k_sk)     # sketch branch

    B, H, W = 2, 16, 16
    sketch_img = jax.random.normal(k_s, (B, C_IN, H, W), jnp.float32)
    positive_img = jax.random.normal(k_p, (B, C_IN, H, W), jnp.float32)
    negative_img = jax.random.normal(k_n, (B, C_IN, H, W), jnp.float32)

    sk_f, pos_f, neg_f = fg_sbir_forward(
        sketch_img, positive_img, negative_img, sample_params, sketch_params)
    jax.block_until_ready((sk_f, pos_f, neg_f))

    assert sk_f.shape == (B, OUT_SIZE)
    assert pos_f.shape == (B, OUT_SIZE)
    assert neg_f.shape == (B, OUT_SIZE)

    # Loose numerical sanity check vs. pure-JAX f32 reference
    # (kernel uses bf16 MXU operands + approx reciprocal).
    pos_ref = embed_branch_ref(positive_img.reshape(B, C_IN, -1), sample_params)
    neg_ref = embed_branch_ref(negative_img.reshape(B, C_IN, -1), sample_params)
    sk_ref = embed_branch_ref(sketch_img.reshape(B, C_IN, -1), sketch_params)
    for got, want in ((pos_f, pos_ref), (neg_f, neg_ref), (sk_f, sk_ref)):
        err = float(jnp.max(jnp.abs(got - want)))
        assert err < 5e-2, f"max abs err too large: {err}"

    print("KERNEL_OK")
</pallas_src>

<mosaic_0001>
module attributes {stable_mosaic.version = 11 : i64} {
  func.func @kernel(%arg0: i32, %arg1: memref<3xi32, #tpu.memory_space<smem>>, %arg2: memref<1x3x512xf32, #tpu.memory_space<vmem>>, %arg3: memref<1x32x3xf32, #tpu.memory_space<vmem>>, %arg4: memref<1x32x1xf32, #tpu.memory_space<vmem>>, %arg5: memref<1x64x32xbf16, #tpu.memory_space<vmem>>, %arg6: memref<1x64x1xf32, #tpu.memory_space<vmem>>, %arg7: memref<1x16x64xbf16, #tpu.memory_space<vmem>>, %arg8: memref<1x16x1xf32, #tpu.memory_space<vmem>>, %arg9: memref<1x64x16xbf16, #tpu.memory_space<vmem>>, %arg10: memref<1x64x1xf32, #tpu.memory_space<vmem>>, %arg11: memref<1x64x32xbf16, #tpu.memory_space<vmem>>, %arg12: memref<1x1x32xf32, #tpu.memory_space<vmem>>, %arg13: memref<1x2x32xf32, #tpu.memory_space<vmem>>) attributes {dimension_semantics = [#tpu.dimension_semantics<parallel>], iteration_bounds = array<i64: 3>, scalar_prefetch = 1 : i64, scratch_operands = 0 : i64, tpu.core_type = #tpu.core_type<tc>, window_params = [{transform_indices = @transform_0, window_bounds = array<i64: 1, 3, 512>}, {transform_indices = @transform_1, window_bounds = array<i64: 1, 32, 3>}, {transform_indices = @transform_2, window_bounds = array<i64: 1, 32, 1>}, {transform_indices = @transform_3, window_bounds = array<i64: 1, 64, 32>}, {transform_indices = @transform_4, window_bounds = array<i64: 1, 64, 1>}, {transform_indices = @transform_5, window_bounds = array<i64: 1, 16, 64>}, {transform_indices = @transform_6, window_bounds = array<i64: 1, 16, 1>}, {transform_indices = @transform_7, window_bounds = array<i64: 1, 64, 16>}, {transform_indices = @transform_8, window_bounds = array<i64: 1, 64, 1>}, {transform_indices = @transform_9, window_bounds = array<i64: 1, 64, 32>}, {transform_indices = @transform_10, window_bounds = array<i64: 1, 1, 32>}, {transform_indices = @transform_11, window_bounds = array<i64: 1, 2, 32>}]} {
    %c0 = arith.constant 0 : index
    %c0_0 = arith.constant 0 : index
    %c0_1 = arith.constant 0 : index
    %0 = vector.load %arg2[%c0, %c0_0, %c0_1] : memref<1x3x512xf32, #tpu.memory_space<vmem>>, vector<1x3x512xf32>
    %1 = vector.shape_cast %0 : vector<1x3x512xf32> to vector<3x512xf32>
    %c0_2 = arith.constant 0 : index
    %c0_3 = arith.constant 0 : index
    %c0_4 = arith.constant 0 : index
    %2 = vector.load %arg3[%c0_2, %c0_3, %c0_4] : memref<1x32x3xf32, #tpu.memory_space<vmem>>, vector<1x32x3xf32>
    %3 = vector.shape_cast %2 : vector<1x32x3xf32> to vector<32x3xf32>
    %4 = vector.extract_strided_slice %3 {offsets = [0, 0], sizes = [32, 1], strides = [1, 1]} : vector<32x3xf32> to vector<32x1xf32>
    %5 = vector.extract_strided_slice %1 {offsets = [0, 0], sizes = [1, 512], strides = [1, 1]} : vector<3x512xf32> to vector<1x512xf32>
    %6 = vector.broadcast %4 : vector<32x1xf32> to vector<32x512xf32>
    %7 = vector.broadcast %5 : vector<1x512xf32> to vector<32x512xf32>
    %8 = arith.mulf %6, %7 : vector<32x512xf32>
    %9 = vector.extract_strided_slice %3 {offsets = [0, 1], sizes = [32, 1], strides = [1, 1]} : vector<32x3xf32> to vector<32x1xf32>
    %10 = vector.extract_strided_slice %1 {offsets = [1, 0], sizes = [1, 512], strides = [1, 1]} : vector<3x512xf32> to vector<1x512xf32>
    %11 = vector.broadcast %9 : vector<32x1xf32> to vector<32x512xf32>
    %12 = vector.broadcast %10 : vector<1x512xf32> to vector<32x512xf32>
    %13 = arith.mulf %11, %12 : vector<32x512xf32>
    %14 = arith.addf %8, %13 : vector<32x512xf32>
    %15 = vector.extract_strided_slice %3 {offsets = [0, 2], sizes = [32, 1], strides = [1, 1]} : vector<32x3xf32> to vector<32x1xf32>
    %16 = vector.extract_strided_slice %1 {offsets = [2, 0], sizes = [1, 512], strides = [1, 1]} : vector<3x512xf32> to vector<1x512xf32>
    %17 = vector.broadcast %15 : vector<32x1xf32> to vector<32x512xf32>
    %18 = vector.broadcast %16 : vector<1x512xf32> to vector<32x512xf32>
    %19 = arith.mulf %17, %18 : vector<32x512xf32>
    %20 = arith.addf %14, %19 : vector<32x512xf32>
    %c0_5 = arith.constant 0 : index
    %c0_6 = arith.constant 0 : index
    %c0_7 = arith.constant 0 : index
    %21 = vector.load %arg4[%c0_5, %c0_6, %c0_7] : memref<1x32x1xf32, #tpu.memory_space<vmem>>, vector<1x32x1xf32>
    %22 = vector.shape_cast %21 : vector<1x32x1xf32> to vector<32x1xf32>
    %23 = vector.broadcast %22 : vector<32x1xf32> to vector<32x512xf32>
    %24 = arith.addf %20, %23 : vector<32x512xf32>
    %cst = arith.constant 0.000000e+00 : f32
    %25 = vector.broadcast %cst : f32 to vector<32x512xf32>
    %26 = arith.maximumf %24, %25 : vector<32x512xf32>
    %c0_8 = arith.constant 0 : index
    %c0_9 = arith.constant 0 : index
    %c0_10 = arith.constant 0 : index
    %27 = vector.load %arg5[%c0_8, %c0_9, %c0_10] : memref<1x64x32xbf16, #tpu.memory_space<vmem>>, vector<1x64x32xbf16>
    %28 = vector.shape_cast %27 : vector<1x64x32xbf16> to vector<64x32xbf16>
    %29 = arith.truncf %26 : vector<32x512xf32> to vector<32x512xbf16>
    %cst_11 = arith.constant dense<0.000000e+00> : vector<64x512xf32>
    %30 = tpu.matmul %28, %29, %cst_11 {dimension_numbers = #tpu.dot_dimension_numbers<[1], [0], [0], [1], [0, 0, 1, 1], [], []>} : vector<64x32xbf16>, vector<32x512xbf16>, vector<64x512xf32> -> vector<64x512xf32>
    %c0_12 = arith.constant 0 : index
    %c0_13 = arith.constant 0 : index
    %c0_14 = arith.constant 0 : index
    %31 = vector.load %arg6[%c0_12, %c0_13, %c0_14] : memref<1x64x1xf32, #tpu.memory_space<vmem>>, vector<1x64x1xf32>
    %32 = vector.shape_cast %31 : vector<1x64x1xf32> to vector<64x1xf32>
    %33 = vector.broadcast %32 : vector<64x1xf32> to vector<64x512xf32>
    %34 = arith.addf %30, %33 : vector<64x512xf32>
    %cst_15 = arith.constant 0.000000e+00 : f32
    %35 = vector.broadcast %cst_15 : f32 to vector<64x512xf32>
    %36 = arith.maximumf %34, %35 : vector<64x512xf32>
    %c0_16 = arith.constant 0 : index
    %c0_17 = arith.constant 0 : index
    %c0_18 = arith.constant 0 : index
    %37 = vector.load %arg7[%c0_16, %c0_17, %c0_18] : memref<1x16x64xbf16, #tpu.memory_space<vmem>>, vector<1x16x64xbf16>
    %38 = vector.shape_cast %37 : vector<1x16x64xbf16> to vector<16x64xbf16>
    %39 = arith.truncf %36 : vector<64x512xf32> to vector<64x512xbf16>
    %cst_19 = arith.constant dense<0.000000e+00> : vector<16x512xf32>
    %40 = tpu.matmul %38, %39, %cst_19 {dimension_numbers = #tpu.dot_dimension_numbers<[1], [0], [0], [1], [0, 0, 1, 1], [], []>} : vector<16x64xbf16>, vector<64x512xbf16>, vector<16x512xf32> -> vector<16x512xf32>
    %c0_20 = arith.constant 0 : index
    %c0_21 = arith.constant 0 : index
    %c0_22 = arith.constant 0 : index
    %41 = vector.load %arg8[%c0_20, %c0_21, %c0_22] : memref<1x16x1xf32, #tpu.memory_space<vmem>>, vector<1x16x1xf32>
    %42 = vector.shape_cast %41 : vector<1x16x1xf32> to vector<16x1xf32>
    %43 = vector.broadcast %42 : vector<16x1xf32> to vector<16x512xf32>
    %44 = arith.addf %40, %43 : vector<16x512xf32>
    %cst_23 = arith.constant 0.000000e+00 : f32
    %45 = vector.broadcast %cst_23 : f32 to vector<16x512xf32>
    %46 = arith.maximumf %44, %45 : vector<16x512xf32>
    %c0_24 = arith.constant 0 : index
    %c0_25 = arith.constant 0 : index
    %c0_26 = arith.constant 0 : index
    %47 = vector.load %arg9[%c0_24, %c0_25, %c0_26] : memref<1x64x16xbf16, #tpu.memory_space<vmem>>, vector<1x64x16xbf16>
    %48 = vector.shape_cast %47 : vector<1x64x16xbf16> to vector<64x16xbf16>
    %49 = arith.truncf %46 : vector<16x512xf32> to vector<16x512xbf16>
    %cst_27 = arith.constant dense<0.000000e+00> : vector<64x512xf32>
    %50 = tpu.matmul %48, %49, %cst_27 {dimension_numbers = #tpu.dot_dimension_numbers<[1], [0], [0], [1], [0, 0, 1, 1], [], []>} : vector<64x16xbf16>, vector<16x512xbf16>, vector<64x512xf32> -> vector<64x512xf32>
    %c0_28 = arith.constant 0 : index
    %c0_29 = arith.constant 0 : index
    %c0_30 = arith.constant 0 : index
    %51 = vector.load %arg10[%c0_28, %c0_29, %c0_30] : memref<1x64x1xf32, #tpu.memory_space<vmem>>, vector<1x64x1xf32>
    %52 = vector.shape_cast %51 : vector<1x64x1xf32> to vector<64x1xf32>
    %53 = vector.broadcast %52 : vector<64x1xf32> to vector<64x512xf32>
    %54 = arith.addf %50, %53 : vector<64x512xf32>
    %55 = vector.shape_cast %54 : vector<64x512xf32> to vector<64x2x256xf32>
    %56 = vector.shape_cast %36 : vector<64x512xf32> to vector<64x2x256xf32>
    %cst_31 = arith.constant dense<0xFF800000> : vector<64x2xf32>
    %57 = vector.multi_reduction <maximumf>, %55, %cst_31 [2] : vector<64x2x256xf32> to vector<64x2xf32>
    %58 = vector.shape_cast %57 : vector<64x2xf32> to vector<64x2x1xf32>
    %cst_32 = arith.constant dense<0xFF800000> : vector<2x1xf32>
    %59 = vector.multi_reduction <maximumf>, %58, %cst_32 [0] : vector<64x2x1xf32> to vector<2x1xf32>
    %60 = vector.shape_cast %59 : vector<2x1xf32> to vector<1x2x1xf32>
    %61 = vector.broadcast %60 : vector<1x2x1xf32> to vector<64x2x256xf32>
    %62 = arith.subf %55, %61 : vector<64x2x256xf32>
    %63 = math.exp %62 : vector<64x2x256xf32>
    %cst_33 = arith.constant dense<0.000000e+00> : vector<64x2xf32>
    %64 = vector.multi_reduction <add>, %63, %cst_33 [2] : vector<64x2x256xf32> to vector<64x2xf32>
    %65 = vector.shape_cast %64 : vector<64x2xf32> to vector<64x2x1xf32>
    %cst_34 = arith.constant dense<0.000000e+00> : vector<2x1xf32>
    %66 = vector.multi_reduction <add>, %65, %cst_34 [0] : vector<64x2x1xf32> to vector<2x1xf32>
    %67 = vector.shape_cast %66 : vector<2x1xf32> to vector<1x2x1xf32>
    %68 = tpu.reciprocal %67 {approx = true} : vector<1x2x1xf32> -> vector<1x2x1xf32>
    %69 = vector.broadcast %68 : vector<1x2x1xf32> to vector<64x2x256xf32>
    %70 = arith.mulf %63, %69 : vector<64x2x256xf32>
    %cst_35 = arith.constant 1.000000e+00 : f32
    %71 = vector.broadcast %cst_35 : f32 to vector<64x2x256xf32>
    %72 = arith.addf %71, %70 : vector<64x2x256xf32>
    %73 = arith.mulf %56, %72 : vector<64x2x256xf32>
    %cst_36 = arith.constant dense<0xFF800000> : vector<64x2xf32>
    %74 = vector.multi_reduction <maximumf>, %73, %cst_36 [2] : vector<64x2x256xf32> to vector<64x2xf32>
    %75 = arith.truncf %74 : vector<64x2xf32> to vector<64x2xbf16>
    %c0_37 = arith.constant 0 : index
    %c0_38 = arith.constant 0 : index
    %c0_39 = arith.constant 0 : index
    %76 = vector.load %arg11[%c0_37, %c0_38, %c0_39] : memref<1x64x32xbf16, #tpu.memory_space<vmem>>, vector<1x64x32xbf16>
    %77 = vector.shape_cast %76 : vector<1x64x32xbf16> to vector<64x32xbf16>
    %cst_40 = arith.constant dense<0.000000e+00> : vector<2x32xf32>
    %78 = tpu.matmul %75, %77, %cst_40 {dimension_numbers = #tpu.dot_dimension_numbers<[0], [0], [1], [1], [0, 1, 1, 1], [], []>} : vector<64x2xbf16>, vector<64x32xbf16>, vector<2x32xf32> -> vector<2x32xf32>
    %c0_41 = arith.constant 0 : index
    %c0_42 = arith.constant 0 : index
    %c0_43 = arith.constant 0 : index
    %79 = vector.load %arg12[%c0_41, %c0_42, %c0_43] : memref<1x1x32xf32, #tpu.memory_space<vmem>>, vector<1x1x32xf32>
    %80 = vector.shape_cast %79 : vector<1x1x32xf32> to vector<1x32xf32>
    %81 = vector.broadcast %80 : vector<1x32xf32> to vector<2x32xf32>
    %82 = arith.addf %78, %81 : vector<2x32xf32>
    %83 = arith.mulf %82, %82 : vector<2x32xf32>
    %cst_44 = arith.constant dense<0.000000e+00> : vector<2xf32>
    %84 = vector.multi_reduction <add>, %83, %cst_44 [1] : vector<2x32xf32> to vector<2xf32>
    %85 = vector.shape_cast %84 : vector<2xf32> to vector<2x1xf32>
    %cst_45 = arith.constant 1.000000e-24 : f32
    %86 = vector.broadcast %cst_45 : f32 to vector<2x1xf32>
    %87 = arith.maximumf %85, %86 : vector<2x1xf32>
    %88 = math.rsqrt %87 : vector<2x1xf32>
    %89 = vector.broadcast %88 : vector<2x1xf32> to vector<2x32xf32>
    %90 = arith.mulf %82, %89 : vector<2x32xf32>
    %c0_46 = arith.constant 0 : index
    %c0_47 = arith.constant 0 : index
    %c0_48 = arith.constant 0 : index
    %91 = vector.load %arg13[%c0_46, %c0_47, %c0_48] : memref<1x2x32xf32, #tpu.memory_space<vmem>>, vector<1x2x32xf32>
    %92 = vector.shape_cast %91 : vector<1x2x32xf32> to vector<2x32xf32>
    %93 = vector.shape_cast %90 : vector<2x32xf32> to vector<1x2x32xf32>
    tpu.vector_store %arg13[%c0_46, %c0_47, %c0_48], %93 {strides = array<i32>} : memref<1x2x32xf32, #tpu.memory_space<vmem>>, vector<1x2x32xf32>,
    return
  }
  func.func @transform_0(%arg0: i32, %arg1: memref<3xi32, #tpu.memory_space<smem>>) -> (i32, i32, i32) {
    %c0_i32 = arith.constant 0 : i32
    %c0_i32_0 = arith.constant 0 : i32
    %c0_i32_1 = arith.constant 0 : i32
    return %arg0, %c0_i32, %c0_i32_0 : i32, i32, i32
  }
  func.func @transform_1(%arg0: i32, %arg1: memref<3xi32, #tpu.memory_space<smem>>) -> (i32, i32, i32) {
    %0 = arith.index_cast %arg0 : i32 to index
    %1 = memref.load %arg1[%0] : memref<3xi32, #tpu.memory_space<smem>>
    %c0_i32 = arith.constant 0 : i32
    %c0_i32_0 = arith.constant 0 : i32
    %c0_i32_1 = arith.constant 0 : i32
    return %1, %c0_i32, %c0_i32_0 : i32, i32, i32
  }
  func.func @transform_2(%arg0: i32, %arg1: memref<3xi32, #tpu.memory_space<smem>>) -> (i32, i32, i32) {
    %0 = arith.index_cast %arg0 : i32 to index
    %1 = memref.load %arg1[%0] : memref<3xi32, #tpu.memory_space<smem>>
    %c0_i32 = arith.constant 0 : i32
    %c0_i32_0 = arith.constant 0 : i32
    %c0_i32_1 = arith.constant 0 : i32
    return %1, %c0_i32, %c0_i32_0 : i32, i32, i32
  }
  func.func @transform_3(%arg0: i32, %arg1: memref<3xi32, #tpu.memory_space<smem>>) -> (i32, i32, i32) {
    %0 = arith.index_cast %arg0 : i32 to index
    %1 = memref.load %arg1[%0] : memref<3xi32, #tpu.memory_space<smem>>
    %c0_i32 = arith.constant 0 : i32
    %c0_i32_0 = arith.constant 0 : i32
    %c0_i32_1 = arith.constant 0 : i32
    return %1, %c0_i32, %c0_i32_0 : i32, i32, i32
  }
  func.func @transform_4(%arg0: i32, %arg1: memref<3xi32, #tpu.memory_space<smem>>) -> (i32, i32, i32) {
    %0 = arith.index_cast %arg0 : i32 to index
    %1 = memref.load %arg1[%0] : memref<3xi32, #tpu.memory_space<smem>>
    %c0_i32 = arith.constant 0 : i32
    %c0_i32_0 = arith.constant 0 : i32
    %c0_i32_1 = arith.constant 0 : i32
    return %1, %c0_i32, %c0_i32_0 : i32, i32, i32
  }
  func.func @transform_5(%arg0: i32, %arg1: memref<3xi32, #tpu.memory_space<smem>>) -> (i32, i32, i32) {
    %0 = arith.index_cast %arg0 : i32 to index
    %1 = memref.load %arg1[%0] : memref<3xi32, #tpu.memory_space<smem>>
    %c0_i32 = arith.constant 0 : i32
    %c0_i32_0 = arith.constant 0 : i32
    %c0_i32_1 = arith.constant 0 : i32
    return %1, %c0_i32, %c0_i32_0 : i32, i32, i32
  }
  func.func @transform_6(%arg0: i32, %arg1: memref<3xi32, #tpu.memory_space<smem>>) -> (i32, i32, i32) {
    %0 = arith.index_cast %arg0 : i32 to index
    %1 = memref.load %arg1[%0] : memref<3xi32, #tpu.memory_space<smem>>
    %c0_i32 = arith.constant 0 : i32
    %c0_i32_0 = arith.constant 0 : i32
    %c0_i32_1 = arith.constant 0 : i32
    return %1, %c0_i32, %c0_i32_0 : i32, i32, i32
  }
  func.func @transform_7(%arg0: i32, %arg1: memref<3xi32, #tpu.memory_space<smem>>) -> (i32, i32, i32) {
    %0 = arith.index_cast %arg0 : i32 to index
    %1 = memref.load %arg1[%0] : memref<3xi32, #tpu.memory_space<smem>>
    %c0_i32 = arith.constant 0 : i32
    %c0_i32_0 = arith.constant 0 : i32
    %c0_i32_1 = arith.constant 0 : i32
    return %1, %c0_i32, %c0_i32_0 : i32, i32, i32
  }
  func.func @transform_8(%arg0: i32, %arg1: memref<3xi32, #tpu.memory_space<smem>>) -> (i32, i32, i32) {
    %0 = arith.index_cast %arg0 : i32 to index
    %1 = memref.load %arg1[%0] : memref<3xi32, #tpu.memory_space<smem>>
    %c0_i32 = arith.constant 0 : i32
    %c0_i32_0 = arith.constant 0 : i32
    %c0_i32_1 = arith.constant 0 : i32
    return %1, %c0_i32, %c0_i32_0 : i32, i32, i32
  }
  func.func @transform_9(%arg0: i32, %arg1: memref<3xi32, #tpu.memory_space<smem>>) -> (i32, i32, i32) {
    %0 = arith.index_cast %arg0 : i32 to index
    %1 = memref.load %arg1[%0] : memref<3xi32, #tpu.memory_space<smem>>
    %c0_i32 = arith.constant 0 : i32
    %c0_i32_0 = arith.constant 0 : i32
    %c0_i32_1 = arith.constant 0 : i32
    return %1, %c0_i32, %c0_i32_0 : i32, i32, i32
  }
  func.func @transform_10(%arg0: i32, %arg1: memref<3xi32, #tpu.memory_space<smem>>) -> (i32, i32, i32) {
    %0 = arith.index_cast %arg0 : i32 to index
    %1 = memref.load %arg1[%0] : memref<3xi32, #tpu.memory_space<smem>>
    %c0_i32 = arith.constant 0 : i32
    %c0_i32_0 = arith.constant 0 : i32
    %c0_i32_1 = arith.constant 0 : i32
    return %1, %c0_i32, %c0_i32_0 : i32, i32, i32
  }
  func.func @transform_11(%arg0: i32, %arg1: memref<3xi32, #tpu.memory_space<smem>>) -> (i32, i32, i32) {
    %c0_i32 = arith.constant 0 : i32
    %c0_i32_0 = arith.constant 0 : i32
    %c0_i32_1 = arith.constant 0 : i32
    return %arg0, %c0_i32, %c0_i32_0 : i32, i32, i32
  }
}

</mosaic_0001>

<bundles_post_ra>
// kernel: fg_sbir_forward.1
= control target key start
LH: loop header
LB: loop body
LE: loop exit
PB: predicated region body
PF: predicated region fallthrough
CT: control target
= control target key end

     0   :  { %s6129_s24 = smov [#allocation3]   ;;  %s10452_s0 = inlined_call_operand.vmem [shape: s32[3], index: 0, kind: input, shape index: {}]   ;;  %s10453_s1 = inlined_call_operand.vmem [shape: f32[3,3,512], index: 1, kind: input, shape index: {}]   ;;  %s10454_s2 = inlined_call_operand.vmem [shape: f32[2,32,3], index: 2, kind: input, shape index: {}]   ;;  %s10455_s3 = inlined_call_operand.vmem [shape: f32[2,32,1], index: 3, kind: input, shape index: {}]   ;;  %s10456_s4 = inlined_call_operand.vmem [shape: bf16[2,64,32], index: 4, kind: input, shape index: {}]   ;;  %s10457_s5 = inlined_call_operand.vmem [shape: f32[2,64,1], index: 5, kind: input, shape index: {}]   ;;  %s10458_s6 = inlined_call_operand.vmem [shape: bf16[2,16,64], index: 6, kind: input, shape index: {}]   ;;  %s10459_s7 = inlined_call_operand.vmem [shape: f32[2,16,1], index: 7, kind: input, shape index: {}]   ;;  %s10460_s8 = inlined_call_operand.vmem [shape: bf16[2,64,16], index: 8, kind: input, shape index: {}]   ;;  %s10461_s9 = inlined_call_operand.vmem [shape: f32[2,64,1], index: 9, kind: input, shape index: {}]   ;;  %s10462_s10 = inlined_call_operand.vmem [shape: bf16[2,64,32], index: 10, kind: input, shape index: {}]   ;;  %s10463_s11 = inlined_call_operand.vmem [shape: f32[2,1,32], index: 11, kind: input, shape index: {}]   ;;  %s10464_s12 = inlined_call_operand.vmem [shape: f32[3,2,32], index: 12, kind: output, shape index: {}]  }
   0x1   :  { %s18_s23 = sshll.u32 %s10452_s0, 4  ;;  %s19_s23 = int_to_ptr.vmem [resolvable:$true] %s18_s23 }
   0x2   :  { %21 = dma.vmem_to_smem %s19_s23, 16, %s6129_s24, [#allocation2] }
   0x3   :  { %6123 = dma.done.wait [#allocation2], 16 }
   0x4   :  { %6124 = vsyncadd [#allocation2], 4294967280 }
   0x5   :  { %24 = sfence }
   0x6   :  { %s6203_s25 = smov 0  }
   0x7 LB: > { %s6209_s26 = sadd.s32 4294967295, %s6127_s25   ;;  %p5686_p0 = scmp.ge.s32.totalorder %s6127_s25, 1  ;;  %s6127_s25 = sphi %s6203_s25, %s30_s25  }
   0x8   : > { %p484_p1 = scmp.lt.s32.totalorder %s6127_s25, 4 }
   0xa   : > { %p485_p2 = pnand %p5686_p0, %p484_p1 }
   0xc   : > { %488 = sbr.rel (%p485_p2) target bundleno = 2028 (0x7ec), region = 64 }
  0x11   : > { %s586_s0 = sld [smem:[#allocation3 + %s6209_s26]]  ;;  %v6130_v0 = vmov 2   ;;  %v6131_v1 = vmov 1   ;;  %v6132_v5 = vmov 0   ;;  %p581_p8 = scmp.lt.s32.totalorder %s6209_s26, 2  ;;  %vm975_vm0 = vcmask 261120  }
  0x12   : > { %5837 = vset.pattern.permute.xlu2 %v6130_v0  ;;  %5840 = vset.pattern.permute.xlu0 %v6131_v1  ;;  %s593_s13 = sld [smem:[#allocation3 + %s6209_s26]]  ;;  %vm1449_vm1 = vcmask 1047556   ;;  %vm1171_vm2 = vcmask 523264   ;;  %vm1319_vm3 = vcmask 130048   ;;  %vm3113_vm4 = vcmask 1041408  }
  0x13   : > { %5836 = vset.pattern.permute.xlu1 %v6131_v1  ;;  %s607_s14 = sld [smem:[#allocation3 + %s6209_s26]]  ;;  %vm5367_vm5 = vcmask 1041409   ;;  %vm5369_vm6 = vcmask 1042434   ;;  %vm5371_vm7 = vcmask 1043459   ;;  %vm5373_vm8 = vcmask 1044484  }
  0x14   : > { %s621_s20 = sld [smem:[#allocation3 + %s6209_s26]]  ;;  %vm5375_vm9 = vcmask 1045509   ;;  %vm5377_vm10 = vcmask 1046534   ;;  %vm5379_vm11 = vcmask 1047559   ;;  %vm5495_vm12 = vcmask 254976  }
  0x15   : > { %s635_s24 = sld [smem:[#allocation3 + %s6209_s26]] }
  0x16   : > { %s6235_s16 = scalar_select %p581_p8, %s6209_s26, 2 }
  0x17   : > { %p587_p3 = scmp.lt.s32.totalorder %s586_s0, 1  ;;  %s6299_s21 = sld [smem:[#allocation3 + %s6209_s26]] }
  0x18   : > { %p594_p4 = scmp.lt.s32.totalorder %s593_s13, 1  ;;  %s5799_s17 = sshll.u32 %s6235_s16, 4 }
  0x19   : > { %s11541_s0 = smov (!%p587_p3, %s586_s0), 1  ;;  %p608_p5 = scmp.lt.s32.totalorder %s607_s14, 1 }
  0x1a   : > { %s5800_s27 = sshll.u32 %s11541_s0, 5  ;;  %s11543_s13 = smov (!%p594_p4, %s593_s13), 1 }
  0x1b   : > { %s591_s30 = scalar_lea.vmem %s10454_s2, %s5800_s27  ;;  %s5801_s15 = sshll.u32 %s11543_s13, 5 }
  0x1c   : > { %v663_v2 = vld [vmem:[%s591_s30 + $0x10] sm:$0xff]  ;;  %v662_v3 = vld [vmem:[%s591_s30 + $0x8] sm:$0xff]  ;;  %v664_v4 = vld [vmem:[%s591_s30 + $0x18] sm:$0xff]  ;;  %s598_s18 = scalar_lea.vmem %s10455_s3, %s5801_s15  ;;  %s11545_s14 = smov (!%p608_p5, %s607_s14), 1 }
  0x1d   : > { %784 = vperm.xlu2 %5837, %v663_v2   ;;  %724 = vperm.xlu1 %5836, %v663_v2   ;;  %v661_v6 = vld [vmem:[%s591_s30] sm:$0xff]  ;;  %v837_v8 = vld [vmem:[%s598_s18 + $0x10] sm:$0xff]  ;;  %v838_v9 = vld [vmem:[%s598_s18 + $0x18] sm:$0xff]  ;;  %s5803_s19 = sshll.u32 %s11545_s14, 6  ;;  %p622_p6 = scmp.lt.s32.totalorder %s621_s20, 1 }
  0x1e   : > { %720 = vperm.xlu0 %5840, %v662_v3   ;;  %v835_v7 = vld [vmem:[%s598_s18] sm:$0xff]  ;;  %s612_s23 = scalar_lea.vmem %s10457_s5, %s5803_s19  ;;  %v836_v11 = vld [vmem:[%s598_s18 + $0x8] sm:$0xff]  ;;  %p636_p7 = scmp.lt.s32.totalorder %s635_s24, 1 }
  0x1f   : > { %v912_v10 = vld [vmem:[%s612_s23 + $0x28] sm:$0xff]  ;;  %v913_v12 = vld [vmem:[%s612_s23 + $0x30] sm:$0xff]  ;;  %s11547_s20 = smov (!%p622_p6, %s621_s20), 1  ;;  %v907_v13 = vld [vmem:[%s612_s23] sm:$0xff]  ;;  %p601_p9 = scmp.lt.s32.totalorder %s6299_s21, 1 }
  0x20   : > { %v914_v14 = vld [vmem:[%s612_s23 + $0x38] sm:$0xff]  ;;  %v911_v15 = vld [vmem:[%s612_s23 + $0x20] sm:$0xff]  ;;  %s5805_s0 = sshll.u32 %s11547_s20, 4  ;;  %s11549_s24 = smov (!%p636_p7, %s635_s24), 1  ;;  %v909_v17 = vld [vmem:[%s612_s23 + $0x10] sm:$0xff] }
  0x21   : > { %s626_s29 = scalar_lea.vmem %s10459_s7, %s5805_s0  ;;  %v910_v18 = vld [vmem:[%s612_s23 + $0x18] sm:$0xff]  ;;  %s5807_s30 = sshll.u32 %s11549_s24, 6  ;;  %v908_v20 = vld [vmem:[%s612_s23 + $0x8] sm:$0xff] }
  0x22   : > { %v1155_v16 = vld [vmem:[%s626_s29 + $0x8] sm:$0xff]  ;;  %s640_s15 = scalar_lea.vmem %s10461_s9, %s5807_s30  ;;  %v1154_v21 = vld [vmem:[%s626_s29] sm:$0xff]  ;;  %s585_s20 = scalar_lea.vmem %s10453_s1, %s5799_s17 }
  0x23   : > { %v1253_v19 = vld [vmem:[%s640_s15 + $0x10] sm:$0xff]  ;;  %v1256_v22 = vld [vmem:[%s640_s15 + $0x28] sm:$0xff]  ;;  %v1251_v23 = vld [vmem:[%s640_s15] sm:$0xff]  ;;  %s11551_s21 = smov (!%p601_p9, %s6299_s21), 1  ;;  %s6538_s27 = sld [smem:[#allocation3 + %s6209_s26]] }
  0x24   : > { %v1252_v24 = vld [vmem:[%s640_s15 + $0x8] sm:$0xff]  ;;  %v1254_v25 = vld [vmem:[%s640_s15 + $0x18] sm:$0xff]  ;;  %v1255_v26 = vld [vmem:[%s640_s15 + $0x20] sm:$0xff]  ;;  %s5802_s22 = sshll.u32 %s11551_s21, 5  ;;  %s628_s14 = sld [smem:[#allocation3 + %s6209_s26]] }
  0x25   : > { %788 = vperm.xlu2 %5837, %v664_v4   ;;  %728 = vperm.xlu1 %5836, %v664_v4   ;;  %v1257_v27 = vld [vmem:[%s640_s15 + $0x30] sm:$0xff]  ;;  %v1258_v28 = vld [vmem:[%s640_s15 + $0x38] sm:$0xff]  ;;  %v659_v33 = vld [vmem:[%s585_s20] sm:$0x77]  ;;  %s605_s0 = scalar_lea.vmem %s10456_s4, %s5802_s22  ;;  %s5707_s29 = sshll.u32 %s6235_s16, 1 }
  0x26   : > { %5841 = vset.pattern.permute.xlu0 %v6132_v5  ;;  %v660_v34 = vld [vmem:[%s585_s20 + $0x8] sm:$0x77]  ;;  %v791_v36 = vperm.slane %v659_v33, 2  ;;  %v792_v37 = vperm.slane %v659_v33, 6  ;;  %v731_v40 = vperm.slane %v659_v33, 1  ;;  %v732_v42 = vperm.slane %v659_v33, 5 }
  0x27   : > { %677 = vperm.xlu0 %5841, %v663_v2   ;;  %v793_v38 = vperm.slane %v660_v34, 2  ;;  %v794_v39 = vperm.slane %v660_v34, 6  ;;  %v733_v43 = vperm.slane %v660_v34, 1  ;;  %v734_v44 = vperm.slane %v660_v34, 5  ;;  %s642_s20 = sld [smem:[#allocation3 + %s6209_s26]] }
  0x28   : > { %v687_v45 = vperm.slane %v659_v33, 0  ;;  %v688_v47 = vperm.slane %v659_v33, 4  ;;  %v689_v48 = vperm.slane %v660_v34, 0  ;;  %v690_v49 = vperm.slane %v660_v34, 4 }
  0x29   : > { %v6243_v50 = vperm.slane %v791_v36, 2  ;;  %v6245_v51 = vperm.slane %v792_v37, 2  ;;  %v6247_v52 = vperm.slane %v793_v38, 2  ;;  %v6249_v53 = vperm.slane %v794_v39, 2  ;;  %p615_p10 = scmp.lt.s32.totalorder %s6538_s27, 1 }
  0x2a   : > { %v739_v54 = vperm.slane %v731_v40, 1  ;;  %v740_v55 = vperm.slane %v732_v42, 1  ;;  %v741_v56 = vperm.slane %v733_v43, 1  ;;  %v742_v57 = vperm.slane %v734_v44, 1  ;;  %p629_p11 = scmp.lt.s32.totalorder %s628_s14, 1 }
  0x2b   : > { %v6251_v58 = vperm.slane %v687_v45, 0  ;;  %v6253_v59 = vperm.slane %v688_v47, 0  ;;  %v6255_v60 = vperm.slane %v689_v48, 0  ;;  %v6257_v61 = vperm.slane %v690_v49, 0  ;;  %s11553_s27 = smov (!%p615_p10, %s6538_s27), 1 }
  0x2c   : > { %s5804_s28 = sshll.u32 %s11553_s27, 3  ;;  %s11555_s14 = smov (!%p629_p11, %s628_s14), 1 }
  0x2d   : > { %5839 = vset.pattern.permute.xlu2 %v6131_v1  ;;  %5838 = vset.pattern.permute.xlu1 %v6132_v5  ;;  %s619_s13 = scalar_lea.vmem %s10458_s6, %s5804_s28  ;;  %s5806_s15 = sshll.u32 %s11555_s14, 5 }
  0x2e   : > { %672 = vperm.xlu1 %5838, %v662_v3   ;;  %716 = vperm.xlu2 %5839, %v661_v6   ;;  %s6784_s19 = scalar_lea.vmem %s10460_s8, %s5806_s15  ;;  %p643_p12 = scmp.lt.s32.totalorder %s642_s20, 1 }
  0x2f   : > { %682 = vperm.xlu0 %5841, %v664_v4   ;;  %s657_s14 = scalar_lea.vmem %s10464_s12, %s5707_s29 }
  0x30   : > { %s11557_s20 = smov (!%p643_p12, %s642_s20), 1 }
  0x31   : > { %s5808_s21 = sshll.u32 %s11557_s20, 5 }
  0x32   : > { %s647_s24 = scalar_lea.vmem %s10462_s10, %s5808_s21 }
  0x36   : > { %5842 = vset.pattern.permute.xlu1 %v6130_v0  ;;  %5843 = vset.pattern.permute.xlu2 %v6130_v0 }
  0x37   : > { %667 = vperm.xlu0 %5841, %v661_v6   ;;  %776 = vperm.xlu1 %5842, %v661_v6  }
  0x38   : > { %780 = vperm.xlu2 %5843, %v662_v3  }
  0x3f   : > { %841 = vperm.xlu0 %5841, %v835_v7   ;;  %5844 = vset.pattern.permute.xlu1 %v6132_v5 }
  0x40   : > { %5845 = vset.pattern.permute.xlu2 %v6132_v5  ;;  %851 = vperm.xlu1 %5844, %v837_v8  }
  0x41   : > { %856 = vperm.xlu2 %5845, %v838_v9  }
  0x47   : > { %942 = vperm.xlu0 %5841, %v912_v10  }
  0x48   : > { %846 = vperm.xlu1 %5844, %v836_v11  }
  0x49   : > { %947 = vperm.xlu2 %5845, %v913_v12  }
  0x4f   : > { %917 = vperm.xlu0 %5841, %v907_v13  }
  0x50   : > { %952 = vperm.xlu1 %5844, %v914_v14  }
  0x51   : > { %937 = vperm.xlu2 %5845, %v911_v15  }
  0x57   : > { %1163 = vperm.xlu0 %5841, %v1155_v16  }
  0x58   : > { %927 = vperm.xlu1 %5844, %v909_v17  }
  0x59   : > { %932 = vperm.xlu2 %5845, %v910_v18  }
  0x5f   : > { %1271 = vperm.xlu0 %5841, %v1253_v19  }
  0x60   : > { %922 = vperm.xlu1 %5844, %v908_v20  }
  0x61   : > { %1158 = vperm.xlu2 %5845, %v1154_v21  }
  0x67   : > { %1286 = vperm.xlu0 %5841, %v1256_v22  }
  0x68   : > { %1261 = vperm.xlu1 %5844, %v1251_v23  }
  0x69   : > { %1266 = vperm.xlu2 %5845, %v1252_v24  }
  0x70   : > { %1276 = vperm.xlu1 %5844, %v1254_v25  }
  0x71   : > { %1281 = vperm.xlu2 %5845, %v1255_v26  }
  0x77   : > { %v785_v29 = vpop.permute.xlu2 %784 }
  0x78   : > { %1291 = vperm.xlu1 %5844, %v1257_v27   ;;  %v811_v62 = vmul.f32 %v6243_v50, %v785_v29  ;;  %v812_v1 = vmul.f32 %v6245_v51, %v785_v29  ;;  %v813_v2 = vmul.f32 %v6247_v52, %v785_v29  ;;  %v814_v3 = vmul.f32 %v6249_v53, %v785_v29 }
  0x79   : > { %1296 = vperm.xlu2 %5845, %v1258_v28  }
  0x7f   : > { %v789_v32 = vpop.permute.xlu2 %788 }
  0x80   : > { %v815_v0 = vmul.f32 %v6243_v50, %v789_v32  ;;  %v816_v6 = vmul.f32 %v6245_v51, %v789_v32  ;;  %v817_v7 = vmul.f32 %v6247_v52, %v789_v32  ;;  %v818_v8 = vmul.f32 %v6249_v53, %v789_v32 }
  0x88   : > { %v717_v46 = vpop.permute.xlu2 %716 }
  0x89   : > { %v6264_v4 = vmul.f32 %v739_v54, %v717_v46  ;;  %v6269_v9 = vmul.f32 %v740_v55, %v717_v46  ;;  %v6271_v10 = vmul.f32 %v741_v56, %v717_v46  ;;  %v6273_v11 = vmul.f32 %v742_v57, %v717_v46 }
  0x8f   : > { %v725_v30 = vpop.permute.xlu1 %724 }
  0x90   : > { %v6238_v31 = vpop.permute.xlu0 %720  ;;  %v751_v12 = vmul.f32 %v739_v54, %v725_v30  ;;  %v752_v14 = vmul.f32 %v740_v55, %v725_v30  ;;  %v753_v15 = vmul.f32 %v741_v56, %v725_v30  ;;  %v754_v16 = vmul.f32 %v742_v57, %v725_v30 }
  0x91   : > { %v747_v13 = vmul.f32 %v739_v54, %v6238_v31  ;;  %v748_v30 = vmul.f32 %v740_v55, %v6238_v31  ;;  %v749_v32 = vmul.f32 %v741_v56, %v6238_v31  ;;  %v750_v33 = vmul.f32 %v742_v57, %v6238_v31 }
  0x92   : > { %v781_v21 = vpop.permute.xlu2 %780 }
  0x93   : > { %v807_v44 = vmul.f32 %v6243_v50, %v781_v21  ;;  %v6293_v31 = vmul.f32 %v6247_v52, %v781_v21  ;;  %v6296_v47 = vmul.f32 %v6249_v53, %v781_v21 }
  0x97   : > { %v729_v35 = vpop.permute.xlu1 %728 }
  0x98   : > { %v755_v23 = vmul.f32 %v739_v54, %v729_v35  ;;  %v756_v25 = vmul.f32 %v740_v55, %v729_v35  ;;  %v757_v27 = vmul.f32 %v741_v56, %v729_v35  ;;  %v758_v29 = vmul.f32 %v742_v57, %v729_v35 }
  0x99   : > { %v678_v41 = vpop.permute.xlu0 %677  ;;  %v6290_v35 = vmul.f32 %v6245_v51, %v781_v21 }
  0x9a   : > { %v707_v22 = vmul.f32 %v6251_v58, %v678_v41  ;;  %v708_v24 = vmul.f32 %v6253_v59, %v678_v41  ;;  %v709_v26 = vmul.f32 %v6255_v60, %v678_v41  ;;  %v710_v28 = vmul.f32 %v6257_v61, %v678_v41 }
  0x9c   : > { %v767_v42 = vadd.f32 %v751_v12, %v707_v22  ;;  %v768_v43 = vadd.f32 %v752_v14, %v708_v24  ;;  %v769_v45 = vadd.f32 %v753_v15, %v709_v26  ;;  %v770_v46 = vadd.f32 %v754_v16, %v710_v28  ;;  %v857_v22 = vpop.permute.xlu2 %856 }
  0x9e   : > { %v827_v16 = vadd.f32 %v811_v62, %v767_v42  ;;  %v830_v21 = vadd.f32 %v814_v3, %v770_v46 }
  0xa0   : > { %v673_v63 = vpop.permute.xlu1 %672 }
  0xa1   : > { %v683_v5 = vpop.permute.xlu0 %682  ;;  %v703_v34 = vmul.f32 %v6251_v58, %v673_v63  ;;  %v704_v48 = vmul.f32 %v6253_v59, %v673_v63  ;;  %v705_v49 = vmul.f32 %v6255_v60, %v673_v63  ;;  %v706_v54 = vmul.f32 %v6257_v61, %v673_v63 }
  0xa2   : > { %v711_v17 = vmul.f32 %v6251_v58, %v683_v5  ;;  %v712_v18 = vmul.f32 %v6253_v59, %v683_v5  ;;  %v713_v19 = vmul.f32 %v6255_v60, %v683_v5  ;;  %v714_v20 = vmul.f32 %v6257_v61, %v683_v5 }
  0xa3   : > { %v763_v55 = vadd.f32 %v747_v13, %v703_v34  ;;  %v764_v63 = vadd.f32 %v748_v30, %v704_v48 }
  0xa4   : > { %v771_v36 = vadd.f32 %v755_v23, %v711_v17  ;;  %v772_v37 = vadd.f32 %v756_v25, %v712_v18  ;;  %v773_v38 = vadd.f32 %v757_v27, %v713_v19  ;;  %v774_v39 = vadd.f32 %v758_v29, %v714_v20 }
  0xa5   : > { %v828_v17 = vadd.f32 %v812_v1, %v768_v43  ;;  %v829_v20 = vadd.f32 %v813_v2, %v769_v45  ;;  %v823_v23 = vadd.f32 %v807_v44, %v763_v55  ;;  %v824_v45 = vadd.f32 %v6290_v35, %v764_v63  ;;  %v5812_v63 = vld [vmem:[%s605_s0 + $0x18] sm:$0xff] }
  0xa6   : > { %v831_v56 = vadd.f32 %v815_v0, %v771_v36  ;;  %v832_v57 = vadd.f32 %v816_v6, %v772_v37  ;;  %v833_v5 = vadd.f32 %v817_v7, %v773_v38  ;;  %v834_v12 = vadd.f32 %v818_v8, %v774_v39 }
  0xa7   : > { %v765_v0 = vadd.f32 %v749_v32, %v705_v49  ;;  %v766_v6 = vadd.f32 %v750_v33, %v706_v54 }
  0xa8   : > { %v871_v7 = vadd.f32 %v857_v22, %v831_v56  ;;  %v872_v8 = vadd.f32 %v857_v22, %v832_v57  ;;  %v873_v13 = vadd.f32 %v857_v22, %v833_v5 }
  0xa9   : > { %v777_v40 = vpop.permute.xlu1 %776  ;;  %v668_v41 = vpop.permute.xlu0 %667  ;;  %v825_v46 = vadd.f32 %v6293_v31, %v765_v0  ;;  %v826_v48 = vadd.f32 %v6296_v47, %v766_v6 }
  0xaa   : > { %v699_v14 = vmul.f32 %v6251_v58, %v668_v41  ;;  %v700_v15 = vmul.f32 %v6253_v59, %v668_v41  ;;  %v701_v18 = vmul.f32 %v6255_v60, %v668_v41  ;;  %v702_v19 = vmul.f32 %v6257_v61, %v668_v41 }
  0xab   : > { %v874_v58 = vadd.f32 %v857_v22, %v834_v12  ;;  %v803_v62 = vmul.f32 %v6243_v50, %v777_v40  ;;  %v804_v61 = vmul.f32 %v6245_v51, %v777_v40  ;;  %v805_v3 = vmul.f32 %v6247_v52, %v777_v40  ;;  %v5810_v22 = vld [vmem:[%s605_s0 + $0x8] sm:$0xff] }
  0xac   : > { %v759_v59 = vadd.f32 %v6264_v4, %v699_v14  ;;  %v760_v60 = vadd.f32 %v6269_v9, %v700_v15  ;;  %v761_v2 = vadd.f32 %v6271_v10, %v701_v18  ;;  %v762_v24 = vadd.f32 %v6273_v11, %v702_v19 }
  0xad   : > { %v806_v25 = vmul.f32 %v6249_v53, %v777_v40  ;;  %v887_v28 = vmax.f32 %v871_v7, 0.0  ;;  %v888_v9 = vmax.f32 %v872_v8, 0.0  ;;  %v889_v29 = vmax.f32 %v873_v13, 0.0 }
  0xae   : > { %v890_v51 = vmax.f32 %v874_v58, 0.0  ;;  %v819_v34 = vadd.f32 %v803_v62, %v759_v59  ;;  %v820_v11 = vadd.f32 %v804_v61, %v760_v60  ;;  %v821_v36 = vadd.f32 %v805_v3, %v761_v2  ;;  %v6347_v59 = vpop.permute.xlu2 %947 }
  0xaf   : > { %v822_v53 = vadd.f32 %v806_v25, %v762_v24  ;;  %v6133_v13 = vmov 1983009808  }
  0xb0   : > { %v1452_v58 = vunpack.c.l.s4 %v6133_v13 }
  0xb1   : > { %v842_v30 = vpop.permute.xlu0 %841 }
  0xb2   : > { %v852_v1 = vpop.permute.xlu1 %851  ;;  %v859_v42 = vadd.f32 %v842_v30, %v819_v34  ;;  %v860_v43 = vadd.f32 %v842_v30, %v820_v11  ;;  %v861_v44 = vadd.f32 %v842_v30, %v821_v36  ;;  %v862_v41 = vadd.f32 %v842_v30, %v822_v53 }
  0xb3   : > { %v867_v26 = vadd.f32 %v852_v1, %v827_v16  ;;  %v868_v27 = vadd.f32 %v852_v1, %v828_v17  ;;  %v869_v4 = vadd.f32 %v852_v1, %v829_v20  ;;  %v870_v50 = vadd.f32 %v852_v1, %v830_v21  ;;  %v5809_v21 = vld [vmem:[%s605_s0] sm:$0xff] }
  0xb4   : > { %v875_v5 = vmax.f32 %v859_v42, 0.0  ;;  %v876_v12 = vmax.f32 %v860_v43, 0.0  ;;  %v877_v14 = vmax.f32 %v861_v44, 0.0  ;;  %v878_v15 = vmax.f32 %v862_v41, 0.0 }
  0xb5   : > { %v883_v32 = vmax.f32 %v867_v26, 0.0  ;;  %v884_v10 = vmax.f32 %v868_v27, 0.0  ;;  %v885_v33 = vmax.f32 %v869_v4, 0.0  ;;  %v886_v52 = vmax.f32 %v870_v50, 0.0 }
  0xb6   : > { %v6353_v26 = vunpack.c.0.s8 %v1452_v58 }
  0xb7   : > { %v903_v37 = vpack.c.bf16 %v887_v28, %v883_v32  ;;  %v904_v38 = vpack.c.bf16 %v888_v9, %v884_v10  ;;  %v905_v39 = vpack.c.bf16 %v889_v29, %v885_v33  ;;  %v906_v40 = vpack.c.bf16 %v890_v51, %v886_v52 }
  0xb9   : > { %994 = vmatpush.bf16.msra.mxu0 %v903_v37  ;;  %1023 = vmatpush.bf16.msra.mxu1 %v904_v38  ;;  %v6345_v0 = vpop.permute.xlu0 %942  ;;  %v938_v38 = vpop.permute.xlu2 %937 }
  0xba   : > { %1052 = vmatpush.bf16.msra.mxu2 %v905_v39  ;;  %1081 = vmatpush.bf16.msra.mxu3 %v906_v40  ;;  %v847_v49 = vpop.permute.xlu1 %846 }
  0xbb   : > { %v863_v54 = vadd.f32 %v847_v49, %v823_v23  ;;  %v864_v55 = vadd.f32 %v847_v49, %v824_v45  ;;  %v865_v56 = vadd.f32 %v847_v49, %v825_v46  ;;  %v866_v57 = vadd.f32 %v847_v49, %v826_v48  ;;  %v5811_v23 = vld [vmem:[%s605_s0 + $0x10] sm:$0xff]  ;;  %s649_s0 = sld [smem:[#allocation3 + %s6209_s26]] }
  0xbd   : > { %v879_v16 = vmax.f32 %v863_v54, 0.0  ;;  %v880_v17 = vmax.f32 %v864_v55, 0.0  ;;  %v881_v18 = vmax.f32 %v865_v56, 0.0  ;;  %v882_v35 = vmax.f32 %v866_v57, 0.0 }
  0xbf   : > { %v899_v31 = vpack.c.bf16 %v879_v16, %v875_v5  ;;  %v900_v47 = vpack.c.bf16 %v880_v17, %v876_v12  ;;  %v901_v19 = vpack.c.bf16 %v881_v18, %v877_v14  ;;  %v902_v20 = vpack.c.bf16 %v882_v35, %v878_v15 }
  0xc1   : > { %995 = vmatpush.bf16.msra.mxu0 %v899_v31  ;;  %1024 = vmatpush.bf16.msra.mxu1 %v900_v47  ;;  %v918_v8 = vpop.permute.xlu0 %917  ;;  %v933_v48 = vpop.permute.xlu2 %932  ;;  %p650_p13 = scmp.lt.s32.totalorder %s649_s0, 1 }
  0xc2   : > { %1053 = vmatpush.bf16.msra.mxu2 %v901_v19  ;;  %1082 = vmatpush.bf16.msra.mxu3 %v902_v20  ;;  %v6363_v9 = vpop.permute.xlu1 %952 }
  0xc3   : > { %s11559_s0 = smov (!%p650_p13, %s649_s0), 1 }
  0xc4   : > { %5724 = vmatmul.msk.bf16.vlgmr.msra.gmra.mxu0 %vm975_vm0, %v5809_v21  ;;  %5728 = vmatmul.msk.bf16.vlgmr.msra.gmra.mxu1 %vm975_vm0, %v5809_v21  ;;  %s652_s28 = scalar_lea.vmem %s10463_s11, %s11559_s0 }
  0xc5   : > { %5732 = vmatmul.msk.bf16.vlgmr.msra.gmra.mxu2 %vm975_vm0, %v5809_v21  ;;  %5736 = vmatmul.msk.bf16.vlgmr.msra.gmra.mxu3 %vm975_vm0, %v5809_v21 }
  0xca   : > { %v928_v39 = vpop.permute.xlu1 %927 }
  0xd4   : > { %5725 = vmatmul.msk.bf16.gmra.mxu0 %vm975_vm0, %v5810_v22  ;;  %5729 = vmatmul.msk.bf16.gmra.mxu1 %vm975_vm0, %v5810_v22 }
  0xd5   : > { %5733 = vmatmul.msk.bf16.gmra.mxu2 %vm975_vm0, %v5810_v22  ;;  %5737 = vmatmul.msk.bf16.gmra.mxu3 %vm975_vm0, %v5810_v22 }
  0xe4   : > { %5726 = vmatmul.msk.bf16.gmra.mxu0 %vm975_vm0, %v5811_v23  ;;  %5730 = vmatmul.msk.bf16.gmra.mxu1 %vm975_vm0, %v5811_v23 }
  0xe5   : > { %5734 = vmatmul.msk.bf16.gmra.mxu2 %vm975_vm0, %v5811_v23  ;;  %5738 = vmatmul.msk.bf16.gmra.mxu3 %vm975_vm0, %v5811_v23 }
  0xf4   : > { %5727 = vmatmul.msk.bf16.gmra.mxu0 %vm975_vm0, %v5812_v63  ;;  %5731 = vmatmul.msk.bf16.gmra.mxu1 %vm975_vm0, %v5812_v63 }
  0xf5   : > { %5735 = vmatmul.msk.bf16.gmra.mxu2 %vm975_vm0, %v5812_v63  ;;  %5739 = vmatmul.msk.bf16.gmra.mxu3 %vm975_vm0, %v5812_v63 }
 0x141   : > { %v997_v6 = vpop.f32.mrf.mxu0  ;;  %v1026_v7 = vpop.f32.mrf.mxu1 }
 0x142   : > { %v998_v62 = vadd.f32 %v997_v6, %v918_v8  ;;  %v1027_v60 = vadd.f32 %v1026_v7, %v918_v8 }
 0x144   : > { %v6355_v27 = vmax.f32 %v998_v62, 0.0  ;;  %v6357_v4 = vmax.f32 %v1027_v60, 0.0 }
 0x146   : > { %v6375_v30 = vperm.slane %v6355_v27, %v6353_v26  ;;  %v6379_v32 = vperm.slane %v6357_v4, %v6353_v26 }
 0x148   : > { %v1055_v61 = vpop.f32.mrf.mxu2  ;;  %v1084_v1 = vpop.f32.mrf.mxu3 }
 0x149   : > { %v1056_v2 = vadd.f32 %v1055_v61, %v918_v8  ;;  %v1085_v3 = vadd.f32 %v1084_v1, %v918_v8  ;;  %v6349_v24 = vpop.f32.mrf.mxu0  ;;  %v6351_v25 = vpop.f32.mrf.mxu1 }
 0x14b   : > { %v6359_v50 = vmax.f32 %v1056_v2, 0.0  ;;  %v6361_v28 = vmax.f32 %v1085_v3, 0.0 }
 0x14d   : > { %v6367_v29 = vperm.slane %v6359_v50, %v6353_v26  ;;  %v6371_v51 = vperm.slane %v6361_v28, %v6353_v26 }
 0x14f   : > { %v2301_v10 = vrot.slane %v6367_v29, 4  ;;  %v2717_v33 = vrot.slane %v6371_v51, 4 }
 0x150   : > { %v6383_v52 = vpop.f32.mrf.mxu2  ;;  %v6385_v34 = vpop.f32.mrf.mxu3 }
 0x151   : > { %v6389_v11 = vsel %vm1449_vm1, %v2301_v10, %v6375_v30  ;;  %v6393_v36 = vsel %vm1449_vm1, %v2717_v33, %v6379_v32  ;;  %v1002_v53 = vpop.f32.mrf.mxu0  ;;  %v1031_v37 = vpop.f32.mrf.mxu1 }
 0x152   : > { %10753 = vst [vmem:[#allocation5_spill] sm:$0xff] %v6389_v11  ;;  %v1003_v43 = vadd.f32 %v1002_v53, %v928_v39  ;;  %v1032_v41 = vadd.f32 %v1031_v37, %v928_v39 }
 0x153   : > { %10754 = vst [vmem:[#allocation6_spill] sm:$0xff] %v6393_v36 }
 0x154   : > { %v6395_v54 = vmax.f32 %v1003_v43, 0.0  ;;  %v6399_v57 = vmax.f32 %v1032_v41, 0.0 }
 0x156   : > { %v6413_v18 = vperm.slane %v6395_v54, %v6353_v26  ;;  %v6420_v19 = vperm.slane %v6399_v57, %v6353_v26 }
 0x158   : > { %v1060_v40 = vpop.f32.mrf.mxu2  ;;  %v1089_v42 = vpop.f32.mrf.mxu3 }
 0x159   : > { %v1004_v44 = vpop.f32.mrf.mxu0  ;;  %v1033_v45 = vpop.f32.mrf.mxu1  ;;  %v1061_v46 = vadd.f32 %v1060_v40, %v928_v39  ;;  %v1090_v49 = vadd.f32 %v1089_v42, %v928_v39 }
 0x15a   : > { %v1005_v56 = vadd.f32 %v1004_v44, %v933_v48  ;;  %v1034_v14 = vadd.f32 %v1033_v45, %v933_v48 }
 0x15b   : > { %v6397_v55 = vmax.f32 %v1061_v46, 0.0  ;;  %v6401_v5 = vmax.f32 %v1090_v49, 0.0 }
 0x15c   : > { %v6416_v31 = vmax.f32 %v1005_v56, 0.0  ;;  %v6427_v22 = vmax.f32 %v1034_v14, 0.0 }
 0x15d   : > { %v6405_v12 = vperm.slane %v6397_v55, %v6353_v26  ;;  %v6409_v15 = vperm.slane %v6401_v5, %v6353_v26 }
 0x15e   : > { %v2442_v6 = vperm.slane %v6416_v31, %v6353_v26  ;;  %v2858_v58 = vperm.slane %v6427_v22, %v6353_v26 }
 0x15f   : > { %v2405_v35 = vrot.slane %v6405_v12, 4  ;;  %v2821_v20 = vrot.slane %v6409_v15, 4 }
 0x160   : > { %v1062_v16 = vpop.f32.mrf.mxu2  ;;  %v1091_v17 = vpop.f32.mrf.mxu3  ;;  %v2459_v3 = vrot.slane %v2442_v6, 4  ;;  %v2875_v37 = vrot.slane %v2858_v58, 4 }
 0x161   : > { %v1007_v47 = vpop.f32.mrf.mxu0  ;;  %v6425_v21 = vsel %vm1449_vm1, %v2405_v35, %v6413_v18  ;;  %v6431_v23 = vsel %vm1449_vm1, %v2821_v20, %v6420_v19  ;;  %v1036_v63 = vpop.f32.mrf.mxu1  ;;  %v1063_v7 = vadd.f32 %v1062_v16, %v933_v48  ;;  %v1092_v8 = vadd.f32 %v1091_v17, %v933_v48 }
 0x162   : > { %10755 = vst [vmem:[#allocation7_spill] sm:$0xff] %v6425_v21  ;;  %v1008_v13 = vadd.f32 %v1007_v47, %v938_v38  ;;  %v1037_v61 = vadd.f32 %v1036_v63, %v938_v38 }
 0x163   : > { %10756 = vst [vmem:[#allocation8_spill] sm:$0xff] %v6431_v23  ;;  %v6437_v62 = vmax.f32 %v1063_v7, 0.0  ;;  %v6439_v60 = vmax.f32 %v1092_v8, 0.0 }
 0x164   : > { %v6445_v53 = vmax.f32 %v1008_v13, 0.0  ;;  %v6450_v44 = vmax.f32 %v1037_v61, 0.0 }
 0x165   : > { %v2452_v10 = vperm.slane %v6437_v62, %v6353_v26  ;;  %v2868_v33 = vperm.slane %v6439_v60, %v6353_v26 }
 0x166   : > { %v6463_v56 = vperm.slane %v6445_v53, %v6353_v26  ;;  %v6467_v16 = vperm.slane %v6450_v44, %v6353_v26 }
 0x167   : > { %v2457_v39 = vrot.slane %v2452_v10, 4  ;;  %v6448_v40 = vsel %vm1449_vm1, %v2452_v10, %v2459_v3  ;;  %v2873_v43 = vrot.slane %v2868_v33, 4  ;;  %v6456_v48 = vsel %vm1449_vm1, %v2868_v33, %v2875_v37 }
 0x168   : > { %v1065_v1 = vpop.f32.mrf.mxu2  ;;  %v1094_v2 = vpop.f32.mrf.mxu3  ;;  %10757 = vst [vmem:[#allocation9_spill] sm:$0xff] %v6448_v40  ;;  %v2511_v63 = vrot.slane %v6463_v56, 4  ;;  %v2927_v13 = vrot.slane %v6467_v16, 4 }
 0x169   : > { %v1009_v42 = vpop.f32.mrf.mxu0  ;;  %v1066_v41 = vadd.f32 %v1065_v1, %v938_v38  ;;  %v1095_v45 = vadd.f32 %v1094_v2, %v938_v38  ;;  %v6453_v46 = vsel %vm1449_vm1, %v2457_v39, %v2442_v6  ;;  %10759 = vst [vmem:[#allocation11_spill] sm:$0xff] %v6456_v48  ;;  %v6459_v49 = vsel %vm1449_vm1, %v2873_v43, %v2858_v58  ;;  %v1038_v14 = vpop.f32.mrf.mxu1 }
 0x16a   : > { %10758 = vst [vmem:[#allocation10_spill] sm:$0xff] %v6453_v46  ;;  %v1010_v8 = vadd.f32 %v1009_v42, %v6345_v0  ;;  %v1039_v10 = vadd.f32 %v1038_v14, %v6345_v0 }
 0x16b   : > { %10760 = vst [vmem:[#allocation12_spill] sm:$0xff] %v6459_v49  ;;  %v6469_v17 = vmax.f32 %v1066_v41, 0.0  ;;  %v6471_v38 = vmax.f32 %v1095_v45, 0.0 }
 0x16c   : > { %v6495_v3 = vmax.f32 %v1010_v8, 0.0 }
 0x16d   : > { %v6477_v6 = vperm.slane %v6469_v17, %v6353_v26  ;;  %v6481_v7 = vperm.slane %v6471_v38, %v6353_v26 }
 0x16e   : > { %v6505_v41 = vperm.slane %v6495_v3, %v6353_v26 }
 0x16f   : > { %v6487_v58 = vsel %vm1449_vm1, %v6477_v6, %v2511_v63  ;;  %v6493_v2 = vsel %vm1449_vm1, %v6481_v7, %v2927_v13 }
 0x170   : > { %v1067_v35 = vpop.f32.mrf.mxu2  ;;  %v1096_v47 = vpop.f32.mrf.mxu3  ;;  %10761 = vst [vmem:[#allocation13_spill] sm:$0xff] %v6487_v58 }
 0x171   : > { %v1068_v20 = vadd.f32 %v1067_v35, %v6345_v0  ;;  %v1012_v1 = vpop.f32.mrf.mxu0  ;;  %10762 = vst [vmem:[#allocation14_spill] sm:$0xff] %v6493_v2  ;;  %v1041_v33 = vpop.f32.mrf.mxu1  ;;  %v1097_v42 = vadd.f32 %v1096_v47, %v6345_v0  ;;  %v6508_v35 = vmax.f32 %v1039_v10, 0.0 }
 0x172   : > { %v1013_v14 = vadd.f32 %v1012_v1, %v6347_v59  ;;  %v1042_v0 = vadd.f32 %v1041_v33, %v6347_v59 }
 0x173   : > { %v6489_v61 = vmax.f32 %v1068_v20, 0.0  ;;  %v6510_v20 = vmax.f32 %v1097_v42, 0.0  ;;  %v6530_v1 = vperm.slane %v6508_v35, %v6353_v26 }
 0x174   : > { %v6535_v33 = vmax.f32 %v1042_v0, 0.0 }
 0x175   : > { %v6500_v37 = vperm.slane %v6489_v61, %v6353_v26  ;;  %v6522_v13 = vperm.slane %v6510_v20, %v6353_v26 }
 0x176   : > { %10765 = vst [vmem:[#allocation17_spill] sm:$0xff] %v6535_v33 }
 0x177   : > { %v2561_v45 = vrot.slane %v6500_v37, 4 }
 0x178   : > { %v1070_v39 = vpop.f32.mrf.mxu2  ;;  %v1099_v43 = vpop.f32.mrf.mxu3 }
 0x179   : > { %v1071_v63 = vadd.f32 %v1070_v39, %v6347_v59  ;;  %v6516_v8 = vsel %vm1449_vm1, %v2561_v45, %v6505_v41  ;;  %v1100_v47 = vadd.f32 %v1099_v43, %v6347_v59  ;;  %v1014_v49 = vpop.f32.mrf.mxu0  ;;  %v2977_v39 = vrot.slane %v6522_v13, 4 }
 0x17a   : > { %10763 = vst [vmem:[#allocation15_spill] sm:$0xff] %v6516_v8  ;;  %v6533_v45 = vmax.f32 %v1013_v14, 0.0 }
 0x17b   : > { %v6524_v10 = vmax.f32 %v1071_v63, 0.0  ;;  %v6526_v42 = vmax.f32 %v1100_v47, 0.0  ;;  %v6542_v59 = vsel %vm1449_vm1, %v2977_v39, %v6530_v1  ;;  %v1015_v63 = vadd.f32 %v1014_v49, %v6363_v9  ;;  %v1043_v47 = vpop.f32.mrf.mxu1 }
 0x17c   : > { %10764 = vst [vmem:[#allocation16_spill] sm:$0xff] %v6533_v45  ;;  %v6555_v0 = vperm.slane %v6533_v45, %v6353_v26  ;;  %v1044_v49 = vadd.f32 %v1043_v47, %v6363_v9 }
 0x17d   : > { %10766 = vst [vmem:[#allocation18_spill] sm:$0xff] %v6542_v59  ;;  %v6546_v43 = vperm.slane %v6524_v10, %v6353_v26  ;;  %v6551_v14 = vperm.slane %v6526_v42, %v6353_v26  ;;  %v6560_v59 = vperm.slane %v6535_v33, %v6353_v26  ;;  %v6568_v2 = vmax.f32 %v1015_v63, 0.0 }
 0x17e   : > { %v6574_v48 = vmax.f32 %v1044_v49, 0.0 }
 0x17f   : > { %10767 = vst [vmem:[#allocation19_spill] sm:$0xff] %v6546_v43  ;;  %v2613_v8 = vrot.slane %v6546_v43, 4  ;;  %v3029_v46 = vrot.slane %v6551_v14, 4 }
 0x180   : > { %10768 = vst [vmem:[#allocation20_spill] sm:$0xff] %v6551_v14  ;;  %v1072_v39 = vpop.f32.mrf.mxu2  ;;  %v1101_v23 = vpop.f32.mrf.mxu3  ;;  %v1151_v63 = vpack.c.bf16 %v6574_v48, %v6535_v33  ;;  %v1142_v14 = vpack.c.bf16 %v6416_v31, %v6395_v54 }
 0x181   : > { %v6566_v21 = vsel %vm1449_vm1, %v2613_v8, %v6555_v0  ;;  %v6572_v58 = vsel %vm1449_vm1, %v3029_v46, %v6560_v59  ;;  %v1073_v40 = vadd.f32 %v1072_v39, %v6363_v9  ;;  %v1102_v36 = vadd.f32 %v1101_v23, %v6363_v9  ;;  %v923_v46 = vpop.permute.xlu1 %922 }
 0x182   : > { %10769 = vst [vmem:[#allocation21_spill] sm:$0xff] %v6566_v21  ;;  %v1150_v8 = vpack.c.bf16 %v6568_v2, %v6533_v45  ;;  %1193 = vmatpush.bf16.msrb.mxu1 %v1151_v63  ;;  %v1000_v49 = vadd.f32 %v6349_v24, %v923_v46  ;;  %v1029_v39 = vadd.f32 %v6351_v25, %v923_v46 }
 0x183   : > { %10770 = vst [vmem:[#allocation22_spill] sm:$0xff] %v6572_v58  ;;  %v6578_v11 = vmax.f32 %v1073_v40, 0.0  ;;  %v6581_v47 = vmax.f32 %v1102_v36, 0.0  ;;  %v1146_v23 = vpack.c.bf16 %v6495_v3, %v6445_v53  ;;  %v1147_v40 = vpack.c.bf16 %v6508_v35, %v6450_v44 }
 0x184   : > { %1179 = vmatpush.bf16.msrb.mxu0 %v1150_v8  ;;  %v1108_v24 = vmax.f32 %v1000_v49, 0.0  ;;  %v1109_v8 = vmax.f32 %v1029_v39, 0.0  ;;  %v1148_v25 = vpack.c.bf16 %v6489_v61, %v6469_v17  ;;  %v1149_v63 = vpack.c.bf16 %v6510_v20, %v6471_v38 }
 0x185   : > { %v1152_v9 = vpack.c.bf16 %v6578_v11, %v6524_v10  ;;  %v1153_v36 = vpack.c.bf16 %v6581_v47, %v6526_v42  ;;  %v1058_v58 = vadd.f32 %v6383_v52, %v923_v46  ;;  %v1087_v21 = vadd.f32 %v6385_v34, %v923_v46 }
 0x186   : > { %1194 = vmatpush.bf16.msrb.mxu1 %v1147_v40  ;;  %v1144_v49 = vpack.c.bf16 %v6437_v62, %v6397_v55  ;;  %v1145_v52 = vpack.c.bf16 %v6439_v60, %v6401_v5  ;;  %v1138_v39 = vpack.c.bf16 %v1108_v24, %v6355_v27 }
 0x187   : > { %1207 = vmatpush.bf16.msrb.mxu2 %v1152_v9  ;;  %1221 = vmatpush.bf16.msrb.mxu3 %v1153_v36  ;;  %v1143_v9 = vpack.c.bf16 %v6427_v22, %v6399_v57  ;;  %v1110_v34 = vmax.f32 %v1058_v58, 0.0  ;;  %v1111_v46 = vmax.f32 %v1087_v21, 0.0  ;;  %v1139_v36 = vpack.c.bf16 %v1109_v8, %v6357_v4 }
 0x188   : > { %1180 = vmatpush.bf16.msrb.mxu0 %v1146_v23  ;;  %v2281_v21 = vrot.slane %v6355_v27, 4  ;;  %v2697_v58 = vrot.slane %v6357_v4, 4 }
 0x189   : > { %v1140_v23 = vpack.c.bf16 %v1110_v34, %v6359_v50  ;;  %v1141_v40 = vpack.c.bf16 %v1111_v46, %v6361_v28 }
 0x18a   : > { %1195 = vmatpush.bf16.msrb.mxu1 %v1143_v9  ;;  %v2282_v9 = vsel %vm1449_vm1, 0.0, %v2281_v21  ;;  %v2343_v21 = vrot.slane %v1110_v34, 4 }
 0x18b   : > { %1208 = vmatpush.bf16.msrb.mxu2 %v1148_v25  ;;  %1222 = vmatpush.bf16.msrb.mxu3 %v1149_v63  ;;  %v2291_v25 = vrot.slane %v6359_v50, 4  ;;  %v2707_v63 = vrot.slane %v6361_v28, 4  ;;  %v2303_v28 = vrot.slane %v6375_v30, 4 }
 0x18c   : > { %1181 = vmatpush.bf16.msrb.mxu0 %v1142_v14  ;;  %v5813_v14 = vld [vmem:[%s619_s13] sm:$0xff] }
 0x18e   : > { %1196 = vmatpush.bf16.msrb.mxu1 %v1139_v36  ;;  %v2333_v36 = vrot.slane %v1108_v24, 4 }
 0x18f   : > { %1209 = vmatpush.bf16.msrb.mxu2 %v1144_v49  ;;  %1223 = vmatpush.bf16.msrb.mxu3 %v1145_v52  ;;  %v2698_v49 = vsel %vm1449_vm1, 0.0, %v2697_v58  ;;  %v2292_v52 = vsel %vm1449_vm1, 0.0, %v2291_v25  ;;  %v2759_v58 = vrot.slane %v1111_v46, 4  ;;  %v2338_v25 = vperm.slane %v1108_v24, %v6353_v26 }
 0x190   : > { %1182 = vmatpush.bf16.msrb.mxu0 %v1138_v39  ;;  %v2708_v39 = vsel %vm1449_vm1, 0.0, %v2707_v63  ;;  %v2706_v27 = vperm.slane %v2698_v49, %v6353_v26  ;;  %v2300_v4 = vperm.slane %v2292_v52, %v6353_v26  ;;  %v2754_v63 = vperm.slane %v1109_v8, %v6353_v26 }
 0x191   : > { %5745 = vmatmul.msk.bf16.vlgmr.msrb.gmra.mxu1 %vm1171_vm2, %v5813_v14  ;;  %v2716_v50 = vperm.slane %v2708_v39, %v6353_v26  ;;  %v2334_v43 = vsel %vm1449_vm1, 0.0, %v2333_v36  ;;  %v6643_v49 = vsel %vm1449_vm1, %v6367_v29, %v2303_v28  ;;  %v2344_v24 = vsel %vm1449_vm1, 0.0, %v2343_v21 }
 0x192   : > { %10771 = vst [vmem:[#allocation23_spill] sm:$0xff] %v6643_v49  ;;  %v2313_v39 = vrot.slane %v2300_v4, 4  ;;  %v2760_v36 = vsel %vm1449_vm1, 0.0, %v2759_v58  ;;  %v2342_v45 = vperm.slane %v2334_v43, %v6353_v26  ;;  %v2355_v29 = vrot.slane %v2338_v25, 4 }
 0x193   : > { %5744 = vmatmul.msk.bf16.vlgmr.msrb.gmra.mxu0 %vm1171_vm2, %v5813_v14  ;;  %1210 = vmatpush.bf16.msrb.mxu2 %v1140_v23  ;;  %v2749_v23 = vrot.slane %v1109_v8, 4  ;;  %v2729_v33 = vrot.slane %v2716_v50, 4  ;;  %v2348_v8 = vperm.slane %v1110_v34, %v6353_v26  ;;  %v2771_v49 = vrot.slane %v2754_v63, 4 }
 0x194   : > { %1224 = vmatpush.bf16.msrb.mxu3 %v1141_v40  ;;  %v2719_v40 = vrot.slane %v6379_v32, 4  ;;  %v2731_v32 = vrot.slane %v2706_v27, 4  ;;  %v2352_v34 = vperm.slane %v2344_v24, %v6353_v26  ;;  %v2768_v21 = vperm.slane %v2760_v36, %v6353_v26 }
 0x195   : > { %v6668_v43 = vsel %vm1449_vm1, %v2729_v33, %v2706_v27  ;;  %v2353_v58 = vrot.slane %v2348_v8, 4 }
 0x196   : > { %5746 = vmatmul.msk.bf16.vlgmr.msrb.gmra.mxu2 %vm1171_vm2, %v5813_v14  ;;  %v6647_v52 = vsel %vm1449_vm1, %v6371_v51, %v2719_v40  ;;  %v2385_v51 = vrot.slane %v6395_v54, 4  ;;  %10776 = vst [vmem:[#allocation28_spill] sm:$0xff] %v6668_v43  ;;  %v2395_v54 = vrot.slane %v6397_v55, 4  ;;  %v2781_v36 = vrot.slane %v2768_v21, 4 }
 0x197   : > { %5747 = vmatmul.msk.bf16.vlgmr.msrb.gmra.mxu3 %vm1171_vm2, %v5813_v14  ;;  %v2290_v14 = vperm.slane %v2282_v9, %v6353_v26  ;;  %v2750_v9 = vsel %vm1449_vm1, 0.0, %v2749_v23  ;;  %10772 = vst [vmem:[#allocation24_spill] sm:$0xff] %v6647_v52  ;;  %v2764_v23 = vperm.slane %v1111_v46, %v6353_v26  ;;  %v6660_v52 = vsel %vm1449_vm1, %v2716_v50, %v2731_v32 }
 0x198   : > { %v2758_v28 = vperm.slane %v2750_v9, %v6353_v26  ;;  %10774 = vst [vmem:[#allocation26_spill] sm:$0xff] %v6660_v52  ;;  %v2367_v50 = vrot.slane %v2342_v45, 4  ;;  %v6674_v32 = vsel %vm1449_vm1, %v2348_v8, %v2355_v29  ;;  %v2386_v33 = vsel %vm1449_vm1, 0.0, %v2385_v51 }
 0x199   : > { %v2315_v30 = vrot.slane %v2290_v14, 4  ;;  %v6665_v46 = vsel %vm1449_vm1, %v2313_v39, %v2290_v14  ;;  %v2769_v9 = vrot.slane %v2764_v23, 4  ;;  %10777 = vst [vmem:[#allocation29_spill] sm:$0xff] %v6674_v32  ;;  %v6677_v24 = vsel %vm1449_vm1, %v2764_v23, %v2771_v49 }
 0x19a   : > { %10775 = vst [vmem:[#allocation27_spill] sm:$0xff] %v6665_v46  ;;  %v2783_v14 = vrot.slane %v2758_v28, 4  ;;  %v2365_v39 = vrot.slane %v2352_v34, 4  ;;  %v2396_v27 = vsel %vm1449_vm1, 0.0, %v2395_v54  ;;  %v6690_v49 = vsel %vm1449_vm1, %v2352_v34, %v2367_v50 }
 0x19b   : > { %v6657_v40 = vsel %vm1449_vm1, %v2300_v4, %v2315_v30  ;;  %v2811_v4 = vrot.slane %v6401_v5, 4  ;;  %v2801_v30 = vrot.slane %v6399_v57, 4  ;;  %10778 = vst [vmem:[#allocation30_spill] sm:$0xff] %v6677_v24  ;;  %v6683_v5 = vsel %vm1449_vm1, %v2353_v58, %v2338_v25 }
 0x19c   : > { %10773 = vst [vmem:[#allocation25_spill] sm:$0xff] %v6657_v40  ;;  %v6686_v57 = vsel %vm1449_vm1, %v2769_v9, %v2754_v63  ;;  %v6693_v23 = vsel %vm1449_vm1, %v2768_v21, %v2783_v14  ;;  %v2394_v29 = vperm.slane %v2386_v33, %v6353_v26  ;;  %v2407_v51 = vrot.slane %v6413_v18, 4 }
 0x19d   : > { %v2812_v55 = vsel %vm1449_vm1, 0.0, %v2811_v4  ;;  %10779 = vst [vmem:[#allocation31_spill] sm:$0xff] %v6683_v5  ;;  %v2802_v8 = vsel %vm1449_vm1, 0.0, %v2801_v30  ;;  %v2404_v54 = vperm.slane %v2396_v27, %v6353_v26  ;;  %v2823_v63 = vrot.slane %v6420_v19, 4 }
 0x19e   : > { %10780 = vst [vmem:[#allocation32_spill] sm:$0xff] %v6686_v57  ;;  %v2820_v25 = vperm.slane %v2812_v55, %v6353_v26  ;;  %v2810_v58 = vperm.slane %v2802_v8, %v6353_v26  ;;  %v6702_v9 = vsel %vm1449_vm1, %v2365_v39, %v2342_v45  ;;  %v6705_v34 = vsel %vm1449_vm1, %v2781_v36, %v2758_v28 }
 0x19f   : > { %10781 = vst [vmem:[#allocation33_spill] sm:$0xff] %v6690_v49  ;;  %v2437_v21 = vrot.slane %v6416_v31, 4  ;;  %v2853_v4 = vrot.slane %v6427_v22, 4  ;;  %v2447_v18 = vrot.slane %v6437_v62, 4  ;;  %v2863_v30 = vrot.slane %v6439_v60, 4 }
 0x1a0   : > { %10782 = vst [vmem:[#allocation34_spill] sm:$0xff] %v6693_v23  ;;  %v6713_v50 = vsel %vm1449_vm1, %v6405_v12, %v2407_v51  ;;  %v6717_v19 = vsel %vm1449_vm1, %v6409_v15, %v2823_v63  ;;  %v2417_v45 = vrot.slane %v2404_v54, 4  ;;  %v2833_v14 = vrot.slane %v2820_v25, 4 }
 0x1a1   : > { %10783 = vst [vmem:[#allocation35_spill] sm:$0xff] %v6702_v9  ;;  %v2419_v28 = vrot.slane %v2394_v29, 4  ;;  %v2835_v39 = vrot.slane %v2810_v58, 4  ;;  %v2438_v31 = vsel %vm1449_vm1, 0.0, %v2437_v21  ;;  %v2854_v22 = vsel %vm1449_vm1, 0.0, %v2853_v4 }
 0x1a2   : > { %10784 = vst [vmem:[#allocation36_spill] sm:$0xff] %v6705_v34  ;;  %v2448_v62 = vsel %vm1449_vm1, 0.0, %v2447_v18  ;;  %v2864_v60 = vsel %vm1449_vm1, 0.0, %v2863_v30  ;;  %v6730_v15 = vsel %vm1449_vm1, %v2417_v45, %v2394_v29  ;;  %v6733_v33 = vsel %vm1449_vm1, %v2833_v14, %v2810_v58 }
 0x1a3   : > { %10785 = vst [vmem:[#allocation37_spill] sm:$0xff] %v6713_v50  ;;  %v6724_v36 = vsel %vm1449_vm1, %v2404_v54, %v2419_v28  ;;  %v6727_v12 = vsel %vm1449_vm1, %v2820_v25, %v2835_v39  ;;  %v2446_v27 = vperm.slane %v2438_v31, %v6353_v26  ;;  %v2862_v55 = vperm.slane %v2854_v22, %v6353_v26 }
 0x1a4   : > { %10786 = vst [vmem:[#allocation38_spill] sm:$0xff] %v6717_v19  ;;  %v2456_v8 = vperm.slane %v2448_v62, %v6353_v26  ;;  %v2872_v51 = vperm.slane %v2864_v60, %v6353_v26  ;;  %v2509_v30 = vrot.slane %v6477_v6, 4  ;;  %v2925_v45 = vrot.slane %v6481_v7, 4 }
 0x1a5   : > { %10787 = vst [vmem:[#allocation39_spill] sm:$0xff] %v6724_v36  ;;  %v2471_v54 = vrot.slane %v2446_v27, 4  ;;  %v2887_v63 = vrot.slane %v2862_v55, 4  ;;  %v2499_v39 = vrot.slane %v6469_v17, 4  ;;  %v2915_v31 = vrot.slane %v6471_v38, 4 }
 0x1a6   : > { %10788 = vst [vmem:[#allocation40_spill] sm:$0xff] %v6727_v12  ;;  %v2469_v21 = vrot.slane %v2456_v8, 4  ;;  %v2885_v25 = vrot.slane %v2872_v51, 4  ;;  %v6756_v14 = vsel %vm1449_vm1, %v2509_v30, %v6463_v56  ;;  %v6760_v28 = vsel %vm1449_vm1, %v2925_v45, %v6467_v16 }
 0x1a7   : > { %10789 = vst [vmem:[#allocation41_spill] sm:$0xff] %v6730_v15  ;;  %v6740_v4 = vsel %vm1449_vm1, %v2456_v8, %v2471_v54  ;;  %v6743_v29 = vsel %vm1449_vm1, %v2872_v51, %v2887_v63  ;;  %v2489_v6 = vrot.slane %v6445_v53, 4  ;;  %v2905_v7 = vrot.slane %v6450_v44, 4  ;;  %v1164_v8 = vpop.permute.xlu0 %1163 }
 0x1a8   : > { %10790 = vst [vmem:[#allocation42_spill] sm:$0xff] %v6733_v33  ;;  %v6746_v58 = vsel %vm1449_vm1, %v2469_v21, %v2446_v27  ;;  %v6749_v18 = vsel %vm1449_vm1, %v2885_v25, %v2862_v55  ;;  %v2500_v60 = vsel %vm1449_vm1, 0.0, %v2499_v39  ;;  %v2916_v56 = vsel %vm1449_vm1, 0.0, %v2915_v31  ;;  %v1159_v27 = vpop.permute.xlu2 %1158 }
 0x1a9   : > { %10791 = vst [vmem:[#allocation43_spill] sm:$0xff] %v6740_v4  ;;  %v2490_v16 = vsel %vm1449_vm1, 0.0, %v2489_v6  ;;  %v2906_v17 = vsel %vm1449_vm1, 0.0, %v2905_v7  ;;  %v2508_v38 = vperm.slane %v2500_v60, %v6353_v26  ;;  %v2924_v55 = vperm.slane %v2916_v56, %v6353_v26 }
 0x1aa   : > { %10792 = vst [vmem:[#allocation44_spill] sm:$0xff] %v6743_v29  ;;  %v2551_v53 = vrot.slane %v6489_v61, 4  ;;  %v2967_v44 = vrot.slane %v6510_v20, 4  ;;  %v2498_v25 = vperm.slane %v2490_v16, %v6353_v26  ;;  %v2914_v30 = vperm.slane %v2906_v17, %v6353_v26 }
 0x1ab   : > { %10793 = vst [vmem:[#allocation45_spill] sm:$0xff] %v6746_v58  ;;  %v2521_v31 = vrot.slane %v2508_v38, 4  ;;  %v2937_v6 = vrot.slane %v2924_v55, 4  ;;  %v2541_v16 = vrot.slane %v6495_v3, 4  ;;  %v2563_v17 = vrot.slane %v6505_v41, 4 }
 0x1ac   : > { %10794 = vst [vmem:[#allocation46_spill] sm:$0xff] %v6749_v18  ;;  %v2552_v7 = vsel %vm1449_vm1, 0.0, %v2551_v53  ;;  %v2968_v61 = vsel %vm1449_vm1, 0.0, %v2967_v44  ;;  %v2957_v53 = vrot.slane %v6508_v35, 4  ;;  %v2979_v44 = vrot.slane %v6530_v1, 4 }
 0x1ad   : > { %10795 = vst [vmem:[#allocation47_spill] sm:$0xff] %v6756_v14  ;;  %v6797_v14 = vsel %vm1449_vm1, %v2937_v6, %v2914_v30  ;;  %v6801_v3 = vsel %vm1449_vm1, %v6500_v37, %v2563_v17  ;;  %v2542_v35 = vsel %vm1449_vm1, 0.0, %v2541_v16 }
 0x1ae   : > { %10796 = vst [vmem:[#allocation48_spill] sm:$0xff] %v6760_v28  ;;  %v6805_v41 = vsel %vm1449_vm1, %v6522_v13, %v2979_v44  ;;  %v2958_v1 = vsel %vm1449_vm1, 0.0, %v2957_v53 }
 0x1af   : > { %10798 = vst [vmem:[#allocation50_spill] sm:$0xff] %v6797_v14  ;;  %v2966_v13 = vperm.slane %v2958_v1, %v6353_v26 }
 0x1b0   : > { %10799 = vst [vmem:[#allocation51_spill] sm:$0xff] %v6801_v3 }
 0x1b1   : > { %10800 = vst [vmem:[#allocation52_spill] sm:$0xff] %v6805_v41 }
 0x20e   : > { %v1198_v62 = vpop.f32.mrf.mxu1 }
 0x20f   : > { %v1199_v54 = vadd.f32 %v1198_v62, %v1159_v27 }
 0x210   : > { %v1184_v22 = vpop.f32.mrf.mxu0 }
 0x211   : > { %v1185_v51 = vadd.f32 %v1184_v22, %v1159_v27  ;;  %v1232_v22 = vmax.f32 %v1199_v54, 0.0 }
 0x213   : > { %v1231_v56 = vmax.f32 %v1185_v51, 0.0  ;;  %v2976_v51 = vperm.slane %v2968_v61, %v6353_v26  ;;  %v2523_v61 = vrot.slane %v2498_v25, 4 }
 0x215   : > { %v2989_v6 = vrot.slane %v2976_v51, 4 }
 0x216   : > { %v1200_v21 = vpop.f32.mrf.mxu1 }
 0x217   : > { %v1201_v39 = vadd.f32 %v1200_v21, %v1164_v8 }
 0x218   : > { %v1186_v63 = vpop.f32.mrf.mxu0 }
 0x219   : > { %v1187_v45 = vadd.f32 %v1186_v63, %v1164_v8  ;;  %v1212_v60 = vpop.f32.mrf.mxu2  ;;  %v1236_v28 = vmax.f32 %v1201_v39, 0.0  ;;  %v2560_v63 = vperm.slane %v2552_v7, %v6353_v26  ;;  %v6794_v39 = vsel %vm1449_vm1, %v2521_v31, %v2498_v25 }
 0x21a   : > { %v1226_v20 = vpop.f32.mrf.mxu3  ;;  %10797 = vst [vmem:[#allocation49_spill] sm:$0xff] %v6794_v39 }
 0x21b   : > { %v1235_v62 = vmax.f32 %v1187_v45, 0.0  ;;  %v1248_v21 = vpack.c.bf16 %v1236_v28, %v1232_v22  ;;  %v5814_v45 = vld [vmem:[%s6784_s19] sm:$0xff]  ;;  %v1213_v28 = vadd.f32 %v1212_v60, %v1159_v27  ;;  %v1227_v31 = vadd.f32 %v1226_v20, %v1159_v27 }
 0x21c   : > { %v2573_v7 = vrot.slane %v2560_v63, 4  ;;  %v6814_v27 = vsel %vm1449_vm1, %v2508_v38, %v2523_v61  ;;  %v5815_v38 = vld [vmem:[%s6784_s19 + $0x8] sm:$0xff]  ;;  %v3019_v61 = vrot.slane %v6526_v42, 4 }
 0x21d   : > { %v1247_v54 = vpack.c.bf16 %v1235_v62, %v1231_v56  ;;  %1368 = vmatpush.bf16.msra.mxu1 %v1248_v21  ;;  %v2939_v56 = vrot.slane %v2914_v30, 4  ;;  %v2550_v62 = vperm.slane %v2542_v35, %v6353_v26  ;;  %v1233_v53 = vmax.f32 %v1213_v28, 0.0  ;;  %10801 = vst [vmem:[#allocation53_spill] sm:$0xff] %v6814_v27 }
 0x21e   : > { %v1234_v60 = vmax.f32 %v1227_v31, 0.0  ;;  %v5816_v31 = vld [vmem:[%s6784_s19 + $0x10] sm:$0xff]  ;;  %v3020_v42 = vsel %vm1449_vm1, 0.0, %v3019_v61 }
 0x21f   : > { %1339 = vmatpush.bf16.msra.mxu0 %v1247_v54  ;;  %v6817_v25 = vsel %vm1449_vm1, %v2924_v55, %v2939_v56  ;;  %v6820_v44 = vsel %vm1449_vm1, %v2573_v7, %v2550_v62  ;;  %v6823_v54 = vsel %vm1449_vm1, %v2989_v6, %v2966_v13  ;;  %v2575_v55 = vrot.slane %v2550_v62, 4 }
 0x220   : > { %5768 = vmatmul.msk.bf16.vlgmr.msra.gmra.mxu1 %vm1319_vm3, %v5814_v45  ;;  %10802 = vst [vmem:[#allocation54_spill] sm:$0xff] %v6817_v25  ;;  %v3076_v7 = vperm.slane %v6581_v47, %v6353_v26  ;;  %v2603_v6 = vrot.slane %v6524_v10, 4  ;;  %v2650_v56 = vperm.slane %v6568_v2, %v6353_v26  ;;  %v3031_v62 = vrot.slane %v6560_v59, 4  ;;  %v10813_v59 = vld [vmem:[#allocation20_spill] sm:$0xff] }
 0x221   : > { %v1214_v37 = vpop.f32.mrf.mxu2  ;;  %10803 = vst [vmem:[#allocation55_spill] sm:$0xff] %v6820_v44  ;;  %v6831_v1 = vsel %vm1449_vm1, %v2560_v63, %v2575_v55 }
 0x222   : > { %5764 = vmatmul.msk.bf16.vlgmr.msra.gmra.mxu0 %vm1319_vm3, %v5814_v45  ;;  %v1228_v22 = vpop.f32.mrf.mxu3  ;;  %v1215_v17 = vadd.f32 %v1214_v37, %v1164_v8  ;;  %10804 = vst [vmem:[#allocation56_spill] sm:$0xff] %v6823_v54  ;;  %v3066_v37 = vperm.slane %v6574_v48, %v6353_v26  ;;  %v2604_v10 = vsel %vm1449_vm1, 0.0, %v2603_v6  ;;  %v2667_v55 = vrot.slane %v2650_v56, 4 }
 0x223   : > { %v1229_v16 = vadd.f32 %v1228_v22, %v1164_v8  ;;  %v2991_v8 = vrot.slane %v2966_v13, 4  ;;  %10805 = vst [vmem:[#allocation57_spill] sm:$0xff] %v6831_v1  ;;  %v2615_v22 = vrot.slane %v6555_v0, 4 }
 0x224   : > { %v1237_v30 = vmax.f32 %v1215_v17, 0.0 }
 0x225   : > { %v1238_v20 = vmax.f32 %v1229_v16, 0.0  ;;  %v6834_v28 = vsel %vm1449_vm1, %v2976_v51, %v2991_v8  ;;  %v3081_v51 = vrot.slane %v3076_v7, 4  ;;  %v10809_v16 = vld [vmem:[#allocation16_spill] sm:$0xff]  ;;  %v3083_v8 = vrot.slane %v3066_v37, 4 }
 0x226   : > { %v1249_v21 = vpack.c.bf16 %v1237_v30, %v1233_v53  ;;  %10806 = vst [vmem:[#allocation58_spill] sm:$0xff] %v6834_v28  ;;  %v2593_v53 = vrot.slane %v10809_v16, 4 }
 0x227   : > { %v1250_v35 = vpack.c.bf16 %v1238_v20, %v1234_v60  ;;  %v6859_v17 = vsel %vm1449_vm1, %v3081_v51, %v3066_v37  ;;  %v10810_v60 = vld [vmem:[#allocation17_spill] sm:$0xff]  ;;  %v10811_v20 = vld [vmem:[#allocation19_spill] sm:$0xff] }
 0x228   : > { %1397 = vmatpush.bf16.msra.mxu2 %v1249_v21  ;;  %10808 = vst [vmem:[#allocation60_spill] sm:$0xff] %v6859_v17  ;;  %v3009_v30 = vrot.slane %v10810_v60, 4  ;;  %v6865_v0 = vsel %vm1449_vm1, %v10811_v20, %v2615_v22  ;;  %v6869_v21 = vsel %vm1449_vm1, %v10813_v59, %v3031_v62  ;;  %v2594_v6 = vsel %vm1449_vm1, 0.0, %v2593_v53 }
 0x229   : > { %1426 = vmatpush.bf16.msra.mxu3 %v1250_v35  ;;  %10812 = vst [vmem:[#allocation16_spill] sm:$0xff] %v6865_v0  ;;  %v2612_v35 = vperm.slane %v2604_v10, %v6353_v26  ;;  %v6881_v62 = vsel %vm1449_vm1, %v3076_v7, %v3083_v8  ;;  %v5817_v10 = vld [vmem:[%s6784_s19 + $0x18] sm:$0xff]  ;;  %v2645_v60 = vrot.slane %v6568_v2, 4 }
 0x22a   : > { %10814 = vst [vmem:[#allocation17_spill] sm:$0xff] %v6869_v21  ;;  %v3010_v61 = vsel %vm1449_vm1, 0.0, %v3009_v30  ;;  %v3061_v30 = vrot.slane %v6574_v48, 4 }
 0x22b   : > { %5772 = vmatmul.msk.bf16.vlgmr.msra.gmra.mxu2 %vm1319_vm3, %v5814_v45  ;;  %10816 = vst [vmem:[#allocation20_spill] sm:$0xff] %v6881_v62  ;;  %v3018_v37 = vperm.slane %v3010_v61, %v6353_v26 }
 0x22c   : > { %5776 = vmatmul.msk.bf16.vlgmr.msra.gmra.mxu3 %vm1319_vm3, %v5814_v45  ;;  %v2660_v45 = vperm.slane %v6578_v11, %v6353_v26 }
 0x22d   : > { %v3043_v48 = vrot.slane %v3018_v37, 4 }
 0x22e   : > { %v2665_v63 = vrot.slane %v2660_v45, 4  ;;  %v6878_v22 = vsel %vm1449_vm1, %v2660_v45, %v2667_v55  ;;  %v3071_v45 = vrot.slane %v6581_v47, 4  ;;  %v3062_v47 = vsel %vm1449_vm1, 0.0, %v3061_v30  ;;  %v1262_v30 = vpop.permute.xlu1 %1261 }
 0x22f   : > { %10815 = vst [vmem:[#allocation19_spill] sm:$0xff] %v6878_v22  ;;  %v3070_v2 = vperm.slane %v3062_v47, %v6353_v26 }
 0x230   : > { %5769 = vmatmul.msk.bf16.gmra.mxu1 %vm1319_vm3, %v5815_v38  ;;  %v6856_v13 = vsel %vm1449_vm1, %v2665_v63, %v2650_v56  ;;  %v2625_v63 = vrot.slane %v2612_v35, 4  ;;  %v2602_v56 = vperm.slane %v2594_v6, %v6353_v26  ;;  %v3072_v53 = vsel %vm1449_vm1, 0.0, %v3071_v45 }
 0x231   : > { %10807 = vst [vmem:[#allocation59_spill] sm:$0xff] %v6856_v13  ;;  %v3080_v59 = vperm.slane %v3072_v53, %v6353_v26 }
 0x232   : > { %5765 = vmatmul.msk.bf16.gmra.mxu0 %vm1319_vm3, %v5815_v38  ;;  %v2627_v61 = vrot.slane %v2602_v56, 4 }
 0x233   : > { %v3093_v8 = vrot.slane %v3080_v59, 4 }
 0x23b   : > { %5773 = vmatmul.msk.bf16.gmra.mxu2 %vm1319_vm3, %v5815_v38 }
 0x23c   : > { %5777 = vmatmul.msk.bf16.gmra.mxu3 %vm1319_vm3, %v5815_v38  ;;  %v3028_v38 = vperm.slane %v3020_v42, %v6353_v26  ;;  %v6887_v42 = vsel %vm1449_vm1, %v2625_v63, %v2602_v56 }
 0x23d   : > { %10817 = vst [vmem:[#allocation61_spill] sm:$0xff] %v6887_v42 }
 0x23e   : > { %v3041_v51 = vrot.slane %v3028_v38, 4 }
 0x240   : > { %5770 = vmatmul.msk.bf16.gmra.mxu1 %vm1319_vm3, %v5816_v31  ;;  %v6890_v16 = vsel %vm1449_vm1, %v3041_v51, %v3018_v37  ;;  %v6912_v51 = vsel %vm1449_vm1, %v3093_v8, %v3070_v2 }
 0x241   : > { %10818 = vst [vmem:[#allocation62_spill] sm:$0xff] %v6890_v16 }
 0x242   : > { %5766 = vmatmul.msk.bf16.gmra.mxu0 %vm1319_vm3, %v5816_v31  ;;  %10820 = vst [vmem:[#allocation64_spill] sm:$0xff] %v6912_v51 }
 0x24b   : > { %5774 = vmatmul.msk.bf16.gmra.mxu2 %vm1319_vm3, %v5816_v31 }
 0x24c   : > { %5778 = vmatmul.msk.bf16.gmra.mxu3 %vm1319_vm3, %v5816_v31  ;;  %v2655_v31 = vrot.slane %v6578_v11, 4  ;;  %v2646_v11 = vsel %vm1449_vm1, 0.0, %v2645_v60 }
 0x24d   : > { %v2654_v6 = vperm.slane %v2646_v11, %v6353_v26 }
 0x24e   : > { %v2656_v7 = vsel %vm1449_vm1, 0.0, %v2655_v31  ;;  %v6918_v31 = vsel %vm1449_vm1, %v3028_v38, %v3043_v48  ;;  %v6134_v48 = vmov 1934713408  }
 0x24f   : > { %v2664_v20 = vperm.slane %v2656_v7, %v6353_v26  ;;  %10822 = vst [vmem:[#allocation66_spill] sm:$0xff] %v6918_v31  ;;  %v2679_v45 = vrot.slane %v2654_v6, 4  ;;  %v3095_v7 = vrot.slane %v3070_v2, 4 }
 0x250   : > { %5771 = vmatmul.msk.bf16.gmra.mxu1 %vm1319_vm3, %v5817_v10 }
 0x251   : > { %v2677_v55 = vrot.slane %v2664_v20, 4  ;;  %v6921_v53 = vsel %vm1449_vm1, %v2664_v20, %v2679_v45  ;;  %v6924_v56 = vsel %vm1449_vm1, %v3080_v59, %v3095_v7  ;;  %v1474_v59 = vunpack.c.l.s4 %v6134_v48 }
 0x252   : > { %5767 = vmatmul.msk.bf16.gmra.mxu0 %vm1319_vm3, %v5817_v10  ;;  %10823 = vst [vmem:[#allocation67_spill] sm:$0xff] %v6921_v53 }
 0x253   : > { %v6909_v63 = vsel %vm1449_vm1, %v2677_v55, %v2654_v6  ;;  %10824 = vst [vmem:[#allocation68_spill] sm:$0xff] %v6924_v56 }
 0x254   : > { %10819 = vst [vmem:[#allocation63_spill] sm:$0xff] %v6909_v63 }
 0x25b   : > { %5775 = vmatmul.msk.bf16.gmra.mxu2 %vm1319_vm3, %v5817_v10 }
 0x25c   : > { %5779 = vmatmul.msk.bf16.gmra.mxu3 %vm1319_vm3, %v5817_v10  ;;  %v6915_v10 = vsel %vm1449_vm1, %v2612_v35, %v2627_v61 }
 0x25d   : > { %10821 = vst [vmem:[#allocation65_spill] sm:$0xff] %v6915_v10 }
 0x29d   : > { %v1370_v60 = vpop.f32.mrf.mxu1 }
 0x29e   : > { %v1371_v47 = vadd.f32 %v1370_v60, %v1262_v30  ;;  %v6932_v60 = vunpack.c.0.s8 %v1474_v59 }
 0x29f   : > { %v1341_v37 = vpop.f32.mrf.mxu0 }
 0x2a0   : > { %v1342_v11 = vadd.f32 %v1341_v37, %v1262_v30  ;;  %v1870_v6 = vperm.slane %v1371_v47, %v6353_v26  ;;  %10825 = vst [vmem:[#allocation69_spill] sm:$0xff] %v6932_v60  ;;  %v1865_v63 = vrot.slane %v1371_v47, 4 }
 0x2a2   : > { %v1454_v38 = vperm.slane %v1342_v11, %v6353_v26  ;;  %v1887_v7 = vrot.slane %v1870_v6, 4 }
 0x2a4   : > { %v1471_v45 = vrot.slane %v1454_v38, 4 }
 0x2a5   : > { %v1372_v0 = vpop.f32.mrf.mxu1 }
 0x2ad   : > { %v1375_v41 = vpop.f32.mrf.mxu1 }
 0x2ae   : > { %v1399_v55 = vpop.f32.mrf.mxu2 }
 0x2af   : > { %v1428_v8 = vpop.f32.mrf.mxu3  ;;  %v1400_v35 = vadd.f32 %v1399_v55, %v1262_v30 }
 0x2b0   : > { %v1429_v61 = vadd.f32 %v1428_v8, %v1262_v30 }
 0x2b1   : > { %v1464_v2 = vperm.slane %v1400_v35, %v6353_v26  ;;  %v1459_v53 = vrot.slane %v1400_v35, 4 }
 0x2b2   : > { %v1880_v20 = vperm.slane %v1429_v61, %v6353_v26  ;;  %v1875_v10 = vrot.slane %v1429_v61, 4 }
 0x2b3   : > { %v1472_v56 = vsel %vm1449_vm1, %v1464_v2, %v1471_v45  ;;  %v1469_v55 = vrot.slane %v1464_v2, 4  ;;  %v1460_v2 = vsel %vm1449_vm1, 0.0, %v1459_v53 }
 0x2b4   : > { %v1888_v37 = vsel %vm1449_vm1, %v1880_v20, %v1887_v7  ;;  %v6935_v30 = vperm.slane %v1472_v56, %v6932_v60  ;;  %v1885_v31 = vrot.slane %v1880_v20, 4  ;;  %v1876_v35 = vsel %vm1449_vm1, 0.0, %v1875_v10 }
 0x2b5   : > { %v6938_v8 = vperm.slane %v1888_v37, %v6932_v60  ;;  %v1470_v59 = vsel %vm1449_vm1, %v1469_v55, %v1454_v38  ;;  %v1448_v20 = vrot.slane %v1342_v11, 4  ;;  %v1468_v38 = vperm.slane %v1460_v2, %v6353_v26  ;;  %v1377_v36 = vpop.f32.mrf.mxu1 }
 0x2b6   : > { %10826 = vst [vmem:[#allocation70_spill] sm:$0xff] %v6935_v30  ;;  %v3124_v48 = vsel %vm3113_vm4, %v6935_v30, -inf  ;;  %v6947_v56 = vperm.slane %v1470_v59, %v6932_v60  ;;  %v1886_v37 = vsel %vm1449_vm1, %v1885_v31, %v1870_v6  ;;  %v1884_v55 = vperm.slane %v1876_v35, %v6353_v26 }
 0x2b7   : > { %10827 = vst [vmem:[#allocation71_spill] sm:$0xff] %v6938_v8  ;;  %v3125_v45 = vsel %vm3113_vm4, %v6938_v8, -inf  ;;  %v6952_v61 = vperm.slane %v1886_v37, %v6932_v60  ;;  %v1495_v10 = vrot.slane %v6935_v30, 4  ;;  %v1450_v6 = vsel %vm1449_vm1, 0.0, %v1448_v20 }
 0x2b8   : > { %v3126_v7 = vmax.f32 %v3124_v48, %v3125_v45  ;;  %10828 = vst [vmem:[#allocation72_spill] sm:$0xff] %v6947_v56  ;;  %v3114_v51 = vsel %vm3113_vm4, %v6947_v56, -inf  ;;  %v1493_v31 = vrot.slane %v6947_v56, 4  ;;  %v1866_v11 = vsel %vm1449_vm1, 0.0, %v1865_v63 }
 0x2b9   : > { %10829 = vst [vmem:[#allocation73_spill] sm:$0xff] %v6952_v61  ;;  %v3115_v53 = vsel %vm3113_vm4, %v6952_v61, -inf  ;;  %v1481_v45 = vrot.slane %v1468_v38, 4  ;;  %v1897_v59 = vrot.slane %v1884_v55, 4  ;;  %v1458_v47 = vperm.slane %v1450_v6, %v6353_v26 }
 0x2ba   : > { %3127 = vmax.xlane.f32.xlu2 %v3126_v7  ;;  %v3116_v48 = vmax.f32 %v3114_v51, %v3115_v53  ;;  %v6966_v2 = vsel %vm1449_vm1, 0.0, %v1493_v31  ;;  %v1909_v7 = vrot.slane %v6952_v61, 4  ;;  %v6970_v51 = vsel %vm1449_vm1, 0.0, %v1495_v10 }
 0x2bb   : > { %10830 = vst [vmem:[#allocation74_spill] sm:$0xff] %v6966_v2  ;;  %v1874_v37 = vperm.slane %v1866_v11, %v6353_v26  ;;  %v3119_v35 = vsel %vm3113_vm4, %v6966_v2, -inf  ;;  %v1911_v63 = vrot.slane %v6938_v8, 4  ;;  %v1482_v53 = vsel %vm1449_vm1, %v1481_v45, %v1458_v47 }
 0x2bc   : > { %3117 = vmax.xlane.f32.xlu0 %v3116_v48  ;;  %10831 = vst [vmem:[#allocation75_spill] sm:$0xff] %v6970_v51  ;;  %v6976_v20 = vsel %vm1449_vm1, 0.0, %v1909_v7  ;;  %v3129_v31 = vsel %vm3113_vm4, %v6970_v51, -inf  ;;  %v6985_v10 = vperm.slane %v1482_v53, %v6932_v60  ;;  %v1483_v17 = vrot.slane %v1458_v47, 4 }
 0x2bd   : > { %10832 = vst [vmem:[#allocation76_spill] sm:$0xff] %v6976_v20  ;;  %v3120_v48 = vsel %vm3113_vm4, %v6976_v20, -inf  ;;  %v1898_v6 = vsel %vm1449_vm1, %v1897_v59, %v1874_v37  ;;  %v6989_v16 = vsel %vm1449_vm1, 0.0, %v1911_v63  ;;  %v1343_v59 = vpop.f32.mrf.mxu0  ;;  %v1899_v28 = vrot.slane %v1874_v37, 4 }
 0x2be   : > { %10833 = vst [vmem:[#allocation77_spill] sm:$0xff] %v6985_v10  ;;  %v3121_v11 = vmax.f32 %v3119_v35, %v3120_v48  ;;  %v6992_v7 = vperm.slane %v1898_v6, %v6932_v60  ;;  %v3130_v45 = vsel %vm3113_vm4, %v6989_v16, -inf  ;;  %v3134_v42 = vsel %vm3113_vm4, %v6985_v10, -inf  ;;  %v1401_v35 = vpop.f32.mrf.mxu2  ;;  %v1267_v48 = vpop.permute.xlu2 %1266 }
 0x2bf   : > { %10834 = vst [vmem:[#allocation78_spill] sm:$0xff] %v6989_v16  ;;  %v3131_v62 = vmax.f32 %v3129_v31, %v3130_v45  ;;  %v1497_v63 = vrot.slane %v6985_v10, 4  ;;  %v1430_v6 = vpop.f32.mrf.mxu3  ;;  %v1344_v13 = vadd.f32 %v1343_v59, %v1267_v48 }
 0x2c0   : > { %10835 = vst [vmem:[#allocation79_spill] sm:$0xff] %v6992_v7  ;;  %3122 = vmax.xlane.f32.xlu1 %v3121_v11  ;;  %v3135_v53 = vsel %vm3113_vm4, %v6992_v7, -inf  ;;  %v1913_v21 = vrot.slane %v6992_v7, 4  ;;  %v1402_v11 = vadd.f32 %v1401_v35, %v1267_v48  ;;  %v1431_v31 = vadd.f32 %v1430_v6, %v1267_v48 }
 0x2c1   : > { %v3136_v22 = vmax.f32 %v3134_v42, %v3135_v53  ;;  %v7003_v45 = vsel %vm1449_vm1, 0.0, %v1497_v63  ;;  %v1506_v37 = vperm.slane %v1344_v13, %v6353_v26  ;;  %v1900_v63 = vsel %vm1449_vm1, %v1884_v55, %v1899_v28 }
 0x2c2   : > { %3132 = vmax.xlane.f32.xlu2 %v3131_v62  ;;  %10836 = vst [vmem:[#allocation80_spill] sm:$0xff] %v7003_v45  ;;  %v7006_v42 = vsel %vm1449_vm1, 0.0, %v1913_v21  ;;  %v1373_v62 = vadd.f32 %v1372_v0, %v1267_v48  ;;  %v3139_v53 = vsel %vm3113_vm4, %v7003_v45, -inf  ;;  %v1516_v21 = vperm.slane %v1402_v11, %v6353_v26 }
 0x2c3   : > { %10837 = vst [vmem:[#allocation81_spill] sm:$0xff] %v7006_v42  ;;  %v3140_v47 = vsel %vm3113_vm4, %v7006_v42, -inf  ;;  %v7020_v6 = vperm.slane %v1900_v63, %v6932_v60  ;;  %v1523_v1 = vrot.slane %v1506_v37, 4  ;;  %v1501_v44 = vrot.slane %v1344_v13, 4 }
 0x2c4   : > { %3137 = vmax.xlane.f32.xlu0 %v3136_v22  ;;  %v1484_v22 = vsel %vm1449_vm1, %v1468_v38, %v1483_v17  ;;  %v3141_v35 = vmax.f32 %v3139_v53, %v3140_v47  ;;  %v1932_v38 = vperm.slane %v1431_v31, %v6353_v26  ;;  %v1922_v48 = vperm.slane %v1373_v62, %v6353_v26 }
 0x2c5   : > { %v7014_v59 = vperm.slane %v1484_v22, %v6932_v60  ;;  %10839 = vst [vmem:[#allocation83_spill] sm:$0xff] %v7020_v6  ;;  %v3145_v22 = vsel %vm3113_vm4, %v7020_v6, -inf  ;;  %v1915_v55 = vrot.slane %v7020_v6, 4  ;;  %v1346_v53 = vpop.f32.mrf.mxu0  ;;  %v1521_v25 = vrot.slane %v1516_v21, 4 }
 0x2c6   : > { %v1917_v27 = vrot.slane %v1373_v62, 4  ;;  %v1937_v3 = vrot.slane %v1932_v38, 4  ;;  %v1939_v14 = vrot.slane %v1922_v48, 4  ;;  %v1511_v18 = vrot.slane %v1402_v11, 4 }
 0x2c7   : > { %10838 = vst [vmem:[#allocation82_spill] sm:$0xff] %v7014_v59  ;;  %v3144_v17 = vsel %vm3113_vm4, %v7014_v59, -inf  ;;  %v1499_v0 = vrot.slane %v7014_v59, 4  ;;  %v7036_v54 = vsel %vm1449_vm1, 0.0, %v1915_v55  ;;  %v1522_v13 = vsel %vm1449_vm1, %v1521_v25, %v1506_v37  ;;  %v1433_v12 = vpop.f32.mrf.mxu3 }
 0x2c8   : > { %3142 = vmax.xlane.f32.xlu1 %v3141_v35  ;;  %v3146_v47 = vmax.f32 %v3144_v17, %v3145_v22  ;;  %10841 = vst [vmem:[#allocation85_spill] sm:$0xff] %v7036_v54  ;;  %v7038_v35 = vpop.permute.xlu0 %1271  ;;  %v1524_v22 = vsel %vm1449_vm1, %v1516_v21, %v1523_v1  ;;  %v1940_v58 = vsel %vm1449_vm1, %v1932_v38, %v1939_v14  ;;  %v1927_v62 = vrot.slane %v1431_v31, 4 }
 0x2c9   : > { %v7030_v28 = vsel %vm1449_vm1, 0.0, %v1499_v0  ;;  %v3150_v0 = vsel %vm3113_vm4, %v7036_v54, -inf  ;;  %v1347_v17 = vadd.f32 %v1346_v53, %v7038_v35  ;;  %v1376_v55 = vadd.f32 %v1375_v41, %v7038_v35 }
 0x2ca   : > { %10840 = vst [vmem:[#allocation84_spill] sm:$0xff] %v7030_v28  ;;  %v3149_v63 = vsel %vm3113_vm4, %v7030_v28, -inf  ;;  %3147 = vmax.xlane.f32.xlu2 %v3146_v47  ;;  %v7048_v47 = vperm.slane %v1522_v13, %v6932_v60  ;;  %v1938_v29 = vsel %vm1449_vm1, %v1937_v3, %v1922_v48  ;;  %v7052_v4 = vperm.slane %v1524_v22, %v6932_v60  ;;  %v1404_v13 = vpop.f32.mrf.mxu2 }
 0x2cb   : > { %v3151_v39 = vmax.f32 %v3149_v63, %v3150_v0  ;;  %v1502_v1 = vsel %vm1449_vm1, 0.0, %v1501_v44  ;;  %v1918_v11 = vsel %vm1449_vm1, 0.0, %v1917_v27  ;;  %v1553_v21 = vrot.slane %v1347_v17, 4 }
 0x2cc   : > { %10842 = vst [vmem:[#allocation86_spill] sm:$0xff] %v7048_v47  ;;  %v7057_v41 = vperm.slane %v1938_v29, %v6932_v60  ;;  %v1512_v14 = vsel %vm1449_vm1, 0.0, %v1511_v18  ;;  %v1545_v25 = vrot.slane %v7048_v47, 4  ;;  %v7064_v3 = vperm.slane %v1940_v58, %v6932_v60 }
 0x2cd   : > { %3152 = vmax.xlane.f32.xlu0 %v3151_v39  ;;  %10843 = vst [vmem:[#allocation87_spill] sm:$0xff] %v7052_v4  ;;  %v3154_v39 = vsel %vm3113_vm4, %v7048_v47, -inf  ;;  %v1969_v31 = vrot.slane %v1376_v55, 4  ;;  %v3164_v29 = vsel %vm3113_vm4, %v7052_v4, -inf  ;;  %v1928_v37 = vsel %vm1449_vm1, 0.0, %v1927_v62 }
 0x2ce   : > { %10844 = vst [vmem:[#allocation88_spill] sm:$0xff] %v7057_v41  ;;  %v3155_v44 = vsel %vm3113_vm4, %v7057_v41, -inf  ;;  %v1961_v27 = vrot.slane %v7057_v41, 4  ;;  %v7073_v38 = vsel %vm1449_vm1, 0.0, %v1545_v25  ;;  %v3165_v48 = vsel %vm3113_vm4, %v7064_v3, -inf }
 0x2cf   : > { %10845 = vst [vmem:[#allocation89_spill] sm:$0xff] %v7064_v3  ;;  %v3156_v18 = vmax.f32 %v3154_v39, %v3155_v44  ;;  %v1520_v58 = vperm.slane %v1512_v14, %v6353_v26  ;;  %v3159_v63 = vsel %vm3113_vm4, %v7073_v38, -inf  ;;  %v3166_v0 = vmax.f32 %v3164_v29, %v3165_v48  ;;  %v1435_v32 = vpop.f32.mrf.mxu3 }
 0x2d0   : > { %10846 = vst [vmem:[#allocation90_spill] sm:$0xff] %v7073_v38  ;;  %v7079_v53 = vsel %vm1449_vm1, 0.0, %v1961_v27  ;;  %v1510_v22 = vperm.slane %v1502_v1, %v6353_v26  ;;  %v1926_v39 = vperm.slane %v1918_v11, %v6353_v26  ;;  %v1554_v25 = vsel %vm1449_vm1, 0.0, %v1553_v21 }
 0x2d1   : > { %10847 = vst [vmem:[#allocation91_spill] sm:$0xff] %v7079_v53  ;;  %3157 = vmax.xlane.f32.xlu1 %v3156_v18  ;;  %v3160_v62 = vsel %vm3113_vm4, %v7079_v53, -inf  ;;  %v1936_v14 = vperm.slane %v1928_v37, %v6353_v26  ;;  %v7090_v27 = vperm.slane %v1347_v17, %v6353_v26  ;;  %v7093_v29 = vperm.slane %v1376_v55, %v6353_v26  ;;  %v1277_v55 = vpop.permute.xlu1 %1276 }
 0x2d2   : > { %v3161_v44 = vmax.f32 %v3159_v63, %v3160_v62  ;;  %v1970_v1 = vsel %vm1449_vm1, 0.0, %v1969_v31  ;;  %v1533_v18 = vrot.slane %v1520_v58, 4  ;;  %v1405_v48 = vadd.f32 %v1404_v13, %v7038_v35  ;;  %v1348_v13 = vpop.f32.mrf.mxu0  ;;  %v1406_v5 = vpop.f32.mrf.mxu2 }
 0x2d3   : > { %v7098_v11 = vperm.slane %v1554_v25, %v6353_v26  ;;  %v1547_v21 = vrot.slane %v7052_v4, 4  ;;  %v1963_v37 = vrot.slane %v7064_v3, 4  ;;  %v1535_v63 = vrot.slane %v1510_v22, 4 }
 0x2d4   : > { %3162 = vmax.xlane.f32.xlu2 %v3161_v44  ;;  %v1951_v17 = vrot.slane %v1926_v39, 4  ;;  %v7104_v62 = vperm.slane %v1970_v1, %v6353_v26  ;;  %v1434_v44 = vadd.f32 %v1433_v12, %v7038_v35  ;;  %v1568_v25 = vperm.slane %v1405_v48, %v6353_v26 }
 0x2d5   : > { %3167 = vmax.xlane.f32.xlu0 %v3166_v0  ;;  %v1949_v0 = vrot.slane %v1936_v14, 4  ;;  %v7110_v33 = vsel %vm1449_vm1, 0.0, %v1547_v21  ;;  %v7113_v15 = vsel %vm1449_vm1, 0.0, %v1963_v37  ;;  %v1534_v19 = vsel %vm1449_vm1, %v1533_v18, %v1510_v22 }
 0x2d6   : > { %10848 = vst [vmem:[#allocation92_spill] sm:$0xff] %v7110_v33  ;;  %v3169_v31 = vsel %vm3113_vm4, %v7110_v33, -inf  ;;  %v3170_v50 = vsel %vm3113_vm4, %v7113_v15, -inf  ;;  %v7122_v12 = vperm.slane %v1534_v19, %v6932_v60  ;;  %v1349_v35 = vadd.f32 %v1348_v13, %v1277_v55 }
 0x2d7   : > { %10849 = vst [vmem:[#allocation93_spill] sm:$0xff] %v7113_v15  ;;  %v1378_v21 = vadd.f32 %v1377_v36, %v1277_v55  ;;  %v3171_v34 = vmax.f32 %v3169_v31, %v3170_v50  ;;  %v1950_v37 = vsel %vm1449_vm1, %v1949_v0, %v1926_v39  ;;  %v1563_v23 = vrot.slane %v1405_v48, 4 }
 0x2d8   : > { %10850 = vst [vmem:[#allocation94_spill] sm:$0xff] %v7122_v12  ;;  %v7126_v22 = vperm.slane %v1950_v37, %v6932_v60  ;;  %v3174_v18 = vsel %vm3113_vm4, %v7122_v12, -inf  ;;  %v1549_v1 = vrot.slane %v7122_v12, 4  ;;  %v1573_v9 = vrot.slane %v1568_v25, 4 }
 0x2d9   : > { %v1979_v57 = vrot.slane %v1434_v44, 4  ;;  %v1984_v19 = vperm.slane %v1434_v44, %v6353_v26  ;;  %3172 = vmax.xlane.f32.xlu1 %v3171_v34  ;;  %v1536_v48 = vsel %vm1449_vm1, %v1520_v58, %v1535_v63  ;;  %v1605_v0 = vrot.slane %v1349_v35, 4 }
 0x2da   : > { %10851 = vst [vmem:[#allocation95_spill] sm:$0xff] %v7126_v22  ;;  %v3175_v50 = vsel %vm3113_vm4, %v7126_v22, -inf  ;;  %v7136_v36 = vsel %vm1449_vm1, 0.0, %v1549_v1  ;;  %v1965_v39 = vrot.slane %v7126_v22, 4  ;;  %v1952_v37 = vsel %vm1449_vm1, %v1936_v14, %v1951_v17 }
 0x2db   : > { %10852 = vst [vmem:[#allocation96_spill] sm:$0xff] %v7136_v36  ;;  %v3176_v31 = vmax.f32 %v3174_v18, %v3175_v50  ;;  %v3179_v13 = vsel %vm3113_vm4, %v7136_v36, -inf  ;;  %v7144_v44 = vperm.slane %v1349_v35, %v6353_v26  ;;  %v2021_v34 = vrot.slane %v1378_v21, 4 }
 0x2dc   : > { %v1564_v49 = vsel %vm1449_vm1, 0.0, %v1563_v23  ;;  %v7148_v1 = vsel %vm1449_vm1, 0.0, %v1965_v39  ;;  %v7151_v24 = vperm.slane %v1378_v21, %v6353_v26  ;;  %v1989_v58 = vrot.slane %v1984_v19, 4 }
 0x2dd   : > { %10853 = vst [vmem:[#allocation97_spill] sm:$0xff] %v7148_v1  ;;  %3177 = vmax.xlane.f32.xlu2 %v3176_v31  ;;  %v3180_v63 = vsel %vm3113_vm4, %v7148_v1, -inf  ;;  %v7156_v14 = vperm.slane %v1536_v48, %v6932_v60  ;;  %v1980_v17 = vsel %vm1449_vm1, 0.0, %v1979_v57  ;;  %v7160_v23 = vperm.slane %v1952_v37, %v6932_v60 }
 0x2de   : > { %v3181_v35 = vmax.f32 %v3179_v13, %v3180_v63  ;;  %v1574_v18 = vsel %vm1449_vm1, %v1573_v9, %v7090_v27  ;;  %v1606_v21 = vsel %vm1449_vm1, 0.0, %v1605_v0  ;;  %v1572_v50 = vperm.slane %v1564_v49, %v6353_v26 }
 0x2df   : > { %10854 = vst [vmem:[#allocation98_spill] sm:$0xff] %v7156_v14  ;;  %v1407_v39 = vadd.f32 %v1406_v5, %v1277_v55  ;;  %v3184_v31 = vsel %vm3113_vm4, %v7156_v14, -inf  ;;  %v3185_v57 = vsel %vm3113_vm4, %v7160_v23, -inf  ;;  %v1551_v48 = vrot.slane %v7156_v14, 4 }
 0x2e0   : > { %10855 = vst [vmem:[#allocation99_spill] sm:$0xff] %v7160_v23  ;;  %3182 = vmax.xlane.f32.xlu0 %v3181_v35  ;;  %v1967_v13 = vrot.slane %v7160_v23, 4  ;;  %v7173_v37 = vperm.slane %v1574_v18, %v6932_v60  ;;  %v2022_v9 = vsel %vm1449_vm1, 0.0, %v2021_v34  ;;  %v1988_v49 = vperm.slane %v1980_v17, %v6353_v26 }
 0x2e1   : > { %v3186_v5 = vmax.f32 %v3184_v31, %v3185_v57  ;;  %v1990_v0 = vsel %vm1449_vm1, %v1989_v58, %v7093_v29  ;;  %v10857_v63 = vrot.slane %v7090_v27, 4  ;;  %v7183_v52 = vsel %vm1449_vm1, 0.0, %v1551_v48 }
 0x2e2   : > { %10856 = vst [vmem:[#allocation100_spill] sm:$0xff] %v7173_v37  ;;  %v7186_v40 = vsel %vm1449_vm1, 0.0, %v1967_v13  ;;  %v7189_v18 = vperm.slane %v1990_v0, %v6932_v60  ;;  %v1436_v34 = vadd.f32 %v1435_v32, %v1277_v55  ;;  %v3189_v17 = vsel %vm3113_vm4, %v7183_v52, -inf }
 0x2e3   : > { %v1576_v35 = vsel %vm1449_vm1, %v1568_v25, %v10857_v63  ;;  %10858 = vst [vmem:[#allocation101_spill] sm:$0xff] %v7183_v52  ;;  %3187 = vmax.xlane.f32.xlu1 %v3186_v5  ;;  %v3190_v58 = vsel %vm3113_vm4, %v7186_v40, -inf  ;;  %v3194_v27 = vsel %vm3113_vm4, %v7173_v37, -inf  ;;  %v1585_v25 = vrot.slane %v1572_v50, 4 }
 0x2e4   : > { %10859 = vst [vmem:[#allocation102_spill] sm:$0xff] %v7186_v40  ;;  %v1615_v31 = vrot.slane %v1407_v39, 4  ;;  %v3191_v57 = vmax.f32 %v3189_v17, %v3190_v58  ;;  %v3195_v48 = vsel %vm3113_vm4, %v7189_v18, -inf  ;;  %v1627_v13 = vrot.slane %v7144_v44, 4 }
 0x2e5   : > { %10860 = vst [vmem:[#allocation103_spill] sm:$0xff] %v7189_v18  ;;  %v10861_v55 = vrot.slane %v7093_v29, 4  ;;  %v2001_v0 = vrot.slane %v1988_v49, 4  ;;  %v7205_v63 = vperm.slane %v1606_v21, %v6353_v26  ;;  %v7208_v43 = vperm.slane %v2022_v9, %v6353_v26 }
 0x2e6   : > { %v1620_v17 = vperm.slane %v1407_v39, %v6353_v26  ;;  %3192 = vmax.xlane.f32.xlu2 %v3191_v57  ;;  %v3196_v58 = vmax.f32 %v3194_v27, %v3195_v48  ;;  %v2031_v46 = vrot.slane %v1436_v34, 4  ;;  %v1597_v40 = vrot.slane %v7173_v37, 4 }
 0x2e7   : > { %v1992_v5 = vsel %vm1449_vm1, %v1984_v19, %v10861_v55  ;;  %v2013_v32 = vrot.slane %v7189_v18, 4  ;;  %v7214_v29 = vperm.slane %v1576_v35, %v6932_v60  ;;  %v1616_v19 = vsel %vm1449_vm1, 0.0, %v1615_v31 }
 0x2e8   : > { %v2036_v21 = vperm.slane %v1436_v34, %v6353_v26  ;;  %3197 = vmax.xlane.f32.xlu0 %v3196_v58  ;;  %v7219_v9 = vperm.slane %v1992_v5, %v6932_v60  ;;  %v1586_v39 = vsel %vm1449_vm1, %v1585_v25, %v7098_v11  ;;  %v7224_v27 = vsel %vm1449_vm1, 0.0, %v1597_v40 }
 0x2e9   : > { %10862 = vst [vmem:[#allocation104_spill] sm:$0xff] %v7214_v29  ;;  %v7227_v57 = vsel %vm1449_vm1, 0.0, %v2013_v32  ;;  %v3204_v35 = vsel %vm3113_vm4, %v7214_v29, -inf  ;;  %v2002_v31 = vsel %vm1449_vm1, %v2001_v0, %v7104_v62  ;;  %v3199_v34 = vsel %vm3113_vm4, %v7224_v27, -inf }
 0x2ea   : > { %10863 = vst [vmem:[#allocation105_spill] sm:$0xff] %v7219_v9  ;;  %v3200_v48 = vsel %vm3113_vm4, %v7227_v57, -inf  ;;  %v3205_v25 = vsel %vm3113_vm4, %v7219_v9, -inf  ;;  %v1599_v40 = vrot.slane %v7214_v29, 4  ;;  %v2015_v5 = vrot.slane %v7219_v9, 4 }
 0x2eb   : > { %10864 = vst [vmem:[#allocation106_spill] sm:$0xff] %v7224_v27  ;;  %v3201_v55 = vmax.f32 %v3199_v34, %v3200_v48  ;;  %v3206_v32 = vmax.f32 %v3204_v35, %v3205_v25  ;;  %v7242_v58 = vperm.slane %v1586_v39, %v6932_v60  ;;  %v7248_v52 = vperm.slane %v2002_v31, %v6932_v60 }
 0x2ec   : > { %10865 = vst [vmem:[#allocation107_spill] sm:$0xff] %v7227_v57  ;;  %v7245_v0 = vsel %vm1449_vm1, 0.0, %v1599_v40  ;;  %v10869_v18 = vrot.slane %v7098_v11, 4  ;;  %v10870_v22 = vrot.slane %v7104_v62, 4  ;;  %v1625_v35 = vrot.slane %v1620_v17, 4 }
 0x2ed   : > { %10866 = vst [vmem:[#allocation108_spill] sm:$0xff] %v7242_v58  ;;  %3202 = vmax.xlane.f32.xlu1 %v3201_v55  ;;  %v7257_v48 = vsel %vm1449_vm1, 0.0, %v2015_v5  ;;  %v3209_v39 = vsel %vm3113_vm4, %v7245_v0, -inf  ;;  %v1601_v25 = vrot.slane %v7242_v58, 4  ;;  %v2032_v31 = vsel %vm1449_vm1, 0.0, %v2031_v46 }
 0x2ee   : > { %10867 = vst [vmem:[#allocation109_spill] sm:$0xff] %v7245_v0  ;;  %v1588_v37 = vsel %vm1449_vm1, %v1572_v50, %v10869_v18  ;;  %v2004_v34 = vsel %vm1449_vm1, %v1988_v49, %v10870_v22  ;;  %3207 = vmax.xlane.f32.xlu2 %v3206_v32  ;;  %v3210_v11 = vsel %vm3113_vm4, %v7257_v48, -inf  ;;  %v2017_v62 = vrot.slane %v7248_v52, 4 }
 0x2ef   : > { %10868 = vst [vmem:[#allocation110_spill] sm:$0xff] %v7248_v52  ;;  %v7267_v22 = vperm.slane %v1588_v37, %v6932_v60  ;;  %v2041_v50 = vrot.slane %v2036_v21, 4  ;;  %v3211_v49 = vmax.f32 %v3209_v39, %v3210_v11  ;;  %v7270_v18 = vsel %vm1449_vm1, 0.0, %v1601_v25 }
 0x2f0   : > { %10871 = vst [vmem:[#allocation111_spill] sm:$0xff] %v7257_v48  ;;  %v7273_v40 = vperm.slane %v2004_v34, %v6932_v60  ;;  %v3214_v46 = vsel %vm3113_vm4, %v7242_v58, -inf  ;;  %v3215_v55 = vsel %vm3113_vm4, %v7248_v52, -inf  ;;  %v7280_v32 = vsel %vm1449_vm1, 0.0, %v2017_v62 }
 0x2f1   : > { %10872 = vst [vmem:[#allocation112_spill] sm:$0xff] %v7267_v22  ;;  %v3219_v37 = vsel %vm3113_vm4, %v7270_v18, -inf  ;;  %3212 = vmax.xlane.f32.xlu0 %v3211_v49  ;;  %v3220_v5 = vsel %vm3113_vm4, %v7280_v32, -inf  ;;  %v1603_v39 = vrot.slane %v7267_v22, 4  ;;  %v1626_v25 = vsel %vm1449_vm1, %v1625_v35, %v7144_v44  ;;  %v1409_v35 = vpop.f32.mrf.mxu2 }
 0x2f2   : > { %10873 = vst [vmem:[#allocation113_spill] sm:$0xff] %v7270_v18  ;;  %v2019_v34 = vrot.slane %v7273_v40, 4  ;;  %v1624_v11 = vperm.slane %v1616_v19, %v6353_v26  ;;  %v1628_v9 = vsel %vm1449_vm1, %v1620_v17, %v1627_v13  ;;  %v2040_v62 = vperm.slane %v2032_v31, %v6353_v26  ;;  %v1351_v18 = vpop.f32.mrf.mxu0  ;;  %v1438_v19 = vpop.f32.mrf.mxu3 }
 0x2f3   : > { %10874 = vst [vmem:[#allocation114_spill] sm:$0xff] %v7273_v40  ;;  %v7294_v29 = vperm.slane %v1626_v25, %v6932_v60  ;;  %v1639_v49 = vrot.slane %v7205_v63, 4  ;;  %v3216_v0 = vmax.f32 %v3214_v46, %v3215_v55  ;;  %v2042_v44 = vsel %vm1449_vm1, %v2041_v50, %v7151_v24  ;;  %v1282_v46 = vpop.permute.xlu2 %1281 }
 0x2f4   : > { %10875 = vst [vmem:[#allocation115_spill] sm:$0xff] %v7280_v32  ;;  %v10877_v32 = vrot.slane %v7151_v24, 4  ;;  %v3221_v52 = vmax.f32 %v3219_v37, %v3220_v5  ;;  %v3224_v13 = vsel %vm3113_vm4, %v7267_v22, -inf  ;;  %v3225_v17 = vsel %vm3113_vm4, %v7273_v40, -inf }
 0x2f5   : > { %10876 = vst [vmem:[#allocation116_spill] sm:$0xff] %v7294_v29  ;;  %v7307_v31 = vperm.slane %v2042_v44, %v6932_v60  ;;  %3217 = vmax.xlane.f32.xlu1 %v3216_v0  ;;  %v7310_v25 = vsel %vm1449_vm1, 0.0, %v1603_v39  ;;  %v1649_v24 = vrot.slane %v7294_v29, 4  ;;  %v7317_v50 = vperm.slane %v1628_v9, %v6932_v60  ;;  %v1380_v39 = vpop.f32.mrf.mxu1 }
 0x2f6   : > { %v2044_v48 = vsel %vm1449_vm1, %v2036_v21, %v10877_v32  ;;  %10879 = vst [vmem:[#allocation118_spill] sm:$0xff] %v7310_v25  ;;  %v7313_v21 = vsel %vm1449_vm1, 0.0, %v2019_v34  ;;  %v1637_v55 = vrot.slane %v1624_v11, 4  ;;  %v2053_v32 = vrot.slane %v2040_v62, 4  ;;  %3222 = vmax.xlane.f32.xlu2 %v3221_v52 }
 0x2f7   : > { %10878 = vst [vmem:[#allocation117_spill] sm:$0xff] %v7307_v31  ;;  %v2065_v37 = vrot.slane %v7307_v31, 4  ;;  %v7321_v5 = vperm.slane %v2044_v48, %v6932_v60  ;;  %v1352_v0 = vadd.f32 %v1351_v18, %v1282_v46  ;;  %v1410_v44 = vadd.f32 %v1409_v35, %v1282_v46 }
 0x2f8   : > { %10880 = vst [vmem:[#allocation119_spill] sm:$0xff] %v7313_v21  ;;  %v1439_v40 = vadd.f32 %v1438_v19, %v1282_v46  ;;  %v3226_v34 = vmax.f32 %v3224_v13, %v3225_v17  ;;  %v2055_v22 = vrot.slane %v7208_v43, 4  ;;  %v3229_v9 = vsel %vm3113_vm4, %v7310_v25, -inf }
 0x2f9   : > { %10881 = vst [vmem:[#allocation120_spill] sm:$0xff] %v7317_v50  ;;  %v3230_v58 = vsel %vm3113_vm4, %v7313_v21, -inf  ;;  %v3234_v52 = vsel %vm3113_vm4, %v7294_v29, -inf  ;;  %v3235_v48 = vsel %vm3113_vm4, %v7307_v31, -inf  ;;  %v7333_v18 = vsel %vm1449_vm1, 0.0, %v1649_v24 }
 0x2fa   : > { %10882 = vst [vmem:[#allocation121_spill] sm:$0xff] %v7321_v5  ;;  %3227 = vmax.xlane.f32.xlu0 %v3226_v34  ;;  %v7336_v35 = vsel %vm1449_vm1, 0.0, %v2065_v37  ;;  %v1651_v19 = vrot.slane %v7317_v50, 4  ;;  %v1381_v13 = vadd.f32 %v1380_v39, %v1282_v46  ;;  %v2067_v17 = vrot.slane %v7321_v5, 4 }
 0x2fb   : > { %10883 = vst [vmem:[#allocation122_spill] sm:$0xff] %v7333_v18  ;;  %v1638_v21 = vsel %vm1449_vm1, %v1637_v55, %v7205_v63  ;;  %v2054_v34 = vsel %vm1449_vm1, %v2053_v32, %v7208_v43  ;;  %v1657_v29 = vrot.slane %v1352_v0, 4  ;;  %v1672_v31 = vperm.slane %v1410_v44, %v6353_v26 }
 0x2fc   : > { %10884 = vst [vmem:[#allocation123_spill] sm:$0xff] %v7336_v35  ;;  %v2088_v24 = vperm.slane %v1439_v40, %v6353_v26  ;;  %v3231_v25 = vmax.f32 %v3229_v9, %v3230_v58  ;;  %v1662_v37 = vperm.slane %v1352_v0, %v6353_v26  ;;  %v3236_v12 = vmax.f32 %v3234_v52, %v3235_v48 }
 0x2fd   : > { %v3239_v46 = vsel %vm3113_vm4, %v7333_v18, -inf  ;;  %v3240_v39 = vsel %vm3113_vm4, %v7336_v35, -inf  ;;  %v7352_v63 = vsel %vm1449_vm1, 0.0, %v1651_v19  ;;  %v7355_v43 = vperm.slane %v1638_v21, %v6932_v60 }
 0x2fe   : > { %3232 = vmax.xlane.f32.xlu1 %v3231_v25  ;;  %10885 = vst [vmem:[#allocation124_spill] sm:$0xff] %v7352_v63  ;;  %v7358_v55 = vperm.slane %v2054_v34, %v6932_v60  ;;  %v1640_v58 = vsel %vm1449_vm1, %v1624_v11, %v1639_v49  ;;  %v2078_v32 = vperm.slane %v1381_v13, %v6353_v26  ;;  %v1667_v0 = vrot.slane %v1410_v44, 4 }
 0x2ff   : > { %10886 = vst [vmem:[#allocation125_spill] sm:$0xff] %v7355_v43  ;;  %3237 = vmax.xlane.f32.xlu2 %v3236_v12  ;;  %v7363_v9 = vsel %vm1449_vm1, 0.0, %v2067_v17  ;;  %v2056_v25 = vsel %vm1449_vm1, %v2040_v62, %v2055_v22  ;;  %v1677_v52 = vrot.slane %v1672_v31, 4  ;;  %v2083_v48 = vrot.slane %v1439_v40, 4 }
 0x300   : > { %10887 = vst [vmem:[#allocation126_spill] sm:$0xff] %v7358_v55  ;;  %v2093_v19 = vrot.slane %v2088_v24, 4  ;;  %v3241_v35 = vmax.f32 %v3239_v46, %v3240_v39  ;;  %v3244_v21 = vsel %vm3113_vm4, %v7317_v50, -inf  ;;  %v3245_v34 = vsel %vm3113_vm4, %v7321_v5, -inf }
 0x301   : > { %10888 = vst [vmem:[#allocation127_spill] sm:$0xff] %v7363_v9  ;;  %v3249_v11 = vsel %vm3113_vm4, %v7352_v63, -inf  ;;  %v7373_v12 = vperm.slane %v1640_v58, %v6932_v60  ;;  %v3250_v22 = vsel %vm3113_vm4, %v7363_v9, -inf  ;;  %v1653_v40 = vrot.slane %v7355_v43, 4 }
 0x302   : > { %3242 = vmax.xlane.f32.xlu0 %v3241_v35  ;;  %v2069_v62 = vrot.slane %v7358_v55, 4  ;;  %v7380_v49 = vperm.slane %v2056_v25, %v6932_v60  ;;  %v1658_v44 = vsel %vm1449_vm1, 0.0, %v1657_v29  ;;  %v2073_v17 = vrot.slane %v1381_v13, 4 }
 0x303   : > { %10889 = vst [vmem:[#allocation128_spill] sm:$0xff] %v7373_v12  ;;  %v1668_v46 = vsel %vm1449_vm1, 0.0, %v1667_v0  ;;  %v2084_v39 = vsel %vm1449_vm1, 0.0, %v2083_v48  ;;  %v3246_v58 = vmax.f32 %v3244_v21, %v3245_v34  ;;  %v1678_v35 = vsel %vm1449_vm1, %v1677_v52, %v1662_v37 }
 0x304   : > { %10890 = vst [vmem:[#allocation129_spill] sm:$0xff] %v7380_v49  ;;  %v2094_v63 = vsel %vm1449_vm1, %v2093_v19, %v2078_v32  ;;  %v1679_v9 = vrot.slane %v1662_v37, 4  ;;  %v3251_v18 = vmax.f32 %v3249_v11, %v3250_v22  ;;  %v3254_v5 = vsel %vm3113_vm4, %v7355_v43, -inf }
 0x305   : > { %v3255_v25 = vsel %vm3113_vm4, %v7358_v55, -inf  ;;  %v7392_v29 = vsel %vm1449_vm1, 0.0, %v1653_v40  ;;  %v7395_v13 = vsel %vm1449_vm1, 0.0, %v2069_v62  ;;  %v1655_v0 = vrot.slane %v7373_v12, 4  ;;  %v1411_v62 = vpop.f32.mrf.mxu2  ;;  %v1440_v55 = vpop.f32.mrf.mxu3 }
 0x306   : > { %3247 = vmax.xlane.f32.xlu1 %v3246_v58  ;;  %10891 = vst [vmem:[#allocation130_spill] sm:$0xff] %v7392_v29  ;;  %v2071_v52 = vrot.slane %v7380_v49, 4  ;;  %v7400_v37 = vperm.slane %v1668_v46, %v6353_v26  ;;  %v7403_v48 = vperm.slane %v2084_v39, %v6353_v26  ;;  %v7406_v19 = vperm.slane %v1678_v35, %v6932_v60  ;;  %v1287_v58 = vpop.permute.xlu0 %1286  ;;  %v1353_v35 = vpop.f32.mrf.mxu0 }
 0x307   : > { %10892 = vst [vmem:[#allocation131_spill] sm:$0xff] %v7395_v13  ;;  %3252 = vmax.xlane.f32.xlu2 %v3251_v18  ;;  %v7409_v21 = vperm.slane %v2094_v63, %v6932_v60  ;;  %v1666_v34 = vperm.slane %v1658_v44, %v6353_v26  ;;  %v2074_v11 = vsel %vm1449_vm1, 0.0, %v2073_v17  ;;  %v2095_v22 = vrot.slane %v2078_v32, 4 }
 0x308   : > { %10893 = vst [vmem:[#allocation132_spill] sm:$0xff] %v7406_v19  ;;  %v3256_v40 = vmax.f32 %v3254_v5, %v3255_v25  ;;  %v3259_v46 = vsel %vm3113_vm4, %v7392_v29, -inf  ;;  %v3260_v39 = vsel %vm3113_vm4, %v7395_v13, -inf  ;;  %v3264_v18 = vsel %vm3113_vm4, %v7373_v12, -inf }
 0x309   : > { %10894 = vst [vmem:[#allocation133_spill] sm:$0xff] %v7409_v21  ;;  %v3265_v63 = vsel %vm3113_vm4, %v7380_v49, -inf  ;;  %v1680_v44 = vsel %vm1449_vm1, %v1672_v31, %v1679_v9  ;;  %v2096_v17 = vsel %vm1449_vm1, %v2088_v24, %v2095_v22  ;;  %v7424_v5 = vsel %vm1449_vm1, 0.0, %v1655_v0  ;;  %v1382_v0 = vpop.f32.mrf.mxu1 }
 0x30a   : > { %3257 = vmax.xlane.f32.xlu0 %v3256_v40  ;;  %10895 = vst [vmem:[#allocation134_spill] sm:$0xff] %v7424_v5  ;;  %v7427_v32 = vsel %vm1449_vm1, 0.0, %v2071_v52  ;;  %v1689_v25 = vrot.slane %v7400_v37, 4  ;;  %v2105_v12 = vrot.slane %v7403_v48, 4  ;;  %v1701_v49 = vrot.slane %v7406_v19, 4 }
 0x30b   : > { %10896 = vst [vmem:[#allocation135_spill] sm:$0xff] %v7427_v32  ;;  %v2117_v43 = vrot.slane %v7409_v21, 4  ;;  %v2082_v31 = vperm.slane %v2074_v11, %v6353_v26  ;;  %v1412_v24 = vadd.f32 %v1411_v62, %v1287_v58  ;;  %v3261_v9 = vmax.f32 %v3259_v46, %v3260_v39 }
 0x30c   : > { %v3266_v22 = vmax.f32 %v3264_v18, %v3265_v63  ;;  %v3269_v52 = vsel %vm3113_vm4, %v7424_v5, -inf  ;;  %v3270_v40 = vsel %vm3113_vm4, %v7427_v32, -inf  ;;  %v7439_v13 = vperm.slane %v1680_v44, %v6932_v60 }
 0x30d   : > { %v7442_v29 = vperm.slane %v2096_v17, %v6932_v60  ;;  %v1691_v50 = vrot.slane %v1666_v34, 4  ;;  %v1354_v57 = vadd.f32 %v1353_v35, %v1287_v58  ;;  %v1441_v27 = vadd.f32 %v1440_v55, %v1287_v58 }
 0x30e   : > { %10897 = vst [vmem:[#allocation136_spill] sm:$0xff] %v7439_v13  ;;  %3262 = vmax.xlane.f32.xlu1 %v3261_v9  ;;  %v7445_v11 = vsel %vm1449_vm1, 0.0, %v1701_v49  ;;  %v7448_v62 = vsel %vm1449_vm1, 0.0, %v2117_v43  ;;  %v1690_v46 = vsel %vm1449_vm1, %v1689_v25, %v1666_v34  ;;  %v2106_v39 = vsel %vm1449_vm1, %v2105_v12, %v2082_v31 }
 0x30f   : > { %10898 = vst [vmem:[#allocation137_spill] sm:$0xff] %v7442_v29  ;;  %3267 = vmax.xlane.f32.xlu2 %v3266_v22  ;;  %v2107_v18 = vrot.slane %v2082_v31, 4  ;;  %v1383_v63 = vadd.f32 %v1382_v0, %v1287_v58  ;;  %v1719_v44 = vrot.slane %v1412_v24, 4  ;;  %v3271_v17 = vmax.f32 %v3269_v52, %v3270_v40 }
 0x310   : > { %10899 = vst [vmem:[#allocation138_spill] sm:$0xff] %v7445_v11  ;;  %v3274_v35 = vsel %vm3113_vm4, %v7406_v19, -inf  ;;  %v3275_v55 = vsel %vm3113_vm4, %v7409_v21, -inf  ;;  %v1703_v49 = vrot.slane %v7439_v13, 4  ;;  %v2119_v9 = vrot.slane %v7442_v29, 4 }
 0x311   : > { %10900 = vst [vmem:[#allocation139_spill] sm:$0xff] %v7448_v62  ;;  %v3279_v43 = vsel %vm3113_vm4, %v7445_v11, -inf  ;;  %v3280_v12 = vsel %vm3113_vm4, %v7448_v62, -inf  ;;  %v7463_v34 = vperm.slane %v1690_v46, %v6932_v60  ;;  %v7466_v58 = vperm.slane %v2106_v39, %v6932_v60 }
 0x312   : > { %3272 = vmax.xlane.f32.xlu0 %v3271_v17  ;;  %v1709_v25 = vrot.slane %v1354_v57, 4  ;;  %v1714_v31 = vperm.slane %v1354_v57, %v6353_v26  ;;  %v1724_v22 = vperm.slane %v1412_v24, %v6353_v26  ;;  %v2140_v0 = vperm.slane %v1441_v27, %v6353_v26 }
 0x313   : > { %10901 = vst [vmem:[#allocation140_spill] sm:$0xff] %v7463_v34  ;;  %v2135_v52 = vrot.slane %v1441_v27, 4  ;;  %v3276_v40 = vmax.f32 %v3274_v35, %v3275_v55  ;;  %v1692_v17 = vsel %vm1449_vm1, %v7400_v37, %v1691_v50  ;;  %v2108_v62 = vsel %vm1449_vm1, %v7403_v48, %v2107_v18 }
 0x314   : > { %10902 = vst [vmem:[#allocation141_spill] sm:$0xff] %v7466_v58  ;;  %v1720_v46 = vsel %vm1449_vm1, 0.0, %v1719_v44  ;;  %v3281_v11 = vmax.f32 %v3279_v43, %v3280_v12  ;;  %v3284_v39 = vsel %vm3113_vm4, %v7439_v13, -inf  ;;  %v3285_v57 = vsel %vm3113_vm4, %v7442_v29, -inf }
 0x315   : > { %v7481_v24 = vsel %vm1449_vm1, 0.0, %v1703_v49  ;;  %v7484_v27 = vsel %vm1449_vm1, 0.0, %v2119_v9  ;;  %v1705_v50 = vrot.slane %v7463_v34, 4  ;;  %v2121_v37 = vrot.slane %v7466_v58, 4 }
 0x316   : > { %3277 = vmax.xlane.f32.xlu1 %v3276_v40  ;;  %10903 = vst [vmem:[#allocation142_spill] sm:$0xff] %v7481_v24  ;;  %v1729_v48 = vrot.slane %v1724_v22, 4  ;;  %v2145_v18 = vrot.slane %v2140_v0, 4  ;;  %v7489_v44 = vperm.slane %v1692_v17, %v6932_v60  ;;  %v7492_v35 = vperm.slane %v2108_v62, %v6932_v60 }
 0x317   : > { %10904 = vst [vmem:[#allocation143_spill] sm:$0xff] %v7484_v27  ;;  %3282 = vmax.xlane.f32.xlu2 %v3281_v11  ;;  %v1710_v55 = vsel %vm1449_vm1, 0.0, %v1709_v25  ;;  %v2125_v49 = vrot.slane %v1383_v63, 4  ;;  %v2130_v43 = vperm.slane %v1383_v63, %v6353_v26  ;;  %v3286_v9 = vmax.f32 %v3284_v39, %v3285_v57 }
 0x318   : > { %10905 = vst [vmem:[#allocation144_spill] sm:$0xff] %v7489_v44  ;;  %v7497_v12 = vperm.slane %v1720_v46, %v6353_v26  ;;  %v2136_v40 = vsel %vm1449_vm1, 0.0, %v2135_v52  ;;  %v3289_v11 = vsel %vm3113_vm4, %v7481_v24, -inf  ;;  %v3290_v17 = vsel %vm3113_vm4, %v7484_v27, -inf  ;;  %v1414_v27 = vpop.f32.mrf.mxu2 }
 0x319   : > { %10906 = vst [vmem:[#allocation145_spill] sm:$0xff] %v7492_v35  ;;  %v3294_v62 = vsel %vm3113_vm4, %v7463_v34, -inf  ;;  %v3295_v25 = vsel %vm3113_vm4, %v7466_v58, -inf  ;;  %v7509_v63 = vsel %vm1449_vm1, 0.0, %v1705_v50  ;;  %v7512_v46 = vsel %vm1449_vm1, 0.0, %v2121_v37 }
 0x31a   : > { %3287 = vmax.xlane.f32.xlu0 %v3286_v9  ;;  %10907 = vst [vmem:[#allocation146_spill] sm:$0xff] %v7509_v63  ;;  %v1707_v52 = vrot.slane %v7489_v44, 4  ;;  %v2123_v39 = vrot.slane %v7492_v35, 4  ;;  %v1730_v57 = vsel %vm1449_vm1, %v1729_v48, %v1714_v31  ;;  %v2146_v9 = vsel %vm1449_vm1, %v2145_v18, %v2130_v43 }
 0x31b   : > { %10908 = vst [vmem:[#allocation147_spill] sm:$0xff] %v7512_v46  ;;  %v1731_v29 = vrot.slane %v1714_v31, 4  ;;  %v2147_v13 = vrot.slane %v2130_v43, 4  ;;  %v7519_v34 = vperm.slane %v2136_v40, %v6353_v26  ;;  %v3291_v58 = vmax.f32 %v3289_v11, %v3290_v17 }
 0x31c   : > { %v2126_v50 = vsel %vm1449_vm1, 0.0, %v2125_v49  ;;  %v3296_v24 = vmax.f32 %v3294_v62, %v3295_v25  ;;  %v3299_v37 = vsel %vm3113_vm4, %v7509_v63, -inf  ;;  %v3300_v32 = vsel %vm3113_vm4, %v7512_v46, -inf  ;;  %v1292_v49 = vpop.permute.xlu1 %1291  ;;  %v1443_v62 = vpop.f32.mrf.mxu3 }
 0x31d   : > { %v1732_v48 = vsel %vm1449_vm1, %v1724_v22, %v1731_v29  ;;  %v2148_v18 = vsel %vm1449_vm1, %v2140_v0, %v2147_v13  ;;  %v7529_v31 = vperm.slane %v1730_v57, %v6932_v60  ;;  %v7532_v43 = vperm.slane %v2146_v9, %v6932_v60  ;;  %v7544_v57 = vpop.permute.xlu2 %1296 }
 0x31e   : > { %3292 = vmax.xlane.f32.xlu1 %v3291_v58  ;;  %v1718_v40 = vperm.slane %v1710_v55, %v6353_v26  ;;  %v1741_v11 = vrot.slane %v7497_v12, 4  ;;  %v7537_v17 = vsel %vm1449_vm1, 0.0, %v1707_v52  ;;  %v7540_v29 = vsel %vm1449_vm1, 0.0, %v2123_v39  ;;  %v1356_v58 = vpop.f32.mrf.mxu0 }
 0x31f   : > { %10909 = vst [vmem:[#allocation148_spill] sm:$0xff] %v7529_v31  ;;  %3297 = vmax.xlane.f32.xlu2 %v3296_v24  ;;  %v2134_v13 = vperm.slane %v2126_v50, %v6353_v26  ;;  %v2157_v22 = vrot.slane %v7519_v34, 4  ;;  %v1415_v0 = vadd.f32 %v1414_v27, %v1292_v49  ;;  %v3301_v25 = vmax.f32 %v3299_v37, %v3300_v32 }
 0x320   : > { %10910 = vst [vmem:[#allocation149_spill] sm:$0xff] %v7532_v43  ;;  %v3304_v55 = vsel %vm3113_vm4, %v7489_v44, -inf  ;;  %v3305_v24 = vsel %vm3113_vm4, %v7492_v35, -inf  ;;  %v7551_v52 = vperm.slane %v1732_v48, %v6932_v60  ;;  %v7554_v39 = vperm.slane %v2148_v18, %v6932_v60  ;;  %v1385_v44 = vpop.f32.mrf.mxu1 }
 0x321   : > { %10911 = vst [vmem:[#allocation150_spill] sm:$0xff] %v7537_v17  ;;  %v3309_v27 = vsel %vm3113_vm4, %v7537_v17, -inf  ;;  %v3310_v32 = vsel %vm3113_vm4, %v7540_v29, -inf  ;;  %v1753_v9 = vrot.slane %v7529_v31, 4  ;;  %v2169_v50 = vrot.slane %v7532_v43, 4 }
 0x322   : > { %10912 = vst [vmem:[#allocation151_spill] sm:$0xff] %v7540_v29  ;;  %3302 = vmax.xlane.f32.xlu0 %v3301_v25  ;;  %v1743_v37 = vrot.slane %v1718_v40, 4  ;;  %v1357_v46 = vadd.f32 %v1356_v58, %v1292_v49  ;;  %v1444_v63 = vadd.f32 %v1443_v62, %v1292_v49  ;;  %v1742_v48 = vsel %vm1449_vm1, %v1741_v11, %v1718_v40 }
 0x323   : > { %10913 = vst [vmem:[#allocation152_spill] sm:$0xff] %v7551_v52  ;;  %v2159_v35 = vrot.slane %v2134_v13, 4  ;;  %v7564_v18 = vperm.slane %v1415_v0, %v6353_v26  ;;  %v3306_v25 = vmax.f32 %v3304_v55, %v3305_v24  ;;  %v2158_v17 = vsel %vm1449_vm1, %v2157_v22, %v2134_v13 }
 0x324   : > { %10914 = vst [vmem:[#allocation153_spill] sm:$0xff] %v7554_v39  ;;  %v3311_v5 = vmax.f32 %v3309_v27, %v3310_v32  ;;  %v3314_v29 = vsel %vm3113_vm4, %v7529_v31, -inf  ;;  %v3315_v21 = vsel %vm3113_vm4, %v7532_v43, -inf  ;;  %v1755_v58 = vrot.slane %v7551_v52, 4 }
 0x325   : > { %v7573_v40 = vsel %vm1449_vm1, 0.0, %v1753_v9  ;;  %v7576_v11 = vsel %vm1449_vm1, 0.0, %v2169_v50  ;;  %v2171_v62 = vrot.slane %v7554_v39, 4  ;;  %v7580_v13 = vperm.slane %v1742_v48, %v6932_v60 }
 0x326   : > { %3307 = vmax.xlane.f32.xlu1 %v3306_v25  ;;  %10915 = vst [vmem:[#allocation154_spill] sm:$0xff] %v7573_v40  ;;  %v1761_v22 = vrot.slane %v1357_v46, 4  ;;  %v1386_v55 = vadd.f32 %v1385_v44, %v1292_v49  ;;  %v2192_v24 = vperm.slane %v1444_v63, %v6353_v26  ;;  %v7584_v27 = vperm.slane %v2158_v17, %v6932_v60 }
 0x327   : > { %10916 = vst [vmem:[#allocation155_spill] sm:$0xff] %v7576_v11  ;;  %3312 = vmax.xlane.f32.xlu2 %v3311_v5  ;;  %v1766_v32 = vperm.slane %v1357_v46, %v6353_v26  ;;  %v1771_v9 = vrot.slane %v1415_v0, 4  ;;  %v2187_v25 = vrot.slane %v1444_v63, 4  ;;  %v3316_v43 = vmax.f32 %v3314_v29, %v3315_v21 }
 0x328   : > { %10917 = vst [vmem:[#allocation156_spill] sm:$0xff] %v7580_v13  ;;  %v1781_v50 = vrot.slane %v7564_v18, 4  ;;  %v3319_v31 = vsel %vm3113_vm4, %v7573_v40, -inf  ;;  %v3320_v48 = vsel %vm3113_vm4, %v7576_v11, -inf  ;;  %v3324_v44 = vsel %vm3113_vm4, %v7551_v52, -inf }
 0x329   : > { %10918 = vst [vmem:[#allocation157_spill] sm:$0xff] %v7584_v27  ;;  %v3325_v46 = vsel %vm3113_vm4, %v7554_v39, -inf  ;;  %v7599_v63 = vsel %vm1449_vm1, 0.0, %v1755_v58  ;;  %v7602_v21 = vsel %vm1449_vm1, 0.0, %v2171_v62  ;;  %v1757_v49 = vrot.slane %v7580_v13, 4 }
 0x32a   : > { %3317 = vmax.xlane.f32.xlu0 %v3316_v43  ;;  %10919 = vst [vmem:[#allocation158_spill] sm:$0xff] %v7599_v63  ;;  %v2197_v17 = vrot.slane %v2192_v24, 4  ;;  %v2173_v29 = vrot.slane %v7584_v27, 4  ;;  %v1744_v0 = vsel %vm1449_vm1, %v7497_v12, %v1743_v37  ;;  %v2160_v43 = vsel %vm1449_vm1, %v7519_v34, %v2159_v35 }
 0x32b   : > { %10920 = vst [vmem:[#allocation159_spill] sm:$0xff] %v7602_v21  ;;  %v2177_v52 = vrot.slane %v1386_v55, 4  ;;  %v2182_v39 = vperm.slane %v1386_v55, %v6353_v26  ;;  %v1772_v58 = vsel %vm1449_vm1, 0.0, %v1771_v9  ;;  %v3321_v11 = vmax.f32 %v3319_v31, %v3320_v48 }
 0x32c   : > { %v2188_v62 = vsel %vm1449_vm1, 0.0, %v2187_v25  ;;  %v3326_v19 = vmax.f32 %v3324_v44, %v3325_v46  ;;  %v3329_v1 = vsel %vm3113_vm4, %v7599_v63, -inf  ;;  %v3330_v12 = vsel %vm3113_vm4, %v7602_v21, -inf }
 0x32d   : > { %v7594_v5 = vpop.xlane.xlu2 %3127  ;;  %v7620_v34 = vsel %vm1449_vm1, 0.0, %v1757_v49  ;;  %v7623_v35 = vperm.slane %v1744_v0, %v6932_v60  ;;  %v7626_v31 = vperm.slane %v2160_v43, %v6932_v60  ;;  %v1782_v37 = vsel %vm1449_vm1, %v1781_v50, %v1766_v32 }
 0x32e   : > { %3322 = vmax.xlane.f32.xlu1 %v3321_v11  ;;  %10921 = vst [vmem:[#allocation160_spill] sm:$0xff] %v7620_v34  ;;  %v1762_v55 = vsel %vm1449_vm1, 0.0, %v1761_v22  ;;  %v1783_v9 = vrot.slane %v1766_v32, 4  ;;  %v7633_v48 = vsel %vm1449_vm1, 0.0, %v2173_v29  ;;  %v2198_v11 = vsel %vm1449_vm1, %v2197_v17, %v2182_v39 }
 0x32f   : > { %v7612_v40 = vpop.xlane.xlu0 %3117  ;;  %10922 = vst [vmem:[#allocation161_spill] sm:$0xff] %v7623_v35  ;;  %3327 = vmax.xlane.f32.xlu2 %v3326_v19  ;;  %v2199_v44 = vrot.slane %v2182_v39, 4  ;;  %v7637_v46 = vperm.slane %v1772_v58, %v6353_v26  ;;  %v7640_v49 = vperm.slane %v2188_v62, %v6353_v26  ;;  %v3331_v0 = vmax.f32 %v3329_v1, %v3330_v12  ;;  %v1358_v12 = vpop.f32.mrf.mxu0 }
 0x330   : > { %10923 = vst [vmem:[#allocation162_spill] sm:$0xff] %v7626_v31  ;;  %v3334_v22 = vsel %vm3113_vm4, %v7580_v13, -inf  ;;  %v3335_v19 = vsel %vm3113_vm4, %v7584_v27, -inf  ;;  %v3339_v32 = vsel %vm3113_vm4, %v7620_v34, -inf  ;;  %v7649_v50 = vperm.slane %v1782_v37, %v6932_v60  ;;  %v1387_v37 = vpop.f32.mrf.mxu1  ;;  %v1445_v27 = vpop.f32.mrf.mxu3 }
 0x331   : > { %10924 = vst [vmem:[#allocation163_spill] sm:$0xff] %v7633_v48  ;;  %v3340_v39 = vsel %vm3113_vm4, %v7633_v48, -inf  ;;  %v1759_v17 = vrot.slane %v7623_v35, 4  ;;  %v2175_v1 = vrot.slane %v7626_v31, 4  ;;  %v7656_v29 = vperm.slane %v2198_v11, %v6932_v60  ;;  %v1416_v11 = vpop.f32.mrf.mxu2 }
 0x332   : > { %10925 = vst [vmem:[#allocation164_spill] sm:$0xff] %v7649_v50  ;;  %3332 = vmax.xlane.f32.xlu0 %v3331_v0  ;;  %v1770_v43 = vperm.slane %v1762_v55, %v6353_v26  ;;  %v2178_v58 = vsel %vm1449_vm1, 0.0, %v2177_v52  ;;  %v1784_v0 = vsel %vm1449_vm1, %v7564_v18, %v1783_v9  ;;  %v1793_v48 = vrot.slane %v7637_v46, 4 }
 0x333   : > { %v7630_v25 = vpop.xlane.xlu1 %3122  ;;  %10926 = vst [vmem:[#allocation165_spill] sm:$0xff] %v7656_v29  ;;  %v2200_v34 = vsel %vm1449_vm1, %v2192_v24, %v2199_v44  ;;  %v3336_v21 = vmax.f32 %v3334_v22, %v3335_v19  ;;  %v2209_v63 = vrot.slane %v7640_v49, 4  ;;  %v3341_v13 = vmax.f32 %v3339_v32, %v3340_v39 }
 0x334   : > { %v3344_v52 = vsel %vm3113_vm4, %v7623_v35, -inf  ;;  %v3345_v55 = vsel %vm3113_vm4, %v7626_v31, -inf  ;;  %v7674_v18 = vsel %vm1449_vm1, 0.0, %v1759_v17  ;;  %v7677_v24 = vsel %vm1449_vm1, 0.0, %v2175_v1 }
 0x335   : > { %v7660_v62 = vpop.xlane.xlu2 %3132  ;;  %10927 = vst [vmem:[#allocation166_spill] sm:$0xff] %v7674_v18  ;;  %v1805_v9 = vrot.slane %v7649_v50, 4  ;;  %v2221_v44 = vrot.slane %v7656_v29, 4  ;;  %v2186_v22 = vperm.slane %v2178_v58, %v6353_v26  ;;  %v7683_v19 = vadd.f32 %v1358_v12, %v7544_v57 }
 0x336   : > { %3337 = vmax.xlane.f32.xlu1 %v3336_v21  ;;  %10928 = vst [vmem:[#allocation167_spill] sm:$0xff] %v7677_v24  ;;  %v7686_v21 = vperm.slane %v1784_v0, %v6932_v60  ;;  %v7689_v32 = vperm.slane %v2200_v34, %v6932_v60  ;;  %v7692_v39 = vadd.f32 %v1387_v37, %v7544_v57  ;;  %v3349_v58 = vsel %vm3113_vm4, %v7674_v18, -inf }
 0x337   : > { %v7671_v36 = vpop.xlane.xlu0 %3137  ;;  %3342 = vmax.xlane.f32.xlu2 %v3341_v13  ;;  %v1417_v17 = vadd.f32 %v1416_v11, %v7544_v57  ;;  %v1446_v1 = vadd.f32 %v1445_v27, %v7544_v57  ;;  %v3346_v31 = vmax.f32 %v3344_v52, %v3345_v55  ;;  %v3350_v13 = vsel %vm3113_vm4, %v7677_v24, -inf }
 0x338   : > { %10929 = vst [vmem:[#allocation168_spill] sm:$0xff] %v7686_v21  ;;  %v3354_v12 = vsel %vm3113_vm4, %v7649_v50, -inf  ;;  %v3355_v34 = vsel %vm3113_vm4, %v7656_v29, -inf  ;;  %v7707_v37 = vsel %vm1449_vm1, 0.0, %v1805_v9  ;;  %v7710_v57 = vsel %vm1449_vm1, 0.0, %v2221_v44 }
 0x339   : > { %10930 = vst [vmem:[#allocation169_spill] sm:$0xff] %v7689_v32  ;;  %v1794_v27 = vsel %vm1449_vm1, %v1793_v48, %v1770_v43  ;;  %v2210_v11 = vsel %vm1449_vm1, %v2209_v63, %v2186_v22  ;;  %v1795_v52 = vrot.slane %v1770_v43, 4  ;;  %v2211_v55 = vrot.slane %v2186_v22, 4 }
 0x33a   : > { %3347 = vmax.xlane.f32.xlu0 %v3346_v31  ;;  %10931 = vst [vmem:[#allocation170_spill] sm:$0xff] %v7707_v37  ;;  %v1807_v50 = vrot.slane %v7686_v21, 4  ;;  %v2223_v35 = vrot.slane %v7689_v32, 4  ;;  %v1828_v29 = vperm.slane %v1417_v17, %v6353_v26  ;;  %v2244_v31 = vperm.slane %v1446_v1, %v6353_v26 }
 0x33b   : > { %v7704_v0 = vpop.xlane.xlu1 %3142  ;;  %10932 = vst [vmem:[#allocation171_spill] sm:$0xff] %v7710_v57  ;;  %v3351_v24 = vmax.f32 %v3349_v58, %v3350_v13  ;;  %v3356_v9 = vmax.f32 %v3354_v12, %v3355_v34  ;;  %v3359_v44 = vsel %vm3113_vm4, %v7707_v37, -inf  ;;  %v3360_v48 = vsel %vm3113_vm4, %v7710_v57, -inf }
 0x33c   : > { %v7725_v63 = vperm.slane %v1794_v27, %v6932_v60  ;;  %v7728_v43 = vperm.slane %v2210_v11, %v6932_v60  ;;  %v1818_v22 = vperm.slane %v7683_v19, %v6353_v26  ;;  %v2234_v58 = vperm.slane %v7692_v39, %v6353_v26 }
 0x33d   : > { %v7722_v18 = vpop.xlane.xlu2 %3147  ;;  %v1823_v13 = vrot.slane %v1417_v17, 4  ;;  %v7735_v12 = vsel %vm1449_vm1, 0.0, %v1807_v50  ;;  %v7738_v34 = vsel %vm1449_vm1, 0.0, %v2223_v35  ;;  %v1796_v27 = vsel %vm1449_vm1, %v7637_v46, %v1795_v52 }
 0x33e   : > { %10933 = vst [vmem:[#allocation172_spill] sm:$0xff] %v7725_v63  ;;  %3352 = vmax.xlane.f32.xlu1 %v3351_v24  ;;  %v2212_v11 = vsel %vm1449_vm1, %v7640_v49, %v2211_v55  ;;  %v1833_v57 = vrot.slane %v1828_v29, 4  ;;  %v2239_v37 = vrot.slane %v1446_v1, 4  ;;  %v2249_v53 = vrot.slane %v2244_v31, 4 }
 0x33f   : > { %10934 = vst [vmem:[#allocation173_spill] sm:$0xff] %v7728_v43  ;;  %3357 = vmax.xlane.f32.xlu2 %v3356_v9  ;;  %v3361_v38 = vmax.f32 %v3359_v44, %v3360_v48  ;;  %v3364_v24 = vsel %vm3113_vm4, %v7686_v21, -inf  ;;  %v3365_v50 = vsel %vm3113_vm4, %v7689_v32, -inf  ;;  %v1809_v35 = vrot.slane %v7725_v63, 4 }
 0x340   : > { %10935 = vst [vmem:[#allocation174_spill] sm:$0xff] %v7735_v12  ;;  %v7744_v23 = vpop.xlane.xlu0 %3152  ;;  %v2225_v17 = vrot.slane %v7728_v43, 4  ;;  %v3369_v46 = vsel %vm3113_vm4, %v7735_v12, -inf  ;;  %v3370_v49 = vsel %vm3113_vm4, %v7738_v34, -inf  ;;  %v7757_v1 = vperm.slane %v1796_v27, %v6932_v60 }
 0x341   : > { %10936 = vst [vmem:[#allocation175_spill] sm:$0xff] %v7738_v34  ;;  %v7760_v52 = vperm.slane %v2212_v11, %v6932_v60  ;;  %v1813_v55 = vrot.slane %v7683_v19, 4  ;;  %v1835_v9 = vrot.slane %v1818_v22, 4  ;;  %v2229_v44 = vrot.slane %v7692_v39, 4 }
 0x342   : > { %3362 = vmax.xlane.f32.xlu0 %v3361_v38  ;;  %10937 = vst [vmem:[#allocation176_spill] sm:$0xff] %v7757_v1  ;;  %v1824_v48 = vsel %vm1449_vm1, 0.0, %v1823_v13  ;;  %v2240_v12 = vsel %vm1449_vm1, 0.0, %v2239_v37  ;;  %v3366_v32 = vmax.f32 %v3364_v24, %v3365_v50  ;;  %v1834_v34 = vsel %vm1449_vm1, %v1833_v57, %v1818_v22 }
 0x343   : > { %10938 = vst [vmem:[#allocation177_spill] sm:$0xff] %v7760_v52  ;;  %v2250_v27 = vsel %vm1449_vm1, %v2249_v53, %v2234_v58  ;;  %v2251_v21 = vrot.slane %v2234_v58, 4  ;;  %v3371_v14 = vmax.f32 %v3369_v46, %v3370_v49  ;;  %v3374_v11 = vsel %vm3113_vm4, %v7725_v63, -inf }
 0x344   : > { %v7765_v38 = vpop.xlane.xlu1 %3157  ;;  %v3375_v19 = vsel %vm3113_vm4, %v7728_v43, -inf  ;;  %v7775_v39 = vsel %vm1449_vm1, 0.0, %v1809_v35  ;;  %v7778_v13 = vsel %vm1449_vm1, 0.0, %v2225_v17  ;;  %v1811_v37 = vrot.slane %v7757_v1, 4 }
 0x345   : > { %10939 = vst [vmem:[#allocation178_spill] sm:$0xff] %v7775_v39  ;;  %v2227_v57 = vrot.slane %v7760_v52, 4  ;;  %v1832_v53 = vperm.slane %v1824_v48, %v6353_v26  ;;  %v2248_v22 = vperm.slane %v2240_v12, %v6353_v26  ;;  %v7787_v24 = vperm.slane %v1834_v34, %v6932_v60 }
 0x346   : > { %3367 = vmax.xlane.f32.xlu1 %v3366_v32  ;;  %10940 = vst [vmem:[#allocation179_spill] sm:$0xff] %v7778_v13  ;;  %v7790_v32 = vperm.slane %v2250_v27, %v6932_v60  ;;  %v1814_v50 = vsel %vm1449_vm1, 0.0, %v1813_v55  ;;  %v2230_v35 = vsel %vm1449_vm1, 0.0, %v2229_v44  ;;  %v3376_v17 = vmax.f32 %v3374_v11, %v3375_v19 }
 0x347   : > { %3372 = vmax.xlane.f32.xlu2 %v3371_v14  ;;  %v7784_v58 = vpop.xlane.xlu2 %3162  ;;  %10941 = vst [vmem:[#allocation180_spill] sm:$0xff] %v7787_v24  ;;  %v1836_v46 = vsel %vm1449_vm1, %v1828_v29, %v1835_v9  ;;  %v2252_v49 = vsel %vm1449_vm1, %v2244_v31, %v2251_v21  ;;  %v3379_v14 = vsel %vm3113_vm4, %v7775_v39, -inf  ;;  %v3380_v12 = vsel %vm3113_vm4, %v7778_v13, -inf }
 0x348   : > { %10942 = vst [vmem:[#allocation181_spill] sm:$0xff] %v7790_v32  ;;  %v7800_v34 = vpop.xlane.xlu0 %3167  ;;  %v3384_v48 = vsel %vm3113_vm4, %v7757_v1, -inf  ;;  %v3385_v55 = vsel %vm3113_vm4, %v7760_v52, -inf  ;;  %v7807_v44 = vsel %vm1449_vm1, 0.0, %v1811_v37  ;;  %v7810_v29 = vsel %vm1449_vm1, 0.0, %v2227_v57 }
 0x349   : > { %10943 = vst [vmem:[#allocation182_spill] sm:$0xff] %v7807_v44  ;;  %v1845_v21 = vrot.slane %v1832_v53, 4  ;;  %v2261_v31 = vrot.slane %v2248_v22, 4  ;;  %v1857_v9 = vrot.slane %v7787_v24, 4  ;;  %v2273_v27 = vrot.slane %v7790_v32, 4 }
 0x34a   : > { %3377 = vmax.xlane.f32.xlu0 %v3376_v17  ;;  %10944 = vst [vmem:[#allocation183_spill] sm:$0xff] %v7810_v29  ;;  %v1822_v11 = vperm.slane %v1814_v50, %v6353_v26  ;;  %v2238_v19 = vperm.slane %v2230_v35, %v6353_v26  ;;  %v3381_v17 = vmax.f32 %v3379_v14, %v3380_v12  ;;  %v3389_v57 = vsel %vm3113_vm4, %v7807_v44, -inf }
 0x34b   : > { %v7817_v1 = vperm.slane %v1836_v46, %v6932_v60  ;;  %v3386_v52 = vmax.f32 %v3384_v48, %v3385_v55  ;;  %v3390_v43 = vsel %vm3113_vm4, %v7810_v29, -inf  ;;  %v7826_v63 = vperm.slane %v2252_v49, %v6932_v60 }
 0x34c   : > { %v7819_v37 = vpop.xlane.xlu1 %3172  ;;  %v7829_v26 = vsel %vm1449_vm1, 0.0, %v1857_v9  ;;  %v7832_v50 = vsel %vm1449_vm1, 0.0, %v2273_v27  ;;  %v1846_v35 = vsel %vm1449_vm1, %v1845_v21, %v1822_v11  ;;  %v2262_v46 = vsel %vm1449_vm1, %v2261_v31, %v2238_v19 }
 0x34d   : > { %10945 = vst [vmem:[#allocation184_spill] sm:$0xff] %v7817_v1  ;;  %v1847_v14 = vrot.slane %v1822_v11, 4  ;;  %v2263_v12 = vrot.slane %v2238_v19, 4  ;;  %v3391_v48 = vmax.f32 %v3389_v57, %v3390_v43  ;;  %v3394_v49 = vsel %vm3113_vm4, %v7787_v24, -inf }
 0x34e   : > { %10946 = vst [vmem:[#allocation185_spill] sm:$0xff] %v7826_v63  ;;  %3382 = vmax.xlane.f32.xlu1 %v3381_v17  ;;  %v1859_v9 = vrot.slane %v7817_v1, 4  ;;  %v2275_v27 = vrot.slane %v7826_v63, 4  ;;  %v3399_v21 = vsel %vm3113_vm4, %v7829_v26, -inf  ;;  %v3400_v31 = vsel %vm3113_vm4, %v7832_v50, -inf }
 0x34f   : > { %3387 = vmax.xlane.f32.xlu2 %v3386_v52  ;;  %10947 = vst [vmem:[#allocation186_spill] sm:$0xff] %v7829_v26  ;;  %v3395_v52 = vsel %vm3113_vm4, %v7790_v32, -inf  ;;  %v7849_v43 = vperm.slane %v1846_v35, %v6932_v60  ;;  %v7852_v11 = vperm.slane %v2262_v46, %v6932_v60  ;;  %v1848_v57 = vsel %vm1449_vm1, %v1832_v53, %v1847_v14 }
 0x350   : > { %10948 = vst [vmem:[#allocation187_spill] sm:$0xff] %v7832_v50  ;;  %v7836_v55 = vpop.xlane.xlu2 %3177  ;;  %v3396_v17 = vmax.f32 %v3394_v49, %v3395_v52  ;;  %v2264_v29 = vsel %vm1449_vm1, %v2248_v22, %v2263_v12  ;;  %v3404_v26 = vsel %vm3113_vm4, %v7817_v1, -inf  ;;  %v3405_v50 = vsel %vm3113_vm4, %v7826_v63, -inf }
 0x351   : > { %10949 = vst [vmem:[#allocation188_spill] sm:$0xff] %v7849_v43  ;;  %v7863_v35 = vsel %vm1449_vm1, 0.0, %v1859_v9  ;;  %v7866_v46 = vsel %vm1449_vm1, 0.0, %v2275_v27  ;;  %v1861_v49 = vrot.slane %v7849_v43, 4  ;;  %v2277_v53 = vrot.slane %v7852_v11, 4 }
 0x352   : > { %3392 = vmax.xlane.f32.xlu0 %v3391_v48  ;;  %10950 = vst [vmem:[#allocation189_spill] sm:$0xff] %v7852_v11  ;;  %v3401_v48 = vmax.f32 %v3399_v21, %v3400_v31  ;;  %v7873_v14 = vperm.slane %v1848_v57, %v6932_v60  ;;  %v7876_v12 = vperm.slane %v2264_v29, %v6932_v60  ;;  %v3409_v9 = vsel %vm3113_vm4, %v7863_v35, -inf }
 0x353   : > { %v7854_v19 = vpop.xlane.xlu0 %3182  ;;  %10951 = vst [vmem:[#allocation190_spill] sm:$0xff] %v7863_v35  ;;  %v3406_v52 = vmax.f32 %v3404_v26, %v3405_v50  ;;  %v3410_v27 = vsel %vm3113_vm4, %v7866_v46, -inf  ;;  %v3414_v31 = vsel %vm3113_vm4, %v7849_v43, -inf  ;;  %v7889_v57 = vsel %vm1449_vm1, 0.0, %v1861_v49 }
 0x354   : > { %10952 = vst [vmem:[#allocation191_spill] sm:$0xff] %v7866_v46  ;;  %v7892_v29 = vsel %vm1449_vm1, 0.0, %v2277_v53  ;;  %v1863_v26 = vrot.slane %v7873_v14, 4  ;;  %v2279_v50 = vrot.slane %v7876_v12, 4  ;;  %v3419_v43 = vsel %vm3113_vm4, %v7889_v57, -inf }
 0x355   : > { %10953 = vst [vmem:[#allocation192_spill] sm:$0xff] %v7873_v14  ;;  %v3444_v28 = vsel %vm3113_vm4, %v7744_v23, -inf  ;;  %v3437_v16 = vsel %vm3113_vm4, %v7660_v62, -inf  ;;  %v3440_v51 = vsel %vm3113_vm4, %v7704_v0, -inf  ;;  %v3442_v42 = vsel %vm3113_vm4, %v7722_v18, -inf }
 0x356   : > { %3397 = vmax.xlane.f32.xlu1 %v3396_v17  ;;  %v7870_v22 = vpop.xlane.xlu1 %3187  ;;  %10954 = vst [vmem:[#allocation193_spill] sm:$0xff] %v7876_v12  ;;  %v3415_v17 = vsel %vm3113_vm4, %v7852_v11, -inf  ;;  %v3420_v11 = vsel %vm3113_vm4, %v7892_v29, -inf  ;;  %v7903_v49 = vsel %vm1449_vm1, 0.0, %v1863_v26  ;;  %v7906_v53 = vsel %vm1449_vm1, 0.0, %v2279_v50 }
 0x357   : > { %3402 = vmax.xlane.f32.xlu2 %v3401_v48  ;;  %10955 = vst [vmem:[#allocation194_spill] sm:$0xff] %v7889_v57  ;;  %v3416_v60 = vmax.f32 %v3414_v31, %v3415_v17  ;;  %v3421_v63 = vmax.f32 %v3419_v43, %v3420_v11  ;;  %v3430_v17 = vsel %vm3113_vm4, %v7906_v53, -inf  ;;  %v3452_v45 = vsel %vm3113_vm4, %v7819_v37, -inf }
 0x358   : > { %10956 = vst [vmem:[#allocation195_spill] sm:$0xff] %v7892_v29  ;;  %v3436_v20 = vsel %vm3113_vm4, %v7594_v5, -inf  ;;  %v3435_v2 = vsel %vm3113_vm4, %v7630_v25, -inf  ;;  %v3445_v8 = vmax.f32 %v3437_v16, %v3444_v28  ;;  %v3438_v23 = vsel %vm3113_vm4, %v7671_v36, -inf }
 0x359   : > { %v7882_v21 = vpop.xlane.xlu2 %3192  ;;  %10957 = vst [vmem:[#allocation196_spill] sm:$0xff] %v7903_v49  ;;  %v3448_v62 = vsel %vm3113_vm4, %v7784_v58, -inf  ;;  %v3450_v0 = vsel %vm3113_vm4, %v7800_v34, -inf  ;;  %v3434_v37 = vsel %vm3113_vm4, %v7612_v40, -inf  ;;  %v3441_v5 = vmax.f32 %v3435_v2, %v3440_v51 }
 0x35a   : > { %3407 = vmax.xlane.f32.xlu0 %v3406_v52  ;;  %v3411_v52 = vmax.f32 %v3409_v9, %v3410_v27  ;;  %10958 = vst [vmem:[#allocation197_spill] sm:$0xff] %v7906_v53  ;;  %v3424_v9 = vsel %vm3113_vm4, %v7873_v14, -inf  ;;  %v3425_v27 = vsel %vm3113_vm4, %v7876_v12, -inf  ;;  %v3460_v18 = vsel %vm3113_vm4, %v7882_v21, -inf }
 0x35b   : > { %v7896_v48 = vpop.xlane.xlu0 %3197  ;;  %v3426_v26 = vmax.f32 %v3424_v9, %v3425_v27  ;;  %v3443_v30 = vmax.f32 %v3436_v20, %v3442_v42  ;;  %v3446_v16 = vsel %vm3113_vm4, %v7765_v38, -inf  ;;  %v3456_v28 = vsel %vm3113_vm4, %v7854_v19, -inf }
 0x35c   : > { %v3458_v36 = vsel %vm3113_vm4, %v7870_v22, -inf  ;;  %v3439_v34 = vmax.f32 %v3434_v37, %v3438_v23  ;;  %v3449_v21 = vmax.f32 %v3441_v5, %v3448_v62  ;;  %v3454_v51 = vsel %vm3113_vm4, %v7836_v55, -inf }
 0x35e   : > { %3412 = vmax.xlane.f32.xlu1 %v3411_v52  ;;  %v3447_v38 = vmax.f32 %v3439_v34, %v3446_v16  ;;  %v3457_v19 = vmax.f32 %v3449_v21, %v3456_v28 }
 0x35f   : > { %3417 = vmax.xlane.f32.xlu2 %v3416_v60  ;;  %v3429_v60 = vsel %vm3113_vm4, %v7903_v49, -inf }
 0x360   : > { %v7908_v1 = vpop.xlane.xlu1 %3202  ;;  %v3431_v43 = vmax.f32 %v3429_v60, %v3430_v17  ;;  %v3455_v23 = vmax.f32 %v3447_v38, %v3454_v51 }
 0x361   : > { %v7914_v31 = vpop.xlane.xlu2 %3207  ;;  %v3464_v20 = vsel %vm3113_vm4, %v7908_v1, -inf }
 0x362   : > { %3422 = vmax.xlane.f32.xlu0 %v3421_v63 }
 0x364   : > { %v3213_v50 = vpop.xlane.xlu0 %3212 }
 0x365   : > { %v3468_v58 = vsel %vm3113_vm4, %v3213_v50, -inf }
 0x366   : > { %3427 = vmax.xlane.f32.xlu1 %v3426_v26 }
 0x367   : > { %3432 = vmax.xlane.f32.xlu2 %v3431_v43 }
 0x368   : > { %v7920_v11 = vpop.xlane.xlu1 %3217 }
 0x369   : > { %v7922_v52 = vpop.xlane.xlu2 %3222 }
 0x36a   : > { %v3472_v50 = vsel %vm3113_vm4, %v7922_v52, -inf }
 0x36d   : > { %v7924_v29 = vpop.xlane.xlu0 %3227 }
 0x36e   : > { %v3474_v55 = vsel %vm3113_vm4, %v7924_v29, -inf }
 0x371   : > { %v3233_v63 = vpop.xlane.xlu1 %3232 }
 0x372   : > { %v7926_v57 = vpop.xlane.xlu2 %3237  ;;  %v3476_v42 = vsel %vm3113_vm4, %v3233_v63, -inf }
 0x373   : > { %v3478_v5 = vsel %vm3113_vm4, %v7926_v57, -inf }
 0x375   : > { %v7928_v12 = vpop.xlane.xlu0 %3242 }
 0x379   : > { %v7930_v49 = vpop.xlane.xlu1 %3247 }
 0x37a   : > { %v7932_v14 = vpop.xlane.xlu2 %3252 }
 0x37b   : > { %v3484_v1 = vsel %vm3113_vm4, %v7932_v14, -inf }
 0x37d   : > { %v7934_v9 = vpop.xlane.xlu0 %3257 }
 0x37e   : > { %v3486_v34 = vsel %vm3113_vm4, %v7934_v9, -inf }
 0x381   : > { %v7936_v27 = vpop.xlane.xlu1 %3262 }
 0x382   : > { %v7938_v60 = vpop.xlane.xlu2 %3267  ;;  %v3488_v16 = vsel %vm3113_vm4, %v7936_v27, -inf }
 0x385   : > { %v7940_v17 = vpop.xlane.xlu0 %3272 }
 0x386   : > { %v3492_v52 = vsel %vm3113_vm4, %v7940_v17, -inf }
 0x389   : > { %v7942_v26 = vpop.xlane.xlu1 %3277 }
 0x38a   : > { %v7944_v43 = vpop.xlane.xlu2 %3282 }
 0x38b   : > { %v3496_v57 = vsel %vm3113_vm4, %v7944_v43, -inf }
 0x38d   : > { %v7946_v53 = vpop.xlane.xlu0 %3287 }
 0x38e   : > { %v3498_v27 = vsel %vm3113_vm4, %v7946_v53, -inf }
 0x391   : > { %v7948_v46 = vpop.xlane.xlu1 %3292 }
 0x392   : > { %v7950_v35 = vpop.xlane.xlu2 %3297 }
 0x395   : > { %v7952_v44 = vpop.xlane.xlu0 %3302 }
 0x396   : > { %v3504_v9 = vsel %vm3113_vm4, %v7952_v44, -inf }
 0x399   : > { %v7954_v32 = vpop.xlane.xlu1 %3307 }
 0x39a   : > { %v7956_v24 = vpop.xlane.xlu2 %3312  ;;  %v3506_v43 = vsel %vm3113_vm4, %v7954_v32, -inf }
 0x39d   : > { %v7958_v13 = vpop.xlane.xlu0 %3317 }
 0x3a1   : > { %v7960_v39 = vpop.xlane.xlu1 %3322 }
 0x3a2   : > { %v7962_v3 = vpop.xlane.xlu2 %3327 }
 0x3a5   : > { %v7964_v4 = vpop.xlane.xlu0 %3332 }
 0x3a6   : > { %v3516_v53 = vsel %vm3113_vm4, %v7964_v4, -inf }
 0x3a9   : > { %v7966_v6 = vpop.xlane.xlu1 %3337 }
 0x3aa   : > { %v7968_v59 = vpop.xlane.xlu2 %3342 }
 0x3ad   : > { %v7972_v33 = vpop.xlane.xlu0 %3347 }
 0x3b1   : > { %v7974_v54 = vpop.xlane.xlu1 %3352 }
 0x3b2   : > { %v7970_v15 = vpop.xlane.xlu2 %3357  ;;  %v3524_v44 = vsel %vm3113_vm4, %v7974_v54, -inf }
 0x3b5   : > { %v7978_v47 = vpop.xlane.xlu0 %3362 }
 0x3b9   : > { %v7980_v7 = vpop.xlane.xlu1 %3367 }
 0x3ba   : > { %v7976_v41 = vpop.xlane.xlu2 %3372 }
 0x3bd   : > { %v7984_v61 = vpop.xlane.xlu0 %3377 }
 0x3be   : > { %10960 = vst [vmem:[#allocation199_spill] sm:$0xff] %v7984_v61  ;;  %v3453_v61 = vmax.f32 %v3445_v8, %v3452_v45  ;;  %v3466_v45 = vsel %vm3113_vm4, %v7914_v31, -inf  ;;  %v3465_v31 = vmax.f32 %v3457_v19, %v3464_v20 }
 0x3c0   : > { %v3461_v40 = vmax.f32 %v3453_v61, %v3460_v18  ;;  %v3462_v61 = vsel %vm3113_vm4, %v7896_v48, -inf  ;;  %v3482_v48 = vsel %vm3113_vm4, %v7930_v49, -inf  ;;  %v3473_v18 = vmax.f32 %v3465_v31, %v3472_v50 }
 0x3c1   : > { %v7986_v56 = vpop.xlane.xlu1 %3382  ;;  %v3463_v29 = vmax.f32 %v3455_v23, %v3462_v61  ;;  %v3512_v61 = vsel %vm3113_vm4, %v7960_v39, -inf  ;;  %v3520_v23 = vsel %vm3113_vm4, %v7968_v59, -inf  ;;  %v3532_v39 = vsel %vm3113_vm4, %v7976_v41, -inf }
 0x3c2   : > { %v7982_v10 = vpop.xlane.xlu2 %3387 }
 0x3c3   : > { %10959 = vst [vmem:[#allocation198_spill] sm:$0xff] %v7982_v10  ;;  %v3451_v10 = vmax.f32 %v3443_v30, %v3450_v0  ;;  %v3469_v30 = vmax.f32 %v3461_v40, %v3468_v58  ;;  %v3480_v0 = vsel %vm3113_vm4, %v7928_v12, -inf  ;;  %v3500_v12 = vsel %vm3113_vm4, %v7948_v46, -inf }
 0x3c4   : > { %v3481_v28 = vmax.f32 %v3473_v18, %v3480_v0 }
 0x3c5   : > { %v8021_v2 = vpop.xlane.xlu0 %3392  ;;  %v3459_v22 = vmax.f32 %v3451_v10, %v3458_v36  ;;  %v3477_v63 = vmax.f32 %v3469_v30, %v3476_v42  ;;  %v3470_v10 = vsel %vm3113_vm4, %v7920_v11, -inf  ;;  %v3490_v11 = vsel %vm3113_vm4, %v7938_v60, -inf }
 0x3c6   : > { %v3471_v49 = vmax.f32 %v3463_v29, %v3470_v10  ;;  %v3508_v60 = vsel %vm3113_vm4, %v7956_v24, -inf  ;;  %v3489_v46 = vmax.f32 %v3481_v28, %v3488_v16  ;;  %v3494_v42 = vsel %vm3113_vm4, %v7942_v26, -inf }
 0x3c7   : > { %v3467_v62 = vmax.f32 %v3459_v22, %v3466_v45  ;;  %v3485_v14 = vmax.f32 %v3477_v63, %v3484_v1  ;;  %v3502_v30 = vsel %vm3113_vm4, %v7950_v35, -inf  ;;  %v3514_v26 = vsel %vm3113_vm4, %v7962_v3, -inf }
 0x3c8   : > { %v3479_v21 = vmax.f32 %v3471_v49, %v3478_v5  ;;  %v3497_v24 = vmax.f32 %v3489_v46, %v3496_v57  ;;  %v3510_v1 = vsel %vm3113_vm4, %v7958_v13, -inf  ;;  %v3522_v35 = vsel %vm3113_vm4, %v7972_v33, -inf }
 0x3c9   : > { %v8023_v8 = vpop.xlane.xlu1 %3397  ;;  %v3475_v37 = vmax.f32 %v3467_v62, %v3474_v55  ;;  %v3493_v17 = vmax.f32 %v3485_v14, %v3492_v52  ;;  %v3518_v63 = vsel %vm3113_vm4, %v7966_v6, -inf  ;;  %v3528_v10 = vsel %vm3113_vm4, %v7978_v47, -inf }
 0x3ca   : > { %v8012_v25 = vpop.xlane.xlu2 %3402  ;;  %v3487_v38 = vmax.f32 %v3479_v21, %v3486_v34  ;;  %v3505_v50 = vmax.f32 %v3497_v24, %v3504_v9  ;;  %v3530_v13 = vsel %vm3113_vm4, %v7980_v7, -inf  ;;  %v3540_v59 = vsel %vm3113_vm4, %v8021_v2, -inf  ;;  %v10961_v18 = vld [vmem:[#allocation198_spill] sm:$0xff] }
 0x3cb   : > { %v3483_v36 = vmax.f32 %v3475_v37, %v3482_v48  ;;  %v3501_v51 = vmax.f32 %v3493_v17, %v3500_v12  ;;  %v3526_v29 = vsel %vm3113_vm4, %v7970_v15, -inf  ;;  %v3536_v6 = vsel %vm3113_vm4, %v7986_v56, -inf  ;;  %v10962_v12 = vld [vmem:[#allocation199_spill] sm:$0xff] }
 0x3cc   : > { %v3495_v32 = vmax.f32 %v3487_v38, %v3494_v42  ;;  %v3513_v31 = vmax.f32 %v3505_v50, %v3512_v61  ;;  %v3538_v47 = vsel %vm3113_vm4, %v10961_v18, -inf  ;;  %v3534_v49 = vsel %vm3113_vm4, %v10962_v12, -inf }
 0x3cd   : > { %v3491_v40 = vmax.f32 %v3483_v36, %v3490_v11  ;;  %v3408_v20 = vpop.xlane.xlu0 %3407  ;;  %v3509_v22 = vmax.f32 %v3501_v51, %v3508_v60  ;;  %v3544_v15 = vsel %vm3113_vm4, %v8012_v25, -inf }
 0x3ce   : > { %v3503_v3 = vmax.f32 %v3495_v32, %v3502_v30  ;;  %v3521_v0 = vmax.f32 %v3513_v31, %v3520_v23  ;;  %v3546_v28 = vsel %vm3113_vm4, %v3408_v20, -inf }
 0x3cf   : > { %v3499_v19 = vmax.f32 %v3491_v40, %v3498_v27  ;;  %v3517_v4 = vmax.f32 %v3509_v22, %v3516_v53  ;;  %v3542_v27 = vsel %vm3113_vm4, %v8023_v8, -inf  ;;  %v10963_v8 = vld [vmem:[#allocation70_spill] sm:$0xff]  ;;  %v10964_v22 = vld [vmem:[#allocation71_spill] sm:$0xff] }
 0x3d0   : > { %v3511_v33 = vmax.f32 %v3503_v3, %v3510_v1  ;;  %v3529_v14 = vmax.f32 %v3521_v0, %v3528_v10  ;;  %v10967_v10 = vld [vmem:[#allocation80_spill] sm:$0xff] }
 0x3d1   : > { %v3413_v45 = vpop.xlane.xlu1 %3412  ;;  %v3507_v55 = vmax.f32 %v3499_v19, %v3506_v43  ;;  %v3525_v54 = vmax.f32 %v3517_v4, %v3524_v44 }
 0x3d2   : > { %v8056_v58 = vpop.xlane.xlu2 %3417  ;;  %v3548_v37 = vsel %vm3113_vm4, %v3413_v45, -inf  ;;  %v3519_v7 = vmax.f32 %v3511_v33, %v3518_v63  ;;  %v3537_v17 = vmax.f32 %v3529_v14, %v3536_v6  ;;  %v10968_v33 = vld [vmem:[#allocation81_spill] sm:$0xff]  ;;  %v10972_v14 = vld [vmem:[#allocation78_spill] sm:$0xff] }
 0x3d3   : > { %v3515_v62 = vmax.f32 %v3507_v55, %v3514_v26  ;;  %v3533_v41 = vmax.f32 %v3525_v54, %v3532_v39  ;;  %v3550_v25 = vsel %vm3113_vm4, %v8056_v58, -inf  ;;  %v10965_v58 = vld [vmem:[#allocation74_spill] sm:$0xff]  ;;  %v10966_v55 = vld [vmem:[#allocation76_spill] sm:$0xff] }
 0x3d4   : > { %v3527_v36 = vmax.f32 %v3519_v7, %v3526_v29  ;;  %v3545_v40 = vmax.f32 %v3537_v17, %v3544_v15  ;;  %v10975_v15 = vld [vmem:[#allocation73_spill] sm:$0xff] }
 0x3d5   : > { %v3523_v48 = vmax.f32 %v3515_v62, %v3522_v35  ;;  %v3541_v2 = vmax.f32 %v3533_v41, %v3540_v59  ;;  %v3423_v16 = vpop.xlane.xlu0 %3422 }
 0x3d6   : > { %v3552_v60 = vsel %vm3113_vm4, %v3423_v16, -inf  ;;  %v3535_v46 = vmax.f32 %v3527_v36, %v3534_v49  ;;  %v10976_v36 = vld [vmem:[#allocation77_spill] sm:$0xff] }
 0x3d7   : > { %v3531_v5 = vmax.f32 %v3523_v48, %v3530_v13  ;;  %v3549_v57 = vmax.f32 %v3541_v2, %v3548_v37  ;;  %v3553_v42 = vmax.f32 %v3545_v40, %v3552_v60  ;;  %v10971_v37 = vld [vmem:[#allocation75_spill] sm:$0xff]  ;;  %v10973_v2 = vld [vmem:[#allocation84_spill] sm:$0xff] }
 0x3d8   : > { %v3543_v20 = vmax.f32 %v3535_v46, %v3542_v27 }
 0x3d9   : > { %v3428_v11 = vpop.xlane.xlu1 %3427  ;;  %v3539_v34 = vmax.f32 %v3531_v5, %v3538_v47 }
 0x3da   : > { %v3433_v52 = vpop.xlane.xlu2 %3432  ;;  %v3554_v21 = vsel %vm3113_vm4, %v3428_v11, -inf  ;;  %v3551_v43 = vmax.f32 %v3543_v20, %v3550_v25  ;;  %v10974_v11 = vld [vmem:[#allocation72_spill] sm:$0xff]  ;;  %v10980_v25 = vld [vmem:[#allocation85_spill] sm:$0xff] }
 0x3db   : > { %v3556_v56 = vsel %vm3113_vm4, %v3433_v52, -inf  ;;  %v3547_v51 = vmax.f32 %v3539_v34, %v3546_v28 }
 0x3dc   : > { %v3557_v45 = vmax.f32 %v3549_v57, %v3556_v56  ;;  %v3558_v38 = vmax.f32 %v3551_v43, %v3553_v42  ;;  %v10977_v57 = vld [vmem:[#allocation79_spill] sm:$0xff] }
 0x3dd   : > { %v3555_v9 = vmax.f32 %v3547_v51, %v3554_v21  ;;  %v10978_v21 = vld [vmem:[#allocation86_spill] sm:$0xff]  ;;  %v10979_v51 = vld [vmem:[#allocation88_spill] sm:$0xff] }
 0x3df   : > { %v3559_v53 = vmax.f32 %v3555_v9, %v3557_v45  ;;  %v10981_v9 = vld [vmem:[#allocation92_spill] sm:$0xff] }
 0x3e1   : > { %v8117_v24 = vmax.f32 %v3558_v38, %v3559_v53  ;;  %v10982_v38 = vld [vmem:[#allocation93_spill] sm:$0xff] }
 0x3e3   : > { %v3565_v19 = vsub.f32 %v10963_v8, %v8117_v24  ;;  %v3566_v30 = vsub.f32 %v10964_v22, %v8117_v24  ;;  %v3563_v44 = vsub.f32 %v10965_v58, %v8117_v24  ;;  %v3564_v4 = vsub.f32 %v10966_v55, %v8117_v24  ;;  %v10983_v55 = vld [vmem:[#allocation82_spill] sm:$0xff] }
 0x3e4   : > { %v3571_v13 = vsub.f32 %v10967_v10, %v8117_v24  ;;  %v3572_v0 = vsub.f32 %v10968_v33, %v8117_v24  ;;  %v3567_v7 = vsub.f32 %v10971_v37, %v8117_v24  ;;  %v3568_v5 = vsub.f32 %v10972_v14, %v8117_v24  ;;  %v10989_v14 = vld [vmem:[#allocation99_spill] sm:$0xff] }
 0x3e5   : > { %v3697_v61 = vmul.f32 1.442695, %v3565_v19  ;;  %v3699_v26 = vmul.f32 1.442695, %v3566_v30  ;;  %v3693_v39 = vmul.f32 1.442695, %v3563_v44  ;;  %v3575_v16 = vsub.f32 %v10973_v2, %v8117_v24 }
 0x3e6   : > { %v3695_v3 = vmul.f32 1.442695, %v3564_v4  ;;  %v3709_v48 = vmul.f32 1.442695, %v3571_v13  ;;  %v3711_v41 = vmul.f32 1.442695, %v3572_v0  ;;  %v3561_v12 = vsub.f32 %v10974_v11, %v8117_v24 }
 0x3e7   : > { %5847 = vpow2.f32 %v3697_v61  ;;  %v3701_v49 = vmul.f32 1.442695, %v3567_v7  ;;  %v3562_v28 = vsub.f32 %v10975_v15, %v8117_v24  ;;  %v3703_v56 = vmul.f32 1.442695, %v3568_v5  ;;  %v10987_v13 = vld [vmem:[#allocation89_spill] sm:$0xff] }
 0x3e8   : > { %5849 = vpow2.f32 %v3699_v26  ;;  %v3569_v17 = vsub.f32 %v10976_v36, %v8117_v24  ;;  %v3717_v34 = vmul.f32 1.442695, %v3575_v16  ;;  %v3570_v27 = vsub.f32 %v10977_v57, %v8117_v24 }
 0x3e9   : > { %5851 = vpow2.f32 %v3693_v39  ;;  %v3689_v60 = vmul.f32 1.442695, %v3561_v12  ;;  %v3577_v46 = vsub.f32 %v10978_v21, %v8117_v24  ;;  %v3691_v40 = vmul.f32 1.442695, %v3562_v28 }
 0x3ea   : > { %5853 = vpow2.f32 %v3695_v3  ;;  %v3578_v45 = vsub.f32 %v10979_v51, %v8117_v24  ;;  %v3576_v20 = vsub.f32 %v10980_v25, %v8117_v24  ;;  %v3705_v42 = vmul.f32 1.442695, %v3569_v17  ;;  %v10986_v3 = vld [vmem:[#allocation87_spill] sm:$0xff] }
 0x3eb   : > { %5855 = vpow2.f32 %v3709_v48  ;;  %v3583_v43 = vsub.f32 %v10981_v9, %v8117_v24  ;;  %v3707_v53 = vmul.f32 1.442695, %v3570_v27  ;;  %v3584_v8 = vsub.f32 %v10982_v38, %v8117_v24 }
 0x3ec   : > { %5857 = vpow2.f32 %v3711_v41  ;;  %v3721_v19 = vmul.f32 1.442695, %v3577_v46  ;;  %v3723_v22 = vmul.f32 1.442695, %v3578_v45  ;;  %v3719_v30 = vmul.f32 1.442695, %v3576_v20 }
 0x3ed   : > { %v8125_v32 = vpop.eup %5847  ;;  %5859 = vpow2.f32 %v3701_v49  ;;  %v3733_v26 = vmul.f32 1.442695, %v3583_v43  ;;  %v3735_v44 = vmul.f32 1.442695, %v3584_v8  ;;  %v3573_v4 = vsub.f32 %v10983_v55, %v8117_v24  ;;  %v10988_v41 = vld [vmem:[#allocation98_spill] sm:$0xff]  ;;  %v10993_v46 = vld [vmem:[#allocation96_spill] sm:$0xff] }
 0x3ee   : > { %v8127_v50 = vpop.eup %5849  ;;  %v3955_v1 = vsel %vm3113_vm4, %v8125_v32, 0.0  ;;  %5861 = vpow2.f32 %v3703_v56  ;;  %v3590_v5 = vsub.f32 %v10989_v14, %v8117_v24  ;;  %v10990_v49 = vld [vmem:[#allocation90_spill] sm:$0xff]  ;;  %v10994_v20 = vld [vmem:[#allocation97_spill] sm:$0xff] }
 0x3ef   : > { %v3956_v23 = vsel %vm3113_vm4, %v8127_v50, 0.0  ;;  %v8135_v31 = vpop.eup %5851  ;;  %5863 = vpow2.f32 %v3717_v34  ;;  %v3713_v48 = vmul.f32 1.442695, %v3573_v4  ;;  %v3579_v15 = vsub.f32 %v10990_v49, %v8117_v24  ;;  %v10992_v34 = vld [vmem:[#allocation91_spill] sm:$0xff]  ;;  %v11002_v49 = vld [vmem:[#allocation100_spill] sm:$0xff] }
 0x3f0   : > { %v3957_v35 = vadd.f32 %v3956_v23, %v3955_v1  ;;  %v8137_v62 = vpop.eup %5853  ;;  %v3950_v54 = vsel %vm3113_vm4, %v8135_v31, 0.0  ;;  %5865 = vpow2.f32 %v3689_v60  ;;  %v10985_v23 = vld [vmem:[#allocation83_spill] sm:$0xff]  ;;  %v3580_v57 = vsub.f32 %v10992_v34, %v8117_v24 }
 0x3f1   : > { %v3951_v63 = vsel %vm3113_vm4, %v8137_v62, 0.0  ;;  %v8147_v52 = vpop.eup %5855  ;;  %5867 = vpow2.f32 %v3691_v40  ;;  %v3587_v40 = vsub.f32 %v10993_v46, %v8117_v24  ;;  %v3747_v45 = vmul.f32 1.442695, %v3590_v5 }
 0x3f2   : > { %3958 = vadd.xlane.f32.xlu2 %v3957_v35  ;;  %v3952_v59 = vadd.f32 %v3951_v63, %v3950_v54  ;;  %10969 = vst [vmem:[#allocation198_spill] sm:$0xff] %v8147_v52  ;;  %v8149_v29 = vpop.eup %5857  ;;  %v3970_v6 = vsel %vm3113_vm4, %v8147_v52, 0.0  ;;  %5869 = vpow2.f32 %v3705_v42  ;;  %v3574_v35 = vsub.f32 %v10985_v23, %v8117_v24 }
 0x3f3   : > { %10970 = vst [vmem:[#allocation199_spill] sm:$0xff] %v8149_v29  ;;  %v3971_v18 = vsel %vm3113_vm4, %v8149_v29, 0.0  ;;  %v8179_v61 = vpop.eup %5859  ;;  %5871 = vpow2.f32 %v3707_v53  ;;  %v3581_v54 = vsub.f32 %v10986_v3, %v8117_v24  ;;  %v3588_v42 = vsub.f32 %v10994_v20, %v8117_v24  ;;  %v10995_v53 = vld [vmem:[#allocation106_spill] sm:$0xff] }
 0x3f4   : > { %3953 = vadd.xlane.f32.xlu1 %v3952_v59  ;;  %v3972_v47 = vadd.f32 %v3971_v18, %v3970_v6  ;;  %v8181_v58 = vpop.eup %5861  ;;  %5873 = vpow2.f32 %v3721_v19  ;;  %v3582_v59 = vsub.f32 %v10987_v13, %v8117_v24  ;;  %v3589_v6 = vsub.f32 %v10988_v41, %v8117_v24  ;;  %v11006_v20 = vld [vmem:[#allocation110_spill] sm:$0xff] }
 0x3f5   : > { %v8185_v1 = vpop.eup %5863  ;;  %5875 = vpow2.f32 %v3723_v22  ;;  %v3715_v7 = vmul.f32 1.442695, %v3574_v35  ;;  %v3729_v11 = vmul.f32 1.442695, %v3581_v54  ;;  %v3960_v9 = vsel %vm3113_vm4, %v8179_v61, 0.0 }
 0x3f6   : > { %10984 = vst [vmem:[#allocation70_spill] sm:$0xff] %v8185_v1  ;;  %v8189_v39 = vpop.eup %5865  ;;  %5877 = vpow2.f32 %v3719_v30  ;;  %v3731_v36 = vmul.f32 1.442695, %v3582_v59  ;;  %v3745_v60 = vmul.f32 1.442695, %v3589_v6  ;;  %v3961_v43 = vsel %vm3113_vm4, %v8181_v58, 0.0 }
 0x3f7   : > { %v8193_v63 = vpop.eup %5867  ;;  %5879 = vpow2.f32 %v3733_v26  ;;  %v3945_v10 = vsel %vm3113_vm4, %v8189_v39, 0.0  ;;  %v3595_v38 = vsub.f32 %v10995_v53, %v8117_v24  ;;  %v3725_v8 = vmul.f32 1.442695, %v3579_v15  ;;  %v10996_v26 = vld [vmem:[#allocation107_spill] sm:$0xff] }
 0x3f8   : > { %v8199_v33 = vpop.eup %5869  ;;  %5881 = vpow2.f32 %v3735_v44  ;;  %v3946_v0 = vsel %vm3113_vm4, %v8193_v63, 0.0  ;;  %v3727_v19 = vmul.f32 1.442695, %v3580_v57  ;;  %v3980_v22 = vsel %vm3113_vm4, %v8185_v1, 0.0 }
 0x3f9   : > { %v8205_v18 = vpop.eup %5871  ;;  %v3965_v37 = vsel %vm3113_vm4, %v8199_v33, 0.0  ;;  %5883 = vpow2.f32 %v3713_v48  ;;  %v3596_v44 = vsub.f32 %v10996_v26, %v8117_v24  ;;  %v3741_v55 = vmul.f32 1.442695, %v3587_v40  ;;  %v10999_v48 = vld [vmem:[#allocation94_spill] sm:$0xff] }
 0x3fa   : > { %3973 = vadd.xlane.f32.xlu2 %v3972_v47  ;;  %v3947_v47 = vadd.f32 %v3946_v0, %v3945_v10  ;;  %v8211_v2 = vpop.eup %5873  ;;  %v3966_v16 = vsel %vm3113_vm4, %v8205_v18, 0.0  ;;  %5885 = vpow2.f32 %v3715_v7  ;;  %v3962_v4 = vadd.f32 %v3961_v43, %v3960_v9  ;;  %v11000_v7 = vld [vmem:[#allocation95_spill] sm:$0xff] }
 0x3fb   : > { %v8215_v12 = vpop.eup %5875  ;;  %v3967_v28 = vadd.f32 %v3966_v16, %v3965_v37  ;;  %v3985_v56 = vsel %vm3113_vm4, %v8211_v2, 0.0  ;;  %5887 = vpow2.f32 %v3729_v11  ;;  %v3743_v35 = vmul.f32 1.442695, %v3588_v42 }
 0x3fc   : > { %3948 = vadd.xlane.f32.xlu0 %v3947_v47  ;;  %v8221_v17 = vpop.eup %5877  ;;  %v3986_v27 = vsel %vm3113_vm4, %v8215_v12, 0.0  ;;  %5889 = vpow2.f32 %v3731_v36  ;;  %v3757_v13 = vmul.f32 1.442695, %v3595_v38  ;;  %v3585_v41 = vsub.f32 %v10999_v48, %v8117_v24 }
 0x3fd   : > { %10991 = vst [vmem:[#allocation71_spill] sm:$0xff] %v8221_v17  ;;  %v8227_v21 = vpop.eup %5879  ;;  %3968 = vadd.xlane.f32.xlu1 %v3967_v28  ;;  %v3987_v51 = vadd.f32 %v3986_v27, %v3985_v56  ;;  %v3981_v30 = vsel %vm3113_vm4, %v8221_v17, 0.0  ;;  %5891 = vpow2.f32 %v3745_v60  ;;  %v3759_v47 = vmul.f32 1.442695, %v3596_v44  ;;  %v11004_v56 = vld [vmem:[#allocation103_spill] sm:$0xff]  ;;  %v11005_v60 = vld [vmem:[#allocation108_spill] sm:$0xff] }
 0x3fe   : > { %v8231_v25 = vpop.eup %5881  ;;  %5893 = vpow2.f32 %v3747_v45  ;;  %v4000_v3 = vsel %vm3113_vm4, %v8227_v21, 0.0  ;;  %v3982_v59 = vadd.f32 %v3981_v30, %v3980_v22  ;;  %v3586_v14 = vsub.f32 %v11000_v7, %v8117_v24  ;;  %v11233_v17 = vld [vmem:[#allocation36_spill] sm:$0xff] }
 0x3ff   : > { %v8247_v23 = vpop.eup %5883  ;;  %v4001_v54 = vsel %vm3113_vm4, %v8231_v25, 0.0  ;;  %5895 = vpow2.f32 %v3725_v8  ;;  %v3593_v15 = vsub.f32 %v11002_v49, %v8117_v24  ;;  %v3594_v36 = vsub.f32 %v11004_v56, %v8117_v24 }
 0x400   : > { %10997 = vst [vmem:[#allocation74_spill] sm:$0xff] %v8247_v23  ;;  %v8253_v10 = vpop.eup %5885  ;;  %5897 = vpow2.f32 %v3727_v19  ;;  %v4002_v37 = vadd.f32 %v4001_v54, %v4000_v3  ;;  %v3975_v16 = vsel %vm3113_vm4, %v8247_v23, 0.0  ;;  %v3737_v27 = vmul.f32 1.442695, %v3585_v41  ;;  %v11007_v19 = vld [vmem:[#allocation101_spill] sm:$0xff]  ;;  %v11012_v41 = vld [vmem:[#allocation111_spill] sm:$0xff] }
 0x401   : > { %10998 = vst [vmem:[#allocation76_spill] sm:$0xff] %v8253_v10  ;;  %v8255_v0 = vpop.eup %5887  ;;  %5899 = vpow2.f32 %v3741_v55  ;;  %v3976_v11 = vsel %vm3113_vm4, %v8253_v10, 0.0  ;;  %v3601_v46 = vsub.f32 %v11005_v60, %v8117_v24  ;;  %v3739_v45 = vmul.f32 1.442695, %v3586_v14  ;;  %v11009_v55 = vld [vmem:[#allocation102_spill] sm:$0xff]  ;;  %v11011_v54 = vld [vmem:[#allocation109_spill] sm:$0xff] }
 0x402   : > { %3988 = vadd.xlane.f32.xlu2 %v3987_v51  ;;  %v8259_v6 = vpop.eup %5889  ;;  %5901 = vpow2.f32 %v3743_v35  ;;  %v3995_v34 = vsel %vm3113_vm4, %v8255_v0, 0.0  ;;  %v3977_v51 = vadd.f32 %v3976_v11, %v3975_v16  ;;  %v3602_v42 = vsub.f32 %v11006_v20, %v8117_v24  ;;  %v11014_v16 = vld [vmem:[#allocation118_spill] sm:$0xff] }
 0x403   : > { %v8263_v5 = vpop.eup %5891  ;;  %5903 = vpow2.f32 %v3757_v13  ;;  %v3996_v57 = vsel %vm3113_vm4, %v8259_v6, 0.0  ;;  %v3753_v38 = vmul.f32 1.442695, %v3593_v15  ;;  %v3591_v22 = vsub.f32 %v11007_v19, %v8117_v24  ;;  %v11019_v19 = vld [vmem:[#allocation104_spill] sm:$0xff] }
 0x404   : > { %3963 = vadd.xlane.f32.xlu0 %v3962_v4  ;;  %11001 = vst [vmem:[#allocation80_spill] sm:$0xff] %v8263_v5  ;;  %v8271_v28 = vpop.eup %5893  ;;  %5905 = vpow2.f32 %v3759_v47  ;;  %v4015_v43 = vsel %vm3113_vm4, %v8263_v5, 0.0  ;;  %v3997_v30 = vadd.f32 %v3996_v57, %v3995_v34  ;;  %v3755_v26 = vmul.f32 1.442695, %v3594_v36  ;;  %v11015_v34 = vld [vmem:[#allocation119_spill] sm:$0xff] }
 0x405   : > { %3983 = vadd.xlane.f32.xlu1 %v3982_v59  ;;  %11003 = vst [vmem:[#allocation81_spill] sm:$0xff] %v8271_v28  ;;  %v8281_v40 = vpop.eup %5895  ;;  %v4016_v53 = vsel %vm3113_vm4, %v8271_v28, 0.0  ;;  %v3592_v4 = vsub.f32 %v11009_v55, %v8117_v24  ;;  %5907 = vpow2.f32 %v3737_v27  ;;  %v3769_v35 = vmul.f32 1.442695, %v3601_v46 }
 0x406   : > { %v8285_v9 = vpop.eup %5897  ;;  %v3599_v13 = vsub.f32 %v11011_v54, %v8117_v24  ;;  %v4017_v59 = vadd.f32 %v4016_v53, %v4015_v43  ;;  %5909 = vpow2.f32 %v3739_v45  ;;  %v3771_v48 = vmul.f32 1.442695, %v3602_v42 }
 0x407   : > { %v8291_v8 = vpop.eup %5899  ;;  %v3600_v47 = vsub.f32 %v11012_v41, %v8117_v24  ;;  %v3991_v7 = vsel %vm3113_vm4, %v8285_v9, 0.0  ;;  %5911 = vpow2.f32 %v3753_v38  ;;  %v3607_v11 = vsub.f32 %v11014_v16, %v8117_v24 }
 0x408   : > { %v8295_v44 = vpop.eup %5901  ;;  %v3749_v49 = vmul.f32 1.442695, %v3591_v22  ;;  %5913 = vpow2.f32 %v3755_v26  ;;  %v3751_v15 = vmul.f32 1.442695, %v3592_v4  ;;  %v4010_v56 = vsel %vm3113_vm4, %v8291_v8, 0.0  ;;  %v11021_v4 = vld [vmem:[#allocation105_spill] sm:$0xff] }
 0x409   : > { %11008 = vst [vmem:[#allocation75_spill] sm:$0xff] %v8295_v44  ;;  %v8299_v3 = vpop.eup %5903  ;;  %v4011_v36 = vsel %vm3113_vm4, %v8295_v44, 0.0  ;;  %5915 = vpow2.f32 %v3769_v35  ;;  %v3608_v57 = vsub.f32 %v11015_v34, %v8117_v24  ;;  %v3765_v27 = vmul.f32 1.442695, %v3599_v13 }
 0x40a   : > { %4003 = vadd.xlane.f32.xlu2 %v4002_v37  ;;  %11010 = vst [vmem:[#allocation78_spill] sm:$0xff] %v8299_v3  ;;  %v3990_v37 = vsel %vm3113_vm4, %v8281_v40, 0.0  ;;  %v8309_v14 = vpop.eup %5905  ;;  %5917 = vpow2.f32 %v3771_v48  ;;  %v4030_v45 = vsel %vm3113_vm4, %v8299_v3, 0.0  ;;  %v3781_v43 = vmul.f32 1.442695, %v3607_v11  ;;  %v11023_v48 = vld [vmem:[#allocation112_spill] sm:$0xff] }
 0x40b   : > { %11013 = vst [vmem:[#allocation84_spill] sm:$0xff] %v8309_v14  ;;  %v3992_v60 = vadd.f32 %v3991_v7, %v3990_v37  ;;  %v8319_v46 = vpop.eup %5907  ;;  %v4031_v20 = vsel %vm3113_vm4, %v8309_v14, 0.0  ;;  %5919 = vpow2.f32 %v3749_v49  ;;  %v4012_v53 = vadd.f32 %v4011_v36, %v4010_v56  ;;  %v11025_v37 = vld [vmem:[#allocation114_spill] sm:$0xff] }
 0x40c   : > { %3978 = vadd.xlane.f32.xlu0 %v3977_v51  ;;  %11016 = vst [vmem:[#allocation72_spill] sm:$0xff] %v8319_v46  ;;  %v3767_v51 = vmul.f32 1.442695, %v3600_v47  ;;  %v8325_v42 = vpop.eup %5909  ;;  %5921 = vpow2.f32 %v3751_v15  ;;  %v3597_v22 = vsub.f32 %v11019_v19, %v8117_v24  ;;  %v3783_v26 = vmul.f32 1.442695, %v3608_v57  ;;  %v11026_v15 = vld [vmem:[#allocation120_spill] sm:$0xff] }
 0x40d   : > { %3998 = vadd.xlane.f32.xlu1 %v3997_v30  ;;  %11017 = vst [vmem:[#allocation73_spill] sm:$0xff] %v8325_v42  ;;  %v8327_v38 = vpop.eup %5911  ;;  %5923 = vpow2.f32 %v3765_v27  ;;  %v4032_v55 = vadd.f32 %v4031_v20, %v4030_v45  ;;  %v3598_v35 = vsub.f32 %v11021_v4, %v8117_v24  ;;  %v4005_v13 = vsel %vm3113_vm4, %v8319_v46, 0.0  ;;  %v11028_v27 = vld [vmem:[#allocation121_spill] sm:$0xff] }
 0x40e   : > { %11018 = vst [vmem:[#allocation77_spill] sm:$0xff] %v8327_v38  ;;  %v8331_v30 = vpop.eup %5913  ;;  %5925 = vpow2.f32 %v3767_v51  ;;  %v3605_v41 = vsub.f32 %v11023_v48, %v8117_v24  ;;  %v3606_v7 = vsub.f32 %v11025_v37, %v8117_v24  ;;  %v4025_v16 = vsel %vm3113_vm4, %v8327_v38, 0.0  ;;  %v11031_v19 = vld [vmem:[#allocation113_spill] sm:$0xff]  ;;  %v11035_v37 = vld [vmem:[#allocation122_spill] sm:$0xff] }
 0x40f   : > { %11020 = vst [vmem:[#allocation79_spill] sm:$0xff] %v8331_v30  ;;  %v8335_v54 = vpop.eup %5915  ;;  %5927 = vpow2.f32 %v3781_v43  ;;  %v4026_v11 = vsel %vm3113_vm4, %v8331_v30, 0.0  ;;  %v3761_v49 = vmul.f32 1.442695, %v3597_v22  ;;  %v3613_v56 = vsub.f32 %v11026_v15, %v8117_v24 }
 0x410   : > { %11022 = vst [vmem:[#allocation86_spill] sm:$0xff] %v8335_v54  ;;  %v8343_v47 = vpop.eup %5917  ;;  %5929 = vpow2.f32 %v3783_v26  ;;  %v3763_v57 = vmul.f32 1.442695, %v3598_v35  ;;  %v4045_v45 = vsel %vm3113_vm4, %v8335_v54, 0.0  ;;  %v3777_v43 = vmul.f32 1.442695, %v3605_v41 }
 0x411   : > { %11024 = vst [vmem:[#allocation88_spill] sm:$0xff] %v8343_v47  ;;  %v8353_v36 = vpop.eup %5919  ;;  %v4046_v20 = vsel %vm3113_vm4, %v8343_v47, 0.0  ;;  %v3603_v22 = vsub.f32 %v11031_v19, %v8117_v24  ;;  %v4027_v26 = vadd.f32 %v4026_v11, %v4025_v16  ;;  %v11033_v35 = vld [vmem:[#allocation115_spill] sm:$0xff]  ;;  %5931 = vpow2.f32 %v3761_v49 }
 0x412   : > { %4018 = vadd.xlane.f32.xlu2 %v4017_v59  ;;  %v4006_v59 = vsel %vm3113_vm4, %v8325_v42, 0.0  ;;  %11027 = vst [vmem:[#allocation85_spill] sm:$0xff] %v8353_v36  ;;  %v8357_v51 = vpop.eup %5921  ;;  %v3611_v41 = vsub.f32 %v11035_v37, %v8117_v24  ;;  %v4047_v15 = vadd.f32 %v4046_v20, %v4045_v45  ;;  %5933 = vpow2.f32 %v3763_v57  ;;  %v11039_v20 = vld [vmem:[#allocation131_spill] sm:$0xff] }
 0x413   : > { %v4007_v34 = vadd.f32 %v4006_v59, %v4005_v13  ;;  %11029 = vst [vmem:[#allocation92_spill] sm:$0xff] %v8357_v51  ;;  %v3604_v13 = vsub.f32 %v11033_v35, %v8117_v24  ;;  %v3793_v59 = vmul.f32 1.442695, %v3613_v56  ;;  %v4021_v11 = vsel %vm3113_vm4, %v8357_v51, 0.0  ;;  %v11038_v56 = vld [vmem:[#allocation130_spill] sm:$0xff] }
 0x414   : > { %3993 = vadd.xlane.f32.xlu0 %v3992_v60  ;;  %v3614_v60 = vsub.f32 %v11028_v27, %v8117_v24  ;;  %5935 = vpow2.f32 %v3777_v43  ;;  %v3619_v19 = vsub.f32 %v11038_v56, %v8117_v24  ;;  %v3773_v35 = vmul.f32 1.442695, %v3603_v22 }
 0x415   : > { %4013 = vadd.xlane.f32.xlu1 %v4012_v53  ;;  %v8363_v53 = vpop.eup %5923  ;;  %v3775_v57 = vmul.f32 1.442695, %v3604_v13  ;;  %v3789_v43 = vmul.f32 1.442695, %v3611_v41  ;;  %v11043_v41 = vld [vmem:[#allocation116_spill] sm:$0xff] }
 0x416   : > { %11030 = vst [vmem:[#allocation93_spill] sm:$0xff] %v8363_v53  ;;  %v8367_v4 = vpop.eup %5925  ;;  %v3795_v27 = vmul.f32 1.442695, %v3614_v60  ;;  %v4040_v60 = vsel %vm3113_vm4, %v8363_v53, 0.0 }
 0x417   : > { %11032 = vst [vmem:[#allocation82_spill] sm:$0xff] %v8367_v4  ;;  %v8371_v48 = vpop.eup %5927  ;;  %v4041_v45 = vsel %vm3113_vm4, %v8367_v4, 0.0 }
 0x418   : > { %11034 = vst [vmem:[#allocation83_spill] sm:$0xff] %v8371_v48  ;;  %v8381_v49 = vpop.eup %5929  ;;  %v4060_v22 = vsel %vm3113_vm4, %v8371_v48, 0.0 }
 0x419   : > { %11037 = vst [vmem:[#allocation87_spill] sm:$0xff] %v8381_v49 }
 0x41a   : > { %4033 = vadd.xlane.f32.xlu2 %v4032_v55  ;;  %v3779_v55 = vmul.f32 1.442695, %v3606_v7  ;;  %v4020_v7 = vsel %vm3113_vm4, %v8353_v36, 0.0 }
 0x41b   : > { %v4022_v37 = vadd.f32 %v4021_v11, %v4020_v7 }
 0x41c   : > { %4008 = vadd.xlane.f32.xlu0 %v4007_v34  ;;  %v11036_v34 = vld [vmem:[#allocation123_spill] sm:$0xff]  ;;  %5937 = vpow2.f32 %v3779_v55  ;;  %v4061_v55 = vsel %vm3113_vm4, %v8381_v49, 0.0 }
 0x41d   : > { %4028 = vadd.xlane.f32.xlu1 %v4027_v26  ;;  %v3612_v16 = vsub.f32 %v11036_v34, %v8117_v24  ;;  %5939 = vpow2.f32 %v3793_v59  ;;  %v3620_v26 = vsub.f32 %v11039_v20, %v8117_v24  ;;  %v8391_v34 = vpop.eup %5931  ;;  %v4042_v59 = vadd.f32 %v4041_v45, %v4040_v60  ;;  %v11045_v20 = vld [vmem:[#allocation117_spill] sm:$0xff] }
 0x41e   : > { %5941 = vpow2.f32 %v3795_v27  ;;  %11040 = vst [vmem:[#allocation89_spill] sm:$0xff] %v8391_v34  ;;  %v8397_v13 = vpop.eup %5933  ;;  %v3609_v27 = vsub.f32 %v11043_v41, %v8117_v24  ;;  %v4062_v11 = vadd.f32 %v4061_v55, %v4060_v22  ;;  %v3610_v49 = vsub.f32 %v11045_v20, %v8117_v24  ;;  %v11050_v55 = vld [vmem:[#allocation132_spill] sm:$0xff] }
 0x41f   : > { %v3791_v56 = vmul.f32 1.442695, %v3612_v16  ;;  %11041 = vst [vmem:[#allocation98_spill] sm:$0xff] %v8397_v13  ;;  %5943 = vpow2.f32 %v3773_v35  ;;  %v8399_v47 = vpop.eup %5935  ;;  %v3807_v16 = vmul.f32 1.442695, %v3620_v26  ;;  %v4036_v35 = vsel %vm3113_vm4, %v8397_v13, 0.0 }
 0x420   : > { %11042 = vst [vmem:[#allocation99_spill] sm:$0xff] %v8399_v47  ;;  %5945 = vpow2.f32 %v3775_v57  ;;  %v11047_v57 = vld [vmem:[#allocation125_spill] sm:$0xff]  ;;  %v11049_v26 = vld [vmem:[#allocation126_spill] sm:$0xff]  ;;  %v3785_v22 = vmul.f32 1.442695, %v3609_v27 }
 0x421   : > { %5947 = vpow2.f32 %v3789_v43  ;;  %v3617_v60 = vsub.f32 %v11047_v57, %v8117_v24  ;;  %v3618_v43 = vsub.f32 %v11049_v26, %v8117_v24  ;;  %v3787_v57 = vmul.f32 1.442695, %v3610_v49 }
 0x422   : > { %4048 = vadd.xlane.f32.xlu2 %v4047_v15  ;;  %v3805_v15 = vmul.f32 1.442695, %v3619_v19  ;;  %v8403_v7 = vpop.eup %5937  ;;  %5949 = vpow2.f32 %v3791_v56  ;;  %v4035_v19 = vsel %vm3113_vm4, %v8391_v34, 0.0 }
 0x423   : > { %11044 = vst [vmem:[#allocation90_spill] sm:$0xff] %v8403_v7  ;;  %v8407_v48 = vpop.eup %5939  ;;  %v4056_v56 = vsel %vm3113_vm4, %v8403_v7, 0.0  ;;  %v4037_v20 = vadd.f32 %v4036_v35, %v4035_v19  ;;  %v3801_v27 = vmul.f32 1.442695, %v3617_v60  ;;  %v3803_v49 = vmul.f32 1.442695, %v3618_v43 }
 0x424   : > { %4023 = vadd.xlane.f32.xlu0 %v4022_v37  ;;  %11046 = vst [vmem:[#allocation91_spill] sm:$0xff] %v8407_v48  ;;  %v8415_v45 = vpop.eup %5941  ;;  %5951 = vpow2.f32 %v3805_v15  ;;  %v4055_v37 = vsel %vm3113_vm4, %v8399_v47, 0.0  ;;  %v11052_v15 = vld [vmem:[#allocation133_spill] sm:$0xff]  ;;  %v4075_v26 = vsel %vm3113_vm4, %v8407_v48, 0.0  ;;  %v11057_v35 = vld [vmem:[#allocation127_spill] sm:$0xff] }
 0x425   : > { %4043 = vadd.xlane.f32.xlu1 %v4042_v59  ;;  %11048 = vst [vmem:[#allocation96_spill] sm:$0xff] %v8415_v45  ;;  %v3625_v59 = vsub.f32 %v11050_v55, %v8117_v24  ;;  %v8425_v41 = vpop.eup %5943  ;;  %5953 = vpow2.f32 %v3807_v16  ;;  %v4076_v7 = vsel %vm3113_vm4, %v8415_v45, 0.0  ;;  %v11055_v55 = vld [vmem:[#allocation124_spill] sm:$0xff]  ;;  %v4057_v16 = vadd.f32 %v4056_v56, %v4055_v37  ;;  %v11059_v45 = vld [vmem:[#allocation134_spill] sm:$0xff] }
 0x426   : > { %11051 = vst [vmem:[#allocation97_spill] sm:$0xff] %v8425_v41  ;;  %v8429_v54 = vpop.eup %5945  ;;  %v3615_v4 = vsub.f32 %v11055_v55, %v8117_v24  ;;  %5955 = vpow2.f32 %v3785_v22  ;;  %v3623_v60 = vsub.f32 %v11059_v45, %v8117_v24  ;;  %v4077_v13 = vadd.f32 %v4076_v7, %v4075_v26  ;;  %v11063_v26 = vld [vmem:[#allocation143_spill] sm:$0xff] }
 0x427   : > { %11053 = vst [vmem:[#allocation106_spill] sm:$0xff] %v8429_v54  ;;  %v8435_v47 = vpop.eup %5947  ;;  %v3817_v53 = vmul.f32 1.442695, %v3625_v59  ;;  %5957 = vpow2.f32 %v3787_v57  ;;  %v4050_v43 = vsel %vm3113_vm4, %v8425_v41, 0.0  ;;  %v4051_v56 = vsel %vm3113_vm4, %v8429_v54, 0.0  ;;  %v11062_v59 = vld [vmem:[#allocation142_spill] sm:$0xff] }
 0x428   : > { %11054 = vst [vmem:[#allocation107_spill] sm:$0xff] %v8435_v47  ;;  %v8439_v19 = vpop.eup %5949  ;;  %5959 = vpow2.f32 %v3801_v27  ;;  %v3631_v55 = vsub.f32 %v11062_v59, %v8117_v24  ;;  %v3797_v45 = vmul.f32 1.442695, %v3615_v4  ;;  %v4070_v57 = vsel %vm3113_vm4, %v8435_v47, 0.0 }
 0x429   : > { %11056 = vst [vmem:[#allocation94_spill] sm:$0xff] %v8439_v19  ;;  %5961 = vpow2.f32 %v3803_v49  ;;  %v3813_v27 = vmul.f32 1.442695, %v3623_v60 }
 0x42a   : > { %4063 = vadd.xlane.f32.xlu2 %v4062_v11  ;;  %v3626_v11 = vsub.f32 %v11052_v15, %v8117_v24  ;;  %v3616_v15 = vsub.f32 %v11057_v35, %v8117_v24  ;;  %v8443_v48 = vpop.eup %5951  ;;  %5963 = vpow2.f32 %v3817_v53  ;;  %v4052_v35 = vadd.f32 %v4051_v56, %v4050_v43 }
 0x42b   : > { %11058 = vst [vmem:[#allocation95_spill] sm:$0xff] %v8443_v48  ;;  %v8453_v22 = vpop.eup %5953  ;;  %v4090_v4 = vsel %vm3113_vm4, %v8443_v48, 0.0 }
 0x42c   : > { %4038 = vadd.xlane.f32.xlu0 %v4037_v20  ;;  %v3819_v34 = vmul.f32 1.442695, %v3626_v11  ;;  %v11060_v20 = vld [vmem:[#allocation135_spill] sm:$0xff]  ;;  %11061 = vst [vmem:[#allocation100_spill] sm:$0xff] %v8453_v22  ;;  %v3799_v7 = vmul.f32 1.442695, %v3616_v15 }
 0x42d   : > { %4058 = vadd.xlane.f32.xlu1 %v4057_v16  ;;  %v3624_v37 = vsub.f32 %v11060_v20, %v8117_v24  ;;  %v4071_v11 = vsel %vm3113_vm4, %v8439_v19, 0.0  ;;  %v3632_v16 = vsub.f32 %v11063_v26, %v8117_v24  ;;  %v8463_v20 = vpop.eup %5955  ;;  %v3829_v15 = vmul.f32 1.442695, %v3631_v55  ;;  %v11069_v26 = vld [vmem:[#allocation129_spill] sm:$0xff] }
 0x42e   : > { %5965 = vpow2.f32 %v3819_v34  ;;  %11064 = vst [vmem:[#allocation103_spill] sm:$0xff] %v8463_v20  ;;  %v8469_v49 = vpop.eup %5957  ;;  %v4072_v53 = vadd.f32 %v4071_v11, %v4070_v57  ;;  %v11067_v34 = vld [vmem:[#allocation128_spill] sm:$0xff]  ;;  %v4065_v55 = vsel %vm3113_vm4, %v8463_v20, 0.0 }
 0x42f   : > { %v3815_v59 = vmul.f32 1.442695, %v3624_v37  ;;  %11065 = vst [vmem:[#allocation108_spill] sm:$0xff] %v8469_v49  ;;  %5967 = vpow2.f32 %v3797_v45  ;;  %v8471_v54 = vpop.eup %5959  ;;  %v3621_v60 = vsub.f32 %v11067_v34, %v8117_v24  ;;  %v3831_v37 = vmul.f32 1.442695, %v3632_v16  ;;  %v11073_v16 = vld [vmem:[#allocation137_spill] sm:$0xff] }
 0x430   : > { %11066 = vst [vmem:[#allocation110_spill] sm:$0xff] %v8471_v54  ;;  %5969 = vpow2.f32 %v3799_v7  ;;  %v8475_v43 = vpop.eup %5961  ;;  %v4066_v45 = vsel %vm3113_vm4, %v8469_v49, 0.0  ;;  %v11071_v7 = vld [vmem:[#allocation136_spill] sm:$0xff] }
 0x431   : > { %11068 = vst [vmem:[#allocation101_spill] sm:$0xff] %v8475_v43  ;;  %5971 = vpow2.f32 %v3813_v27  ;;  %v8479_v48 = vpop.eup %5963  ;;  %v3629_v57 = vsub.f32 %v11071_v7, %v8117_v24  ;;  %v3630_v27 = vsub.f32 %v11073_v16, %v8117_v24 }
 0x432   : > { %4078 = vadd.xlane.f32.xlu2 %v4077_v13  ;;  %v4091_v13 = vsel %vm3113_vm4, %v8453_v22, 0.0  ;;  %v3622_v22 = vsub.f32 %v11069_v26, %v8117_v24  ;;  %11070 = vst [vmem:[#allocation102_spill] sm:$0xff] %v8479_v48  ;;  %5973 = vpow2.f32 %v3815_v59  ;;  %v4086_v59 = vsel %vm3113_vm4, %v8475_v43, 0.0 }
 0x433   : > { %v4092_v56 = vadd.f32 %v4091_v13, %v4090_v4  ;;  %5975 = vpow2.f32 %v3829_v15  ;;  %v3809_v4 = vmul.f32 1.442695, %v3621_v60  ;;  %v11074_v13 = vld [vmem:[#allocation144_spill] sm:$0xff]  ;;  %v4067_v26 = vadd.f32 %v4066_v45, %v4065_v55  ;;  %v11076_v15 = vld [vmem:[#allocation145_spill] sm:$0xff]  ;;  %v11081_v45 = vld [vmem:[#allocation139_spill] sm:$0xff] }
 0x434   : > { %4053 = vadd.xlane.f32.xlu0 %v4052_v35  ;;  %v8487_v11 = vpop.eup %5965  ;;  %v4085_v35 = vsel %vm3113_vm4, %v8471_v54, 0.0  ;;  %5977 = vpow2.f32 %v3831_v37  ;;  %v3811_v7 = vmul.f32 1.442695, %v3622_v22  ;;  %v4105_v16 = vsel %vm3113_vm4, %v8479_v48, 0.0 }
 0x435   : > { %4073 = vadd.xlane.f32.xlu1 %v4072_v53  ;;  %11072 = vst [vmem:[#allocation109_spill] sm:$0xff] %v8487_v11  ;;  %v3637_v53 = vsub.f32 %v11074_v13, %v8117_v24  ;;  %v8497_v34 = vpop.eup %5967  ;;  %v4106_v43 = vsel %vm3113_vm4, %v8487_v11, 0.0  ;;  %v3825_v60 = vmul.f32 1.442695, %v3629_v57  ;;  %v11079_v13 = vld [vmem:[#allocation138_spill] sm:$0xff]  ;;  %v4087_v37 = vadd.f32 %v4086_v59, %v4085_v35 }
 0x436   : > { %11075 = vst [vmem:[#allocation111_spill] sm:$0xff] %v8497_v34  ;;  %v8501_v41 = vpop.eup %5969  ;;  %v3627_v49 = vsub.f32 %v11079_v13, %v8117_v24  ;;  %v3827_v22 = vmul.f32 1.442695, %v3630_v27  ;;  %5979 = vpow2.f32 %v3809_v4  ;;  %v11083_v11 = vld [vmem:[#allocation146_spill] sm:$0xff]  ;;  %v4107_v19 = vadd.f32 %v4106_v43, %v4105_v16  ;;  %v11087_v16 = vld [vmem:[#allocation155_spill] sm:$0xff] }
 0x437   : > { %11077 = vst [vmem:[#allocation118_spill] sm:$0xff] %v8501_v41  ;;  %v8507_v54 = vpop.eup %5971  ;;  %v3841_v20 = vmul.f32 1.442695, %v3637_v53  ;;  %v3635_v57 = vsub.f32 %v11083_v11, %v8117_v24  ;;  %5981 = vpow2.f32 %v3811_v7  ;;  %v4080_v27 = vsel %vm3113_vm4, %v8497_v34, 0.0  ;;  %v11086_v53 = vld [vmem:[#allocation154_spill] sm:$0xff] }
 0x438   : > { %11078 = vst [vmem:[#allocation119_spill] sm:$0xff] %v8507_v54  ;;  %v8511_v55 = vpop.eup %5973  ;;  %v4081_v59 = vsel %vm3113_vm4, %v8501_v41, 0.0  ;;  %5983 = vpow2.f32 %v3825_v60  ;;  %v3643_v13 = vsub.f32 %v11086_v53, %v8117_v24  ;;  %v3821_v11 = vmul.f32 1.442695, %v3627_v49 }
 0x439   : > { %11080 = vst [vmem:[#allocation104_spill] sm:$0xff] %v8511_v55  ;;  %v8515_v48 = vpop.eup %5975  ;;  %5985 = vpow2.f32 %v3827_v22  ;;  %v4100_v7 = vsel %vm3113_vm4, %v8507_v54, 0.0  ;;  %v3837_v60 = vmul.f32 1.442695, %v3635_v57 }
 0x43a   : > { %4093 = vadd.xlane.f32.xlu2 %v4092_v56  ;;  %v3638_v56 = vsub.f32 %v11076_v15, %v8117_v24  ;;  %v3628_v15 = vsub.f32 %v11081_v45, %v8117_v24  ;;  %11082 = vst [vmem:[#allocation105_spill] sm:$0xff] %v8515_v48  ;;  %v8525_v4 = vpop.eup %5977  ;;  %5987 = vpow2.f32 %v3841_v20  ;;  %v4082_v45 = vadd.f32 %v4081_v59, %v4080_v27 }
 0x43b   : > { %11085 = vst [vmem:[#allocation112_spill] sm:$0xff] %v8525_v4  ;;  %v4121_v49 = vsel %vm3113_vm4, %v8525_v4, 0.0 }
 0x43c   : > { %4068 = vadd.xlane.f32.xlu0 %v4067_v26  ;;  %v3843_v47 = vmul.f32 1.442695, %v3638_v56  ;;  %v11084_v26 = vld [vmem:[#allocation147_spill] sm:$0xff]  ;;  %v3823_v43 = vmul.f32 1.442695, %v3628_v15  ;;  %v4101_v56 = vsel %vm3113_vm4, %v8511_v55, 0.0 }
 0x43d   : > { %4088 = vadd.xlane.f32.xlu1 %v4087_v37  ;;  %v3636_v35 = vsub.f32 %v11084_v26, %v8117_v24  ;;  %v3644_v37 = vsub.f32 %v11087_v16, %v8117_v24  ;;  %v8535_v26 = vpop.eup %5979  ;;  %v3853_v15 = vmul.f32 1.442695, %v3643_v13  ;;  %v4102_v20 = vadd.f32 %v4101_v56, %v4100_v7  ;;  %v11093_v16 = vld [vmem:[#allocation141_spill] sm:$0xff] }
 0x43e   : > { %5989 = vpow2.f32 %v3843_v47  ;;  %11088 = vst [vmem:[#allocation114_spill] sm:$0xff] %v8535_v26  ;;  %v8541_v22 = vpop.eup %5981  ;;  %v11091_v47 = vld [vmem:[#allocation140_spill] sm:$0xff]  ;;  %v3634_v4 = vsub.f32 %v11093_v16, %v8117_v24  ;;  %v4095_v13 = vsel %vm3113_vm4, %v8535_v26, 0.0 }
 0x43f   : > { %v3839_v53 = vmul.f32 1.442695, %v3636_v35  ;;  %11089 = vst [vmem:[#allocation120_spill] sm:$0xff] %v8541_v22  ;;  %5991 = vpow2.f32 %v3821_v11  ;;  %v8543_v55 = vpop.eup %5983  ;;  %v3633_v57 = vsub.f32 %v11091_v47, %v8117_v24  ;;  %v3855_v35 = vmul.f32 1.442695, %v3644_v37  ;;  %v11097_v37 = vld [vmem:[#allocation149_spill] sm:$0xff] }
 0x440   : > { %11090 = vst [vmem:[#allocation121_spill] sm:$0xff] %v8543_v55  ;;  %5993 = vpow2.f32 %v3823_v43  ;;  %v8547_v27 = vpop.eup %5985  ;;  %v4096_v11 = vsel %vm3113_vm4, %v8541_v22, 0.0  ;;  %v11095_v43 = vld [vmem:[#allocation148_spill] sm:$0xff] }
 0x441   : > { %11092 = vst [vmem:[#allocation113_spill] sm:$0xff] %v8547_v27  ;;  %5995 = vpow2.f32 %v3837_v60  ;;  %v3641_v7 = vsub.f32 %v11095_v43, %v8117_v24  ;;  %v3642_v60 = vsub.f32 %v11097_v37, %v8117_v24  ;;  %v4097_v16 = vadd.f32 %v4096_v11, %v4095_v13 }
 0x442   : > { %4108 = vadd.xlane.f32.xlu2 %v4107_v19  ;;  %v4120_v19 = vsel %vm3113_vm4, %v8515_v48, 0.0  ;;  %v8551_v48 = vpop.eup %5987  ;;  %5997 = vpow2.f32 %v3839_v53  ;;  %v4116_v53 = vsel %vm3113_vm4, %v8547_v27, 0.0  ;;  %v3835_v43 = vmul.f32 1.442695, %v3634_v4  ;;  %v11104_v4 = vld [vmem:[#allocation150_spill] sm:$0xff] }
 0x443   : > { %v4122_v59 = vadd.f32 %v4121_v49, %v4120_v19  ;;  %11094 = vst [vmem:[#allocation115_spill] sm:$0xff] %v8551_v48  ;;  %5999 = vpow2.f32 %v3853_v15  ;;  %v3833_v19 = vmul.f32 1.442695, %v3633_v57  ;;  %v11098_v49 = vld [vmem:[#allocation156_spill] sm:$0xff]  ;;  %v11100_v15 = vld [vmem:[#allocation157_spill] sm:$0xff]  ;;  %v4135_v37 = vsel %vm3113_vm4, %v8551_v48, 0.0 }
 0x444   : > { %4083 = vadd.xlane.f32.xlu0 %v4082_v45  ;;  %v8559_v56 = vpop.eup %5989  ;;  %v4115_v45 = vsel %vm3113_vm4, %v8543_v55, 0.0  ;;  %6001 = vpow2.f32 %v3855_v35  ;;  %v3849_v57 = vmul.f32 1.442695, %v3641_v7  ;;  %v3851_v22 = vmul.f32 1.442695, %v3642_v60  ;;  %v11106_v48 = vld [vmem:[#allocation151_spill] sm:$0xff] }
 0x445   : > { %4103 = vadd.xlane.f32.xlu1 %v4102_v20  ;;  %11096 = vst [vmem:[#allocation122_spill] sm:$0xff] %v8559_v56  ;;  %v3649_v20 = vsub.f32 %v11098_v49, %v8117_v24  ;;  %v8569_v47 = vpop.eup %5991  ;;  %v4136_v27 = vsel %vm3113_vm4, %v8559_v56, 0.0  ;;  %v4117_v49 = vadd.f32 %v4116_v53, %v4115_v45  ;;  %v3639_v13 = vsub.f32 %v11104_v4, %v8117_v24 }
 0x446   : > { %11099 = vst [vmem:[#allocation123_spill] sm:$0xff] %v8569_v47  ;;  %v8573_v54 = vpop.eup %5993  ;;  %6003 = vpow2.f32 %v3833_v19  ;;  %v3640_v26 = vsub.f32 %v11106_v48, %v8117_v24  ;;  %v4137_v56 = vadd.f32 %v4136_v27, %v4135_v37  ;;  %v4110_v60 = vsel %vm3113_vm4, %v8569_v47, 0.0  ;;  %v11110_v48 = vld [vmem:[#allocation166_spill] sm:$0xff] }
 0x447   : > { %11101 = vst [vmem:[#allocation130_spill] sm:$0xff] %v8573_v54  ;;  %v8579_v55 = vpop.eup %5995  ;;  %v3865_v11 = vmul.f32 1.442695, %v3649_v20  ;;  %6005 = vpow2.f32 %v3835_v43  ;;  %v4111_v53 = vsel %vm3113_vm4, %v8573_v54, 0.0  ;;  %v11109_v20 = vld [vmem:[#allocation159_spill] sm:$0xff]  ;;  %v3655_v27 = vsub.f32 %v11110_v48, %v8117_v24 }
 0x448   : > { %11102 = vst [vmem:[#allocation131_spill] sm:$0xff] %v8579_v55  ;;  %v8581_v35 = vpop.eup %5997  ;;  %6007 = vpow2.f32 %v3849_v57  ;;  %v3648_v4 = vsub.f32 %v11109_v20, %v8117_v24  ;;  %v3845_v43 = vmul.f32 1.442695, %v3639_v13  ;;  %v11111_v57 = vld [vmem:[#allocation167_spill] sm:$0xff]  ;;  %v4112_v54 = vadd.f32 %v4111_v53, %v4110_v60 }
 0x449   : > { %11103 = vst [vmem:[#allocation116_spill] sm:$0xff] %v8581_v35  ;;  %6009 = vpow2.f32 %v3851_v22  ;;  %v4131_v37 = vsel %vm3113_vm4, %v8581_v35, 0.0 }
 0x44a   : > { %4123 = vadd.xlane.f32.xlu2 %v4122_v59  ;;  %v3650_v59 = vsub.f32 %v11100_v15, %v8117_v24  ;;  %v8585_v15 = vpop.eup %5999  ;;  %6011 = vpow2.f32 %v3865_v11  ;;  %v3863_v48 = vmul.f32 1.442695, %v3648_v4 }
 0x44b   : > { %11105 = vst [vmem:[#allocation117_spill] sm:$0xff] %v8585_v15  ;;  %v8595_v19 = vpop.eup %6001  ;;  %v4150_v22 = vsel %vm3113_vm4, %v8585_v15, 0.0 }
 0x44c   : > { %4098 = vadd.xlane.f32.xlu0 %v4097_v16  ;;  %v3867_v7 = vmul.f32 1.442695, %v3650_v59  ;;  %v11107_v16 = vld [vmem:[#allocation158_spill] sm:$0xff]  ;;  %11108 = vst [vmem:[#allocation125_spill] sm:$0xff] %v8595_v19  ;;  %v4130_v59 = vsel %vm3113_vm4, %v8579_v55, 0.0  ;;  %v8607_v20 = vpop.eup %6003  ;;  %v11117_v55 = vld [vmem:[#allocation153_spill] sm:$0xff] }
 0x44d   : > { %4118 = vadd.xlane.f32.xlu1 %v4117_v49  ;;  %v3647_v45 = vsub.f32 %v11107_v16, %v8117_v24  ;;  %v3656_v49 = vsub.f32 %v11111_v57, %v8117_v24  ;;  %v3847_v16 = vmul.f32 1.442695, %v3640_v26  ;;  %11112 = vst [vmem:[#allocation126_spill] sm:$0xff] %v8607_v20  ;;  %v8613_v13 = vpop.eup %6005  ;;  %v4132_v11 = vadd.f32 %v4131_v37, %v4130_v59  ;;  %v11115_v26 = vld [vmem:[#allocation152_spill] sm:$0xff] }
 0x44e   : > { %6013 = vpow2.f32 %v3867_v7  ;;  %11113 = vst [vmem:[#allocation132_spill] sm:$0xff] %v8613_v13  ;;  %v8615_v35 = vpop.eup %6007  ;;  %v3877_v57 = vmul.f32 1.442695, %v3655_v27  ;;  %v3645_v7 = vsub.f32 %v11115_v26, %v8117_v24  ;;  %v4126_v4 = vsel %vm3113_vm4, %v8613_v13, 0.0  ;;  %v11119_v27 = vld [vmem:[#allocation161_spill] sm:$0xff]  ;;  %v11121_v37 = vld [vmem:[#allocation168_spill] sm:$0xff] }
 0x44f   : > { %v3861_v47 = vmul.f32 1.442695, %v3647_v45  ;;  %11114 = vst [vmem:[#allocation133_spill] sm:$0xff] %v8615_v35  ;;  %6015 = vpow2.f32 %v3845_v43  ;;  %v8619_v60 = vpop.eup %6009  ;;  %v3879_v45 = vmul.f32 1.442695, %v3656_v49  ;;  %v3653_v43 = vsub.f32 %v11119_v27, %v8117_v24 }
 0x450   : > { %11116 = vst [vmem:[#allocation124_spill] sm:$0xff] %v8619_v60  ;;  %6017 = vpow2.f32 %v3847_v16  ;;  %v8623_v15 = vpop.eup %6011  ;;  %v3661_v49 = vsub.f32 %v11121_v37, %v8117_v24 }
 0x451   : > { %11118 = vst [vmem:[#allocation127_spill] sm:$0xff] %v8623_v15  ;;  %6019 = vpow2.f32 %v3861_v47  ;;  %v4145_v47 = vsel %vm3113_vm4, %v8615_v35, 0.0 }
 0x452   : > { %4138 = vadd.xlane.f32.xlu2 %v4137_v56  ;;  %v4151_v56 = vsel %vm3113_vm4, %v8595_v19, 0.0  ;;  %v3646_v19 = vsub.f32 %v11117_v55, %v8117_v24  ;;  %6021 = vpow2.f32 %v3863_v48  ;;  %v11122_v55 = vld [vmem:[#allocation162_spill] sm:$0xff]  ;;  %v4165_v48 = vsel %vm3113_vm4, %v8623_v15, 0.0 }
 0x453   : > { %v4152_v53 = vadd.f32 %v4151_v56, %v4150_v22  ;;  %v3654_v16 = vsub.f32 %v11122_v55, %v8117_v24  ;;  %6023 = vpow2.f32 %v3877_v57  ;;  %v4146_v22 = vsel %vm3113_vm4, %v8619_v60, 0.0 }
 0x454   : > { %4113 = vadd.xlane.f32.xlu0 %v4112_v54  ;;  %v4125_v54 = vsel %vm3113_vm4, %v8607_v20, 0.0  ;;  %v8631_v59 = vpop.eup %6013  ;;  %v3857_v56 = vmul.f32 1.442695, %v3645_v7  ;;  %6025 = vpow2.f32 %v3879_v45  ;;  %v3859_v13 = vmul.f32 1.442695, %v3646_v19  ;;  %v11127_v45 = vld [vmem:[#allocation160_spill] sm:$0xff] }
 0x455   : > { %4133 = vadd.xlane.f32.xlu1 %v4132_v11  ;;  %11120 = vst [vmem:[#allocation134_spill] sm:$0xff] %v8631_v59  ;;  %v11123_v11 = vld [vmem:[#allocation169_spill] sm:$0xff]  ;;  %v4127_v27 = vadd.f32 %v4126_v4, %v4125_v54  ;;  %v8643_v37 = vpop.eup %6015  ;;  %v4166_v57 = vsel %vm3113_vm4, %v8631_v59, 0.0  ;;  %v4147_v20 = vadd.f32 %v4146_v22, %v4145_v47  ;;  %v3875_v7 = vmul.f32 1.442695, %v3654_v16  ;;  %v11131_v16 = vld [vmem:[#allocation170_spill] sm:$0xff] }
 0x456   : > { %v3662_v26 = vsub.f32 %v11123_v11, %v8117_v24  ;;  %11124 = vst [vmem:[#allocation135_spill] sm:$0xff] %v8643_v37  ;;  %v8649_v55 = vpop.eup %6017  ;;  %v3651_v54 = vsub.f32 %v11127_v45, %v8117_v24  ;;  %v3889_v19 = vmul.f32 1.442695, %v3661_v49  ;;  %6027 = vpow2.f32 %v3857_v56  ;;  %v11129_v11 = vld [vmem:[#allocation163_spill] sm:$0xff] }
 0x457   : > { %11125 = vst [vmem:[#allocation142_spill] sm:$0xff] %v8649_v55  ;;  %v8651_v60 = vpop.eup %6019  ;;  %v3652_v15 = vsub.f32 %v11129_v11, %v8117_v24  ;;  %6029 = vpow2.f32 %v3859_v13  ;;  %v3659_v47 = vsub.f32 %v11131_v16, %v8117_v24  ;;  %v4140_v22 = vsel %vm3113_vm4, %v8643_v37, 0.0  ;;  %v11134_v13 = vld [vmem:[#allocation178_spill] sm:$0xff] }
 0x458   : > { %11126 = vst [vmem:[#allocation143_spill] sm:$0xff] %v8651_v60  ;;  %v8655_v4 = vpop.eup %6021  ;;  %v3891_v35 = vmul.f32 1.442695, %v3662_v26  ;;  %v4141_v49 = vsel %vm3113_vm4, %v8649_v55, 0.0  ;;  %v4160_v45 = vsel %vm3113_vm4, %v8651_v60, 0.0 }
 0x459   : > { %11128 = vst [vmem:[#allocation128_spill] sm:$0xff] %v8655_v4  ;;  %v8659_v59 = vpop.eup %6023  ;;  %v4161_v11 = vsel %vm3113_vm4, %v8655_v4, 0.0  ;;  %v3871_v55 = vmul.f32 1.442695, %v3652_v15  ;;  %v4142_v37 = vadd.f32 %v4141_v49, %v4140_v22  ;;  %v3885_v41 = vmul.f32 1.442695, %v3659_v47 }
 0x45a   : > { %4153 = vadd.xlane.f32.xlu2 %v4152_v53  ;;  %v3873_v53 = vmul.f32 1.442695, %v3653_v43  ;;  %v4167_v43 = vadd.f32 %v4166_v57, %v4165_v48  ;;  %11130 = vst [vmem:[#allocation129_spill] sm:$0xff] %v8659_v59  ;;  %v3667_v48 = vsub.f32 %v11134_v13, %v8117_v24  ;;  %v3869_v57 = vmul.f32 1.442695, %v3651_v54 }
 0x45c   : > { %4128 = vadd.xlane.f32.xlu0 %v4127_v27  ;;  %6031 = vpow2.f32 %v3873_v53  ;;  %v8669_v27 = vpop.eup %6025  ;;  %v11135_v53 = vld [vmem:[#allocation179_spill] sm:$0xff] }
 0x45d   : > { %4148 = vadd.xlane.f32.xlu1 %v4147_v20  ;;  %11132 = vst [vmem:[#allocation136_spill] sm:$0xff] %v8669_v27  ;;  %v11133_v20 = vld [vmem:[#allocation171_spill] sm:$0xff]  ;;  %6033 = vpow2.f32 %v3875_v7  ;;  %v3668_v16 = vsub.f32 %v11135_v53, %v8117_v24  ;;  %v4180_v7 = vsel %vm3113_vm4, %v8659_v59, 0.0  ;;  %v4181_v54 = vsel %vm3113_vm4, %v8669_v27, 0.0  ;;  %v11141_v27 = vld [vmem:[#allocation165_spill] sm:$0xff] }
 0x45e   : > { %v3660_v26 = vsub.f32 %v11133_v20, %v8117_v24  ;;  %6035 = vpow2.f32 %v3889_v19  ;;  %v8681_v20 = vpop.eup %6027  ;;  %v4162_v19 = vadd.f32 %v4161_v11, %v4160_v45  ;;  %v3901_v53 = vmul.f32 1.442695, %v3667_v48 }
 0x45f   : > { %6037 = vpow2.f32 %v3891_v35  ;;  %11136 = vst [vmem:[#allocation137_spill] sm:$0xff] %v8681_v20  ;;  %v11139_v35 = vld [vmem:[#allocation164_spill] sm:$0xff]  ;;  %v3903_v47 = vmul.f32 1.442695, %v3668_v16  ;;  %v4182_v49 = vadd.f32 %v4181_v54, %v4180_v7  ;;  %v3658_v59 = vsub.f32 %v11141_v27, %v8117_v24 }
 0x460   : > { %v3887_v13 = vmul.f32 1.442695, %v3660_v26  ;;  %6039 = vpow2.f32 %v3869_v57  ;;  %v3657_v15 = vsub.f32 %v11139_v35, %v8117_v24  ;;  %v4155_v48 = vsel %vm3113_vm4, %v8681_v20, 0.0  ;;  %v11146_v27 = vld [vmem:[#allocation180_spill] sm:$0xff] }
 0x461   : > { %6041 = vpow2.f32 %v3871_v55  ;;  %v11145_v55 = vld [vmem:[#allocation173_spill] sm:$0xff]  ;;  %v3673_v7 = vsub.f32 %v11146_v27, %v8117_v24  ;;  %v3883_v20 = vmul.f32 1.442695, %v3658_v59  ;;  %v11152_v59 = vld [vmem:[#allocation175_spill] sm:$0xff] }
 0x462   : > { %4168 = vadd.xlane.f32.xlu2 %v4167_v43  ;;  %v8687_v43 = vpop.eup %6029  ;;  %6043 = vpow2.f32 %v3885_v41  ;;  %v3666_v16 = vsub.f32 %v11145_v55, %v8117_v24  ;;  %v3881_v35 = vmul.f32 1.442695, %v3657_v15 }
 0x463   : > { %11137 = vst [vmem:[#allocation144_spill] sm:$0xff] %v8687_v43  ;;  %v8689_v4 = vpop.eup %6031  ;;  %v4156_v57 = vsel %vm3113_vm4, %v8687_v43, 0.0  ;;  %6045 = vpow2.f32 %v3887_v13 }
 0x464   : > { %4143 = vadd.xlane.f32.xlu0 %v4142_v37  ;;  %11138 = vst [vmem:[#allocation145_spill] sm:$0xff] %v8689_v4  ;;  %v8693_v22 = vpop.eup %6033  ;;  %v11143_v37 = vld [vmem:[#allocation172_spill] sm:$0xff]  ;;  %6047 = vpow2.f32 %v3901_v53  ;;  %v4175_v41 = vsel %vm3113_vm4, %v8689_v4, 0.0  ;;  %v4157_v55 = vadd.f32 %v4156_v57, %v4155_v48  ;;  %v3899_v4 = vmul.f32 1.442695, %v3666_v16 }
 0x465   : > { %v8667_v56 = vpop.xlane.xlu2 %3958  ;;  %11140 = vst [vmem:[#allocation138_spill] sm:$0xff] %v8693_v22  ;;  %4163 = vadd.xlane.f32.xlu1 %v4162_v19  ;;  %v8697_v60 = vpop.eup %6035  ;;  %v3665_v26 = vsub.f32 %v11143_v37, %v8117_v24  ;;  %v4176_v54 = vsel %vm3113_vm4, %v8693_v22, 0.0  ;;  %v11147_v37 = vld [vmem:[#allocation181_spill] sm:$0xff]  ;;  %6049 = vpow2.f32 %v3903_v47  ;;  %v11150_v22 = vld [vmem:[#allocation174_spill] sm:$0xff]  ;;  %v3664_v48 = vsub.f32 %v11152_v59, %v8117_v24 }
 0x466   : > { %11142 = vst [vmem:[#allocation139_spill] sm:$0xff] %v8697_v60  ;;  %v8705_v11 = vpop.eup %6037  ;;  %v3674_v43 = vsub.f32 %v11147_v37, %v8117_v24  ;;  %v4195_v53 = vsel %vm3113_vm4, %v8697_v60, 0.0  ;;  %v3663_v15 = vsub.f32 %v11150_v22, %v8117_v24  ;;  %v4177_v37 = vadd.f32 %v4176_v54, %v4175_v41  ;;  %v11157_v41 = vld [vmem:[#allocation183_spill] sm:$0xff] }
 0x467   : > { %v3954_v45 = vpop.xlane.xlu1 %3953  ;;  %11144 = vst [vmem:[#allocation146_spill] sm:$0xff] %v8705_v11  ;;  %v8719_v34 = vpop.eup %6039  ;;  %v3897_v13 = vmul.f32 1.442695, %v3665_v26  ;;  %v11153_v26 = vld [vmem:[#allocation176_spill] sm:$0xff]  ;;  %v3913_v60 = vmul.f32 1.442695, %v3673_v7  ;;  %6051 = vpow2.f32 %v3881_v35  ;;  %v3672_v54 = vsub.f32 %v11157_v41, %v8117_v24 }
 0x468   : > { %11148 = vst [vmem:[#allocation147_spill] sm:$0xff] %v8719_v34  ;;  %v8725_v27 = vpop.eup %6041  ;;  %v3669_v57 = vsub.f32 %v11153_v26, %v8117_v24  ;;  %v3915_v30 = vmul.f32 1.442695, %v3674_v43  ;;  %6053 = vpow2.f32 %v3883_v20  ;;  %v4170_v59 = vsel %vm3113_vm4, %v8719_v34, 0.0  ;;  %v11159_v43 = vld [vmem:[#allocation190_spill] sm:$0xff] }
 0x469   : > { %11149 = vst [vmem:[#allocation154_spill] sm:$0xff] %v8725_v27  ;;  %v8729_v47 = vpop.eup %6043  ;;  %v4171_v7 = vsel %vm3113_vm4, %v8725_v27, 0.0  ;;  %6055 = vpow2.f32 %v3897_v13  ;;  %v4266_v20 = vsel %vm3113_vm4, %v3954_v45, 0.0  ;;  %v11160_v13 = vld [vmem:[#allocation191_spill] sm:$0xff]  ;;  %v3895_v34 = vmul.f32 1.442695, %v3664_v48 }
 0x46a   : > { %4183 = vadd.xlane.f32.xlu2 %v4182_v49  ;;  %v4196_v49 = vsel %vm3113_vm4, %v8705_v11, 0.0  ;;  %11151 = vst [vmem:[#allocation155_spill] sm:$0xff] %v8729_v47  ;;  %v8735_v51 = vpop.eup %6045  ;;  %v11155_v11 = vld [vmem:[#allocation182_spill] sm:$0xff]  ;;  %6057 = vpow2.f32 %v3899_v4  ;;  %v4190_v26 = vsel %vm3113_vm4, %v8729_v47, 0.0  ;;  %v3680_v27 = vsub.f32 %v11160_v13, %v8117_v24  ;;  %v11164_v48 = vld [vmem:[#allocation184_spill] sm:$0xff] }
 0x46b   : > { %11154 = vst [vmem:[#allocation140_spill] sm:$0xff] %v8735_v51  ;;  %v3671_v36 = vsub.f32 %v11155_v11, %v8117_v24  ;;  %v4197_v22 = vadd.f32 %v4196_v49, %v4195_v53  ;;  %v8739_v16 = vpop.eup %6047  ;;  %v3679_v11 = vsub.f32 %v11159_v43, %v8117_v24  ;;  %v3893_v49 = vmul.f32 1.442695, %v3663_v15 }
 0x46c   : > { %4158 = vadd.xlane.f32.xlu0 %v4157_v55  ;;  %11156 = vst [vmem:[#allocation141_spill] sm:$0xff] %v8739_v16  ;;  %v8747_v35 = vpop.eup %6049  ;;  %v4191_v41 = vsel %vm3113_vm4, %v8735_v51, 0.0  ;;  %6059 = vpow2.f32 %v3913_v60  ;;  %v4172_v43 = vadd.f32 %v4171_v7, %v4170_v59  ;;  %v4210_v15 = vsel %vm3113_vm4, %v8739_v16, 0.0  ;;  %v11163_v60 = vld [vmem:[#allocation177_spill] sm:$0xff]  ;;  %v11167_v16 = vld [vmem:[#allocation192_spill] sm:$0xff] }
 0x46d   : > { %v8715_v19 = vpop.xlane.xlu2 %3973  ;;  %4178 = vadd.xlane.f32.xlu1 %v4177_v37  ;;  %11158 = vst [vmem:[#allocation148_spill] sm:$0xff] %v8747_v35  ;;  %6061 = vpow2.f32 %v3915_v30  ;;  %v8759_v45 = vpop.eup %6051  ;;  %v4211_v47 = vsel %vm3113_vm4, %v8747_v35, 0.0  ;;  %v3670_v13 = vsub.f32 %v11163_v60, %v8117_v24  ;;  %v3677_v30 = vsub.f32 %v11164_v48, %v8117_v24 }
 0x46e   : > { %11161 = vst [vmem:[#allocation149_spill] sm:$0xff] %v8759_v45  ;;  %v8767_v51 = vpop.eup %6053  ;;  %v3911_v59 = vmul.f32 1.442695, %v3672_v54  ;;  %v3685_v38 = vsub.f32 %v11167_v16, %v8117_v24  ;;  %v3925_v35 = vmul.f32 1.442695, %v3679_v11  ;;  %6063 = vpow2.f32 %v3893_v49 }
 0x46f   : > { %v3949_v55 = vpop.xlane.xlu0 %3948  ;;  %11162 = vst [vmem:[#allocation156_spill] sm:$0xff] %v8767_v51  ;;  %v8773_v7 = vpop.eup %6055  ;;  %v3927_v3 = vmul.f32 1.442695, %v3680_v27  ;;  %6065 = vpow2.f32 %v3895_v34  ;;  %v4268_v60 = vsel %vm3113_vm4, %v8667_v56, 0.0  ;;  %v4212_v54 = vadd.f32 %v4211_v47, %v4210_v15  ;;  %v11171_v34 = vld [vmem:[#allocation193_spill] sm:$0xff] }
 0x470   : > { %v4265_v53 = vsel %vm3113_vm4, %v3949_v55, 0.0  ;;  %v3969_v37 = vpop.xlane.xlu1 %3968  ;;  %v3909_v55 = vmul.f32 1.442695, %v3671_v36  ;;  %v4192_v36 = vadd.f32 %v4191_v41, %v4190_v26  ;;  %11165 = vst [vmem:[#allocation157_spill] sm:$0xff] %v8773_v7  ;;  %v8779_v14 = vpop.eup %6057  ;;  %v4185_v48 = vsel %vm3113_vm4, %v8759_v45, 0.0 }
 0x471   : > { %11168 = vst [vmem:[#allocation150_spill] sm:$0xff] %v8779_v14  ;;  %v4186_v16 = vsel %vm3113_vm4, %v8767_v51, 0.0  ;;  %v3686_v27 = vsub.f32 %v11171_v34, %v8117_v24  ;;  %v3905_v49 = vmul.f32 1.442695, %v3669_v57  ;;  %v4206_v15 = vsel %vm3113_vm4, %v8779_v14, 0.0 }
 0x472   : > { %4198 = vadd.xlane.f32.xlu2 %v4197_v22  ;;  %v4267_v22 = vadd.f32 %v4266_v20, %v4265_v53  ;;  %v11166_v20 = vld [vmem:[#allocation185_spill] sm:$0xff]  ;;  %v8783_v26 = vpop.eup %6059  ;;  %6067 = vpow2.f32 %v3909_v55  ;;  %v3921_v57 = vmul.f32 1.442695, %v3677_v30  ;;  %v11176_v30 = vld [vmem:[#allocation187_spill] sm:$0xff]  ;;  %v3937_v14 = vmul.f32 1.442695, %v3685_v38 }
 0x473   : > { %v3678_v53 = vsub.f32 %v11166_v20, %v8117_v24  ;;  %11169 = vst [vmem:[#allocation151_spill] sm:$0xff] %v8783_v26  ;;  %v8789_v11 = vpop.eup %6061  ;;  %6069 = vpow2.f32 %v3911_v59  ;;  %v4272_v20 = vsel %vm3113_vm4, %v3969_v37, 0.0  ;;  %v3939_v51 = vmul.f32 1.442695, %v3686_v27  ;;  %v11181_v27 = vld [vmem:[#allocation195_spill] sm:$0xff] }
 0x474   : > { %4173 = vadd.xlane.f32.xlu0 %v4172_v43  ;;  %v4269_v41 = vadd.f32 %v4268_v60, %v4267_v22  ;;  %11170 = vst [vmem:[#allocation158_spill] sm:$0xff] %v8789_v11  ;;  %6071 = vpow2.f32 %v3925_v35  ;;  %v4205_v22 = vsel %vm3113_vm4, %v8773_v7, 0.0  ;;  %v4187_v60 = vadd.f32 %v4186_v16, %v4185_v48  ;;  %v8799_v34 = vpop.eup %6063 }
 0x475   : > { %v8761_v4 = vpop.xlane.xlu2 %3988  ;;  %4193 = vadd.xlane.f32.xlu1 %v4192_v36  ;;  %v3907_v36 = vmul.f32 1.442695, %v3670_v13  ;;  %6073 = vpow2.f32 %v3927_v3  ;;  %11172 = vst [vmem:[#allocation159_spill] sm:$0xff] %v8799_v34  ;;  %v4225_v35 = vsel %vm3113_vm4, %v8783_v26, 0.0  ;;  %v11174_v13 = vld [vmem:[#allocation186_spill] sm:$0xff]  ;;  %v4207_v37 = vadd.f32 %v4206_v15, %v4205_v22 }
 0x476   : > { %v3675_v3 = vsub.f32 %v11174_v13, %v8117_v24  ;;  %v3676_v16 = vsub.f32 %v11176_v30, %v8117_v24  ;;  %6075 = vpow2.f32 %v3905_v49  ;;  %v4274_v45 = vsel %vm3113_vm4, %v8715_v19, 0.0 }
 0x477   : > { %v3964_v43 = vpop.xlane.xlu0 %3963  ;;  %6077 = vpow2.f32 %v3907_v36  ;;  %v4200_v13 = vsel %vm3113_vm4, %v8799_v34, 0.0  ;;  %v3684_v30 = vsub.f32 %v11181_v27, %v8117_v24  ;;  %v11218_v34 = vld [vmem:[#allocation14_spill] sm:$0xff] }
 0x478   : > { %v4270_v56 = vsel %vm3113_vm4, %v3964_v43, 0.0  ;;  %v3984_v55 = vpop.xlane.xlu1 %3983  ;;  %6079 = vpow2.f32 %v3921_v57  ;;  %v3917_v19 = vmul.f32 1.442695, %v3675_v3  ;;  %v3919_v57 = vmul.f32 1.442695, %v3676_v16 }
 0x479   : > { %v4271_v47 = vadd.f32 %v4270_v56, %v4269_v41  ;;  %v8807_v41 = vpop.eup %6065  ;;  %v3923_v56 = vmul.f32 1.442695, %v3678_v53 }
 0x47a   : > { %4213 = vadd.xlane.f32.xlu2 %v4212_v54  ;;  %v4226_v54 = vsel %vm3113_vm4, %v8789_v11, 0.0  ;;  %11173 = vst [vmem:[#allocation166_spill] sm:$0xff] %v8807_v41  ;;  %v8811_v48 = vpop.eup %6067  ;;  %v4201_v38 = vsel %vm3113_vm4, %v8807_v41, 0.0 }
 0x47b   : > { %v4273_v59 = vadd.f32 %v4272_v20, %v4271_v47  ;;  %11175 = vst [vmem:[#allocation167_spill] sm:$0xff] %v8811_v48  ;;  %v11177_v47 = vld [vmem:[#allocation194_spill] sm:$0xff]  ;;  %v8817_v7 = vpop.eup %6069  ;;  %v4227_v53 = vadd.f32 %v4226_v54, %v4225_v35  ;;  %6081 = vpow2.f32 %v3923_v56 }
 0x47c   : > { %4188 = vadd.xlane.f32.xlu0 %v4187_v60  ;;  %v3683_v20 = vsub.f32 %v11177_v47, %v8117_v24  ;;  %11178 = vst [vmem:[#allocation152_spill] sm:$0xff] %v8817_v7  ;;  %v8821_v22 = vpop.eup %6071  ;;  %v4221_v54 = vsel %vm3113_vm4, %v8817_v7, 0.0  ;;  %6083 = vpow2.f32 %v3937_v14  ;;  %v4202_v47 = vadd.f32 %v4201_v38, %v4200_v13  ;;  %v11187_v38 = vld [vmem:[#allocation189_spill] sm:$0xff] }
 0x47d   : > { %v8801_v43 = vpop.xlane.xlu2 %4003  ;;  %4208 = vadd.xlane.f32.xlu1 %v4207_v37  ;;  %11179 = vst [vmem:[#allocation153_spill] sm:$0xff] %v8821_v22  ;;  %v4275_v15 = vadd.f32 %v4274_v45, %v4273_v59  ;;  %v8827_v49 = vpop.eup %6073  ;;  %v4220_v59 = vsel %vm3113_vm4, %v8811_v48, 0.0  ;;  %v4278_v37 = vsel %vm3113_vm4, %v3984_v55, 0.0  ;;  %6085 = vpow2.f32 %v3939_v51  ;;  %v11185_v51 = vld [vmem:[#allocation188_spill] sm:$0xff] }
 0x47e   : > { %11180 = vst [vmem:[#allocation161_spill] sm:$0xff] %v8827_v49  ;;  %v8837_v27 = vpop.eup %6075  ;;  %v3933_v3 = vmul.f32 1.442695, %v3683_v20  ;;  %v4240_v56 = vsel %vm3113_vm4, %v8821_v22, 0.0  ;;  %v3935_v14 = vmul.f32 1.442695, %v3684_v30  ;;  %v4222_v16 = vadd.f32 %v4221_v54, %v4220_v59 }
 0x47f   : > { %v3979_v60 = vpop.xlane.xlu0 %3978  ;;  %11182 = vst [vmem:[#allocation168_spill] sm:$0xff] %v8837_v27  ;;  %v3681_v13 = vsub.f32 %v11185_v51, %v8117_v24  ;;  %6087 = vpow2.f32 %v3917_v19 }
 0x480   : > { %v4276_v35 = vsel %vm3113_vm4, %v3979_v60, 0.0  ;;  %v3999_v45 = vpop.xlane.xlu1 %3998  ;;  %6089 = vpow2.f32 %v3919_v57 }
 0x481   : > { %v4277_v36 = vadd.f32 %v4276_v35, %v4275_v15  ;;  %v4241_v15 = vsel %vm3113_vm4, %v8827_v49, 0.0  ;;  %v8845_v35 = vpop.eup %6077  ;;  %6091 = vpow2.f32 %v3933_v3 }
 0x482   : > { %4228 = vadd.xlane.f32.xlu2 %v4227_v53  ;;  %11183 = vst [vmem:[#allocation162_spill] sm:$0xff] %v8845_v35  ;;  %v8847_v55 = vpop.eup %6079  ;;  %v4242_v7 = vadd.f32 %v4241_v15, %v4240_v56  ;;  %v4216_v19 = vsel %vm3113_vm4, %v8845_v35, 0.0  ;;  %6093 = vpow2.f32 %v3935_v14 }
 0x483   : > { %v4279_v60 = vadd.f32 %v4278_v37, %v4277_v36  ;;  %11184 = vst [vmem:[#allocation169_spill] sm:$0xff] %v8847_v55  ;;  %v8851_v20 = vpop.eup %6081  ;;  %v3682_v36 = vsub.f32 %v11187_v38, %v8117_v24  ;;  %v4280_v37 = vsel %vm3113_vm4, %v8761_v4, 0.0  ;;  %v3929_v4 = vmul.f32 1.442695, %v3681_v13 }
 0x484   : > { %4203 = vadd.xlane.f32.xlu0 %v4202_v47  ;;  %11186 = vst [vmem:[#allocation160_spill] sm:$0xff] %v8851_v20  ;;  %v8857_v30 = vpop.eup %6083  ;;  %v4215_v47 = vsel %vm3113_vm4, %v8837_v27, 0.0  ;;  %v4235_v3 = vsel %vm3113_vm4, %v8847_v55, 0.0  ;;  %v4284_v38 = vsel %vm3113_vm4, %v3999_v45, 0.0 }
 0x485   : > { %v8839_v53 = vpop.xlane.xlu2 %4018  ;;  %4223 = vadd.xlane.f32.xlu1 %v4222_v16  ;;  %11188 = vst [vmem:[#allocation163_spill] sm:$0xff] %v8857_v30  ;;  %v4281_v59 = vadd.f32 %v4280_v37, %v4279_v60  ;;  %v8863_v51 = vpop.eup %6085  ;;  %v4236_v60 = vsel %vm3113_vm4, %v8851_v20, 0.0  ;;  %v3931_v15 = vmul.f32 1.442695, %v3682_v36  ;;  %v4217_v37 = vadd.f32 %v4216_v19, %v4215_v47  ;;  %v11193_v36 = vld [vmem:[#allocation196_spill] sm:$0xff]  ;;  %v11195_v19 = vld [vmem:[#allocation197_spill] sm:$0xff] }
 0x486   : > { %11189 = vst [vmem:[#allocation170_spill] sm:$0xff] %v8863_v51  ;;  %v8871_v35 = vpop.eup %6087  ;;  %v4256_v13 = vsel %vm3113_vm4, %v8863_v51, 0.0  ;;  %v3687_v45 = vsub.f32 %v11193_v36, %v8117_v24  ;;  %6095 = vpow2.f32 %v3929_v4 }
 0x487   : > { %v3994_v54 = vpop.xlane.xlu0 %3993  ;;  %11190 = vst [vmem:[#allocation171_spill] sm:$0xff] %v8871_v35  ;;  %6097 = vpow2.f32 %v3931_v15 }
 0x488   : > { %v4282_v57 = vsel %vm3113_vm4, %v3994_v54, 0.0  ;;  %v4014_v56 = vpop.xlane.xlu1 %4013  ;;  %v4237_v54 = vadd.f32 %v4236_v60, %v4235_v3  ;;  %v4230_v3 = vsel %vm3113_vm4, %v8871_v35, 0.0  ;;  %v3941_v36 = vmul.f32 1.442695, %v3687_v45 }
 0x489   : > { %v4283_v16 = vadd.f32 %v4282_v57, %v4281_v59  ;;  %v8877_v59 = vpop.eup %6089 }
 0x48a   : > { %4243 = vadd.xlane.f32.xlu2 %v4242_v7  ;;  %v4255_v7 = vsel %vm3113_vm4, %v8857_v30, 0.0  ;;  %11191 = vst [vmem:[#allocation178_spill] sm:$0xff] %v8877_v59  ;;  %v8879_v57 = vpop.eup %6091  ;;  %v4231_v60 = vsel %vm3113_vm4, %v8877_v59, 0.0  ;;  %6099 = vpow2.f32 %v3941_v36 }
 0x48b   : > { %v4285_v27 = vadd.f32 %v4284_v38, %v4283_v16  ;;  %11192 = vst [vmem:[#allocation179_spill] sm:$0xff] %v8879_v57  ;;  %v8883_v47 = vpop.eup %6093  ;;  %v3688_v16 = vsub.f32 %v11195_v19, %v8117_v24  ;;  %v4286_v38 = vsel %vm3113_vm4, %v8801_v43, 0.0  ;;  %v4257_v51 = vadd.f32 %v4256_v13, %v4255_v7 }
 0x48c   : > { %4218 = vadd.xlane.f32.xlu0 %v4217_v37  ;;  %11194 = vst [vmem:[#allocation164_spill] sm:$0xff] %v8883_v47  ;;  %v4250_v43 = vsel %vm3113_vm4, %v8879_v57, 0.0  ;;  %v4251_v15 = vsel %vm3113_vm4, %v8883_v47, 0.0  ;;  %v4290_v7 = vsel %vm3113_vm4, %v4014_v56, 0.0  ;;  %v4232_v13 = vadd.f32 %v4231_v60, %v4230_v3  ;;  %v11217_v57 = vld [vmem:[#allocation29_spill] sm:$0xff] }
 0x48d   : > { %v4034_v14 = vpop.xlane.xlu2 %4033  ;;  %4238 = vadd.xlane.f32.xlu1 %v4237_v54  ;;  %v4287_v30 = vadd.f32 %v4286_v38, %v4285_v27  ;;  %v3943_v27 = vmul.f32 1.442695, %v3688_v16  ;;  %v8899_v54 = vpop.eup %6095 }
 0x48e   : > { %11196 = vst [vmem:[#allocation165_spill] sm:$0xff] %v8899_v54  ;;  %v8901_v41 = vpop.eup %6097  ;;  %v4245_v56 = vsel %vm3113_vm4, %v8899_v54, 0.0  ;;  %v11213_v54 = vld [vmem:[#allocation11_spill] sm:$0xff] }
 0x48f   : > { %v4009_v37 = vpop.xlane.xlu0 %4008  ;;  %11197 = vst [vmem:[#allocation172_spill] sm:$0xff] %v8901_v41  ;;  %6101 = vpow2.f32 %v3943_v27  ;;  %v4246_v16 = vsel %vm3113_vm4, %v8901_v41, 0.0 }
 0x490   : > { %v4288_v4 = vsel %vm3113_vm4, %v4009_v37, 0.0  ;;  %v4029_v24 = vpop.xlane.xlu1 %4028  ;;  %v4247_v36 = vadd.f32 %v4246_v16, %v4245_v56 }
 0x491   : > { %v4289_v48 = vadd.f32 %v4288_v4, %v4287_v30  ;;  %v4292_v30 = vsel %vm3113_vm4, %v8839_v53, 0.0  ;;  %v4296_v4 = vsel %vm3113_vm4, %v4029_v24, 0.0 }
 0x492   : > { %4258 = vadd.xlane.f32.xlu2 %v4257_v51  ;;  %v4252_v51 = vadd.f32 %v4251_v15, %v4250_v43  ;;  %v8911_v43 = vpop.eup %6099 }
 0x493   : > { %v4291_v19 = vadd.f32 %v4290_v7, %v4289_v48  ;;  %11198 = vst [vmem:[#allocation173_spill] sm:$0xff] %v8911_v43  ;;  %v4298_v7 = vsel %vm3113_vm4, %v4034_v14, 0.0 }
 0x494   : > { %4233 = vadd.xlane.f32.xlu0 %v4232_v13 }
 0x495   : > { %v4049_v38 = vpop.xlane.xlu2 %4048  ;;  %4253 = vadd.xlane.f32.xlu1 %v4252_v51  ;;  %v4293_v45 = vadd.f32 %v4292_v30, %v4291_v19  ;;  %v8913_v27 = vpop.eup %6101  ;;  %v4260_v51 = vsel %vm3113_vm4, %v8911_v43, 0.0 }
 0x496   : > { %11199 = vst [vmem:[#allocation180_spill] sm:$0xff] %v8913_v27  ;;  %v4261_v30 = vsel %vm3113_vm4, %v8913_v27, 0.0  ;;  %v4304_v14 = vsel %vm3113_vm4, %v4049_v38, 0.0 }
 0x497   : > { %v4024_v37 = vpop.xlane.xlu0 %4023  ;;  %v4262_v16 = vadd.f32 %v4261_v30, %v4260_v51 }
 0x498   : > { %v4294_v48 = vsel %vm3113_vm4, %v4024_v37, 0.0  ;;  %v4044_v60 = vpop.xlane.xlu1 %4043 }
 0x499   : > { %v4295_v3 = vadd.f32 %v4294_v48, %v4293_v45  ;;  %v4302_v56 = vsel %vm3113_vm4, %v4044_v60, 0.0 }
 0x49b   : > { %v4297_v15 = vadd.f32 %v4296_v4, %v4295_v3 }
 0x49c   : > { %4248 = vadd.xlane.f32.xlu0 %v4247_v36 }
 0x49d   : > { %v4064_v53 = vpop.xlane.xlu2 %4063  ;;  %v4299_v13 = vadd.f32 %v4298_v7, %v4297_v15 }
 0x49f   : > { %v4039_v19 = vpop.xlane.xlu0 %4038 }
 0x4a0   : > { %v4300_v24 = vsel %vm3113_vm4, %v4039_v19, 0.0  ;;  %v4059_v37 = vpop.xlane.xlu1 %4058 }
 0x4a1   : > { %v4301_v45 = vadd.f32 %v4300_v24, %v4299_v13  ;;  %v4308_v27 = vsel %vm3113_vm4, %v4059_v37, 0.0  ;;  %v4310_v13 = vsel %vm3113_vm4, %v4064_v53, 0.0 }
 0x4a3   : > { %v4303_v48 = vadd.f32 %v4302_v56, %v4301_v45 }
 0x4a4   : > { %4263 = vadd.xlane.f32.xlu0 %v4262_v16 }
 0x4a5   : > { %v4079_v3 = vpop.xlane.xlu2 %4078  ;;  %v4305_v4 = vadd.f32 %v4304_v14, %v4303_v48 }
 0x4a6   : > { %v4316_v48 = vsel %vm3113_vm4, %v4079_v3, 0.0 }
 0x4a7   : > { %v4054_v36 = vpop.xlane.xlu0 %4053 }
 0x4a8   : > { %v4306_v15 = vsel %vm3113_vm4, %v4054_v36, 0.0  ;;  %v4074_v43 = vpop.xlane.xlu1 %4073 }
 0x4a9   : > { %v4307_v7 = vadd.f32 %v4306_v15, %v4305_v4  ;;  %v4314_v38 = vsel %vm3113_vm4, %v4074_v43, 0.0 }
 0x4ab   : > { %v4309_v41 = vadd.f32 %v4308_v27, %v4307_v7 }
 0x4ad   : > { %v4094_v19 = vpop.xlane.xlu2 %4093  ;;  %v4311_v24 = vadd.f32 %v4310_v13, %v4309_v41 }
 0x4ae   : > { %v4322_v7 = vsel %vm3113_vm4, %v4094_v19, 0.0 }
 0x4af   : > { %v4069_v60 = vpop.xlane.xlu0 %4068 }
 0x4b0   : > { %v4312_v51 = vsel %vm3113_vm4, %v4069_v60, 0.0  ;;  %v4089_v45 = vpop.xlane.xlu1 %4088 }
 0x4b1   : > { %v4313_v30 = vadd.f32 %v4312_v51, %v4311_v24  ;;  %v4320_v53 = vsel %vm3113_vm4, %v4089_v45, 0.0 }
 0x4b3   : > { %v4315_v56 = vadd.f32 %v4314_v38, %v4313_v30 }
 0x4b5   : > { %v4109_v16 = vpop.xlane.xlu2 %4108  ;;  %v4317_v14 = vadd.f32 %v4316_v48, %v4315_v56 }
 0x4b6   : > { %v4328_v56 = vsel %vm3113_vm4, %v4109_v16, 0.0 }
 0x4b7   : > { %v4084_v4 = vpop.xlane.xlu0 %4083 }
 0x4b8   : > { %v4318_v37 = vsel %vm3113_vm4, %v4084_v4, 0.0  ;;  %v4104_v36 = vpop.xlane.xlu1 %4103 }
 0x4b9   : > { %v4319_v27 = vadd.f32 %v4318_v37, %v4317_v14  ;;  %v4326_v3 = vsel %vm3113_vm4, %v4104_v36, 0.0 }
 0x4bb   : > { %v4321_v41 = vadd.f32 %v4320_v53, %v4319_v27 }
 0x4bd   : > { %v4124_v15 = vpop.xlane.xlu2 %4123  ;;  %v4323_v13 = vadd.f32 %v4322_v7, %v4321_v41 }
 0x4be   : > { %v4334_v41 = vsel %vm3113_vm4, %v4124_v15, 0.0 }
 0x4bf   : > { %v4099_v24 = vpop.xlane.xlu0 %4098 }
 0x4c0   : > { %v4324_v43 = vsel %vm3113_vm4, %v4099_v24, 0.0  ;;  %v4119_v51 = vpop.xlane.xlu1 %4118 }
 0x4c1   : > { %v4325_v60 = vadd.f32 %v4324_v43, %v4323_v13  ;;  %v4332_v19 = vsel %vm3113_vm4, %v4119_v51, 0.0 }
 0x4c3   : > { %v4327_v30 = vadd.f32 %v4326_v3, %v4325_v60 }
 0x4c5   : > { %v4139_v38 = vpop.xlane.xlu2 %4138  ;;  %v4329_v48 = vadd.f32 %v4328_v56, %v4327_v30 }
 0x4c6   : > { %v4340_v3 = vsel %vm3113_vm4, %v4139_v38, 0.0 }
 0x4c7   : > { %v4114_v14 = vpop.xlane.xlu0 %4113 }
 0x4c8   : > { %v4330_v45 = vsel %vm3113_vm4, %v4114_v14, 0.0  ;;  %v4134_v37 = vpop.xlane.xlu1 %4133 }
 0x4c9   : > { %v4331_v4 = vadd.f32 %v4330_v45, %v4329_v48  ;;  %v4338_v16 = vsel %vm3113_vm4, %v4134_v37, 0.0 }
 0x4cb   : > { %v4333_v27 = vadd.f32 %v4332_v19, %v4331_v4 }
 0x4cd   : > { %v4154_v53 = vpop.xlane.xlu2 %4153  ;;  %v4335_v7 = vadd.f32 %v4334_v41, %v4333_v27 }
 0x4ce   : > { %v4346_v19 = vsel %vm3113_vm4, %v4154_v53, 0.0 }
 0x4cf   : > { %v4129_v13 = vpop.xlane.xlu0 %4128 }
 0x4d0   : > { %v4336_v36 = vsel %vm3113_vm4, %v4129_v13, 0.0  ;;  %v4149_v43 = vpop.xlane.xlu1 %4148 }
 0x4d1   : > { %v4337_v24 = vadd.f32 %v4336_v36, %v4335_v7  ;;  %v4344_v15 = vsel %vm3113_vm4, %v4149_v43, 0.0 }
 0x4d3   : > { %v4339_v60 = vadd.f32 %v4338_v16, %v4337_v24 }
 0x4d5   : > { %v4341_v30 = vadd.f32 %v4340_v3, %v4339_v60  ;;  %v4169_v48 = vpop.xlane.xlu2 %4168 }
 0x4d6   : > { %v4352_v16 = vsel %vm3113_vm4, %v4169_v48, 0.0  ;;  %v11203_v48 = vld [vmem:[#allocation24_spill] sm:$0xff] }
 0x4d7   : > { %v4144_v56 = vpop.xlane.xlu0 %4143 }
 0x4d8   : > { %v4342_v51 = vsel %vm3113_vm4, %v4144_v56, 0.0  ;;  %v4164_v45 = vpop.xlane.xlu1 %4163 }
 0x4d9   : > { %v4343_v14 = vadd.f32 %v4342_v51, %v4341_v30  ;;  %v4350_v38 = vsel %vm3113_vm4, %v4164_v45, 0.0  ;;  %v11202_v45 = vld [vmem:[#allocation23_spill] sm:$0xff] }
 0x4db   : > { %v4345_v4 = vadd.f32 %v4344_v15, %v4343_v14 }
 0x4dd   : > { %v4347_v27 = vadd.f32 %v4346_v19, %v4345_v4  ;;  %v4184_v13 = vpop.xlane.xlu2 %4183  ;;  %v11200_v4 = vld [vmem:[#allocation69_spill] sm:$0xff] }
 0x4de   : > { %v4358_v15 = vsel %vm3113_vm4, %v4184_v13, 0.0  ;;  %v11201_v19 = vld [vmem:[#allocation5_spill] sm:$0xff]  ;;  %v8994_v47 = vperm.slane %v11213_v54, %v11200_v4 }
 0x4df   : > { %v4159_v41 = vpop.xlane.xlu0 %4158 }
 0x4e0   : > { %v4348_v7 = vsel %vm3113_vm4, %v4159_v41, 0.0  ;;  %v4179_v36 = vpop.xlane.xlu1 %4178  ;;  %v8956_v41 = vperm.slane %v11202_v45, %v11200_v4  ;;  %11214 = vst [vmem:[#allocation176_spill] sm:$0xff] %v8994_v47 }
 0x4e1   : > { %v4349_v37 = vadd.f32 %v4348_v7, %v4347_v27  ;;  %v4356_v53 = vsel %vm3113_vm4, %v4179_v36, 0.0  ;;  %v8952_v27 = vperm.slane %v11201_v19, %v11200_v4  ;;  %v8960_v7 = vperm.slane %v11203_v48, %v11200_v4  ;;  %v11204_v36 = vld [vmem:[#allocation6_spill] sm:$0xff] }
 0x4e3   : > { %v4351_v24 = vadd.f32 %v4350_v38, %v4349_v37  ;;  %v2743_v45 = vrot.slane %v8960_v7, 4 }
 0x4e5   : > { %v4353_v60 = vadd.f32 %v4352_v16, %v4351_v24  ;;  %v4199_v14 = vpop.xlane.xlu2 %4198  ;;  %v8964_v24 = vperm.slane %v11204_v36, %v11200_v4 }
 0x4e7   : > { %v4174_v3 = vpop.xlane.xlu0 %4173 }
 0x4e8   : > { %v4354_v30 = vsel %vm3113_vm4, %v4174_v3, 0.0  ;;  %v4194_v56 = vpop.xlane.xlu1 %4193  ;;  %v11205_v3 = vld [vmem:[#allocation27_spill] sm:$0xff] }
 0x4e9   : > { %v4355_v43 = vadd.f32 %v4354_v30, %v4353_v60  ;;  %v8969_v30 = vperm.slane %v11205_v3, %v11200_v4  ;;  %v4362_v19 = vsel %vm3113_vm4, %v4194_v56, 0.0 }
 0x4eb   : > { %v4357_v51 = vadd.f32 %v4356_v53, %v4355_v43  ;;  %v11206_v43 = vld [vmem:[#allocation28_spill] sm:$0xff]  ;;  %v2329_v54 = vrot.slane %v8969_v30, 4 }
 0x4ec   : > { %v8973_v53 = vperm.slane %v11206_v43, %v11200_v4  ;;  %v11211_v43 = vld [vmem:[#allocation9_spill] sm:$0xff] }
 0x4ed   : > { %v4359_v37 = vadd.f32 %v4358_v15, %v4357_v51  ;;  %v2325_v51 = vrot.slane %v8952_v27, 4  ;;  %v2327_v15 = vrot.slane %v8956_v41, 4  ;;  %v8990_v56 = vperm.slane %v11211_v43, %v11200_v4  ;;  %v4214_v49 = vpop.xlane.xlu2 %4213  ;;  %v11220_v43 = vld [vmem:[#allocation30_spill] sm:$0xff] }
 0x4ee   : > { %v9010_v22 = vperm.slane %v11220_v43, %v11200_v4  ;;  %v2745_v59 = vrot.slane %v8973_v53, 4 }
 0x4ef   : > { %v4189_v38 = vpop.xlane.xlu0 %4188  ;;  %11212 = vst [vmem:[#allocation175_spill] sm:$0xff] %v8990_v56  ;;  %v9016_v35 = vsel %vm1449_vm1, 0.0, %v2325_v51  ;;  %v11223_v51 = vld [vmem:[#allocation31_spill] sm:$0xff] }
 0x4f0   : > { %v4360_v13 = vsel %vm3113_vm4, %v4189_v38, 0.0  ;;  %v4209_v60 = vpop.xlane.xlu1 %4208  ;;  %v11207_v38 = vld [vmem:[#allocation25_spill] sm:$0xff]  ;;  %v9032_v10 = vperm.slane %v11223_v51, %v11200_v4  ;;  %v11227_v51 = vld [vmem:[#allocation35_spill] sm:$0xff] }
 0x4f1   : > { %v4361_v16 = vadd.f32 %v4360_v13, %v4359_v37  ;;  %v2741_v37 = vrot.slane %v8964_v24, 4  ;;  %v8982_v36 = vperm.slane %v11207_v38, %v11200_v4  ;;  %v11209_v13 = vld [vmem:[#allocation26_spill] sm:$0xff]  ;;  %v9002_v38 = vperm.slane %v11217_v57, %v11200_v4 }
 0x4f2   : > { %v8986_v3 = vperm.slane %v11209_v13, %v11200_v4  ;;  %v9006_v13 = vperm.slane %v11218_v34, %v11200_v4  ;;  %v9019_v57 = vsel %vm1449_vm1, 0.0, %v2327_v15  ;;  %v9022_v34 = vsel %vm1449_vm1, 0.0, %v2743_v45  ;;  %v11224_v15 = vld [vmem:[#allocation32_spill] sm:$0xff] }
 0x4f3   : > { %v4363_v48 = vadd.f32 %v4362_v19, %v4361_v16  ;;  %11208 = vst [vmem:[#allocation181_spill] sm:$0xff] %v8982_v36  ;;  %v11215_v16 = vld [vmem:[#allocation13_spill] sm:$0xff]  ;;  %v9025_v43 = vsel %vm1449_vm1, 0.0, %v2741_v37  ;;  %v2331_v11 = vrot.slane %v8982_v36, 4  ;;  %v9036_v23 = vperm.slane %v11224_v15, %v11200_v4 }
 0x4f4   : > { %11210 = vst [vmem:[#allocation174_spill] sm:$0xff] %v8986_v3  ;;  %v8998_v19 = vperm.slane %v11215_v16, %v11200_v4  ;;  %v4364_v16 = vsel %vm3113_vm4, %v4199_v14, 0.0  ;;  %v2747_v26 = vrot.slane %v8986_v3, 4  ;;  %v2379_v45 = vrot.slane %v9002_v38, 4  ;;  %v11229_v15 = vld [vmem:[#allocation33_spill] sm:$0xff] }
 0x4f5   : > { %11219 = vst [vmem:[#allocation183_spill] sm:$0xff] %v9006_v13  ;;  %v4365_v20 = vadd.f32 %v4364_v16, %v4363_v48  ;;  %v2795_v37 = vrot.slane %v9010_v22, 4  ;;  %v9041_v16 = vsel %vm1449_vm1, 0.0, %v2329_v54  ;;  %v9044_v3 = vsel %vm1449_vm1, 0.0, %v2745_v59 }
 0x4f6   : > { %11216 = vst [vmem:[#allocation182_spill] sm:$0xff] %v8998_v19  ;;  %v9049_v36 = vperm.slane %v11227_v51, %v11200_v4  ;;  %v9053_v28 = vperm.slane %v11229_v15, %v11200_v4  ;;  %v9061_v59 = vperm.slane %v11233_v17, %v11200_v4  ;;  %v9067_v51 = vsel %vm1449_vm1, 0.0, %v2747_v26  ;;  %v11241_v26 = vld [vmem:[#allocation8_spill] sm:$0xff] }
 0x4f7   : > { %11221 = vst [vmem:[#allocation190_spill] sm:$0xff] %v9019_v57  ;;  %v4204_v55 = vpop.xlane.xlu0 %4203  ;;  %v2377_v1 = vrot.slane %v9032_v10, 4  ;;  %v2793_v15 = vrot.slane %v9036_v23, 4  ;;  %v9079_v17 = vsel %vm1449_vm1, 0.0, %v2795_v37  ;;  %v4229_v57 = vpop.xlane.xlu2 %4228 }
 0x4f8   : > { %11222 = vst [vmem:[#allocation191_spill] sm:$0xff] %v9022_v34  ;;  %v4366_v14 = vsel %vm3113_vm4, %v4204_v55, 0.0  ;;  %v4368_v55 = vsel %vm3113_vm4, %v4209_v60, 0.0  ;;  %v4224_v54 = vpop.xlane.xlu1 %4223  ;;  %v9064_v60 = vsel %vm1449_vm1, 0.0, %v2331_v11  ;;  %v11239_v11 = vld [vmem:[#allocation7_spill] sm:$0xff]  ;;  %v2383_v34 = vrot.slane %v9053_v28, 4 }
 0x4f9   : > { %v4367_v48 = vadd.f32 %v4366_v14, %v4365_v20  ;;  %11225 = vst [vmem:[#allocation177_spill] sm:$0xff] %v9041_v16  ;;  %v11231_v20 = vld [vmem:[#allocation34_spill] sm:$0xff]  ;;  %v2797_v46 = vrot.slane %v9061_v59, 4 }
 0x4fa   : > { %11226 = vst [vmem:[#allocation184_spill] sm:$0xff] %v9044_v3  ;;  %v9057_v14 = vperm.slane %v11231_v20, %v11200_v4  ;;  %v9072_v3 = vsel %vm1449_vm1, 0.0, %v2379_v45  ;;  %v9083_v20 = vperm.slane %v11239_v11, %v11200_v4  ;;  %v4370_v45 = vsel %vm3113_vm4, %v4214_v49, 0.0 }
 0x4fb   : > { %11228 = vst [vmem:[#allocation185_spill] sm:$0xff] %v9049_v36  ;;  %v4369_v5 = vadd.f32 %v4368_v55, %v4367_v48  ;;  %v11237_v48 = vld [vmem:[#allocation37_spill] sm:$0xff] }
 0x4fc   : > { %11230 = vst [vmem:[#allocation192_spill] sm:$0xff] %v9053_v28  ;;  %v9076_v55 = vperm.slane %v11237_v48, %v11200_v4  ;;  %v2381_v48 = vrot.slane %v9049_v36, 4  ;;  %v2799_v37 = vrot.slane %v9057_v14, 4  ;;  %v9108_v36 = vsel %vm1449_vm1, 0.0, %v2377_v1 }
 0x4fd   : > { %11232 = vst [vmem:[#allocation193_spill] sm:$0xff] %v9057_v14  ;;  %v4371_v42 = vadd.f32 %v4370_v45, %v4369_v5  ;;  %v9111_v14 = vsel %vm1449_vm1, 0.0, %v2793_v15  ;;  %v2429_v28 = vrot.slane %v9083_v20, 4  ;;  %v9122_v1 = vsel %vm1449_vm1, 0.0, %v2383_v34 }
 0x4fe   : > { %11234 = vst [vmem:[#allocation186_spill] sm:$0xff] %v9061_v59  ;;  %v2431_v5 = vrot.slane %v9076_v55, 4  ;;  %v9119_v44 = vsel %vm1449_vm1, 0.0, %v2381_v48  ;;  %v9125_v15 = vsel %vm1449_vm1, 0.0, %v2799_v37  ;;  %v11253_v48 = vld [vmem:[#allocation12_spill] sm:$0xff]  ;;  %v11256_v37 = vld [vmem:[#allocation39_spill] sm:$0xff] }
 0x4ff   : > { %11235 = vst [vmem:[#allocation187_spill] sm:$0xff] %v9064_v60  ;;  %v11243_v60 = vld [vmem:[#allocation38_spill] sm:$0xff]  ;;  %v4219_v11 = vpop.xlane.xlu0 %4218 }
 0x500   : > { %11236 = vst [vmem:[#allocation194_spill] sm:$0xff] %v9067_v51  ;;  %v9087_v51 = vperm.slane %v11241_v26, %v11200_v4  ;;  %v9091_v16 = vperm.slane %v11243_v60, %v11200_v4  ;;  %v11245_v26 = vld [vmem:[#allocation41_spill] sm:$0xff]  ;;  %v11247_v60 = vld [vmem:[#allocation42_spill] sm:$0xff]  ;;  %v4372_v49 = vsel %vm3113_vm4, %v4219_v11, 0.0  ;;  %v9141_v34 = vsel %vm1449_vm1, 0.0, %v2431_v5 }
 0x501   : > { %11238 = vst [vmem:[#allocation195_spill] sm:$0xff] %v9076_v55  ;;  %v9100_v29 = vperm.slane %v11245_v26, %v11200_v4  ;;  %v9104_v52 = vperm.slane %v11247_v60, %v11200_v4  ;;  %v4373_v45 = vadd.f32 %v4372_v49, %v4371_v42  ;;  %v4374_v60 = vsel %vm3113_vm4, %v4224_v54, 0.0 }
 0x502   : > { %11240 = vst [vmem:[#allocation188_spill] sm:$0xff] %v9083_v20  ;;  %v2845_v26 = vrot.slane %v9087_v51, 4  ;;  %v2847_v59 = vrot.slane %v9091_v16, 4  ;;  %v9128_v42 = vsel %vm1449_vm1, 0.0, %v2797_v46  ;;  %v4239_v46 = vpop.xlane.xlu1 %4238  ;;  %v4376_v5 = vsel %vm3113_vm4, %v4229_v57, 0.0 }
 0x503   : > { %11242 = vst [vmem:[#allocation189_spill] sm:$0xff] %v9087_v51  ;;  %v4375_v11 = vadd.f32 %v4374_v60, %v4373_v45  ;;  %v2433_v49 = vrot.slane %v9100_v29, 4  ;;  %v2849_v55 = vrot.slane %v9104_v52, 4  ;;  %v9138_v51 = vperm.slane %v11253_v48, %v11200_v4  ;;  %v11261_v48 = vld [vmem:[#allocation40_spill] sm:$0xff] }
 0x504   : > { %11244 = vst [vmem:[#allocation196_spill] sm:$0xff] %v9091_v16  ;;  %v11251_v16 = vld [vmem:[#allocation10_spill] sm:$0xff]  ;;  %v9145_v45 = vperm.slane %v11256_v37, %v11200_v4  ;;  %v9148_v60 = vsel %vm1449_vm1, 0.0, %v2429_v28  ;;  %v11263_v37 = vld [vmem:[#allocation43_spill] sm:$0xff]  ;;  %v11265_v28 = vld [vmem:[#allocation44_spill] sm:$0xff] }
 0x505   : > { %11246 = vst [vmem:[#allocation197_spill] sm:$0xff] %v9100_v29  ;;  %v9134_v54 = vperm.slane %v11251_v16, %v11200_v4  ;;  %v9154_v16 = vsel %vm1449_vm1, 0.0, %v2847_v59  ;;  %v9158_v29 = vperm.slane %v11261_v48, %v11200_v4  ;;  %v2899_v59 = vrot.slane %v8994_v47, 4 }
 0x506   : > { %11248 = vst [vmem:[#allocation5_spill] sm:$0xff] %v9104_v52  ;;  %v9151_v52 = vsel %vm1449_vm1, 0.0, %v2845_v26  ;;  %v4377_v26 = vadd.f32 %v4376_v5, %v4375_v11  ;;  %v9175_v48 = vsel %vm1449_vm1, 0.0, %v2849_v55  ;;  %v11269_v11 = vld [vmem:[#allocation45_spill] sm:$0xff] }
 0x507   : > { %11249 = vst [vmem:[#allocation23_spill] sm:$0xff] %v9122_v1  ;;  %v9168_v1 = vperm.slane %v11265_v28, %v11200_v4  ;;  %v4234_v20 = vpop.xlane.xlu0 %4233  ;;  %v4244_v28 = vpop.xlane.xlu2 %4243  ;;  %v9183_v5 = vperm.slane %v11269_v11, %v11200_v4  ;;  %v2851_v55 = vrot.slane %v9158_v29, 4  ;;  %v11275_v11 = vld [vmem:[#allocation47_spill] sm:$0xff] }
 0x508   : > { %11250 = vst [vmem:[#allocation24_spill] sm:$0xff] %v9125_v15  ;;  %v9164_v15 = vperm.slane %v11263_v37, %v11200_v4  ;;  %v4378_v57 = vsel %vm3113_vm4, %v4234_v20, 0.0  ;;  %v2897_v37 = vrot.slane %v9138_v51, 4  ;;  %v4380_v20 = vsel %vm3113_vm4, %v4239_v46, 0.0 }
 0x509   : > { %11252 = vst [vmem:[#allocation6_spill] sm:$0xff] %v9134_v54 }
 0x50a   : > { %11254 = vst [vmem:[#allocation27_spill] sm:$0xff] %v9138_v51  ;;  %v2487_v47 = vrot.slane %v9164_v15, 4  ;;  %v9201_v51 = vperm.slane %v11275_v11, %v11200_v4  ;;  %v2485_v11 = vrot.slane %v9183_v5, 4 }
 0x50b   : > { %11255 = vst [vmem:[#allocation28_spill] sm:$0xff] %v9141_v34  ;;  %v2483_v34 = vrot.slane %v8990_v56, 4  ;;  %v2481_v56 = vrot.slane %v9134_v54, 4 }
 0x50c   : > { %11257 = vst [vmem:[#allocation25_spill] sm:$0xff] %v9145_v45 }
 0x50d   : > { %11258 = vst [vmem:[#allocation26_spill] sm:$0xff] %v9148_v60  ;;  %v4379_v60 = vadd.f32 %v4378_v57, %v4377_v26  ;;  %v9197_v57 = vsel %vm1449_vm1, 0.0, %v2899_v59  ;;  %v9208_v46 = vsel %vm1449_vm1, 0.0, %v2481_v56  ;;  %v11282_v59 = vld [vmem:[#allocation18_spill] sm:$0xff]  ;;  %v9227_v56 = vsel %vm1449_vm1, 0.0, %v2851_v55 }
 0x50e   : > { %11259 = vst [vmem:[#allocation9_spill] sm:$0xff] %v9151_v52  ;;  %v2435_v52 = vrot.slane %v9145_v45, 4  ;;  %v2903_v45 = vrot.slane %v9168_v1, 4  ;;  %v2951_v55 = vrot.slane %v9006_v13, 4 }
 0x50f   : > { %11260 = vst [vmem:[#allocation11_spill] sm:$0xff] %v9154_v16  ;;  %v9172_v16 = vsel %vm1449_vm1, 0.0, %v2433_v49  ;;  %v11271_v49 = vld [vmem:[#allocation46_spill] sm:$0xff]  ;;  %v4381_v26 = vadd.f32 %v4380_v20, %v4379_v60  ;;  %v9219_v20 = vperm.slane %v11282_v59, %v11200_v4  ;;  %v2535_v59 = vrot.slane %v8998_v19, 4  ;;  %v4249_v54 = vpop.xlane.xlu0 %4248 }
 0x510   : > { %11262 = vst [vmem:[#allocation13_spill] sm:$0xff] %v9158_v29 }
 0x511   : > { %11264 = vst [vmem:[#allocation29_spill] sm:$0xff] %v9164_v15 }
 0x512   : > { %11266 = vst [vmem:[#allocation14_spill] sm:$0xff] %v9168_v1  ;;  %v11280_v1 = vld [vmem:[#allocation15_spill] sm:$0xff] }
 0x513   : > { %11267 = vst [vmem:[#allocation30_spill] sm:$0xff] %v9172_v16  ;;  %v9187_v16 = vperm.slane %v11271_v49, %v11200_v4  ;;  %v11277_v49 = vld [vmem:[#allocation48_spill] sm:$0xff]  ;;  %v9215_v60 = vperm.slane %v11280_v1, %v11200_v4  ;;  %v9234_v1 = vsel %vm1449_vm1, 0.0, %v2903_v45  ;;  %v11288_v45 = vld [vmem:[#allocation49_spill] sm:$0xff] }
 0x514   : > { %11268 = vst [vmem:[#allocation31_spill] sm:$0xff] %v9175_v48  ;;  %v9192_v48 = vsel %vm1449_vm1, 0.0, %v2483_v34  ;;  %v9205_v29 = vperm.slane %v11277_v49, %v11200_v4  ;;  %v9211_v34 = vsel %vm1449_vm1, 0.0, %v2897_v37  ;;  %v9224_v49 = vsel %vm1449_vm1, 0.0, %v2435_v52 }
 0x515   : > { %11270 = vst [vmem:[#allocation32_spill] sm:$0xff] %v9183_v5  ;;  %v2901_v15 = vrot.slane %v9187_v16, 4  ;;  %v4382_v37 = vsel %vm3113_vm4, %v4244_v28, 0.0  ;;  %v2585_v28 = vrot.slane %v9215_v60, 4 }
 0x516   : > { %11272 = vst [vmem:[#allocation35_spill] sm:$0xff] %v9187_v16  ;;  %v4383_v5 = vadd.f32 %v4382_v37, %v4381_v26  ;;  %v2533_v16 = vrot.slane %v9201_v51, 4  ;;  %v2949_v52 = vrot.slane %v9205_v29, 4  ;;  %v9248_v26 = vsel %vm1449_vm1, 0.0, %v2485_v11 }
 0x517   : > { %11273 = vst [vmem:[#allocation33_spill] sm:$0xff] %v9192_v48  ;;  %v4254_v48 = vpop.xlane.xlu1 %4253  ;;  %v9251_v37 = vsel %vm1449_vm1, 0.0, %v2901_v15 }
 0x518   : > { %11274 = vst [vmem:[#allocation34_spill] sm:$0xff] %v9197_v57  ;;  %v9231_v57 = vsel %vm1449_vm1, 0.0, %v2487_v47  ;;  %v3001_v47 = vrot.slane %v9219_v20, 4 }
 0x519   : > { %11276 = vst [vmem:[#allocation36_spill] sm:$0xff] %v9201_v51 }
 0x51a   : > { %11278 = vst [vmem:[#allocation37_spill] sm:$0xff] %v9205_v29 }
 0x51b   : > { %11279 = vst [vmem:[#allocation7_spill] sm:$0xff] %v9211_v34 }
 0x51c   : > { %11281 = vst [vmem:[#allocation8_spill] sm:$0xff] %v9215_v60  ;;  %v9259_v60 = vsel %vm1449_vm1, 0.0, %v2535_v59  ;;  %v9279_v59 = vsel %vm1449_vm1, 0.0, %v2585_v28  ;;  %v11309_v28 = vld [vmem:[#allocation54_spill] sm:$0xff] }
 0x51d   : > { %11283 = vst [vmem:[#allocation38_spill] sm:$0xff] %v9219_v20  ;;  %v11295_v20 = vld [vmem:[#allocation51_spill] sm:$0xff] }
 0x51e   : > { %11284 = vst [vmem:[#allocation41_spill] sm:$0xff] %v9224_v49  ;;  %v9245_v49 = vperm.slane %v11288_v45, %v11200_v4  ;;  %v9263_v45 = vperm.slane %v11295_v20, %v11200_v4  ;;  %v9282_v20 = vsel %vm1449_vm1, 0.0, %v3001_v47 }
 0x51f   : > { %11285 = vst [vmem:[#allocation42_spill] sm:$0xff] %v9227_v56  ;;  %v4384_v56 = vsel %vm3113_vm4, %v4249_v54, 0.0  ;;  %v4386_v54 = vsel %vm3113_vm4, %v4254_v48, 0.0  ;;  %v9276_v48 = vsel %vm1449_vm1, 0.0, %v2951_v55 }
 0x520   : > { %11286 = vst [vmem:[#allocation10_spill] sm:$0xff] %v9231_v57  ;;  %v4385_v19 = vadd.f32 %v4384_v56, %v4383_v5  ;;  %v11297_v5 = vld [vmem:[#allocation52_spill] sm:$0xff]  ;;  %v4259_v56 = vpop.xlane.xlu2 %4258  ;;  %v9270_v57 = vsel %vm1449_vm1, 0.0, %v2533_v16  ;;  %v11306_v16 = vld [vmem:[#allocation55_spill] sm:$0xff] }
 0x521   : > { %11287 = vst [vmem:[#allocation12_spill] sm:$0xff] %v9234_v1  ;;  %v11292_v1 = vld [vmem:[#allocation50_spill] sm:$0xff]  ;;  %v9267_v11 = vperm.slane %v11297_v5, %v11200_v4  ;;  %v11304_v5 = vld [vmem:[#allocation53_spill] sm:$0xff] }
 0x522   : > { %11289 = vst [vmem:[#allocation39_spill] sm:$0xff] %v9245_v49  ;;  %v9255_v13 = vperm.slane %v11292_v1, %v11200_v4  ;;  %v4387_v15 = vadd.f32 %v4386_v54, %v4385_v19  ;;  %v9273_v1 = vsel %vm1449_vm1, 0.0, %v2949_v52  ;;  %v2537_v19 = vrot.slane %v9245_v49, 4  ;;  %v11308_v52 = vld [vmem:[#allocation56_spill] sm:$0xff] }
 0x523   : > { %11290 = vst [vmem:[#allocation40_spill] sm:$0xff] %v9248_v26  ;;  %v9291_v54 = vperm.slane %v11306_v16, %v11200_v4  ;;  %v9295_v55 = vperm.slane %v11308_v52, %v11200_v4  ;;  %v3003_v49 = vrot.slane %v9267_v11, 4  ;;  %v11313_v52 = vld [vmem:[#allocation58_spill] sm:$0xff]  ;;  %v11324_v26 = vld [vmem:[#allocation60_spill] sm:$0xff] }
 0x524   : > { %11291 = vst [vmem:[#allocation43_spill] sm:$0xff] %v9251_v37  ;;  %v2953_v47 = vrot.slane %v9255_v13, 4  ;;  %v9311_v29 = vperm.slane %v11313_v52, %v11200_v4  ;;  %v11322_v37 = vld [vmem:[#allocation59_spill] sm:$0xff] }
 0x525   : > { %11293 = vst [vmem:[#allocation44_spill] sm:$0xff] %v9255_v13 }
 0x526   : > { %11294 = vst [vmem:[#allocation45_spill] sm:$0xff] %v9259_v60  ;;  %v9286_v60 = vperm.slane %v11304_v5, %v11200_v4  ;;  %v2587_v5 = vrot.slane %v9263_v45, 4 }
 0x527   : > { %11296 = vst [vmem:[#allocation46_spill] sm:$0xff] %v9263_v45  ;;  %v9323_v45 = vsel %vm1449_vm1, 0.0, %v2537_v19  ;;  %v2589_v19 = vrot.slane %v9291_v54, 4 }
 0x528   : > { %11298 = vst [vmem:[#allocation47_spill] sm:$0xff] %v9267_v11 }
 0x529   : > { %11299 = vst [vmem:[#allocation48_spill] sm:$0xff] %v9270_v57  ;;  %v11311_v57 = vld [vmem:[#allocation57_spill] sm:$0xff] }
 0x52a   : > { %11300 = vst [vmem:[#allocation15_spill] sm:$0xff] %v9273_v1  ;;  %v4388_v1 = vsel %vm3113_vm4, %v4259_v56, 0.0  ;;  %v9307_v16 = vperm.slane %v11311_v57, %v11200_v4  ;;  %v11317_v56 = vld [vmem:[#allocation22_spill] sm:$0xff]  ;;  %v2539_v57 = vrot.slane %v9286_v60, 4 }
 0x52b   : > { %11301 = vst [vmem:[#allocation18_spill] sm:$0xff] %v9276_v48  ;;  %v9299_v48 = vperm.slane %v11309_v28, %v11200_v4  ;;  %v11315_v28 = vld [vmem:[#allocation21_spill] sm:$0xff]  ;;  %v9319_v13 = vperm.slane %v11317_v56, %v11200_v4  ;;  %v9336_v56 = vperm.slane %v11324_v26, %v11200_v4 }
 0x52c   : > { %11302 = vst [vmem:[#allocation49_spill] sm:$0xff] %v9279_v59  ;;  %v4264_v59 = vpop.xlane.xlu0 %4263  ;;  %v9315_v51 = vperm.slane %v11315_v28, %v11200_v4  ;;  %v9332_v28 = vperm.slane %v11322_v37, %v11200_v4  ;;  %v3007_v37 = vrot.slane %v9311_v29, 4 }
 0x52d   : > { %11303 = vst [vmem:[#allocation50_spill] sm:$0xff] %v9282_v20  ;;  %v4389_v20 = vadd.f32 %v4388_v1, %v4387_v15  ;;  %v4390_v11 = vsel %vm3113_vm4, %v4264_v59, 0.0  ;;  %v11320_v15 = vld [vmem:[#allocation16_spill] sm:$0xff]  ;;  %v11326_v59 = vld [vmem:[#allocation17_spill] sm:$0xff]  ;;  %v3053_v26 = vrot.slane %v9319_v13, 4 }
 0x52e   : > { %11305 = vst [vmem:[#allocation51_spill] sm:$0xff] %v9286_v60  ;;  %v9328_v1 = vperm.slane %v11320_v15, %v11200_v4  ;;  %v9340_v34 = vperm.slane %v11326_v59, %v11200_v4  ;;  %v2591_v15 = vrot.slane %v9307_v16, 4  ;;  %v9350_v60 = vsel %vm1449_vm1, 0.0, %v2587_v5 }
 0x52f   : > { %11307 = vst [vmem:[#allocation52_spill] sm:$0xff] %v9291_v54  ;;  %v4391_v52 = vadd.f32 %v4390_v11, %v4389_v20  ;;  %v2955_v11 = vrot.slane %v9299_v48, 4  ;;  %v2637_v20 = vrot.slane %v9315_v51, 4  ;;  %v9353_v59 = vsel %vm1449_vm1, 0.0, %v3003_v49 }
 0x530   : > { %11310 = vst [vmem:[#allocation53_spill] sm:$0xff] %v9299_v48  ;;  %v9356_v54 = vsel %vm1449_vm1, 0.0, %v2953_v47  ;;  %v11328_v48 = vld [vmem:[#allocation19_spill] sm:$0xff]  ;;  %v9367_v5 = vsel %vm1449_vm1, 0.0, %v2589_v19  ;;  %v9373_v47 = vsel %vm1449_vm1, 0.0, %v2539_v57  ;;  %v9388_v19 = vsel %vm1449_vm1, 0.0, %v3053_v26 }
 0x531   : > { %11312 = vst [vmem:[#allocation55_spill] sm:$0xff] %v9307_v16  ;;  %6103 = vrcp.f32 %v4391_v52  ;;  %v2639_v16 = vrot.slane %v9328_v1, 4  ;;  %v9361_v52 = vperm.slane %v11328_v48, %v11200_v4  ;;  %v9379_v48 = vsel %vm1449_vm1, 0.0, %v2591_v15  ;;  %v11334_v57 = vld [vmem:[#allocation61_spill] sm:$0xff]  ;;  %v11335_v15 = vld [vmem:[#allocation62_spill] sm:$0xff] }
 0x532   : > { %11314 = vst [vmem:[#allocation56_spill] sm:$0xff] %v9311_v29  ;;  %v2689_v29 = vrot.slane %v9332_v28, 4 }
 0x533   : > { %11316 = vst [vmem:[#allocation54_spill] sm:$0xff] %v9315_v51  ;;  %v3105_v51 = vrot.slane %v9336_v56, 4 }
 0x534   : > { %11318 = vst [vmem:[#allocation57_spill] sm:$0xff] %v9319_v13  ;;  %v3055_v13 = vrot.slane %v9340_v34, 4  ;;  %v9408_v26 = vsel %vm1449_vm1, 0.0, %v2689_v29 }
 0x535   : > { %11319 = vst [vmem:[#allocation58_spill] sm:$0xff] %v9323_v45  ;;  %v3005_v45 = vrot.slane %v9295_v55, 4 }
 0x536   : > { %11321 = vst [vmem:[#allocation21_spill] sm:$0xff] %v9328_v1  ;;  %v9376_v1 = vsel %vm1449_vm1, 0.0, %v2955_v11  ;;  %v9396_v11 = vperm.slane %v11334_v57, %v11200_v4  ;;  %v9415_v57 = vsel %vm1449_vm1, 0.0, %v3055_v13 }
 0x537   : > { %11323 = vst [vmem:[#allocation22_spill] sm:$0xff] %v9332_v28  ;;  %v9370_v49 = vsel %vm1449_vm1, 0.0, %v3005_v45  ;;  %v9382_v28 = vsel %vm1449_vm1, 0.0, %v3007_v37  ;;  %v11333_v45 = vld [vmem:[#allocation20_spill] sm:$0xff]  ;;  %v9403_v37 = vsel %vm1449_vm1, 0.0, %v2639_v16 }
 0x538   : > { %11325 = vst [vmem:[#allocation16_spill] sm:$0xff] %v9336_v56  ;;  %v9392_v56 = vperm.slane %v11333_v45, %v11200_v4 }
 0x539   : > { %11327 = vst [vmem:[#allocation59_spill] sm:$0xff] %v9340_v34  ;;  %v9385_v34 = vsel %vm1449_vm1, 0.0, %v2637_v20  ;;  %v9405_v20 = vpop.eup %6103 }
 0x53a   : > { %11329 = vst [vmem:[#allocation60_spill] sm:$0xff] %v9373_v47  ;;  %v4410_v16 = vmul.f32 %v9405_v20, %v8215_v12  ;;  %v4396_v29 = vmul.f32 %v9405_v20, %v8137_v62  ;;  %v4394_v45 = vmul.f32 %v9405_v20, %v8193_v63  ;;  %v4413_v13 = vmul.f32 %v9405_v20, %v8255_v0 }
 0x53b   : > { %11330 = vst [vmem:[#allocation17_spill] sm:$0xff] %v9376_v1  ;;  %v9400_v1 = vperm.slane %v11335_v15, %v11200_v4  ;;  %v4409_v15 = vmul.f32 %v9405_v20, %v8211_v2  ;;  %v4414_v2 = vmul.f32 %v9405_v20, %v8259_v6 }
 0x53c   : > { %11331 = vst [vmem:[#allocation19_spill] sm:$0xff] %v9385_v34  ;;  %v4538_v12 = vadd.f32 1.0, %v4410_v16  ;;  %v4522_v4 = vadd.f32 1.0, %v4394_v45  ;;  %v4541_v34 = vadd.f32 1.0, %v4413_v13 }
 0x53d   : > { %11332 = vst [vmem:[#allocation200_spill] sm:$0xff] %v9388_v19  ;;  %v9411_v19 = vsel %vm1449_vm1, 0.0, %v3105_v51  ;;  %v4393_v51 = vmul.f32 %v9405_v20, %v8189_v39  ;;  %v4542_v62 = vadd.f32 1.0, %v4414_v2 }
 0x53e   : > { %11336 = vst [vmem:[#allocation20_spill] sm:$0xff] %v9400_v1  ;;  %v4666_v39 = vmul.f32 %v4538_v12, %v9036_v23  ;;  %v4650_v6 = vmul.f32 %v4522_v4, %v8964_v24 }
 0x53f   : > { %11337 = vst [vmem:[#allocation61_spill] sm:$0xff] %v9403_v37  ;;  %v4395_v37 = vmul.f32 %v9405_v20, %v8135_v31  ;;  %v4521_v31 = vadd.f32 1.0, %v4393_v51  ;;  %v4401_v51 = vmul.f32 %v9405_v20, %v8199_v33 }
 0x540   : > { %11338 = vst [vmem:[#allocation62_spill] sm:$0xff] %v9408_v26  ;;  %v4524_v26 = vadd.f32 1.0, %v4396_v29  ;;  %v4818_v16 = vsel %vm3113_vm4, %v4666_v39, -inf  ;;  %v4412_v29 = vmul.f32 %v9405_v20, %v8285_v9 }
 0x541   : > { %11339 = vst [vmem:[#allocation201_spill] sm:$0xff] %v9411_v19  ;;  %v4523_v19 = vadd.f32 1.0, %v4395_v37  ;;  %v4649_v0 = vmul.f32 %v4521_v31, %v8952_v27  ;;  %v4670_v37 = vmul.f32 %v4542_v62, %v9010_v22  ;;  %v4778_v27 = vsel %vm3113_vm4, %v4650_v6, -inf }
 0x542   : > { %11340 = vst [vmem:[#allocation202_spill] sm:$0xff] %v9415_v57  ;;  %v4537_v57 = vadd.f32 1.0, %v4409_v15  ;;  %v4652_v47 = vmul.f32 %v4524_v26, %v9025_v43  ;;  %v4669_v15 = vmul.f32 %v4541_v34, %v9002_v38  ;;  %v4397_v22 = vmul.f32 %v9405_v20, %v8125_v32 }
 0x543   : > { %v4651_v63 = vmul.f32 %v4523_v19, %v9016_v35  ;;  %v4777_v43 = vsel %vm3113_vm4, %v4649_v0, -inf  ;;  %v4828_v24 = vsel %vm3113_vm4, %v4670_v37, -inf  ;;  %v4398_v34 = vmul.f32 %v9405_v20, %v8127_v50 }
 0x544   : > { %v4665_v1 = vmul.f32 %v4537_v57, %v9032_v10  ;;  %v4783_v23 = vsel %vm3113_vm4, %v4652_v47, -inf  ;;  %v4779_v19 = vmax.f32 %v4777_v43, %v4778_v27  ;;  %v4827_v4 = vsel %vm3113_vm4, %v4669_v15, -inf  ;;  %v11341_v43 = vld [vmem:[#allocation75_spill] sm:$0xff] }
 0x545   : > { %v4782_v10 = vsel %vm3113_vm4, %v4651_v63, -inf  ;;  %v4829_v38 = vmax.f32 %v4827_v4, %v4828_v24  ;;  %v3107_v47 = vrot.slane %v9392_v56, 4  ;;  %v4525_v26 = vadd.f32 1.0, %v4397_v22  ;;  %v11343_v24 = vld [vmem:[#allocation199_spill] sm:$0xff] }
 0x546   : > { %v4817_v45 = vsel %vm3113_vm4, %v4665_v1, -inf  ;;  %v4784_v35 = vmax.f32 %v4782_v10, %v4783_v23  ;;  %v4411_v1 = vmul.f32 %v9405_v20, %v8281_v40  ;;  %4780 = vmax.xlane.f32.xlu1 %v4779_v19  ;;  %v4402_v32 = vmul.f32 %v9405_v20, %v8205_v18  ;;  %v11342_v19 = vld [vmem:[#allocation198_spill] sm:$0xff] }
 0x547   : > { %v4819_v57 = vmax.f32 %v4817_v45, %v4818_v16  ;;  %v4526_v13 = vadd.f32 1.0, %v4398_v34  ;;  %v4415_v50 = vmul.f32 %v9405_v20, %v8227_v21  ;;  %v4416_v40 = vmul.f32 %v9405_v20, %v8231_v25 }
 0x548   : > { %4785 = vmax.xlane.f32.xlu2 %v4784_v35  ;;  %v4539_v2 = vadd.f32 1.0, %v4411_v1  ;;  %v4653_v12 = vmul.f32 %v4525_v26, %v8956_v41  ;;  %v4540_v31 = vadd.f32 1.0, %v4412_v29  ;;  %v4529_v62 = vadd.f32 1.0, %v4401_v51 }
 0x549   : > { %4820 = vmax.xlane.f32.xlu0 %v4819_v57  ;;  %v4530_v39 = vadd.f32 1.0, %v4402_v32  ;;  %v4654_v9 = vmul.f32 %v4526_v13, %v8960_v7  ;;  %v4543_v63 = vadd.f32 1.0, %v4415_v50  ;;  %v4544_v0 = vadd.f32 1.0, %v4416_v40  ;;  %v11347_v40 = vld [vmem:[#allocation191_spill] sm:$0xff] }
 0x54a   : > { %v4667_v33 = vmul.f32 %v4539_v2, %v9108_v36  ;;  %v4787_v18 = vsel %vm3113_vm4, %v4653_v12, -inf  ;;  %v4668_v6 = vmul.f32 %v4540_v31, %v9111_v14  ;;  %v4657_v21 = vmul.f32 %v4529_v62, %v8969_v30  ;;  %v11346_v2 = vld [vmem:[#allocation190_spill] sm:$0xff] }
 0x54b   : > { %v4658_v15 = vmul.f32 %v4530_v39, %v8973_v53  ;;  %v4788_v25 = vsel %vm3113_vm4, %v4654_v9, -inf  ;;  %v4671_v37 = vmul.f32 %v4543_v63, %v9072_v3  ;;  %v4672_v7 = vmul.f32 %v4544_v0, %v9079_v17  ;;  %v11348_v9 = vld [vmem:[#allocation177_spill] sm:$0xff]  ;;  %v11349_v63 = vld [vmem:[#allocation184_spill] sm:$0xff] }
 0x54c   : > { %v4822_v41 = vsel %vm3113_vm4, %v4667_v33, -inf  ;;  %v4789_v45 = vmax.f32 %v4787_v18, %v4788_v25  ;;  %v4823_v36 = vsel %vm3113_vm4, %v4668_v6, -inf  ;;  %v4797_v16 = vsel %vm3113_vm4, %v4657_v21, -inf  ;;  %v11350_v18 = vld [vmem:[#allocation185_spill] sm:$0xff] }
 0x54d   : > { %v4798_v10 = vsel %vm3113_vm4, %v4658_v15, -inf  ;;  %v4824_v14 = vmax.f32 %v4822_v41, %v4823_v36  ;;  %v4832_v53 = vsel %vm3113_vm4, %v4671_v37, -inf  ;;  %v4833_v23 = vsel %vm3113_vm4, %v4672_v7, -inf  ;;  %v11351_v41 = vld [vmem:[#allocation186_spill] sm:$0xff] }
 0x54e   : > { %v4799_v30 = vmax.f32 %v4797_v16, %v4798_v10  ;;  %v4834_v57 = vmax.f32 %v4832_v53, %v4833_v23  ;;  %v4399_v3 = vmul.f32 %v9405_v20, %v8179_v61  ;;  %v4400_v17 = vmul.f32 %v9405_v20, %v8181_v58  ;;  %v11345_v58 = vld [vmem:[#allocation73_spill] sm:$0xff]  ;;  %v11352_v23 = vld [vmem:[#allocation70_spill] sm:$0xff] }
 0x54f   : > { %v4419_v35 = vmul.f32 %v9405_v20, %v8291_v8  ;;  %4825 = vmax.xlane.f32.xlu1 %v4824_v14  ;;  %v4420_v27 = vmul.f32 %v9405_v20, %v11341_v43  ;;  %v4403_v4 = vmul.f32 %v9405_v20, %v11342_v19  ;;  %v4404_v22 = vmul.f32 %v9405_v20, %v11343_v24  ;;  %v11356_v19 = vld [vmem:[#allocation74_spill] sm:$0xff]  ;;  %v11357_v24 = vld [vmem:[#allocation76_spill] sm:$0xff] }
 0x550   : > { %4790 = vmax.xlane.f32.xlu2 %v4789_v45  ;;  %v4527_v61 = vadd.f32 1.0, %v4399_v3  ;;  %v4528_v1 = vadd.f32 1.0, %v4400_v17  ;;  %v4418_v29 = vmul.f32 %v9405_v20, %v11345_v58  ;;  %v4407_v3 = vmul.f32 %v9405_v20, %v11352_v23  ;;  %v11359_v58 = vld [vmem:[#allocation84_spill] sm:$0xff] }
 0x551   : > { %4830 = vmax.xlane.f32.xlu0 %v4829_v38  ;;  %v11344_v38 = vld [vmem:[#allocation72_spill] sm:$0xff]  ;;  %v4547_v26 = vadd.f32 1.0, %v4419_v35  ;;  %v4548_v8 = vadd.f32 1.0, %v4420_v27  ;;  %v4531_v51 = vadd.f32 1.0, %v4403_v4  ;;  %v4532_v32 = vadd.f32 1.0, %v4404_v22  ;;  %v11355_v27 = vld [vmem:[#allocation81_spill] sm:$0xff] }
 0x552   : > { %v4417_v34 = vmul.f32 %v9405_v20, %v11344_v38  ;;  %v4655_v50 = vmul.f32 %v4527_v61, %v11346_v2  ;;  %v4656_v12 = vmul.f32 %v4528_v1, %v11347_v40  ;;  %v4546_v62 = vadd.f32 1.0, %v4418_v29  ;;  %v11354_v35 = vld [vmem:[#allocation80_spill] sm:$0xff]  ;;  %v11358_v38 = vld [vmem:[#allocation78_spill] sm:$0xff]  ;;  %v11360_v2 = vld [vmem:[#allocation187_spill] sm:$0xff] }
 0x553   : > { %v4675_v31 = vmul.f32 %v4547_v26, %v9119_v44  ;;  %v4676_v39 = vmul.f32 %v4548_v8, %v9128_v42  ;;  %v4659_v33 = vmul.f32 %v4531_v51, %v11348_v9  ;;  %v4660_v0 = vmul.f32 %v4532_v32, %v11349_v63  ;;  %v11361_v40 = vld [vmem:[#allocation194_spill] sm:$0xff]  ;;  %v11363_v9 = vld [vmem:[#allocation193_spill] sm:$0xff] }
 0x554   : > { %v4545_v13 = vadd.f32 1.0, %v4417_v34  ;;  %v4792_v21 = vsel %vm3113_vm4, %v4655_v50, -inf  ;;  %v4793_v15 = vsel %vm3113_vm4, %v4656_v12, -inf  ;;  %v4674_v37 = vmul.f32 %v4546_v62, %v11351_v41  ;;  %v11364_v63 = vld [vmem:[#allocation181_spill] sm:$0xff] }
 0x555   : > { %v4842_v25 = vsel %vm3113_vm4, %v4675_v31, -inf  ;;  %v4794_v7 = vmax.f32 %v4792_v21, %v4793_v15  ;;  %v4843_v44 = vsel %vm3113_vm4, %v4676_v39, -inf  ;;  %v4802_v42 = vsel %vm3113_vm4, %v4659_v33, -inf  ;;  %v11362_v31 = vld [vmem:[#allocation192_spill] sm:$0xff]  ;;  %v11366_v21 = vld [vmem:[#allocation26_spill] sm:$0xff] }
 0x556   : > { %v4673_v6 = vmul.f32 %v4545_v13, %v11350_v18  ;;  %v4803_v45 = vsel %vm3113_vm4, %v4660_v0, -inf  ;;  %v4844_v36 = vmax.f32 %v4842_v25, %v4843_v44  ;;  %v4838_v14 = vsel %vm3113_vm4, %v4674_v37, -inf  ;;  %v11365_v18 = vld [vmem:[#allocation174_spill] sm:$0xff] }
 0x557   : > { %v4804_v16 = vmax.f32 %v4802_v42, %v4803_v45  ;;  %4795 = vmax.xlane.f32.xlu1 %v4794_v7  ;;  %v4421_v43 = vmul.f32 %v9405_v20, %v11354_v35  ;;  %v4405_v4 = vmul.f32 %v9405_v20, %v11356_v19  ;;  %v4406_v22 = vmul.f32 %v9405_v20, %v11357_v24  ;;  %v11367_v7 = vld [vmem:[#allocation9_spill] sm:$0xff] }
 0x558   : > { %4835 = vmax.xlane.f32.xlu2 %v4834_v57  ;;  %v4837_v10 = vsel %vm3113_vm4, %v4673_v6, -inf  ;;  %v4422_v57 = vmul.f32 %v9405_v20, %v11355_v27  ;;  %v4427_v34 = vmul.f32 %v9405_v20, %v11358_v38  ;;  %v4535_v61 = vadd.f32 1.0, %v4407_v3  ;;  %v11368_v35 = vld [vmem:[#allocation77_spill] sm:$0xff]  ;;  %v11369_v27 = vld [vmem:[#allocation79_spill] sm:$0xff]  ;;  %v11373_v38 = vld [vmem:[#allocation98_spill] sm:$0xff] }
 0x559   : > { %4800 = vmax.xlane.f32.xlu0 %v4799_v30  ;;  %v4839_v53 = vmax.f32 %v4837_v10, %v4838_v14  ;;  %v11353_v30 = vld [vmem:[#allocation71_spill] sm:$0xff]  ;;  %v4549_v26 = vadd.f32 1.0, %v4421_v43  ;;  %v4428_v29 = vmul.f32 %v9405_v20, %v11359_v58  ;;  %v4533_v51 = vadd.f32 1.0, %v4405_v4  ;;  %v11371_v4 = vld [vmem:[#allocation92_spill] sm:$0xff] }
 0x55a   : > { %v4408_v17 = vmul.f32 %v9405_v20, %v11353_v30  ;;  %v4550_v8 = vadd.f32 1.0, %v4422_v57  ;;  %v4534_v32 = vadd.f32 1.0, %v4406_v22  ;;  %v4555_v13 = vadd.f32 1.0, %v4427_v34  ;;  %v11370_v57 = vld [vmem:[#allocation85_spill] sm:$0xff] }
 0x55b   : > { %v4663_v50 = vmul.f32 %v4535_v61, %v11360_v2  ;;  %v4677_v62 = vmul.f32 %v4549_v26, %v11362_v31  ;;  %v4556_v39 = vadd.f32 1.0, %v4428_v29  ;;  %v4661_v0 = vmul.f32 %v4533_v51, %v11364_v63  ;;  %v11374_v61 = vld [vmem:[#allocation107_spill] sm:$0xff]  ;;  %v11377_v31 = vld [vmem:[#allocation189_spill] sm:$0xff]  ;;  %v11379_v63 = vld [vmem:[#allocation24_spill] sm:$0xff] }
 0x55c   : > { %v4536_v1 = vadd.f32 1.0, %v4408_v17  ;;  %v4678_v33 = vmul.f32 %v4550_v8, %v11363_v9  ;;  %v4662_v6 = vmul.f32 %v4534_v32, %v11365_v18  ;;  %v4683_v15 = vmul.f32 %v4555_v13, %v11366_v21  ;;  %v11375_v8 = vld [vmem:[#allocation94_spill] sm:$0xff]  ;;  %v11380_v18 = vld [vmem:[#allocation195_spill] sm:$0xff]  ;;  %v11381_v21 = vld [vmem:[#allocation196_spill] sm:$0xff] }
 0x55d   : > { %v4812_v25 = vsel %vm3113_vm4, %v4663_v50, -inf  ;;  %v4847_v37 = vsel %vm3113_vm4, %v4677_v62, -inf  ;;  %v4684_v44 = vmul.f32 %v4556_v39, %v11367_v7  ;;  %v4807_v10 = vsel %vm3113_vm4, %v4661_v0, -inf  ;;  %v11378_v39 = vld [vmem:[#allocation23_spill] sm:$0xff] }
 0x55e   : > { %v4664_v12 = vmul.f32 %v4536_v1, %v11361_v40  ;;  %v4848_v45 = vsel %vm3113_vm4, %v4678_v33, -inf  ;;  %v4808_v14 = vsel %vm3113_vm4, %v4662_v6, -inf  ;;  %v4425_v43 = vmul.f32 %v9405_v20, %v11368_v35  ;;  %v11376_v40 = vld [vmem:[#allocation188_spill] sm:$0xff] }
 0x55f   : > { %4840 = vmax.xlane.f32.xlu1 %v4839_v53  ;;  %v4849_v23 = vmax.f32 %v4847_v37, %v4848_v45  ;;  %v4809_v3 = vmax.f32 %v4807_v10, %v4808_v14  ;;  %v4863_v30 = vsel %vm3113_vm4, %v4684_v44, -inf  ;;  %v4423_v19 = vmul.f32 %v9405_v20, %v11370_v57  ;;  %v11372_v53 = vld [vmem:[#allocation89_spill] sm:$0xff]  ;;  %v11382_v44 = vld [vmem:[#allocation7_spill] sm:$0xff]  ;;  %v11384_v57 = vld [vmem:[#allocation108_spill] sm:$0xff] }
 0x560   : > { %v4813_v41 = vsel %vm3113_vm4, %v4664_v12, -inf  ;;  %4805 = vmax.xlane.f32.xlu2 %v4804_v16  ;;  %v4426_v16 = vmul.f32 %v9405_v20, %v11369_v27  ;;  %v4424_v24 = vmul.f32 %v9405_v20, %v11371_v4  ;;  %v4429_v22 = vmul.f32 %v9405_v20, %v11372_v53  ;;  %v11383_v27 = vld [vmem:[#allocation103_spill] sm:$0xff] }
 0x561   : > { %4845 = vmax.xlane.f32.xlu0 %v4844_v36  ;;  %v4814_v42 = vmax.f32 %v4812_v25, %v4813_v41  ;;  %v4862_v36 = vsel %vm3113_vm4, %v4683_v15, -inf  ;;  %v4430_v34 = vmul.f32 %v9405_v20, %v11373_v38  ;;  %v4443_v1 = vmul.f32 %v9405_v20, %v11374_v61 }
 0x562   : > { %v4864_v17 = vmax.f32 %v4862_v36, %v4863_v30  ;;  %v4553_v26 = vadd.f32 1.0, %v4425_v43  ;;  %v4554_v58 = vadd.f32 1.0, %v4426_v16  ;;  %v4551_v29 = vadd.f32 1.0, %v4423_v19  ;;  %v11385_v19 = vld [vmem:[#allocation111_spill] sm:$0xff] }
 0x563   : > { %v4444_v51 = vmul.f32 %v9405_v20, %v11375_v8  ;;  %v4552_v32 = vadd.f32 1.0, %v4424_v24  ;;  %v4557_v13 = vadd.f32 1.0, %v4429_v22  ;;  %v4558_v2 = vadd.f32 1.0, %v4430_v34  ;;  %v11386_v24 = vld [vmem:[#allocation118_spill] sm:$0xff]  ;;  %v11387_v22 = vld [vmem:[#allocation93_spill] sm:$0xff] }
 0x564   : > { %v4571_v50 = vadd.f32 1.0, %v4443_v1  ;;  %v4681_v12 = vmul.f32 %v4553_v26, %v11376_v40  ;;  %v4682_v62 = vmul.f32 %v4554_v58, %v11377_v31  ;;  %v4679_v9 = vmul.f32 %v4551_v29, %v11378_v39  ;;  %v11388_v34 = vld [vmem:[#allocation82_spill] sm:$0xff]  ;;  %v11389_v1 = vld [vmem:[#allocation91_spill] sm:$0xff] }
 0x565   : > { %v4572_v33 = vadd.f32 1.0, %v4444_v51  ;;  %v4680_v0 = vmul.f32 %v4552_v32, %v11379_v63  ;;  %v4685_v6 = vmul.f32 %v4557_v13, %v11380_v18  ;;  %v4686_v15 = vmul.f32 %v4558_v2, %v11381_v21  ;;  %v11390_v51 = vld [vmem:[#allocation96_spill] sm:$0xff] }
 0x566   : > { %v4699_v25 = vmul.f32 %v4571_v50, %v9208_v46  ;;  %v4857_v41 = vsel %vm3113_vm4, %v4681_v12, -inf  ;;  %v4858_v37 = vsel %vm3113_vm4, %v4682_v62, -inf  ;;  %v4852_v7 = vsel %vm3113_vm4, %v4679_v9, -inf  ;;  %v11391_v12 = vld [vmem:[#allocation6_spill] sm:$0xff]  ;;  %v11392_v62 = vld [vmem:[#allocation27_spill] sm:$0xff]  ;;  %v11393_v9 = vld [vmem:[#allocation33_spill] sm:$0xff] }
 0x567   : > { %v4700_v45 = vmul.f32 %v4572_v33, %v11382_v44  ;;  %4810 = vmax.xlane.f32.xlu1 %v4809_v3  ;;  %v4859_v10 = vmax.f32 %v4857_v41, %v4858_v37  ;;  %v4867_v14 = vsel %vm3113_vm4, %v4685_v6, -inf  ;;  %v4868_v36 = vsel %vm3113_vm4, %v4686_v15, -inf  ;;  %v11395_v6 = vld [vmem:[#allocation28_spill] sm:$0xff]  ;;  %v11396_v15 = vld [vmem:[#allocation11_spill] sm:$0xff] }
 0x568   : > { %4850 = vmax.xlane.f32.xlu2 %v4849_v23  ;;  %v4869_v35 = vmax.f32 %v4867_v14, %v4868_v36  ;;  %v4902_v46 = vsel %vm3113_vm4, %v4699_v25, -inf  ;;  %v4441_v16 = vmul.f32 %v9405_v20, %v11383_v27  ;;  %v4442_v3 = vmul.f32 %v9405_v20, %v11384_v57  ;;  %v11397_v41 = vld [vmem:[#allocation175_spill] sm:$0xff] }
 0x569   : > { %4815 = vmax.xlane.f32.xlu0 %v4814_v42  ;;  %v4853_v42 = vsel %vm3113_vm4, %v4680_v0, -inf  ;;  %v4903_v23 = vsel %vm3113_vm4, %v4700_v45, -inf  ;;  %v4447_v4 = vmul.f32 %v9405_v20, %v11385_v19  ;;  %v4448_v53 = vmul.f32 %v9405_v20, %v11386_v24  ;;  %v11394_v0 = vld [vmem:[#allocation34_spill] sm:$0xff]  ;;  %v11398_v45 = vld [vmem:[#allocation176_spill] sm:$0xff] }
 0x56a   : > { %v4854_v30 = vmax.f32 %v4852_v7, %v4853_v42  ;;  %v4904_v43 = vmax.f32 %v4902_v46, %v4903_v23  ;;  %v4431_v38 = vmul.f32 %v9405_v20, %v11387_v22  ;;  %v4432_v61 = vmul.f32 %v9405_v20, %v11388_v34 }
 0x56b   : > { %v4445_v26 = vmul.f32 %v9405_v20, %v11389_v1  ;;  %v4569_v58 = vadd.f32 1.0, %v4441_v16  ;;  %v4570_v29 = vadd.f32 1.0, %v4442_v3  ;;  %v4575_v8 = vadd.f32 1.0, %v4447_v4  ;;  %v11399_v3 = vld [vmem:[#allocation97_spill] sm:$0xff]  ;;  %v11400_v4 = vld [vmem:[#allocation106_spill] sm:$0xff] }
 0x56c   : > { %v4446_v32 = vmul.f32 %v9405_v20, %v11390_v51  ;;  %v4576_v13 = vadd.f32 1.0, %v4448_v53  ;;  %v4559_v2 = vadd.f32 1.0, %v4431_v38  ;;  %v4560_v50 = vadd.f32 1.0, %v4432_v61  ;;  %v11401_v53 = vld [vmem:[#allocation110_spill] sm:$0xff]  ;;  %v11402_v38 = vld [vmem:[#allocation101_spill] sm:$0xff] }
 0x56d   : > { %v4573_v40 = vadd.f32 1.0, %v4445_v26  ;;  %v4697_v31 = vmul.f32 %v4569_v58, %v11391_v12  ;;  %v4698_v39 = vmul.f32 %v4570_v29, %v11392_v62  ;;  %v4703_v33 = vmul.f32 %v4575_v8, %v11393_v9  ;;  %v11403_v61 = vld [vmem:[#allocation86_spill] sm:$0xff]  ;;  %v11404_v26 = vld [vmem:[#allocation88_spill] sm:$0xff] }
 0x56e   : > { %v4574_v63 = vadd.f32 1.0, %v4446_v32  ;;  %v4704_v18 = vmul.f32 %v4576_v13, %v11394_v0  ;;  %v4687_v21 = vmul.f32 %v4559_v2, %v11395_v6  ;;  %v4688_v25 = vmul.f32 %v4560_v50, %v11396_v15  ;;  %v11405_v29 = vld [vmem:[#allocation114_spill] sm:$0xff]  ;;  %v11406_v2 = vld [vmem:[#allocation120_spill] sm:$0xff] }
 0x56f   : > { %v4701_v37 = vmul.f32 %v4573_v40, %v11397_v41  ;;  %4855 = vmax.xlane.f32.xlu1 %v4854_v30  ;;  %v4897_v7 = vsel %vm3113_vm4, %v4697_v31, -inf  ;;  %v4912_v44 = vsel %vm3113_vm4, %v4703_v33, -inf  ;;  %v4435_v19 = vmul.f32 %v9405_v20, %v11399_v3  ;;  %v11408_v33 = vld [vmem:[#allocation31_spill] sm:$0xff]  ;;  %v11409_v0 = vld [vmem:[#allocation32_spill] sm:$0xff] }
 0x570   : > { %4860 = vmax.xlane.f32.xlu2 %v4859_v10  ;;  %v4702_v42 = vmul.f32 %v4574_v63, %v11398_v45  ;;  %v4913_v10 = vsel %vm3113_vm4, %v4704_v18, -inf  ;;  %v4872_v36 = vsel %vm3113_vm4, %v4687_v21, -inf  ;;  %v4873_v46 = vsel %vm3113_vm4, %v4688_v25, -inf  ;;  %v11410_v21 = vld [vmem:[#allocation35_spill] sm:$0xff]  ;;  %v11411_v25 = vld [vmem:[#allocation197_spill] sm:$0xff] }
 0x571   : > { %4865 = vmax.xlane.f32.xlu0 %v4864_v17  ;;  %v4898_v17 = vsel %vm3113_vm4, %v4698_v39, -inf  ;;  %v4914_v23 = vmax.f32 %v4912_v44, %v4913_v10  ;;  %v4874_v27 = vmax.f32 %v4872_v36, %v4873_v46  ;;  %v4907_v16 = vsel %vm3113_vm4, %v4701_v37, -inf  ;;  %v11407_v39 = vld [vmem:[#allocation30_spill] sm:$0xff]  ;;  %v11412_v37 = vld [vmem:[#allocation5_spill] sm:$0xff] }
 0x572   : > { %v4899_v14 = vmax.f32 %v4897_v7, %v4898_v17  ;;  %v4908_v30 = vsel %vm3113_vm4, %v4702_v42, -inf  ;;  %v4436_v24 = vmul.f32 %v9405_v20, %v11400_v4  ;;  %v4449_v22 = vmul.f32 %v9405_v20, %v11401_v53  ;;  %v11414_v42 = vld [vmem:[#allocation14_spill] sm:$0xff]  ;;  %v11415_v53 = vld [vmem:[#allocation99_spill] sm:$0xff] }
 0x573   : > { %v4909_v57 = vmax.f32 %v4907_v16, %v4908_v30  ;;  %v4450_v34 = vmul.f32 %v9405_v20, %v11402_v38  ;;  %v4433_v1 = vmul.f32 %v9405_v20, %v11403_v61  ;;  %v4434_v58 = vmul.f32 %v9405_v20, %v11404_v26  ;;  %v11416_v38 = vld [vmem:[#allocation90_spill] sm:$0xff]  ;;  %v11417_v61 = vld [vmem:[#allocation95_spill] sm:$0xff]  ;;  %v11418_v26 = vld [vmem:[#allocation100_spill] sm:$0xff] }
 0x574   : > { %v4453_v8 = vmul.f32 %v9405_v20, %v11405_v29  ;;  %v4563_v51 = vadd.f32 1.0, %v4435_v19  ;;  %v4564_v32 = vadd.f32 1.0, %v4436_v24  ;;  %v4577_v13 = vadd.f32 1.0, %v4449_v22  ;;  %v11419_v29 = vld [vmem:[#allocation102_spill] sm:$0xff] }
 0x575   : > { %v4454_v50 = vmul.f32 %v9405_v20, %v11406_v2  ;;  %v4578_v40 = vadd.f32 1.0, %v4450_v34  ;;  %v4561_v12 = vadd.f32 1.0, %v4433_v1  ;;  %v4562_v31 = vadd.f32 1.0, %v4434_v58 }
 0x576   : > { %v4581_v62 = vadd.f32 1.0, %v4453_v8  ;;  %v4691_v9 = vmul.f32 %v4563_v51, %v11407_v39  ;;  %v4692_v63 = vmul.f32 %v4564_v32, %v11408_v33  ;;  %v4705_v18 = vmul.f32 %v4577_v13, %v11409_v0  ;;  %v11420_v51 = vld [vmem:[#allocation109_spill] sm:$0xff]  ;;  %v11421_v13 = vld [vmem:[#allocation119_spill] sm:$0xff] }
 0x577   : > { %v4582_v6 = vadd.f32 1.0, %v4454_v50  ;;  %4900 = vmax.xlane.f32.xlu1 %v4899_v14  ;;  %v4706_v15 = vmul.f32 %v4578_v40, %v11410_v21  ;;  %v4689_v41 = vmul.f32 %v4561_v12, %v11411_v25  ;;  %v4690_v7 = vmul.f32 %v4562_v31, %v11412_v37  ;;  %v11422_v31 = vld [vmem:[#allocation104_spill] sm:$0xff]  ;;  %v11423_v0 = vld [vmem:[#allocation25_spill] sm:$0xff] }
 0x578   : > { %4905 = vmax.xlane.f32.xlu2 %v4904_v43  ;;  %v4882_v44 = vsel %vm3113_vm4, %v4691_v9, -inf  ;;  %v4883_v43 = vsel %vm3113_vm4, %v4692_v63, -inf  ;;  %v4917_v45 = vsel %vm3113_vm4, %v4705_v18, -inf  ;;  %v4437_v22 = vmul.f32 %v9405_v20, %v11415_v53 }
 0x579   : > { %4870 = vmax.xlane.f32.xlu0 %v4869_v35  ;;  %v11413_v35 = vld [vmem:[#allocation29_spill] sm:$0xff]  ;;  %v4710_v10 = vmul.f32 %v4582_v6, %v11414_v42  ;;  %v4884_v36 = vmax.f32 %v4882_v44, %v4883_v43  ;;  %v4918_v46 = vsel %vm3113_vm4, %v4706_v15, -inf  ;;  %v4877_v14 = vsel %vm3113_vm4, %v4689_v41, -inf  ;;  %v11425_v15 = vld [vmem:[#allocation40_spill] sm:$0xff]  ;;  %v11429_v43 = vld [vmem:[#allocation10_spill] sm:$0xff] }
 0x57a   : > { %v4709_v17 = vmul.f32 %v4581_v62, %v11413_v35  ;;  %v4878_v16 = vsel %vm3113_vm4, %v4690_v7, -inf  ;;  %v4919_v30 = vmax.f32 %v4917_v45, %v4918_v46  ;;  %v4438_v34 = vmul.f32 %v9405_v20, %v11416_v38  ;;  %v11424_v6 = vld [vmem:[#allocation13_spill] sm:$0xff]  ;;  %v11427_v7 = vld [vmem:[#allocation36_spill] sm:$0xff] }
 0x57b   : > { %v4879_v3 = vmax.f32 %v4877_v14, %v4878_v16  ;;  %v9644_v4 = vsel %vm3113_vm4, %v4710_v10, -inf  ;;  %v4451_v1 = vmul.f32 %v9405_v20, %v11417_v61  ;;  %v4452_v58 = vmul.f32 %v9405_v20, %v11418_v26  ;;  %v11430_v10 = vld [vmem:[#allocation12_spill] sm:$0xff] }
 0x57c   : > { %v9641_v19 = vsel %vm3113_vm4, %v4709_v17, -inf  ;;  %v4457_v8 = vmul.f32 %v9405_v20, %v11419_v29  ;;  %v4458_v32 = vmul.f32 %v9405_v20, %v11420_v51  ;;  %v4455_v2 = vmul.f32 %v9405_v20, %v11421_v13  ;;  %v11428_v17 = vld [vmem:[#allocation37_spill] sm:$0xff] }
 0x57d   : > { %v4929_v24 = vmax.f32 %v9641_v19, %v9644_v4  ;;  %v4565_v50 = vadd.f32 1.0, %v4437_v22  ;;  %v4566_v40 = vadd.f32 1.0, %v4438_v34  ;;  %v4579_v12 = vadd.f32 1.0, %v4451_v1  ;;  %v11452_v4 = vld [vmem:[#allocation113_spill] sm:$0xff] }
 0x57e   : > { %v4456_v62 = vmul.f32 %v9405_v20, %v11422_v31  ;;  %v4580_v39 = vadd.f32 1.0, %v4452_v58  ;;  %v4585_v9 = vadd.f32 1.0, %v4457_v8  ;;  %v4586_v33 = vadd.f32 1.0, %v4458_v32  ;;  %v11431_v58 = vld [vmem:[#allocation83_spill] sm:$0xff]  ;;  %v11433_v32 = vld [vmem:[#allocation117_spill] sm:$0xff]  ;;  %v11436_v31 = vld [vmem:[#allocation124_spill] sm:$0xff] }
 0x57f   : > { %v4583_v63 = vadd.f32 1.0, %v4455_v2  ;;  %4910 = vmax.xlane.f32.xlu1 %v4909_v57  ;;  %v4693_v18 = vmul.f32 %v4565_v50, %v11423_v0  ;;  %v4694_v21 = vmul.f32 %v4566_v40, %v11424_v6  ;;  %v4707_v25 = vmul.f32 %v4579_v12, %v11425_v15  ;;  %v11432_v8 = vld [vmem:[#allocation87_spill] sm:$0xff]  ;;  %v11434_v2 = vld [vmem:[#allocation125_spill] sm:$0xff] }
 0x580   : > { %4875 = vmax.xlane.f32.xlu2 %v4874_v27  ;;  %v4584_v41 = vadd.f32 1.0, %v4456_v62  ;;  %v4713_v35 = vmul.f32 %v4585_v9, %v11427_v7  ;;  %v4714_v44 = vmul.f32 %v4586_v33, %v11428_v17  ;;  %v4439_v29 = vmul.f32 %v9405_v20, %v11431_v58  ;;  %v11435_v40 = vld [vmem:[#allocation133_spill] sm:$0xff] }
 0x581   : > { %4915 = vmax.xlane.f32.xlu0 %v4914_v23  ;;  %v11426_v23 = vld [vmem:[#allocation43_spill] sm:$0xff]  ;;  %v4711_v27 = vmul.f32 %v4583_v63, %v11429_v43  ;;  %v4887_v45 = vsel %vm3113_vm4, %v4693_v18, -inf  ;;  %v4888_v42 = vsel %vm3113_vm4, %v4694_v21, -inf  ;;  %v4922_v57 = vsel %vm3113_vm4, %v4707_v25, -inf  ;;  %v11438_v18 = vld [vmem:[#allocation130_spill] sm:$0xff] }
 0x582   : > { %v4708_v37 = vmul.f32 %v4580_v39, %v11426_v23  ;;  %v4712_v46 = vmul.f32 %v4584_v41, %v11430_v10  ;;  %v4889_v14 = vmax.f32 %v4887_v45, %v4888_v42  ;;  %v9677_v53 = vsel %vm3113_vm4, %v4713_v35, -inf  ;;  %v11437_v39 = vld [vmem:[#allocation123_spill] sm:$0xff]  ;;  %v11439_v41 = vld [vmem:[#allocation41_spill] sm:$0xff]  ;;  %v11442_v43 = vld [vmem:[#allocation50_spill] sm:$0xff] }
 0x583   : > { %v9680_v22 = vsel %vm3113_vm4, %v4714_v44, -inf  ;;  %v9685_v61 = vsel %vm3113_vm4, %v4711_v27, -inf  ;;  %v4440_v51 = vmul.f32 %v9405_v20, %v11432_v8  ;;  %v4475_v13 = vmul.f32 %v9405_v20, %v11433_v32  ;;  %v11441_v35 = vld [vmem:[#allocation49_spill] sm:$0xff]  ;;  %v11443_v27 = vld [vmem:[#allocation8_spill] sm:$0xff]  ;;  %v11444_v42 = vld [vmem:[#allocation38_spill] sm:$0xff] }
 0x584   : > { %v4923_v16 = vsel %vm3113_vm4, %v4708_v37, -inf  ;;  %v4939_v34 = vmax.f32 %v9677_v53, %v9680_v22  ;;  %v9688_v1 = vsel %vm3113_vm4, %v4712_v46, -inf  ;;  %v4476_v50 = vmul.f32 %v9405_v20, %v11434_v2  ;;  %v11440_v37 = vld [vmem:[#allocation42_spill] sm:$0xff]  ;;  %v11445_v10 = vld [vmem:[#allocation48_spill] sm:$0xff] }
 0x585   : > { %v4924_v38 = vmax.f32 %v4922_v57, %v4923_v16  ;;  %v4934_v26 = vmax.f32 %v9685_v61, %v9688_v1  ;;  %v4473_v12 = vmul.f32 %v9405_v20, %v11435_v40  ;;  %v4474_v62 = vmul.f32 %v9405_v20, %v11436_v31  ;;  %v11462_v22 = vld [vmem:[#allocation126_spill] sm:$0xff] }
 0x586   : > { %v4459_v9 = vmul.f32 %v9405_v20, %v11437_v39  ;;  %v4567_v33 = vadd.f32 1.0, %v4439_v29  ;;  %v4568_v63 = vadd.f32 1.0, %v4440_v51  ;;  %v4603_v0 = vadd.f32 1.0, %v4475_v13  ;;  %v11446_v29 = vld [vmem:[#allocation15_spill] sm:$0xff]  ;;  %v11447_v39 = vld [vmem:[#allocation105_spill] sm:$0xff]  ;;  %v11467_v1 = vld [vmem:[#allocation122_spill] sm:$0xff] }
 0x587   : > { %v4460_v6 = vmul.f32 %v9405_v20, %v11438_v18  ;;  %4880 = vmax.xlane.f32.xlu1 %v4879_v3  ;;  %v4601_v21 = vadd.f32 1.0, %v4473_v12  ;;  %v4602_v15 = vadd.f32 1.0, %v4474_v62 }
 0x588   : > { %4920 = vmax.xlane.f32.xlu2 %v4919_v30  ;;  %v4587_v25 = vadd.f32 1.0, %v4459_v9  ;;  %v4695_v23 = vmul.f32 %v4567_v33, %v11439_v41  ;;  %v4696_v7 = vmul.f32 %v4568_v63, %v11440_v37  ;;  %v4731_v17 = vmul.f32 %v4603_v0, %v11441_v35  ;;  %v11448_v33 = vld [vmem:[#allocation112_spill] sm:$0xff]  ;;  %v11449_v0 = vld [vmem:[#allocation137_spill] sm:$0xff] }
 0x589   : > { %4885 = vmax.xlane.f32.xlu0 %v4884_v36  ;;  %v4604_v36 = vadd.f32 1.0, %v4476_v50  ;;  %v4588_v44 = vadd.f32 1.0, %v4460_v6  ;;  %v4729_v45 = vmul.f32 %v4601_v21, %v11443_v27  ;;  %v4730_v57 = vmul.f32 %v4602_v15, %v11444_v42  ;;  %v11450_v6 = vld [vmem:[#allocation144_spill] sm:$0xff]  ;;  %v11451_v21 = vld [vmem:[#allocation121_spill] sm:$0xff]  ;;  %v11453_v15 = vld [vmem:[#allocation127_spill] sm:$0xff] }
 0x58a   : > { %v4715_v46 = vmul.f32 %v4587_v25, %v11445_v10  ;;  %v4892_v3 = vsel %vm3113_vm4, %v4695_v23, -inf  ;;  %v4893_v16 = vsel %vm3113_vm4, %v4696_v7, -inf  ;;  %v9718_v58 = vsel %vm3113_vm4, %v4731_v17, -inf  ;;  %v11454_v7 = vld [vmem:[#allocation134_spill] sm:$0xff] }
 0x58b   : > { %v4732_v30 = vmul.f32 %v4604_v36, %v11442_v43  ;;  %v4716_v8 = vmul.f32 %v4588_v44, %v11446_v29  ;;  %v4894_v51 = vmax.f32 %v4892_v3, %v4893_v16  ;;  %v9725_v13 = vsel %vm3113_vm4, %v4729_v45, -inf  ;;  %v11456_v45 = vld [vmem:[#allocation18_spill] sm:$0xff]  ;;  %v11458_v3 = vld [vmem:[#allocation47_spill] sm:$0xff] }
 0x58c   : > { %v9728_v2 = vsel %vm3113_vm4, %v4730_v57, -inf  ;;  %v9735_v12 = vsel %vm3113_vm4, %v4715_v46, -inf  ;;  %v4463_v9 = vmul.f32 %v9405_v20, %v11447_v39  ;;  %v4464_v63 = vmul.f32 %v9405_v20, %v11448_v33  ;;  %v11457_v57 = vld [vmem:[#allocation46_spill] sm:$0xff] }
 0x58d   : > { %v9722_v32 = vsel %vm3113_vm4, %v4732_v30, -inf  ;;  %v4979_v40 = vmax.f32 %v9725_v13, %v9728_v2  ;;  %v9738_v31 = vsel %vm3113_vm4, %v4716_v8, -inf  ;;  %v4477_v18 = vmul.f32 %v9405_v20, %v11449_v0  ;;  %v11455_v30 = vld [vmem:[#allocation45_spill] sm:$0xff]  ;;  %v11460_v8 = vld [vmem:[#allocation183_spill] sm:$0xff] }
 0x58e   : > { %v4984_v50 = vmax.f32 %v9718_v58, %v9722_v32  ;;  %v4944_v62 = vmax.f32 %v9735_v12, %v9738_v31  ;;  %v4478_v36 = vmul.f32 %v9405_v20, %v11450_v6  ;;  %v4461_v19 = vmul.f32 %v9405_v20, %v11451_v21  ;;  %v11474_v2 = vld [vmem:[#allocation131_spill] sm:$0xff] }
 0x58f   : > { %v4481_v25 = vmul.f32 %v9405_v20, %v11453_v15  ;;  %4925 = vmax.xlane.f32.xlu1 %v4924_v38  ;;  %v4591_v41 = vadd.f32 1.0, %v4463_v9  ;;  %v4592_v23 = vadd.f32 1.0, %v4464_v63  ;;  %v4605_v37 = vadd.f32 1.0, %v4477_v18  ;;  %v11459_v38 = vld [vmem:[#allocation182_spill] sm:$0xff]  ;;  %v11461_v9 = vld [vmem:[#allocation52_spill] sm:$0xff]  ;;  %v11479_v31 = vld [vmem:[#allocation135_spill] sm:$0xff] }
 0x590   : > { %4890 = vmax.xlane.f32.xlu2 %v4889_v14  ;;  %v4482_v35 = vmul.f32 %v9405_v20, %v11454_v7  ;;  %v4606_v14 = vadd.f32 1.0, %v4478_v36  ;;  %v4589_v17 = vadd.f32 1.0, %v4461_v19 }
 0x591   : > { %4930 = vmax.xlane.f32.xlu0 %v4929_v24  ;;  %v4462_v24 = vmul.f32 %v9405_v20, %v11452_v4  ;;  %v4609_v43 = vadd.f32 1.0, %v4481_v25  ;;  %v4719_v27 = vmul.f32 %v4591_v41, %v11455_v30  ;;  %v4720_v42 = vmul.f32 %v4592_v23, %v11456_v45  ;;  %v11463_v41 = vld [vmem:[#allocation132_spill] sm:$0xff] }
 0x592   : > { %v4733_v10 = vmul.f32 %v4605_v37, %v11457_v57  ;;  %v4610_v46 = vadd.f32 1.0, %v4482_v35  ;;  %v4734_v16 = vmul.f32 %v4606_v14, %v11458_v3  ;;  %v4717_v29 = vmul.f32 %v4589_v17, %v11459_v38  ;;  %v11464_v37 = vld [vmem:[#allocation143_spill] sm:$0xff]  ;;  %v11465_v35 = vld [vmem:[#allocation128_spill] sm:$0xff] }
 0x593   : > { %v4590_v44 = vadd.f32 1.0, %v4462_v24  ;;  %v4737_v33 = vmul.f32 %v4609_v43, %v11461_v9  ;;  %v9769_v63 = vsel %vm3113_vm4, %v4719_v27, -inf  ;;  %v9772_v0 = vsel %vm3113_vm4, %v4720_v42, -inf  ;;  %v11466_v17 = vld [vmem:[#allocation115_spill] sm:$0xff]  ;;  %v11469_v42 = vld [vmem:[#allocation154_spill] sm:$0xff] }
 0x594   : > { %v9775_v18 = vsel %vm3113_vm4, %v4733_v10, -inf  ;;  %v4738_v6 = vmul.f32 %v4610_v46, %v9295_v55  ;;  %v4954_v36 = vmax.f32 %v9769_v63, %v9772_v0  ;;  %v9781_v21 = vsel %vm3113_vm4, %v4734_v16, -inf  ;;  %v11470_v16 = vld [vmem:[#allocation39_spill] sm:$0xff] }
 0x595   : > { %v4718_v39 = vmul.f32 %v4590_v44, %v11460_v8  ;;  %v9784_v19 = vsel %vm3113_vm4, %v4717_v29, -inf  ;;  %v4989_v24 = vmax.f32 %v9775_v18, %v9781_v21  ;;  %v9797_v15 = vsel %vm3113_vm4, %v4737_v33, -inf  ;;  %v11468_v44 = vld [vmem:[#allocation147_spill] sm:$0xff]  ;;  %v11471_v29 = vld [vmem:[#allocation44_spill] sm:$0xff] }
 0x596   : > { %v9800_v25 = vsel %vm3113_vm4, %v4738_v6, -inf  ;;  %v4466_v23 = vmul.f32 %v9405_v20, %v11463_v41  ;;  %v4479_v7 = vmul.f32 %v9405_v20, %v11464_v37  ;;  %v4480_v14 = vmul.f32 %v9405_v20, %v11465_v35  ;;  %v11472_v6 = vld [vmem:[#allocation51_spill] sm:$0xff] }
 0x597   : > { %v9787_v4 = vsel %vm3113_vm4, %v4718_v39, -inf  ;;  %v4999_v53 = vmax.f32 %v9797_v15, %v9800_v25  ;;  %4895 = vmax.xlane.f32.xlu1 %v4894_v51  ;;  %v4469_v61 = vmul.f32 %v9405_v20, %v11466_v17  ;;  %v4483_v43 = vmul.f32 %v9405_v20, %v11468_v44  ;;  %v11486_v21 = vld [vmem:[#allocation55_spill] sm:$0xff]  ;;  %v11503_v15 = vld [vmem:[#allocation54_spill] sm:$0xff] }
 0x598   : > { %v4949_v55 = vmax.f32 %v9784_v19, %v9787_v4  ;;  %4935 = vmax.xlane.f32.xlu2 %v4934_v26  ;;  %v4470_v26 = vmul.f32 %v9405_v20, %v11467_v1  ;;  %v4594_v27 = vadd.f32 1.0, %v4466_v23  ;;  %v4607_v45 = vadd.f32 1.0, %v4479_v7  ;;  %v11490_v4 = vld [vmem:[#allocation20_spill] sm:$0xff] }
 0x599   : > { %4940 = vmax.xlane.f32.xlu0 %v4939_v34  ;;  %v4465_v34 = vmul.f32 %v9405_v20, %v11462_v22  ;;  %v4484_v57 = vmul.f32 %v9405_v20, %v11469_v42  ;;  %v4608_v10 = vadd.f32 1.0, %v4480_v14  ;;  %v4597_v51 = vadd.f32 1.0, %v4469_v61  ;;  %v11475_v61 = vld [vmem:[#allocation116_spill] sm:$0xff] }
 0x59a   : > { %v4598_v46 = vadd.f32 1.0, %v4470_v26  ;;  %v4611_v3 = vadd.f32 1.0, %v4483_v43  ;;  %v4722_v8 = vmul.f32 %v4594_v27, %v11471_v29  ;;  %v4735_v39 = vmul.f32 %v4607_v45, %v9350_v60  ;;  %v11477_v43 = vld [vmem:[#allocation129_spill] sm:$0xff]  ;;  %v11478_v27 = vld [vmem:[#allocation136_spill] sm:$0xff] }
 0x59b   : > { %v4593_v30 = vadd.f32 1.0, %v4465_v34  ;;  %v4612_v9 = vadd.f32 1.0, %v4484_v57  ;;  %v4736_v33 = vmul.f32 %v4608_v10, %v9353_v59  ;;  %v4725_v22 = vmul.f32 %v4597_v51, %v11472_v6  ;;  %v11473_v34 = vld [vmem:[#allocation53_spill] sm:$0xff]  ;;  %v11480_v10 = vld [vmem:[#allocation142_spill] sm:$0xff] }
 0x59c   : > { %v4726_v41 = vmul.f32 %v4598_v46, %v11473_v34  ;;  %v4739_v23 = vmul.f32 %v4611_v3, %v9367_v5  ;;  %v9834_v7 = vsel %vm3113_vm4, %v4722_v8, -inf  ;;  %v9837_v35 = vsel %vm3113_vm4, %v4735_v39, -inf  ;;  %v11481_v29 = vld [vmem:[#allocation145_spill] sm:$0xff]  ;;  %v11482_v39 = vld [vmem:[#allocation58_spill] sm:$0xff] }
 0x59d   : > { %v4721_v38 = vmul.f32 %v4593_v30, %v11470_v16  ;;  %v4740_v60 = vmul.f32 %v4612_v9, %v9370_v49  ;;  %v9846_v5 = vsel %vm3113_vm4, %v4736_v33, -inf  ;;  %v9849_v14 = vsel %vm3113_vm4, %v4725_v22, -inf }
 0x59e   : > { %v9852_v17 = vsel %vm3113_vm4, %v4726_v41, -inf  ;;  %v4994_v49 = vmax.f32 %v9837_v35, %v9846_v5  ;;  %v9862_v32 = vsel %vm3113_vm4, %v4739_v23, -inf  ;;  %v4468_v1 = vmul.f32 %v9405_v20, %v11475_v61  ;;  %v11484_v23 = vld [vmem:[#allocation60_spill] sm:$0xff]  ;;  %v11485_v61 = vld [vmem:[#allocation17_spill] sm:$0xff] }
 0x59f   : > { %v9831_v37 = vsel %vm3113_vm4, %v4721_v38, -inf  ;;  %v4969_v58 = vmax.f32 %v9849_v14, %v9852_v17  ;;  %4945 = vmax.xlane.f32.xlu1 %v4944_v62  ;;  %v11476_v26 = vrot.slane %v9361_v52, 4  ;;  %v4487_v30 = vmul.f32 %v9405_v20, %v11477_v43  ;;  %v11487_v43 = vld [vmem:[#allocation56_spill] sm:$0xff] }
 0x5a0   : > { %v4959_v59 = vmax.f32 %v9831_v37, %v9834_v7  ;;  %4980 = vmax.xlane.f32.xlu2 %v4979_v40  ;;  %v4467_v40 = vmul.f32 %v9405_v20, %v11474_v2  ;;  %v4488_v12 = vmul.f32 %v9405_v20, %v11478_v27  ;;  %v4471_v62 = vmul.f32 %v9405_v20, %v11479_v31  ;;  %v11504_v7 = vld [vmem:[#allocation57_spill] sm:$0xff]  ;;  %v11516_v17 = vld [vmem:[#allocation64_spill] sm:$0xff] }
 0x5a1   : > { %4985 = vmax.xlane.f32.xlu0 %v4984_v50  ;;  %v9865_v50 = vsel %vm3113_vm4, %v4740_v60, -inf  ;;  %v9879_v44 = vsel %vm1449_vm1, 0.0, %v11476_v26  ;;  %v9890_v45 = vsel %vm1449_vm1, 0.0, %v3107_v47  ;;  %v4596_v57 = vadd.f32 1.0, %v4468_v1  ;;  %v11483_v47 = vld [vmem:[#allocation138_spill] sm:$0xff] }
 0x5a2   : > { %v5004_v13 = vmax.f32 %v9862_v32, %v9865_v50  ;;  %v4595_v42 = vadd.f32 1.0, %v4467_v40  ;;  %v4472_v51 = vmul.f32 %v9405_v20, %v11480_v10  ;;  %v2641_v46 = vrot.slane %v9396_v11, 4  ;;  %v11491_v10 = vld [vmem:[#allocation155_spill] sm:$0xff] }
 0x5a3   : > { %v4615_v3 = vadd.f32 1.0, %v4487_v30  ;;  %v4616_v16 = vadd.f32 1.0, %v4488_v12  ;;  %v4599_v38 = vadd.f32 1.0, %v4471_v62  ;;  %v4485_v8 = vmul.f32 %v9405_v20, %v11481_v29  ;;  %v11488_v12 = vld [vmem:[#allocation151_spill] sm:$0xff]  ;;  %v11489_v62 = vld [vmem:[#allocation158_spill] sm:$0xff] }
 0x5a4   : > { %v4723_v9 = vmul.f32 %v4595_v42, %v11482_v39  ;;  %v4724_v33 = vmul.f32 %v4596_v57, %v9356_v54  ;;  %v4600_v6 = vadd.f32 1.0, %v4472_v51  ;;  %v4486_v22 = vmul.f32 %v9405_v20, %v11483_v47  ;;  %v11493_v39 = vld [vmem:[#allocation149_spill] sm:$0xff]  ;;  %v11494_v47 = vld [vmem:[#allocation156_spill] sm:$0xff] }
 0x5a5   : > { %v4743_v34 = vmul.f32 %v4615_v3, %v9379_v48  ;;  %v4744_v41 = vmul.f32 %v4616_v16, %v9382_v28  ;;  %v4727_v60 = vmul.f32 %v4599_v38, %v11484_v23  ;;  %v4613_v2 = vadd.f32 1.0, %v4485_v8  ;;  %v11492_v3 = vld [vmem:[#allocation140_spill] sm:$0xff]  ;;  %v11496_v23 = vld [vmem:[#allocation22_spill] sm:$0xff] }
 0x5a6   : > { %v9908_v40 = vsel %vm3113_vm4, %v4723_v9, -inf  ;;  %v9911_v54 = vsel %vm3113_vm4, %v4724_v33, -inf  ;;  %v4728_v1 = vmul.f32 %v4600_v6, %v11485_v61  ;;  %v4614_v26 = vadd.f32 1.0, %v4486_v22 }
 0x5a7   : > { %v4964_v28 = vmax.f32 %v9908_v40, %v9911_v54  ;;  %v9920_v48 = vsel %vm3113_vm4, %v4743_v34, -inf  ;;  %v9923_v63 = vsel %vm3113_vm4, %v4744_v41, -inf  ;;  %v9926_v0 = vsel %vm3113_vm4, %v4727_v60, -inf  ;;  %4950 = vmax.xlane.f32.xlu1 %v4949_v55  ;;  %v11495_v34 = vld [vmem:[#allocation169_spill] sm:$0xff] }
 0x5a8   : > { %4990 = vmax.xlane.f32.xlu2 %v4989_v24  ;;  %v5014_v18 = vmax.f32 %v9920_v48, %v9923_v63  ;;  %v4741_v24 = vmul.f32 %v4613_v2, %v11486_v21  ;;  %v4742_v30 = vmul.f32 %v4614_v26, %v11487_v43  ;;  %v4505_v31 = vmul.f32 %v9405_v20, %v11488_v12  ;;  %v11497_v2 = vld [vmem:[#allocation16_spill] sm:$0xff]  ;;  %v11517_v54 = vld [vmem:[#allocation161_spill] sm:$0xff] }
 0x5a9   : > { %4955 = vmax.xlane.f32.xlu0 %v4954_v36  ;;  %v9934_v36 = vsel %vm3113_vm4, %v4728_v1, -inf  ;;  %v4506_v19 = vmul.f32 %v9405_v20, %v11489_v62  ;;  %v3057_v55 = vrot.slane %v11490_v4, 4  ;;  %v4491_v51 = vmul.f32 %v9405_v20, %v11491_v10  ;;  %v11498_v26 = vld [vmem:[#allocation160_spill] sm:$0xff]  ;;  %v11501_v62 = vld [vmem:[#allocation69_spill] sm:$0xff] }
 0x5aa   : > { %v4974_v27 = vmax.f32 %v9926_v0, %v9934_v36  ;;  %v9946_v42 = vsel %vm3113_vm4, %v4741_v24, -inf  ;;  %v9949_v57 = vsel %vm3113_vm4, %v4742_v30, -inf  ;;  %v4492_v16 = vmul.f32 %v9405_v20, %v11492_v3  ;;  %v11499_v24 = vld [vmem:[#allocation19_spill] sm:$0xff]  ;;  %v11500_v30 = vld [vmem:[#allocation200_spill] sm:$0xff] }
 0x5ab   : > { %v5009_v38 = vmax.f32 %v9946_v42, %v9949_v57  ;;  %v4633_v29 = vadd.f32 1.0, %v4505_v31  ;;  %v4634_v8 = vadd.f32 1.0, %v4506_v19  ;;  %v4489_v9 = vmul.f32 %v9405_v20, %v11493_v39  ;;  %v11502_v19 = vld [vmem:[#allocation63_spill] sm:$0xff]  ;;  %v11524_v57 = vld [vmem:[#allocation148_spill] sm:$0xff] }
 0x5ac   : > { %v4619_v33 = vadd.f32 1.0, %v4491_v51  ;;  %v4620_v6 = vadd.f32 1.0, %v4492_v16  ;;  %v4490_v22 = vmul.f32 %v9405_v20, %v11494_v47  ;;  %v4509_v41 = vmul.f32 %v9405_v20, %v11495_v34  ;;  %v11521_v0 = vld [vmem:[#allocation179_spill] sm:$0xff] }
 0x5ad   : > { %v4761_v60 = vmul.f32 %v4633_v29, %v11496_v23  ;;  %v4762_v61 = vmul.f32 %v4634_v8, %v11497_v2  ;;  %v4617_v1 = vadd.f32 1.0, %v4489_v9  ;;  %v4510_v21 = vmul.f32 %v9405_v20, %v11498_v26 }
 0x5ae   : > { %v4747_v43 = vmul.f32 %v4619_v33, %v11499_v24  ;;  %v4748_v12 = vmul.f32 %v4620_v6, %v11500_v30  ;;  %v4618_v31 = vadd.f32 1.0, %v4490_v22  ;;  %v9974_v10 = vperm.slane %v11502_v19, %v11501_v62  ;;  %v11506_v6 = vld [vmem:[#allocation146_spill] sm:$0xff]  ;;  %v11507_v22 = vld [vmem:[#allocation171_spill] sm:$0xff] }
 0x5af   : > { %v9980_v51 = vsel %vm3113_vm4, %v4761_v60, -inf  ;;  %v9983_v3 = vsel %vm3113_vm4, %v4762_v61, -inf  ;;  %v4745_v25 = vmul.f32 %v4617_v1, %v11503_v15  ;;  %4995 = vmax.xlane.f32.xlu1 %v4994_v49  ;;  %v4638_v9 = vadd.f32 1.0, %v4510_v21  ;;  %v11505_v49 = vld [vmem:[#allocation139_spill] sm:$0xff]  ;;  %v11509_v21 = vld [vmem:[#allocation157_spill] sm:$0xff] }
 0x5b0   : > { %4960 = vmax.xlane.f32.xlu2 %v4959_v59  ;;  %v5059_v16 = vmax.f32 %v9980_v51, %v9983_v3  ;;  %v9992_v29 = vsel %vm3113_vm4, %v4747_v43, -inf  ;;  %v9995_v37 = vsel %vm3113_vm4, %v4748_v12, -inf  ;;  %v4746_v59 = vmul.f32 %v4618_v31, %v11504_v7  ;;  %v11510_v31 = vld [vmem:[#allocation150_spill] sm:$0xff]  ;;  %v11511_v15 = vld [vmem:[#allocation21_spill] sm:$0xff] }
 0x5b1   : > { %5000 = vmax.xlane.f32.xlu0 %v4999_v53  ;;  %v4637_v53 = vadd.f32 1.0, %v4509_v41  ;;  %v5024_v8 = vmax.f32 %v9992_v29, %v9995_v37  ;;  %v10001_v39 = vsel %vm3113_vm4, %v4745_v25, -inf  ;;  %v4493_v33 = vmul.f32 %v9405_v20, %v11505_v49  ;;  %v11529_v29 = vld [vmem:[#allocation172_spill] sm:$0xff] }
 0x5b2   : > { %v10005_v5 = vsel %vm3113_vm4, %v4746_v59, -inf  ;;  %v4494_v47 = vmul.f32 %v9405_v20, %v11506_v6  ;;  %v4507_v34 = vmul.f32 %v9405_v20, %v11507_v22  ;;  %v4766_v23 = vmul.f32 %v4638_v9, %v9392_v56  ;;  %v11513_v59 = vld [vmem:[#allocation62_spill] sm:$0xff]  ;;  %v11515_v6 = vld [vmem:[#allocation153_spill] sm:$0xff] }
 0x5b3   : > { %v4765_v35 = vmul.f32 %v4637_v53, %v9361_v52  ;;  %v5019_v41 = vmax.f32 %v10001_v39, %v10005_v5  ;;  %v11508_v52 = vld [vmem:[#allocation178_spill] sm:$0xff]  ;;  %v4621_v61 = vadd.f32 1.0, %v4493_v33  ;;  %v4497_v24 = vmul.f32 %v9405_v20, %v11509_v21  ;;  %v11512_v53 = vld [vmem:[#allocation59_spill] sm:$0xff] }
 0x5b4   : > { %v4508_v2 = vmul.f32 %v9405_v20, %v11508_v52  ;;  %v4622_v1 = vadd.f32 1.0, %v4494_v47  ;;  %v4635_v26 = vadd.f32 1.0, %v4507_v34  ;;  %v5301_v43 = vlaneseq }
 0x5b5   : > { %v10017_v60 = vsel %vm3113_vm4, %v4765_v35, -inf  ;;  %v10024_v30 = vsel %vm3113_vm4, %v4766_v23, -inf  ;;  %v4498_v56 = vmul.f32 %v9405_v20, %v11510_v31  ;;  %v4749_v25 = vmul.f32 %v4621_v61, %v11511_v15  ;;  %v11514_v35 = vld [vmem:[#allocation201_spill] sm:$0xff] }
 0x5b6   : > { %v4636_v12 = vadd.f32 1.0, %v4508_v2  ;;  %v5069_v19 = vmax.f32 %v10017_v60, %v10024_v30  ;;  %v4750_v7 = vmul.f32 %v4622_v1, %v11512_v53  ;;  %v4763_v9 = vmul.f32 %v4635_v26, %v11513_v59  ;;  %v11518_v53 = vld [vmem:[#allocation159_spill] sm:$0xff] }
 0x5b7   : > { %v4625_v33 = vadd.f32 1.0, %v4497_v24  ;;  %v4511_v14 = vmul.f32 %v9405_v20, %v11515_v6  ;;  %4965 = vmax.xlane.f32.xlu1 %v4964_v28  ;;  %v10050_v47 = vsel %vm3113_vm4, %v4749_v25, -inf  ;;  %v4512_v28 = vmul.f32 %v9405_v20, %v11517_v54  ;;  %v11519_v6 = vld [vmem:[#allocation166_spill] sm:$0xff]  ;;  %v11534_v30 = vld [vmem:[#allocation67_spill] sm:$0xff] }
 0x5b8   : > { %5005 = vmax.xlane.f32.xlu2 %v5004_v13  ;;  %v4764_v49 = vmul.f32 %v4636_v12, %v11514_v35  ;;  %v10053_v32 = vsel %vm3113_vm4, %v4750_v7, -inf  ;;  %v10056_v50 = vsel %vm3113_vm4, %v4763_v9, -inf  ;;  %v4626_v13 = vadd.f32 1.0, %v4498_v56 }
 0x5b9   : > { %4970 = vmax.xlane.f32.xlu0 %v4969_v58  ;;  %v10044_v58 = vperm.slane %v11516_v17, %v11501_v62  ;;  %v5029_v23 = vmax.f32 %v10050_v47, %v10053_v32  ;;  %v4753_v40 = vmul.f32 %v4625_v33, %v9396_v11  ;;  %v10068_v2 = vand.u32 127, %v5301_v43  ;;  %v4781_v1 = vpop.xlane.xlu1 %4780  ;;  %v11535_v47 = vld [vmem:[#allocation168_spill] sm:$0xff] }
 0x5ba   : > { %v10063_v52 = vsel %vm3113_vm4, %v4764_v49, -inf  ;;  %v4754_v21 = vmul.f32 %v4626_v13, %v11490_v4  ;;  %v5097_v24 = vpack.c.bf16 %v4781_v1, %v4781_v1  ;;  %v4639_v31 = vadd.f32 1.0, %v4511_v14  ;;  %v11523_v1 = vld [vmem:[#allocation141_spill] sm:$0xff]  ;;  %v11527_v4 = vld [vmem:[#allocation66_spill] sm:$0xff] }
 0x5bb   : > { %v4786_v34 = vpop.xlane.xlu2 %4785  ;;  %v5064_v26 = vmax.f32 %v10056_v50, %v10063_v52  ;;  %v10074_v12 = vsel %vm3113_vm4, %v4753_v40, -inf  ;;  %v4640_v56 = vadd.f32 1.0, %v4512_v28  ;;  %v4495_v43 = vmul.f32 %v9405_v20, %v11518_v53  ;;  %v11522_v28 = vld [vmem:[#allocation164_spill] sm:$0xff]  ;;  %v11537_v52 = vld [vmem:[#allocation162_spill] sm:$0xff] }
 0x5bc   : > { %v10058_v22 = vpop.xlane.xlu0 %4820  ;;  %v5098_v61 = vpack.c.bf16 %v4786_v34, %v4786_v34  ;;  %v10077_v25 = vsel %vm3113_vm4, %v4754_v21, -inf  ;;  %v2693_v7 = vrot.slane %v9974_v10, 4  ;;  %v5237_v59 = vunpack.c.l.b16 %v5097_v24  ;;  %v11525_v24 = vld [vmem:[#allocation202_spill] sm:$0xff] }
 0x5bd   : > { %v5039_v9 = vmax.f32 %v10074_v12, %v10077_v25  ;;  %v4767_v35 = vmul.f32 %v4639_v31, %v9879_v44  ;;  %v4768_v49 = vmul.f32 %v4640_v56, %v9890_v45  ;;  %v4496_v14 = vmul.f32 %v9405_v20, %v11519_v6 }
 0x5be   : > { %v5238_v15 = vunpack.c.l.b16 %v5098_v61  ;;  %v4623_v17 = vadd.f32 1.0, %v4495_v43  ;;  %v5303_v13 = vperm.slane %v5237_v59, %v10068_v2  ;;  %v3109_v34 = vrot.slane %v10044_v58, 4 }
 0x5bf   : > { %v10097_v44 = vsel %vm3113_vm4, %v4767_v35, -inf  ;;  %v10100_v45 = vsel %vm3113_vm4, %v4768_v49, -inf  ;;  %5010 = vmax.xlane.f32.xlu1 %v5009_v38  ;;  %v4624_v63 = vadd.f32 1.0, %v4496_v14  ;;  %v4515_v36 = vmul.f32 %v9405_v20, %v11521_v0 }
 0x5c0   : > { %v5304_v33 = vperm.slane %v5238_v15, %v10068_v2  ;;  %4975 = vmax.xlane.f32.xlu2 %v4974_v27  ;;  %v5074_v48 = vmax.f32 %v10097_v44, %v10100_v45  ;;  %v4516_v61 = vmul.f32 %v9405_v20, %v11522_v28  ;;  %v4499_v42 = vmul.f32 %v9405_v20, %v11523_v1  ;;  %v11528_v28 = vld [vmem:[#allocation165_spill] sm:$0xff] }
 0x5c1   : > { %5015 = vmax.xlane.f32.xlu0 %v5014_v18  ;;  %v11520_v18 = vld [vmem:[#allocation61_spill] sm:$0xff]  ;;  %v4500_v38 = vmul.f32 %v9405_v20, %v11524_v57  ;;  %v4752_v31 = vmul.f32 %v4624_v63, %v11525_v24  ;;  %v4643_v15 = vadd.f32 1.0, %v4515_v36  ;;  %v2642_v53 = vsel %vm1449_vm1, 0.0, %v2641_v46 }
 0x5c2   : > { %v4751_v40 = vmul.f32 %v4623_v17, %v11520_v18  ;;  %v10112_v27 = vsel %vm5367_vm5, %v5304_v33, %v5303_v13  ;;  %v10131_v43 = vpop.xlane.xlu1 %4825  ;;  %v2694_v59 = vsel %vm1449_vm1, 0.0, %v2693_v7  ;;  %v4644_v35 = vadd.f32 1.0, %v4516_v61  ;;  %v11526_v7 = vld [vmem:[#allocation65_spill] sm:$0xff] }
 0x5c3   : > { %v10122_v21 = vpop.xlane.xlu2 %4790  ;;  %v4627_v49 = vadd.f32 1.0, %v4499_v42  ;;  %v4628_v33 = vadd.f32 1.0, %v4500_v38  ;;  %v10135_v6 = vsel %vm3113_vm4, %v4752_v31, -inf  ;;  %v3110_v14 = vsel %vm1449_vm1, 0.0, %v3109_v34 }
 0x5c4   : > { %v10114_v54 = vpop.xlane.xlu0 %4830  ;;  %v10126_v56 = vsel %vm3113_vm4, %v4751_v40, -inf  ;;  %v4771_v17 = vmul.f32 %v4643_v15, %v2694_v59  ;;  %v3058_v13 = vsel %vm1449_vm1, 0.0, %v3057_v55  ;;  %v4772_v46 = vmul.f32 %v4644_v35, %v3110_v14  ;;  %v11531_v15 = vld [vmem:[#allocation152_spill] sm:$0xff] }
 0x5c5   : > { %v5034_v11 = vmax.f32 %v10126_v56, %v10135_v6  ;;  %v4755_v63 = vmul.f32 %v4627_v49, %v2642_v53  ;;  %v2636_v18 = vperm.slane %v11526_v7, %v11501_v62  ;;  %v4756_v34 = vmul.f32 %v4628_v33, %v3058_v13 }
 0x5c6   : > { %v10149_v40 = vsel %vm3113_vm4, %v4771_v17, -inf  ;;  %v3052_v0 = vperm.slane %v11527_v4, %v11501_v62  ;;  %v10157_v55 = vsel %vm3113_vm4, %v4772_v46, -inf  ;;  %v4513_v51 = vmul.f32 %v9405_v20, %v11528_v28  ;;  %v11532_v17 = vld [vmem:[#allocation163_spill] sm:$0xff] }
 0x5c7   : > { %v10160_v36 = vsel %vm3113_vm4, %v4755_v63, -inf  ;;  %5020 = vmax.xlane.f32.xlu1 %v5019_v41  ;;  %v5084_v3 = vmax.f32 %v10149_v40, %v10157_v55  ;;  %v4514_v37 = vmul.f32 %v9405_v20, %v11529_v29  ;;  %v2643_v42 = vrot.slane %v2636_v18, 4  ;;  %v11530_v41 = vld [vmem:[#allocation167_spill] sm:$0xff]  ;;  %v11536_v29 = vld [vmem:[#allocation68_spill] sm:$0xff] }
 0x5c8   : > { %5025 = vmax.xlane.f32.xlu2 %v5024_v8  ;;  %v4641_v1 = vadd.f32 1.0, %v4513_v51  ;;  %v3059_v5 = vrot.slane %v3052_v0, 4  ;;  %v4503_v38 = vmul.f32 %v9405_v20, %v11530_v41  ;;  %v4504_v53 = vmul.f32 %v9405_v20, %v11531_v15 }
 0x5c9   : > { %5060 = vmax.xlane.f32.xlu0 %v5059_v16  ;;  %v10170_v16 = vsel %vm3113_vm4, %v4756_v34, -inf  ;;  %v4642_v39 = vadd.f32 1.0, %v4514_v37  ;;  %v2644_v33 = vsel %vm1449_vm1, 0.0, %v2643_v42  ;;  %v4517_v13 = vmul.f32 %v9405_v20, %v11532_v17  ;;  %v11533_v34 = vld [vmem:[#allocation170_spill] sm:$0xff] }
 0x5ca   : > { %v5044_v61 = vmax.f32 %v10160_v36, %v10170_v16  ;;  %v10182_v24 = vpop.xlane.xlu1 %4795  ;;  %v4769_v31 = vmul.f32 %v4641_v1, %v9974_v10  ;;  %v4631_v35 = vadd.f32 1.0, %v4503_v38  ;;  %v4632_v14 = vadd.f32 1.0, %v4504_v53 }
 0x5cb   : > { %v10178_v57 = vpop.xlane.xlu2 %4835  ;;  %v4770_v59 = vmul.f32 %v4642_v39, %v10044_v58  ;;  %v3060_v46 = vsel %vm1449_vm1, 0.0, %v3059_v5  ;;  %v4518_v4 = vmul.f32 %v9405_v20, %v11533_v34  ;;  %v4645_v28 = vadd.f32 1.0, %v4517_v13 }
 0x5cc   : > { %v10174_v8 = vpop.xlane.xlu0 %4800  ;;  %v10189_v49 = vsel %vm3113_vm4, %v4769_v31, -inf  ;;  %v4759_v58 = vmul.f32 %v4631_v35, %v2644_v33  ;;  %v4760_v7 = vmul.f32 %v4632_v14, %v3060_v46  ;;  %v4501_v32 = vmul.f32 %v9405_v20, %v11535_v47  ;;  %v11538_v35 = vld [vmem:[#allocation173_spill] sm:$0xff] }
 0x5cd   : > { %v10198_v10 = vsel %vm3113_vm4, %v4770_v59, -inf  ;;  %v3104_v37 = vperm.slane %v11536_v29, %v11501_v62  ;;  %v4646_v50 = vadd.f32 1.0, %v4518_v4  ;;  %v5105_v56 = vpack.c.bf16 %v10058_v22, %v10058_v22 }
 0x5ce   : > { %v5079_v63 = vmax.f32 %v10189_v49, %v10198_v10  ;;  %v10212_v60 = vsel %vm3113_vm4, %v4759_v58, -inf  ;;  %v10221_v51 = vsel %vm3113_vm4, %v4760_v7, -inf  ;;  %v4629_v38 = vadd.f32 1.0, %v4501_v32 }
 0x5cf   : > { %5065 = vmax.xlane.f32.xlu1 %v5064_v26  ;;  %v4502_v26 = vmul.f32 %v9405_v20, %v11537_v52  ;;  %v5054_v42 = vmax.f32 %v10212_v60, %v10221_v51  ;;  %v4774_v41 = vmul.f32 %v4646_v50, %v3104_v37  ;;  %v4519_v49 = vmul.f32 %v9405_v20, %v11538_v35 }
 0x5d0   : > { %5030 = vmax.xlane.f32.xlu2 %v5029_v23  ;;  %v4757_v59 = vmul.f32 %v4629_v38, %v2636_v18  ;;  %v3111_v17 = vrot.slane %v3104_v37, 4  ;;  %v11539_v18 = vld [vmem:[#allocation180_spill] sm:$0xff]  ;;  %v5099_v34 = vpack.c.bf16 %v10122_v21, %v10122_v21  ;;  %v5100_v22 = vpack.c.bf16 %v10182_v24, %v10182_v24 }
 0x5d1   : > { %5070 = vmax.xlane.f32.xlu0 %v5069_v19  ;;  %v2688_v19 = vperm.slane %v11534_v30, %v11501_v62  ;;  %v4630_v15 = vadd.f32 1.0, %v4502_v26  ;;  %v10235_v62 = vsel %vm3113_vm4, %v4774_v41, -inf  ;;  %v4520_v10 = vmul.f32 %v9405_v20, %v11539_v18 }
 0x5d2   : > { %v4841_v5 = vpop.xlane.xlu1 %4840  ;;  %v10248_v13 = vsel %vm3113_vm4, %v4757_v59, -inf  ;;  %v4647_v46 = vadd.f32 1.0, %v4519_v49  ;;  %v3112_v20 = vsel %vm1449_vm1, 0.0, %v3111_v17  ;;  %v5108_v30 = vpack.c.bf16 %v10178_v57, %v10178_v57 }
 0x5d3   : > { %v10227_v1 = vpop.xlane.xlu2 %4805  ;;  %v4773_v39 = vmul.f32 %v4645_v28, %v2688_v19  ;;  %v2695_v53 = vrot.slane %v2688_v19, 4  ;;  %v4758_v14 = vmul.f32 %v4630_v15, %v3052_v0  ;;  %v5245_v28 = vunpack.c.l.b16 %v5105_v56 }
 0x5d4   : > { %v10218_v23 = vpop.xlane.xlu0 %4845  ;;  %v5109_v47 = vpack.c.bf16 %v4841_v5, %v4841_v5  ;;  %v5239_v57 = vunpack.c.l.b16 %v5099_v34  ;;  %v5101_v24 = vpack.c.bf16 %v10174_v8, %v10174_v8  ;;  %v5248_v29 = vunpack.c.l.b16 %v5108_v30 }
 0x5d5   : > { %v10232_v31 = vsel %vm3113_vm4, %v4773_v39, -inf  ;;  %v5048_v12 = vsel %vm3113_vm4, %v4758_v14, -inf  ;;  %v2696_v25 = vsel %vm1449_vm1, 0.0, %v2695_v53  ;;  %v5240_v55 = vunpack.c.l.b16 %v5100_v22 }
 0x5d6   : > { %v5089_v33 = vmax.f32 %v10232_v31, %v10235_v62  ;;  %v5049_v45 = vmax.f32 %v10248_v13, %v5048_v12  ;;  %v4775_v0 = vmul.f32 %v4647_v46, %v2696_v25  ;;  %v5102_v37 = vpack.c.bf16 %v10227_v1, %v10227_v1 }
 0x5d7   : > { %5035 = vmax.xlane.f32.xlu1 %v5034_v11  ;;  %v5311_v16 = vperm.slane %v5245_v28, %v10068_v2  ;;  %v5305_v39 = vperm.slane %v5239_v57, %v10068_v2  ;;  %v5241_v5 = vunpack.c.l.b16 %v5101_v24  ;;  %v5314_v1 = vperm.slane %v5248_v29, %v10068_v2 }
 0x5d8   : > { %5075 = vmax.xlane.f32.xlu2 %v5074_v48  ;;  %v4648_v48 = vadd.f32 1.0, %v4520_v10  ;;  %v10266_v7 = vsel %vm3113_vm4, %v4775_v0, -inf  ;;  %v5306_v41 = vperm.slane %v5240_v55, %v10068_v2  ;;  %v5242_v15 = vunpack.c.l.b16 %v5102_v37 }
 0x5d9   : > { %5040 = vmax.xlane.f32.xlu0 %v5039_v9  ;;  %v5106_v9 = vpack.c.bf16 %v10131_v43, %v10131_v43  ;;  %v5107_v43 = vpack.c.bf16 %v10114_v54, %v10114_v54  ;;  %v5370_v13 = vsel %vm5369_vm6, %v5305_v39, %v10112_v27  ;;  %v5307_v18 = vperm.slane %v5241_v5, %v10068_v2 }
 0x5da   : > { %v4811_v6 = vpop.xlane.xlu1 %4810  ;;  %v4776_v11 = vmul.f32 %v4648_v48, %v3112_v20  ;;  %v5308_v31 = vperm.slane %v5242_v15, %v10068_v2 }
 0x5db   : > { %v4851_v58 = vpop.xlane.xlu2 %4850  ;;  %v5246_v4 = vunpack.c.l.b16 %v5106_v9  ;;  %v5247_v21 = vunpack.c.l.b16 %v5107_v43  ;;  %v5103_v50 = vpack.c.bf16 %v4811_v6, %v4811_v6 }
 0x5dc   : > { %v10259_v44 = vpop.xlane.xlu0 %4815  ;;  %v10275_v19 = vsel %vm3113_vm4, %v4776_v11, -inf }
 0x5dd   : > { %v5094_v54 = vmax.f32 %v10266_v7, %v10275_v19  ;;  %v5312_v32 = vperm.slane %v5246_v4, %v10068_v2  ;;  %v5313_v8 = vperm.slane %v5247_v21, %v10068_v2  ;;  %v5104_v53 = vpack.c.bf16 %v10259_v44, %v10259_v44 }
 0x5de   : > { %v5243_v49 = vunpack.c.l.b16 %v5103_v50 }
 0x5df   : > { %5080 = vmax.xlane.f32.xlu1 %v5079_v63  ;;  %v5111_v63 = vpack.c.bf16 %v4851_v58, %v4851_v58  ;;  %v5244_v62 = vunpack.c.l.b16 %v5104_v53 }
 0x5e0   : > { %5045 = vmax.xlane.f32.xlu2 %v5044_v61  ;;  %v5249_v61 = vunpack.c.l.b16 %v5109_v47  ;;  %v5309_v27 = vperm.slane %v5243_v49, %v10068_v2 }
 0x5e1   : > { %5085 = vmax.xlane.f32.xlu0 %v5084_v3  ;;  %v5110_v3 = vpack.c.bf16 %v10218_v23, %v10218_v23  ;;  %v5381_v23 = vsel %vm5367_vm5, %v5312_v32, %v5311_v16  ;;  %v5251_v35 = vunpack.c.l.b16 %v5111_v63  ;;  %v5310_v48 = vperm.slane %v5244_v62, %v10068_v2 }
 0x5e2   : > { %v4856_v52 = vpop.xlane.xlu1 %4855  ;;  %v5315_v59 = vperm.slane %v5249_v61, %v10068_v2  ;;  %v5382_v14 = vsel %vm5369_vm6, %v5313_v8, %v5381_v23 }
 0x5e3   : > { %v10296_v36 = vpop.xlane.xlu2 %4860  ;;  %v5112_v26 = vpack.c.bf16 %v4856_v52, %v4856_v52  ;;  %v5250_v38 = vunpack.c.l.b16 %v5110_v3  ;;  %v5383_v60 = vsel %vm5371_vm7, %v5314_v1, %v5382_v14  ;;  %v5317_v12 = vperm.slane %v5251_v35, %v10068_v2 }
 0x5e4   : > { %v10290_v40 = vpop.xlane.xlu0 %4865  ;;  %v5384_v46 = vsel %vm5373_vm8, %v5315_v59, %v5383_v60  ;;  %v5113_v7 = vpack.c.bf16 %v10296_v36, %v10296_v36 }
 0x5e5   : > { %v5252_v17 = vunpack.c.l.b16 %v5112_v26  ;;  %v5316_v10 = vperm.slane %v5250_v38, %v10068_v2  ;;  %v5114_v32 = vpack.c.bf16 %v10290_v40, %v10290_v40 }
 0x5e6   : > { %v5253_v39 = vunpack.c.l.b16 %v5113_v7 }
 0x5e7   : > { %5050 = vmax.xlane.f32.xlu1 %v5049_v45  ;;  %v5318_v9 = vperm.slane %v5252_v17, %v10068_v2  ;;  %v5385_v0 = vsel %vm5375_vm9, %v5316_v10, %v5384_v46  ;;  %v5254_v19 = vunpack.c.l.b16 %v5114_v32 }
 0x5e8   : > { %5090 = vmax.xlane.f32.xlu2 %v5089_v33  ;;  %v5386_v58 = vsel %vm5377_vm10, %v5317_v12, %v5385_v0 }
 0x5e9   : > { %5055 = vmax.xlane.f32.xlu0 %v5054_v42  ;;  %v5372_v42 = vsel %vm5371_vm7, %v5306_v41, %v5370_v13  ;;  %v5387_v56 = vsel %vm5379_vm11, %v5318_v9, %v5386_v58  ;;  %v5320_v5 = vperm.slane %v5254_v19, %v10068_v2  ;;  %v5319_v13 = vperm.slane %v5253_v39, %v10068_v2 }
 0x5ea   : > { %v4901_v25 = vpop.xlane.xlu1 %4900  ;;  %v5374_v44 = vsel %vm5373_vm8, %v5307_v18, %v5372_v42 }
 0x5eb   : > { %v4906_v33 = vpop.xlane.xlu2 %4905  ;;  %v5376_v45 = vsel %vm5375_vm9, %v5308_v31, %v5374_v44  ;;  %v5121_v29 = vpack.c.bf16 %v4901_v25, %v4901_v25 }
 0x5ec   : > { %v4871_v51 = vpop.xlane.xlu0 %4870  ;;  %v5378_v20 = vsel %vm5377_vm10, %v5309_v27, %v5376_v45  ;;  %v5122_v24 = vpack.c.bf16 %v4906_v33, %v4906_v33 }
 0x5ed   : > { %v5380_v43 = vsel %vm5379_vm11, %v5310_v48, %v5378_v20  ;;  %v5261_v37 = vunpack.c.l.b16 %v5121_v29  ;;  %v5388_v48 = vsel %vm5367_vm5, %v5320_v5, %v5319_v13 }
 0x5ee   : > { %v5430_v4 = vpack.c.b16 %v5387_v56, %v5380_v43  ;;  %v5262_v3 = vunpack.c.l.b16 %v5122_v24 }
 0x5ef   : > { %5095 = vmax.xlane.f32.xlu1 %v5094_v54  ;;  %v5115_v54 = vpack.c.bf16 %v4871_v51, %v4871_v51  ;;  %v5327_v41 = vperm.slane %v5261_v37, %v10068_v2 }
 0x5f0   : > { %v5328_v36 = vperm.slane %v5262_v3, %v10068_v2 }
 0x5f1   : > { %v5255_v1 = vunpack.c.l.b16 %v5115_v54 }
 0x5f2   : > { %v4911_v34 = vpop.xlane.xlu1 %4910  ;;  %v5395_v10 = vsel %vm5367_vm5, %v5328_v36, %v5327_v41 }
 0x5f3   : > { %v4876_v11 = vpop.xlane.xlu2 %4875  ;;  %v5123_v55 = vpack.c.bf16 %v4911_v34, %v4911_v34  ;;  %v5321_v42 = vperm.slane %v5255_v1, %v10068_v2 }
 0x5f4   : > { %v4916_v6 = vpop.xlane.xlu0 %4915  ;;  %v5116_v61 = vpack.c.bf16 %v4876_v11, %v4876_v11 }
 0x5f5   : > { %v5124_v16 = vpack.c.bf16 %v4916_v6, %v4916_v6  ;;  %v5263_v63 = vunpack.c.l.b16 %v5123_v55  ;;  %v5389_v6 = vsel %vm5369_vm6, %v5321_v42, %v5388_v48 }
 0x5f6   : > { %v5256_v15 = vunpack.c.l.b16 %v5116_v61 }
 0x5f7   : > { %v5264_v38 = vunpack.c.l.b16 %v5124_v16  ;;  %v5329_v53 = vperm.slane %v5263_v63, %v10068_v2 }
 0x5f8   : > { %v5322_v62 = vperm.slane %v5256_v15, %v10068_v2 }
 0x5f9   : > { %v5330_v31 = vperm.slane %v5264_v38, %v10068_v2  ;;  %v5396_v33 = vsel %vm5369_vm6, %v5329_v53, %v5395_v10 }
 0x5fa   : > { %v4881_v28 = vpop.xlane.xlu1 %4880  ;;  %v5390_v11 = vsel %vm5371_vm7, %v5322_v62, %v5389_v6 }
 0x5fb   : > { %v4921_v22 = vpop.xlane.xlu2 %4920  ;;  %v5117_v8 = vpack.c.bf16 %v4881_v28, %v4881_v28  ;;  %v5397_v34 = vsel %vm5371_vm7, %v5330_v31, %v5396_v33 }
 0x5fc   : > { %v4886_v30 = vpop.xlane.xlu0 %4885  ;;  %v5125_v52 = vpack.c.bf16 %v4921_v22, %v4921_v22 }
 0x5fd   : > { %v5118_v59 = vpack.c.bf16 %v4886_v30, %v4886_v30  ;;  %v5257_v49 = vunpack.c.l.b16 %v5117_v8 }
 0x5fe   : > { %v5265_v35 = vunpack.c.l.b16 %v5125_v52 }
 0x5ff   : > { %v5258_v46 = vunpack.c.l.b16 %v5118_v59  ;;  %v5323_v25 = vperm.slane %v5257_v49, %v10068_v2 }
 0x600   : > { %v5331_v27 = vperm.slane %v5265_v35, %v10068_v2 }
 0x601   : > { %v5324_v43 = vperm.slane %v5258_v46, %v10068_v2  ;;  %v5391_v30 = vsel %vm5373_vm8, %v5323_v25, %v5390_v11 }
 0x602   : > { %v4926_v57 = vpop.xlane.xlu1 %4925 }
 0x603   : > { %v4891_v21 = vpop.xlane.xlu2 %4890  ;;  %v5126_v40 = vpack.c.bf16 %v4926_v57, %v4926_v57  ;;  %v5392_v32 = vsel %vm5375_vm9, %v5324_v43, %v5391_v30 }
 0x604   : > { %v4931_v47 = vpop.xlane.xlu0 %4930  ;;  %v5119_v17 = vpack.c.bf16 %v4891_v21, %v4891_v21 }
 0x605   : > { %v5127_v14 = vpack.c.bf16 %v4931_v47, %v4931_v47  ;;  %v5266_v18 = vunpack.c.l.b16 %v5126_v40 }
 0x606   : > { %v5259_v44 = vunpack.c.l.b16 %v5119_v17 }
 0x607   : > { %v5267_v9 = vunpack.c.l.b16 %v5127_v14  ;;  %v5332_v0 = vperm.slane %v5266_v18, %v10068_v2 }
 0x608   : > { %v5325_v28 = vperm.slane %v5259_v44, %v10068_v2 }
 0x609   : > { %v5333_v22 = vperm.slane %v5267_v9, %v10068_v2 }
 0x60a   : > { %v4896_v23 = vpop.xlane.xlu1 %4895  ;;  %v5393_v29 = vsel %vm5377_vm10, %v5325_v28, %v5392_v32 }
 0x60b   : > { %v4936_v26 = vpop.xlane.xlu2 %4935  ;;  %v5120_v51 = vpack.c.bf16 %v4896_v23, %v4896_v23 }
 0x60c   : > { %v10340_v50 = vpop.xlane.xlu0 %4940  ;;  %v5128_v60 = vpack.c.bf16 %v4936_v26, %v4936_v26 }
 0x60d   : > { %v5260_v20 = vunpack.c.l.b16 %v5120_v51  ;;  %v5129_v26 = vpack.c.bf16 %v10340_v50, %v10340_v50 }
 0x60e   : > { %v5268_v58 = vunpack.c.l.b16 %v5128_v60 }
 0x60f   : > { %v5326_v57 = vperm.slane %v5260_v20, %v10068_v2  ;;  %v5269_v38 = vunpack.c.l.b16 %v5129_v26 }
 0x610   : > { %v5334_v21 = vperm.slane %v5268_v58, %v10068_v2 }
 0x611   : > { %5438 = vxpose.xlu2.c.b16.start [1/4] (short) (narrow) %v5430_v4, 16  ;;  %v5398_v4 = vsel %vm5373_vm8, %v5331_v27, %v5397_v34  ;;  %v5394_v54 = vsel %vm5379_vm11, %v5326_v57, %v5393_v29  ;;  %v5335_v31 = vperm.slane %v5269_v38, %v10068_v2 }
 0x612   : > { %v4946_v56 = vpop.xlane.xlu1 %4945  ;;  %v5399_v47 = vsel %vm5375_vm9, %v5332_v0, %v5398_v4 }
 0x613   : > { %v4981_v45 = vpop.xlane.xlu2 %4980  ;;  %v5400_v55 = vsel %vm5377_vm10, %v5333_v22, %v5399_v47  ;;  %v5130_v63 = vpack.c.bf16 %v4946_v56, %v4946_v56 }
 0x614   : > { %v4986_v12 = vpop.xlane.xlu0 %4985  ;;  %v5401_v19 = vsel %vm5379_vm11, %v5334_v21, %v5400_v55  ;;  %v5137_v40 = vpack.c.bf16 %v4981_v45, %v4981_v45 }
 0x615   : > { %v5431_v37 = vpack.c.b16 %v5401_v19, %v5394_v54  ;;  %v5138_v39 = vpack.c.bf16 %v4986_v12, %v4986_v12  ;;  %v5270_v23 = vunpack.c.l.b16 %v5130_v63 }
 0x616   : > { %v5277_v35 = vunpack.c.l.b16 %v5137_v40 }
 0x617   : > { %v5278_v59 = vunpack.c.l.b16 %v5138_v39  ;;  %v5336_v14 = vperm.slane %v5270_v23, %v10068_v2 }
 0x618   : > { %v5343_v12 = vperm.slane %v5277_v35, %v10068_v2 }
 0x619   : > { %v5344_v46 = vperm.slane %v5278_v59, %v10068_v2  ;;  %v5402_v25 = vsel %vm5367_vm5, %v5336_v14, %v5335_v31  ;;  %v5820_v14 = vld [vmem:[%s647_s24 + $0x10] sm:$0xff] }
 0x61a   : > { %v4951_v3 = vpop.xlane.xlu1 %4950 }
 0x61b   : > { %v4991_v7 = vpop.xlane.xlu2 %4990  ;;  %v5131_v8 = vpack.c.bf16 %v4951_v3, %v4951_v3  ;;  %v5409_v43 = vsel %vm5367_vm5, %v5344_v46, %v5343_v12 }
 0x61c   : > { %v4956_v24 = vpop.xlane.xlu0 %4955  ;;  %v5139_v1 = vpack.c.bf16 %v4991_v7, %v4991_v7 }
 0x61d   : > { %v5132_v5 = vpack.c.bf16 %v4956_v24, %v4956_v24  ;;  %v5271_v36 = vunpack.c.l.b16 %v5131_v8 }
 0x61e   : > { %v5279_v13 = vunpack.c.l.b16 %v5139_v1 }
 0x61f   : > { %v5272_v17 = vunpack.c.l.b16 %v5132_v5  ;;  %v5337_v50 = vperm.slane %v5271_v36, %v10068_v2 }
 0x620   : > { %v5345_v44 = vperm.slane %v5279_v13, %v10068_v2 }
 0x621   : > { %5439 = vxpose.xlu2.c.b16.cont [2/4] (short) (narrow) %v5431_v37, 16  ;;  %v5338_v9 = vperm.slane %v5272_v17, %v10068_v2  ;;  %v5403_v48 = vsel %vm5369_vm6, %v5337_v50, %v5402_v25 }
 0x622   : > { %v4996_v52 = vpop.xlane.xlu1 %4995  ;;  %v5410_v30 = vsel %vm5369_vm6, %v5345_v44, %v5409_v43 }
 0x623   : > { %v4961_v61 = vpop.xlane.xlu2 %4960  ;;  %v5140_v15 = vpack.c.bf16 %v4996_v52, %v4996_v52  ;;  %v5404_v28 = vsel %vm5371_vm7, %v5338_v9, %v5403_v48 }
 0x624   : > { %v5001_v16 = vpop.xlane.xlu0 %5000  ;;  %v5133_v41 = vpack.c.bf16 %v4961_v61, %v4961_v61 }
 0x625   : > { %v5141_v18 = vpack.c.bf16 %v5001_v16, %v5001_v16  ;;  %v5280_v62 = vunpack.c.l.b16 %v5140_v15 }
 0x626   : > { %v5273_v51 = vunpack.c.l.b16 %v5133_v41 }
 0x627   : > { %v5281_v45 = vunpack.c.l.b16 %v5141_v18  ;;  %v5346_v20 = vperm.slane %v5280_v62, %v10068_v2 }
 0x628   : > { %v5339_v0 = vperm.slane %v5273_v51, %v10068_v2  ;;  %v5819_v51 = vld [vmem:[%s647_s24 + $0x8] sm:$0xff] }
 0x629   : > { %v5347_v22 = vperm.slane %v5281_v45, %v10068_v2  ;;  %v5411_v55 = vsel %vm5371_vm7, %v5346_v20, %v5410_v30 }
 0x62a   : > { %v4966_v60 = vpop.xlane.xlu1 %4965  ;;  %v5405_v57 = vsel %vm5373_vm8, %v5339_v0, %v5404_v28 }
 0x62b   : > { %v5006_v49 = vpop.xlane.xlu2 %5005  ;;  %v5134_v10 = vpack.c.bf16 %v4966_v60, %v4966_v60  ;;  %v5412_v61 = vsel %vm5373_vm8, %v5347_v22, %v5411_v55 }
 0x62c   : > { %v4971_v53 = vpop.xlane.xlu0 %4970  ;;  %v5142_v33 = vpack.c.bf16 %v5006_v49, %v5006_v49  ;;  %v5821_v49 = vld [vmem:[%s647_s24 + $0x18] sm:$0xff] }
 0x62d   : > { %v5135_v42 = vpack.c.bf16 %v4971_v53, %v4971_v53  ;;  %v5274_v27 = vunpack.c.l.b16 %v5134_v10  ;;  %5485 = vmatpush.bf16.msrb.mxu0 %v5821_v49 }
 0x62e   : > { %v5282_v56 = vunpack.c.l.b16 %v5142_v33 }
 0x62f   : > { %v5275_v58 = vunpack.c.l.b16 %v5135_v42  ;;  %v5340_v6 = vperm.slane %v5274_v27, %v10068_v2  ;;  %v5818_v27 = vld [vmem:[%s647_s24] sm:$0xff] }
 0x630   : > { %v5348_v7 = vperm.slane %v5282_v56, %v10068_v2 }
 0x631   : > { %v5341_v32 = vperm.slane %v5275_v58, %v10068_v2  ;;  %v5406_v19 = vsel %vm5375_vm9, %v5340_v6, %v5405_v57  ;;  %5486 = vmatpush.bf16.msrb.mxu0 %v5820_v14 }
 0x632   : > { %v5011_v21 = vpop.xlane.xlu1 %5010  ;;  %v5413_v8 = vsel %vm5375_vm9, %v5348_v7, %v5412_v61 }
 0x633   : > { %v4976_v4 = vpop.xlane.xlu2 %4975  ;;  %v5143_v29 = vpack.c.bf16 %v5011_v21, %v5011_v21  ;;  %v5407_v63 = vsel %vm5377_vm10, %v5341_v32, %v5406_v19 }
 0x634   : > { %v5016_v11 = vpop.xlane.xlu0 %5015  ;;  %v5136_v47 = vpack.c.bf16 %v4976_v4, %v4976_v4 }
 0x635   : > { %v5144_v34 = vpack.c.bf16 %v5016_v11, %v5016_v11  ;;  %v5283_v3 = vunpack.c.l.b16 %v5143_v29  ;;  %5487 = vmatpush.bf16.msrb.mxu0 %v5819_v51 }
 0x636   : > { %v5276_v54 = vunpack.c.l.b16 %v5136_v47 }
 0x637   : > { %v5284_v24 = vunpack.c.l.b16 %v5144_v34  ;;  %v5349_v52 = vperm.slane %v5283_v3, %v10068_v2 }
 0x638   : > { %v5342_v16 = vperm.slane %v5276_v54, %v10068_v2 }
 0x639   : > { %v5350_v37 = vperm.slane %v5284_v24, %v10068_v2  ;;  %v5414_v40 = vsel %vm5377_vm10, %v5349_v52, %v5413_v8  ;;  %5488 = vmatpush.bf16.msrb.mxu0 %v5818_v27 }
 0x63a   : > { %v5408_v26 = vsel %vm5379_vm11, %v5342_v16, %v5407_v63  ;;  %v5021_v5 = vpop.xlane.xlu1 %5020 }
 0x63b   : > { %v5026_v23 = vpop.xlane.xlu2 %5025  ;;  %v5415_v1 = vsel %vm5379_vm11, %v5350_v37, %v5414_v40  ;;  %v5145_v60 = vpack.c.bf16 %v5021_v5, %v5021_v5 }
 0x63c   : > { %v5061_v39 = vpop.xlane.xlu0 %5060  ;;  %v5432_v36 = vpack.c.b16 %v5415_v1, %v5408_v26  ;;  %v5146_v18 = vpack.c.bf16 %v5026_v23, %v5026_v23 }
 0x63d   : > { %v5153_v31 = vpack.c.bf16 %v5061_v39, %v5061_v39  ;;  %v5285_v46 = vunpack.c.l.b16 %v5145_v60 }
 0x63e   : > { %5440 = vxpose.xlu2.c.b16.cont [3/4] (short) (narrow) %v5432_v36, 16  ;;  %v5286_v33 = vunpack.c.l.b16 %v5146_v18 }
 0x63f   : > { %v5293_v0 = vunpack.c.l.b16 %v5153_v31  ;;  %v5351_v11 = vperm.slane %v5285_v46, %v10068_v2 }
 0x640   : > { %v5352_v6 = vperm.slane %v5286_v33, %v10068_v2  ;;  %v5846_v33 = vld [vmem:[%s652_s28] ss:$0 sm:$0xff] }
 0x641   : > { %v5359_v29 = vperm.slane %v5293_v0, %v10068_v2 }
 0x642   : > { %v5066_v15 = vpop.xlane.xlu1 %5065  ;;  %v5416_v37 = vsel %vm5367_vm5, %v5352_v6, %v5351_v11 }
 0x643   : > { %v5031_v38 = vpop.xlane.xlu2 %5030  ;;  %v5154_v42 = vpack.c.bf16 %v5066_v15, %v5066_v15 }
 0x644   : > { %v5071_v41 = vpop.xlane.xlu0 %5070  ;;  %v5147_v10 = vpack.c.bf16 %v5031_v38, %v5031_v38 }
 0x645   : > { %v5155_v12 = vpack.c.bf16 %v5071_v41, %v5071_v41  ;;  %v5294_v25 = vunpack.c.l.b16 %v5154_v42 }
 0x646   : > { %v5287_v44 = vunpack.c.l.b16 %v5147_v10 }
 0x647   : > { %v5295_v43 = vunpack.c.l.b16 %v5155_v12  ;;  %v5360_v30 = vperm.slane %v5294_v25, %v10068_v2 }
 0x648   : > { %v5353_v21 = vperm.slane %v5287_v44, %v10068_v2 }
 0x649   : > { %v5361_v54 = vperm.slane %v5295_v43, %v10068_v2  ;;  %v5423_v16 = vsel %vm5367_vm5, %v5360_v30, %v5359_v29 }
 0x64a   : > { %v5036_v35 = vpop.xlane.xlu1 %5035  ;;  %v5417_v52 = vsel %vm5369_vm6, %v5353_v21, %v5416_v37 }
 0x64b   : > { %v5076_v59 = vpop.xlane.xlu2 %5075  ;;  %v5148_v62 = vpack.c.bf16 %v5036_v35, %v5036_v35  ;;  %v5424_v1 = vsel %vm5369_vm6, %v5361_v54, %v5423_v16 }
 0x64c   : > { %v5041_v53 = vpop.xlane.xlu0 %5040  ;;  %v5156_v9 = vpack.c.bf16 %v5076_v59, %v5076_v59 }
 0x64d   : > { %v5149_v45 = vpack.c.bf16 %v5041_v53, %v5041_v53  ;;  %v5288_v58 = vunpack.c.l.b16 %v5148_v62 }
 0x64e   : > { %v5296_v22 = vunpack.c.l.b16 %v5156_v9 }
 0x64f   : > { %v5289_v57 = vunpack.c.l.b16 %v5149_v45  ;;  %v5354_v55 = vperm.slane %v5288_v58, %v10068_v2 }
 0x650   : > { %v5362_v61 = vperm.slane %v5296_v22, %v10068_v2 }
 0x651   : > { %v5355_v8 = vperm.slane %v5289_v57, %v10068_v2  ;;  %v5418_v40 = vsel %vm5371_vm7, %v5354_v55, %v5417_v52 }
 0x652   : > { %v5081_v50 = vpop.xlane.xlu1 %5080  ;;  %v5425_v38 = vsel %vm5371_vm7, %v5362_v61, %v5424_v1 }
 0x653   : > { %v5046_v13 = vpop.xlane.xlu2 %5045  ;;  %v5157_v48 = vpack.c.bf16 %v5081_v50, %v5081_v50  ;;  %v5419_v59 = vsel %vm5373_vm8, %v5355_v8, %v5418_v40 }
 0x654   : > { %v5086_v17 = vpop.xlane.xlu0 %5085  ;;  %v5150_v20 = vpack.c.bf16 %v5046_v13, %v5046_v13 }
 0x655   : > { %v5158_v28 = vpack.c.bf16 %v5086_v17, %v5086_v17  ;;  %v5297_v32 = vunpack.c.l.b16 %v5157_v48 }
 0x656   : > { %v5290_v7 = vunpack.c.l.b16 %v5150_v20 }
 0x657   : > { %v5298_v63 = vunpack.c.l.b16 %v5158_v28  ;;  %v5363_v26 = vperm.slane %v5297_v32, %v10068_v2 }
 0x658   : > { %v5356_v23 = vperm.slane %v5290_v7, %v10068_v2 }
 0x659   : > { %v5364_v15 = vperm.slane %v5298_v63, %v10068_v2  ;;  %v5426_v35 = vsel %vm5373_vm8, %v5363_v26, %v5425_v38 }
 0x65a   : > { %v5051_v4 = vpop.xlane.xlu1 %5050  ;;  %v5420_v14 = vsel %vm5375_vm9, %v5356_v23, %v5419_v59 }
 0x65b   : > { %v5091_v56 = vpop.xlane.xlu2 %5090  ;;  %v5151_v47 = vpack.c.bf16 %v5051_v4, %v5051_v4  ;;  %v5427_v60 = vsel %vm5375_vm9, %v5364_v15, %v5426_v35 }
 0x65c   : > { %v5056_v34 = vpop.xlane.xlu0 %5055  ;;  %v5159_v24 = vpack.c.bf16 %v5091_v56, %v5091_v56 }
 0x65d   : > { %v5152_v19 = vpack.c.bf16 %v5056_v34, %v5056_v34  ;;  %v5291_v3 = vunpack.c.l.b16 %v5151_v47 }
 0x65e   : > { %v5299_v39 = vunpack.c.l.b16 %v5159_v24 }
 0x65f   : > { %v5292_v5 = vunpack.c.l.b16 %v5152_v19  ;;  %v5357_v36 = vperm.slane %v5291_v3, %v10068_v2 }
 0x660   : > { %v5365_v49 = vperm.slane %v5299_v39, %v10068_v2 }
 0x661   : > { %v5358_v17 = vperm.slane %v5292_v5, %v10068_v2  ;;  %v5421_v18 = vsel %vm5377_vm10, %v5357_v36, %v5420_v14 }
 0x662   : > { %v5096_v41 = vpop.xlane.xlu1 %5095  ;;  %v5428_v51 = vsel %vm5377_vm10, %v5365_v49, %v5427_v60 }
 0x663   : > { %v5160_v53 = vpack.c.bf16 %v5096_v41, %v5096_v41  ;;  %v5422_v10 = vsel %vm5379_vm11, %v5358_v17, %v5421_v18 }
 0x665   : > { %v5300_v13 = vunpack.c.l.b16 %v5160_v53 }
 0x667   : > { %v5366_v50 = vperm.slane %v5300_v13, %v10068_v2 }
 0x669   : > { %v5429_v42 = vsel %vm5379_vm11, %v5366_v50, %v5428_v51 }
 0x66a   : > { %v5433_v31 = vpack.c.b16 %v5429_v42, %v5422_v10 }
 0x66c   : > { %5441 = vxpose.xlu2.c.b16.end [4/4] (short) (narrow) %v5433_v31, 16 }
 0x6dd   : > { %v5446_v62 = vpop.trf.xlu2 }
 0x6de   : > { %5796 = vmatmul.msk.bf16.vlgmr.msrb.gmra.mxu0 %vm1171_vm2, %v5446_v62 }
 0x75b   : > { %v5490_v46 = vpop.f32.mrf.mxu0 }
 0x75c   : > { %v5491_v12 = vadd.f32 %v5846_v33, %v5490_v46 }
 0x75e   : > { %v5494_v2 = vmul.f32 %v5491_v12, %v5491_v12 }
 0x760   : > { %v5496_v27 = vsel %vm5495_vm12, %v5494_v2, 0.0 }
 0x761   : > { %5497 = vadd.xlane.f32.xlu0 %v5496_v27 }
 0x763   : > { %v5492_v25 = vpop.f32.mrf.mxu0 }
 0x7d4   : > { %v5498_v9 = vpop.xlane.xlu0 %5497 }
 0x7d5   : > { %v5499_v44 = vmax.f32 %v5498_v9, 1e-24 }
 0x7d7   : > { %6105 = vrsqrt.f32 %v5499_v44  ;;  %vm5506_vm14 = vweird.f32 %v5499_v44 }
 0x7dd   : > { %v6106_v45 = vpop.eup %6105 }
 0x7de   : > { %v5501_v48 = vmul.f32 %v6106_v45, %v5499_v44  ;;  %vm5507_vm13 = vweird.f32 %v6106_v45 }
 0x7df   : > { %vm5508_vm15 = vmor %vm5506_vm14, %vm5507_vm13 }
 0x7e0   : > { %v5502_v0 = vmul.f32 %v6106_v45, %v5501_v48 }
 0x7e2   : > { %v5503_v58 = vmul.f32 0.5, %v5502_v0 }
 0x7e4   : > { %v5504_v20 = vsub.f32 1.5, %v5503_v58 }
 0x7e6   : > { %v5505_v56 = vmul.f32 %v6106_v45, %v5504_v20 }
 0x7e8   : > { %v5509_v6 = vsel %vm5508_vm15, %v6106_v45, %v5505_v56 }
 0x7e9   : > { %v5510_v11 = vmul.f32 %v5509_v6, %v5491_v12 }
 0x7eb   : > { %5511 = vst.msk [vmem:[%s657_s14] sm:$0x3] %vm5495_vm12, %v5510_v11 }
 0x7ec PF: > { %s30_s25 = sadd.s32 1, %s6127_s25  }
 0x7ed   : > { %p27_p0 = scmp.ge.s32.totalorder %s30_s25, 5  }
 0x7ef   :  { %29 = sbr.rel (!%p27_p0) target bundleno = 7 (0x7), region = 124 }

</bundles_post_ra>
